<compile_context>
chip_gen: v7x
topology: tpu7x:2x2x1
jax: 0.10.0
libtpu: 0.0.40
codegen_flags: <defaults>
</compile_context>

<pallas_src>
import functools

import jax
import jax.numpy as jnp
from jax import lax
from jax.experimental import pallas as pl
from jax.experimental.pallas import tpu as pltpu


def _conv2d_nn_attn_kernel(x_ref, wkqvT_ref, convw_ref, convb_ref, woT_ref,
                           out_ref, kqv_ref, acc_ref, *, K, Cp, C_out_p, Bb):
    T = x_ref.shape[1]
    mm = wkqvT_ref.dtype                     # matmul-operand dtype (bf16 or f32)

    # ---- fused K/Q/V projection: ONE (Bb*Cp, T) x (T, 3T) MXU call --------------
    kqv_ref[...] = jnp.dot(x_ref[...], wkqvT_ref[...],
                           preferred_element_type=jnp.float32)       # (Bb*Cp, 3T) f32

    eps2 = jnp.float32(1e-24)                # (F.normalize eps=1e-12)^2
    hi_mask = jnp.int32(-65536)              # 0xFFFF0000
    lo_mask = jnp.int32(0xFFFF)
    # inverted column index: larger == smaller j  (first-occurrence tie-break)
    col_inv = jnp.int32(T - 1) - lax.broadcasted_iota(jnp.int32, (T, T), 1)
    conv_w = convw_ref[...]                  # (C_out_p, K*Cp), mm dtype

    def per_image(b, carry):
        row = pl.multiple_of(b * Cp, 8)
        kqv_b = kqv_ref[pl.ds(row, Cp), :]                            # (Cp, 3T) f32
        kb = kqv_b[:, 0:T]
        qb = kqv_b[:, T:2 * T]
        vb = kqv_b[:, 2 * T:3 * T]

        # F.normalize(p=2, dim=1) over channels; rsqrt goes to the EUP slot.
        k_n = kb * lax.rsqrt(jnp.maximum(jnp.sum(kb * kb, axis=0, keepdims=True), eps2))
        q_n = qb * lax.rsqrt(jnp.maximum(jnp.sum(qb * qb, axis=0, keepdims=True), eps2))

        # sim[i, j] = sum_c k_n[c, i] * q_n[c, j]; bf16 operands -> native MXU pass.
        sim = lax.dot_general(k_n.astype(mm), q_n.astype(mm),
                              (((0,), (0,)), ((), ())),
                              preferred_element_type=jnp.float32)     # (T, T) f32

        # clamp(min=0) + pack into one comparable int32 key:
        #   [ sim high 16 bits | (T-1-j) ]  -> a single jnp.max == (max val, first idx).
        bits = jnp.maximum(pltpu.bitcast(sim, jnp.int32), 0)          # negatives -> +0
        packed = (bits & hi_mask) | col_inv

        vb_mm = vb.astype(mm)
        gathered = []
        for kk in range(K):                                           # K static -> unrolled
            best = jnp.max(packed, axis=-1, keepdims=True)            # (T, 1): one reduce
            sel = col_inv == (best & lo_mask)                         # one-hot rows (T, T)
            # prime_kk[c, t] = v[c, argmax_t]   (gather as a one-hot MXU matmul)
            gathered.append(lax.dot_general(vb_mm, sel.astype(mm),
                                            (((1,), (1,)), ((), ())),
                                            preferred_element_type=jnp.float32))
            if kk + 1 < K:
                packed = jnp.where(sel, jnp.int32(-1), packed)

        # Stack the K gathers -> (K*Cp, T) slab, then ONE conv matmul (bias hoisted).
        slab = jnp.concatenate(gathered, axis=0).astype(mm)
        orow = pl.multiple_of(b * C_out_p, 8)
        acc_ref[pl.ds(orow, C_out_p), :] = jnp.dot(
            conv_w, slab, preferred_element_type=jnp.float32)
        return carry

    lax.fori_loop(0, Bb, per_image, 0, unroll=(Bb <= 2))

    # Bias added once for the whole batch block, then ONE (Bb*C_out_p, T) x (T, T)
    # w_o matmul. Output tokens are lane-dense (T multiple of 128 in the demo).
    acc = acc_ref[...] + convb_ref[...]
    out_ref[...] = jnp.dot(acc.astype(mm), woT_ref[...],
                           preferred_element_type=jnp.float32).astype(out_ref.dtype)


def _round_up(n, m):
    return ((n + m - 1) // m) * m


def _pad_axis(a, target, axis):
    pad = target - a.shape[axis]
    if pad <= 0:
        return a
    widths = [(0, 0)] * a.ndim
    widths[axis] = (0, pad)
    return jnp.pad(a, widths)


def _pick_batch_block(B, rows_per_image, *, target_rows=256, min_grid_steps=2):
    """Largest Bb with Bb*rows_per_image <= target_rows (fills the MXU M dim) while
    keeping >= min_grid_steps grid steps (so v7x's 2 TensorCores both get work)."""
    divisors = [d for d in range(1, B + 1) if B % d == 0]
    cap = max(1, target_rows // max(rows_per_image, 1))
    good = [d for d in divisors if d <= cap and B // d >= min_grid_steps]
    if not good:
        good = [d for d in divisors if d <= cap] or [1]
    return max(good)


def _weight_spec(shape, single_buffered):
    index_map = lambda g: (0,) * len(shape)
    if single_buffered:
        # Constant-index weights need no double buffering; halves their VMEM
        # (required headroom for large-T scaling inside v7x's 64 MiB VMEM).
        return pl.BlockSpec(shape, index_map, pipeline_mode=pl.Buffered(1))
    return pl.BlockSpec(shape, index_map)


def conv2d_nn_attn(x, params, K, *, use_bf16_matmul=True,
                   target_mxu_rows=256, min_grid_steps=2):
    """x: (B, C_in, H, W) NCHW (same as the PyTorch module). Returns (B, C_out, H, W)."""
    B, C_in, H, W = x.shape
    T = H * W
    assert T <= 65536, "packed top-K key uses a 16-bit index field"
    conv_w = params["conv_w"]                      # (C_out, C_in, K) torch Conv1d layout
    C_out = conv_w.shape[0]
    out_dtype = x.dtype
    mm_dtype = jnp.bfloat16 if use_bf16_matmul else jnp.float32

    # Pad channels to a sublane multiple so every row block / slice is (8,128)-aligned.
    Cp = _round_up(C_in, 8)
    Cop = _round_up(C_out, 8)

    # Channel-padded, token-flattened input as a 2D (B*Cp, T) slab, already in the
    # matmul dtype (cast in the wrapper -> halves the x DMA, no in-kernel cast pass).
    x2d = _pad_axis(x.reshape(B, C_in, T), Cp, axis=1).reshape(B * Cp, T).astype(mm_dtype)

    # Fused projection weight: Linear(y = x @ W^T) for k|q|v  ->  (T, 3T).
    wkqvT = jnp.concatenate(
        [params["w_k"].T, params["w_q"].T, params["w_v"].T], axis=1).astype(mm_dtype)
    woT = params["w_o"].T.astype(mm_dtype)
    # Conv1d weight (C_out, C_in, K) -> (Cop, K*Cp), matching slab rows kk*Cp + c.
    cw = _pad_axis(jnp.transpose(conv_w, (0, 2, 1)), Cp, axis=2).reshape(C_out, K * Cp)
    cw = _pad_axis(cw, Cop, axis=0).astype(mm_dtype)

    Bb = _pick_batch_block(B, Cp, target_rows=target_mxu_rows,
                           min_grid_steps=min_grid_steps)
    grid = (B // Bb,)

    # Bias pre-tiled to the batch block so the kernel adds it exactly once.
    conv_b = _pad_axis(params["conv_b"].reshape(C_out, 1), Cop, axis=0)
    conv_b_blk = jnp.tile(conv_b, (Bb, 1)).astype(jnp.float32)        # (Bb*Cop, 1)

    kernel = functools.partial(_conv2d_nn_attn_kernel,
                               K=K, Cp=Cp, C_out_p=Cop, Bb=Bb)

    # Advisory cost estimate so XLA schedules around the custom call.
    flops = int(B * (2 * Cp * T * 3 * T              # fused kqv projection
                     + 2 * Cp * T * T                # similarity matrix
                     + K * 2 * Cp * T * T            # K one-hot gathers
                     + 2 * Cop * K * Cp * T          # conv matmul
                     + 2 * Cop * T * T))             # w_o
    transcendentals = int(B * 2 * T)                 # rsqrt per token (k and q)
    bytes_accessed = int(x2d.size * x2d.dtype.itemsize
                         + wkqvT.size * wkqvT.dtype.itemsize
                         + woT.size * woT.dtype.itemsize
                         + cw.size * cw.dtype.itemsize + conv_b_blk.size * 4
                         + B * Cop * T * jnp.dtype(out_dtype).itemsize)
    cost = pl.CostEstimate(flops=flops, transcendentals=transcendentals,
                           bytes_accessed=bytes_accessed)

    def run(single_buffer_weights):
        return pl.pallas_call(
            kernel,
            out_shape=jax.ShapeDtypeStruct((B * Cop, T), out_dtype),
            grid=grid,
            in_specs=[
                pl.BlockSpec((Bb * Cp, T), lambda g: (g, 0)),         # batch-blocked x
                _weight_spec((T, 3 * T), single_buffer_weights),      # [Wk^T|Wq^T|Wv^T]
                _weight_spec((Cop, K * Cp), single_buffer_weights),   # conv1d weight slab
                _weight_spec((Bb * Cop, 1), single_buffer_weights),   # conv1d bias (tiled)
                _weight_spec((T, T), single_buffer_weights),          # Wo^T
            ],
            out_specs=pl.BlockSpec((Bb * Cop, T), lambda g: (g, 0)),
            scratch_shapes=[
                pltpu.VMEM((Bb * Cp, 3 * T), jnp.float32),    # fused kqv slab
                pltpu.VMEM((Bb * Cop, T), jnp.float32),       # conv accumulator
            ],
            compiler_params=pltpu.CompilerParams(
                dimension_semantics=("parallel",)),
            cost_estimate=cost,
        )(x2d, wkqvT, cw, conv_b_blk, woT)

    try:
        out2d = run(True)
    except Exception:
        # pl.Buffered(1) not supported by this JAX build -> default double buffering.
        out2d = run(False)

    out = out2d.reshape(B, Cop, T)[:, :C_out, :]
    return out.reshape(B, C_out, H, W)


if __name__ == "__main__":
    # Module hyper-parameters (consistent with the asserts in __init__):
    #   in_channels=4, out_channels=8, K=stride=3, sampling_type='all', num_samples=-1,
    #   shuffle_pattern='NA', magnitude_type='similarity', img_size=(16, 16).
    # H=W=16 -> T=256, a multiple of 128, so every token dim is lane-dense.
    B, C_in, C_out, H, W, K = 2, 4, 8, 16, 16, 3
    T = H * W

    key = jax.random.PRNGKey(0)
    kx, kk_, kq_, kv_, ko_, kc_, kb_ = jax.random.split(key, 7)

    x = jax.random.normal(kx, (B, C_in, H, W), jnp.float32)

    lin_scale = (1.0 / T) ** 0.5
    conv_scale = (1.0 / (C_in * K)) ** 0.5
    params = {
        "w_k": jax.random.normal(kk_, (T, T), jnp.float32) * lin_scale,
        "w_q": jax.random.normal(kq_, (T, T), jnp.float32) * lin_scale,
        "w_v": jax.random.normal(kv_, (T, T), jnp.float32) * lin_scale,
        "w_o": jax.random.normal(ko_, (T, T), jnp.float32) * lin_scale,
        "conv_w": jax.random.normal(kc_, (C_out, C_in, K), jnp.float32) * conv_scale,
        "conv_b": jax.random.normal(kb_, (C_out,), jnp.float32) * conv_scale,
    }

    y = conv2d_nn_attn(x, params, K)
    jax.block_until_ready(y)
    assert y.shape == (B, C_out, H, W), y.shape
    assert bool(jnp.all(jnp.isfinite(y)))
    print("KERNEL_OK")
</pallas_src>

<mosaic_0001>
module attributes {stable_mosaic.version = 11 : i64} {
  func.func @_conv2d_nn_attn_kernel(%arg0: i32, %arg1: memref<8x256xbf16, #tpu.memory_space<vmem>>, %arg2: memref<256x768xbf16, #tpu.memory_space<vmem>>, %arg3: memref<8x24xbf16, #tpu.memory_space<vmem>>, %arg4: memref<8x1xf32, #tpu.memory_space<vmem>>, %arg5: memref<256x256xbf16, #tpu.memory_space<vmem>>, %arg6: memref<8x256xf32, #tpu.memory_space<vmem>>, %arg7: memref<8x768xf32, #tpu.memory_space<vmem>>, %arg8: memref<8x256xf32, #tpu.memory_space<vmem>>) attributes {dimension_semantics = [#tpu.dimension_semantics<parallel>], iteration_bounds = array<i64: 2>, scalar_prefetch = 0 : i64, scratch_operands = 2 : i64, tpu.core_type = #tpu.core_type<tc>, window_params = [{transform_indices = @transform_0, window_bounds = array<i64: 8, 256>}, {pipeline_mode = #tpu.pipeline_mode<synchronous>, transform_indices = @transform_1, window_bounds = array<i64: 256, 768>}, {pipeline_mode = #tpu.pipeline_mode<synchronous>, transform_indices = @transform_2, window_bounds = array<i64: 8, 24>}, {pipeline_mode = #tpu.pipeline_mode<synchronous>, transform_indices = @transform_3, window_bounds = array<i64: 8, 1>}, {pipeline_mode = #tpu.pipeline_mode<synchronous>, transform_indices = @transform_4, window_bounds = array<i64: 256, 256>}, {transform_indices = @transform_5, window_bounds = array<i64: 8, 256>}]} {
    %c0 = arith.constant 0 : index
    %c0_0 = arith.constant 0 : index
    %0 = vector.load %arg1[%c0, %c0_0] : memref<8x256xbf16, #tpu.memory_space<vmem>>, vector<8x256xbf16>
    %c0_1 = arith.constant 0 : index
    %c0_2 = arith.constant 0 : index
    %1 = vector.load %arg2[%c0_1, %c0_2] : memref<256x768xbf16, #tpu.memory_space<vmem>>, vector<256x768xbf16>
    %cst = arith.constant dense<0.000000e+00> : vector<8x768xf32>
    %2 = tpu.matmul %0, %1, %cst {dimension_numbers = #tpu.dot_dimension_numbers<[1], [0], [0], [1], [0, 0, 1, 1], [], []>} : vector<8x256xbf16>, vector<256x768xbf16>, vector<8x768xf32> -> vector<8x768xf32>
    %c0_3 = arith.constant 0 : index
    %c0_4 = arith.constant 0 : index
    %3 = vector.load %arg7[%c0_3, %c0_4] : memref<8x768xf32, #tpu.memory_space<vmem>>, vector<8x768xf32>
    tpu.vector_store %arg7[%c0_3, %c0_4], %2 {strides = array<i32>} : memref<8x768xf32, #tpu.memory_space<vmem>>, vector<8x768xf32>,
    %4 = tpu.iota {dimensions = array<i32: 1>} : vector<256x256xi32>
    %c255_i32 = arith.constant 255 : i32
    %5 = vector.broadcast %c255_i32 : i32 to vector<256x256xi32>
    %6 = arith.subi %5, %4 : vector<256x256xi32>
    %c0_5 = arith.constant 0 : index
    %c0_6 = arith.constant 0 : index
    %7 = vector.load %arg3[%c0_5, %c0_6] : memref<8x24xbf16, #tpu.memory_space<vmem>>, vector<8x24xbf16>
    %cst_7 = arith.constant 1.000000e-24 : f32
    %c-65536_i32 = arith.constant -65536 : i32
    %c65535_i32 = arith.constant 65535 : i32
    %c0_i32 = arith.constant 0 : i32
    %c8_i32 = arith.constant 8 : i32
    %8 = arith.muli %c0_i32, %c8_i32 : i32
    %9 = tpu.assume_multiple %8, 8 : i32
    %10 = arith.index_cast %9 : i32 to index
    %c0_8 = arith.constant 0 : index
    %11 = vector.load %arg7[%10, %c0_8] : memref<8x768xf32, #tpu.memory_space<vmem>>, vector<8x768xf32>
    %12 = vector.extract_strided_slice %11 {offsets = [0, 0], sizes = [8, 256], strides = [1, 1]} : vector<8x768xf32> to vector<8x256xf32>
    %13 = vector.extract_strided_slice %11 {offsets = [0, 256], sizes = [8, 256], strides = [1, 1]} : vector<8x768xf32> to vector<8x256xf32>
    %14 = vector.extract_strided_slice %11 {offsets = [0, 512], sizes = [8, 256], strides = [1, 1]} : vector<8x768xf32> to vector<8x256xf32>
    %15 = arith.mulf %12, %12 : vector<8x256xf32>
    %cst_9 = arith.constant dense<0.000000e+00> : vector<256xf32>
    %16 = vector.multi_reduction <add>, %15, %cst_9 [0] : vector<8x256xf32> to vector<256xf32>
    %17 = vector.shape_cast %16 : vector<256xf32> to vector<1x256xf32>
    %18 = vector.broadcast %cst_7 : f32 to vector<1x256xf32>
    %19 = arith.maximumf %17, %18 : vector<1x256xf32>
    %20 = math.rsqrt %19 : vector<1x256xf32>
    %21 = vector.broadcast %20 : vector<1x256xf32> to vector<8x256xf32>
    %22 = arith.mulf %12, %21 : vector<8x256xf32>
    %23 = arith.mulf %13, %13 : vector<8x256xf32>
    %cst_10 = arith.constant dense<0.000000e+00> : vector<256xf32>
    %24 = vector.multi_reduction <add>, %23, %cst_10 [0] : vector<8x256xf32> to vector<256xf32>
    %25 = vector.shape_cast %24 : vector<256xf32> to vector<1x256xf32>
    %26 = vector.broadcast %cst_7 : f32 to vector<1x256xf32>
    %27 = arith.maximumf %25, %26 : vector<1x256xf32>
    %28 = math.rsqrt %27 : vector<1x256xf32>
    %29 = vector.broadcast %28 : vector<1x256xf32> to vector<8x256xf32>
    %30 = arith.mulf %13, %29 : vector<8x256xf32>
    %31 = arith.truncf %22 : vector<8x256xf32> to vector<8x256xbf16>
    %32 = arith.truncf %30 : vector<8x256xf32> to vector<8x256xbf16>
    %cst_11 = arith.constant dense<0.000000e+00> : vector<256x256xf32>
    %33 = tpu.matmul %31, %32, %cst_11 {dimension_numbers = #tpu.dot_dimension_numbers<[0], [0], [1], [1], [0, 1, 1, 1], [], []>} : vector<8x256xbf16>, vector<8x256xbf16>, vector<256x256xf32> -> vector<256x256xf32>
    %34 = tpu.bitcast %33 : vector<256x256xf32> -> vector<256x256xi32>
    %c0_i32_12 = arith.constant 0 : i32
    %35 = vector.broadcast %c0_i32_12 : i32 to vector<256x256xi32>
    %36 = arith.maxsi %34, %35 : vector<256x256xi32>
    %37 = vector.broadcast %c-65536_i32 : i32 to vector<256x256xi32>
    %38 = arith.andi %36, %37 : vector<256x256xi32>
    %39 = arith.ori %38, %6 : vector<256x256xi32>
    %40 = arith.truncf %14 : vector<8x256xf32> to vector<8x256xbf16>
    %cst_13 = arith.constant dense<-2147483648> : vector<256xi32>
    %41 = vector.multi_reduction <maxsi>, %39, %cst_13 [1] : vector<256x256xi32> to vector<256xi32>
    %42 = vector.shape_cast %41 : vector<256xi32> to vector<256x1xi32>
    %43 = vector.broadcast %c65535_i32 : i32 to vector<256x1xi32>
    %44 = arith.andi %42, %43 : vector<256x1xi32>
    %45 = vector.broadcast %44 : vector<256x1xi32> to vector<256x256xi32>
    %46 = arith.cmpi eq, %6, %45 : vector<256x256xi32>
    %47 = arith.extui %46 : vector<256x256xi1> to vector<256x256xi32>
    %48 = arith.sitofp %47 : vector<256x256xi32> to vector<256x256xf32>
    %49 = arith.truncf %48 : vector<256x256xf32> to vector<256x256xbf16>
    %cst_14 = arith.constant dense<0.000000e+00> : vector<8x256xf32>
    %50 = tpu.matmul %40, %49, %cst_14 {dimension_numbers = #tpu.dot_dimension_numbers<[1], [1], [0], [0], [0, 0, 1, 0], [], []>} : vector<8x256xbf16>, vector<256x256xbf16>, vector<8x256xf32> -> vector<8x256xf32>
    %c-1_i32 = arith.constant -1 : i32
    %51 = vector.broadcast %c-1_i32 : i32 to vector<256x256xi32>
    %52 = arith.select %46, %51, %39 : vector<256x256xi1>, vector<256x256xi32>
    %cst_15 = arith.constant dense<-2147483648> : vector<256xi32>
    %53 = vector.multi_reduction <maxsi>, %52, %cst_15 [1] : vector<256x256xi32> to vector<256xi32>
    %54 = vector.shape_cast %53 : vector<256xi32> to vector<256x1xi32>
    %55 = vector.broadcast %c65535_i32 : i32 to vector<256x1xi32>
    %56 = arith.andi %54, %55 : vector<256x1xi32>
    %57 = vector.broadcast %56 : vector<256x1xi32> to vector<256x256xi32>
    %58 = arith.cmpi eq, %6, %57 : vector<256x256xi32>
    %59 = arith.extui %58 : vector<256x256xi1> to vector<256x256xi32>
    %60 = arith.sitofp %59 : vector<256x256xi32> to vector<256x256xf32>
    %61 = arith.truncf %60 : vector<256x256xf32> to vector<256x256xbf16>
    %cst_16 = arith.constant dense<0.000000e+00> : vector<8x256xf32>
    %62 = tpu.matmul %40, %61, %cst_16 {dimension_numbers = #tpu.dot_dimension_numbers<[1], [1], [0], [0], [0, 0, 1, 0], [], []>} : vector<8x256xbf16>, vector<256x256xbf16>, vector<8x256xf32> -> vector<8x256xf32>
    %c-1_i32_17 = arith.constant -1 : i32
    %63 = vector.broadcast %c-1_i32_17 : i32 to vector<256x256xi32>
    %64 = arith.select %58, %63, %52 : vector<256x256xi1>, vector<256x256xi32>
    %cst_18 = arith.constant dense<-2147483648> : vector<256xi32>
    %65 = vector.multi_reduction <maxsi>, %64, %cst_18 [1] : vector<256x256xi32> to vector<256xi32>
    %66 = vector.shape_cast %65 : vector<256xi32> to vector<256x1xi32>
    %67 = vector.broadcast %c65535_i32 : i32 to vector<256x1xi32>
    %68 = arith.andi %66, %67 : vector<256x1xi32>
    %69 = vector.broadcast %68 : vector<256x1xi32> to vector<256x256xi32>
    %70 = arith.cmpi eq, %6, %69 : vector<256x256xi32>
    %71 = arith.extui %70 : vector<256x256xi1> to vector<256x256xi32>
    %72 = arith.sitofp %71 : vector<256x256xi32> to vector<256x256xf32>
    %73 = arith.truncf %72 : vector<256x256xf32> to vector<256x256xbf16>
    %cst_19 = arith.constant dense<0.000000e+00> : vector<8x256xf32>
    %74 = tpu.matmul %40, %73, %cst_19 {dimension_numbers = #tpu.dot_dimension_numbers<[1], [1], [0], [0], [0, 0, 1, 0], [], []>} : vector<8x256xbf16>, vector<256x256xbf16>, vector<8x256xf32> -> vector<8x256xf32>
    %75 = tpu.concatenate %50, %62, %74 in 0 : vector<8x256xf32>, vector<8x256xf32>, vector<8x256xf32> -> vector<24x256xf32>
    %76 = arith.truncf %75 : vector<24x256xf32> to vector<24x256xbf16>
    %c8_i32_20 = arith.constant 8 : i32
    %77 = arith.muli %c0_i32, %c8_i32_20 : i32
    %78 = tpu.assume_multiple %77, 8 : i32
    %cst_21 = arith.constant dense<0.000000e+00> : vector<8x256xf32>
    %79 = tpu.matmul %7, %76, %cst_21 {dimension_numbers = #tpu.dot_dimension_numbers<[1], [0], [0], [1], [0, 0, 1, 1], [], []>} : vector<8x24xbf16>, vector<24x256xbf16>, vector<8x256xf32> -> vector<8x256xf32>
    %80 = arith.index_cast %78 : i32 to index
    %c0_22 = arith.constant 0 : index
    %81 = vector.load %arg8[%80, %c0_22] : memref<8x256xf32, #tpu.memory_space<vmem>>, vector<8x256xf32>
    tpu.vector_store %arg8[%80, %c0_22], %79 {strides = array<i32>} : memref<8x256xf32, #tpu.memory_space<vmem>>, vector<8x256xf32>,
    %c1_i32 = arith.constant 1 : i32
    %c0_23 = arith.constant 0 : index
    %c0_24 = arith.constant 0 : index
    %82 = vector.load %arg8[%c0_23, %c0_24] : memref<8x256xf32, #tpu.memory_space<vmem>>, vector<8x256xf32>
    %c0_25 = arith.constant 0 : index
    %c0_26 = arith.constant 0 : index
    %83 = vector.load %arg4[%c0_25, %c0_26] : memref<8x1xf32, #tpu.memory_space<vmem>>, vector<8x1xf32>
    %84 = vector.broadcast %83 : vector<8x1xf32> to vector<8x256xf32>
    %85 = arith.addf %82, %84 : vector<8x256xf32>
    %86 = arith.truncf %85 : vector<8x256xf32> to vector<8x256xbf16>
    %c0_27 = arith.constant 0 : index
    %c0_28 = arith.constant 0 : index
    %87 = vector.load %arg5[%c0_27, %c0_28] : memref<256x256xbf16, #tpu.memory_space<vmem>>, vector<256x256xbf16>
    %cst_29 = arith.constant dense<0.000000e+00> : vector<8x256xf32>
    %88 = tpu.matmul %86, %87, %cst_29 {dimension_numbers = #tpu.dot_dimension_numbers<[1], [0], [0], [1], [0, 0, 1, 1], [], []>} : vector<8x256xbf16>, vector<256x256xbf16>, vector<8x256xf32> -> vector<8x256xf32>
    %c0_30 = arith.constant 0 : index
    %c0_31 = arith.constant 0 : index
    %89 = vector.load %arg6[%c0_30, %c0_31] : memref<8x256xf32, #tpu.memory_space<vmem>>, vector<8x256xf32>
    tpu.vector_store %arg6[%c0_30, %c0_31], %88 {strides = array<i32>} : memref<8x256xf32, #tpu.memory_space<vmem>>, vector<8x256xf32>,
    return
  }
  func.func @transform_0(%arg0: i32) -> (i32, i32) {
    %c0_i32 = arith.constant 0 : i32
    %c0_i32_0 = arith.constant 0 : i32
    return %arg0, %c0_i32 : i32, i32
  }
  func.func @transform_1(%arg0: i32) -> (i32, i32) {
    %c0_i32 = arith.constant 0 : i32
    %c0_i32_0 = arith.constant 0 : i32
    %c0_i32_1 = arith.constant 0 : i32
    return %c0_i32, %c0_i32_0 : i32, i32
  }
  func.func @transform_2(%arg0: i32) -> (i32, i32) {
    %c0_i32 = arith.constant 0 : i32
    %c0_i32_0 = arith.constant 0 : i32
    %c0_i32_1 = arith.constant 0 : i32
    return %c0_i32, %c0_i32_0 : i32, i32
  }
  func.func @transform_3(%arg0: i32) -> (i32, i32) {
    %c0_i32 = arith.constant 0 : i32
    %c0_i32_0 = arith.constant 0 : i32
    %c0_i32_1 = arith.constant 0 : i32
    return %c0_i32, %c0_i32_0 : i32, i32
  }
  func.func @transform_4(%arg0: i32) -> (i32, i32) {
    %c0_i32 = arith.constant 0 : i32
    %c0_i32_0 = arith.constant 0 : i32
    %c0_i32_1 = arith.constant 0 : i32
    return %c0_i32, %c0_i32_0 : i32, i32
  }
  func.func @transform_5(%arg0: i32) -> (i32, i32) {
    %c0_i32 = arith.constant 0 : i32
    %c0_i32_0 = arith.constant 0 : i32
    return %arg0, %c0_i32 : i32, i32
  }
}

module attributes {stable_mosaic.version = 11 : i64} {
  func.func @_conv2d_nn_attn_kernel(%arg0: i32, %arg1: memref<8x256xbf16, #tpu.memory_space<vmem>>, %arg2: memref<256x768xbf16, #tpu.memory_space<vmem>>, %arg3: memref<8x24xbf16, #tpu.memory_space<vmem>>, %arg4: memref<8x1xf32, #tpu.memory_space<vmem>>, %arg5: memref<256x256xbf16, #tpu.memory_space<vmem>>, %arg6: memref<8x256xf32, #tpu.memory_space<vmem>>, %arg7: memref<8x768xf32, #tpu.memory_space<vmem>>, %arg8: memref<8x256xf32, #tpu.memory_space<vmem>>) attributes {dimension_semantics = [#tpu.dimension_semantics<parallel>], iteration_bounds = array<i64: 2>, scalar_prefetch = 0 : i64, scratch_operands = 2 : i64, tpu.core_type = #tpu.core_type<tc>, window_params = [{transform_indices = @transform_0, window_bounds = array<i64: 8, 256>}, {pipeline_mode = #tpu.pipeline_mode<synchronous>, transform_indices = @transform_1, window_bounds = array<i64: 256, 768>}, {pipeline_mode = #tpu.pipeline_mode<synchronous>, transform_indices = @transform_2, window_bounds = array<i64: 8, 24>}, {pipeline_mode = #tpu.pipeline_mode<synchronous>, transform_indices = @transform_3, window_bounds = array<i64: 8, 1>}, {pipeline_mode = #tpu.pipeline_mode<synchronous>, transform_indices = @transform_4, window_bounds = array<i64: 256, 256>}, {transform_indices = @transform_5, window_bounds = array<i64: 8, 256>}]} {
    %c0 = arith.constant 0 : index
    %c0_0 = arith.constant 0 : index
    %0 = vector.load %arg1[%c0, %c0_0] : memref<8x256xbf16, #tpu.memory_space<vmem>>, vector<8x256xbf16>
    %c0_1 = arith.constant 0 : index
    %c0_2 = arith.constant 0 : index
    %1 = vector.load %arg2[%c0_1, %c0_2] : memref<256x768xbf16, #tpu.memory_space<vmem>>, vector<256x768xbf16>
    %cst = arith.constant dense<0.000000e+00> : vector<8x768xf32>
    %2 = tpu.matmul %0, %1, %cst {dimension_numbers = #tpu.dot_dimension_numbers<[1], [0], [0], [1], [0, 0, 1, 1], [], []>} : vector<8x256xbf16>, vector<256x768xbf16>, vector<8x768xf32> -> vector<8x768xf32>
    %c0_3 = arith.constant 0 : index
    %c0_4 = arith.constant 0 : index
    %3 = vector.load %arg7[%c0_3, %c0_4] : memref<8x768xf32, #tpu.memory_space<vmem>>, vector<8x768xf32>
    tpu.vector_store %arg7[%c0_3, %c0_4], %2 {strides = array<i32>} : memref<8x768xf32, #tpu.memory_space<vmem>>, vector<8x768xf32>,
    %4 = tpu.iota {dimensions = array<i32: 1>} : vector<256x256xi32>
    %c255_i32 = arith.constant 255 : i32
    %5 = vector.broadcast %c255_i32 : i32 to vector<256x256xi32>
    %6 = arith.subi %5, %4 : vector<256x256xi32>
    %c0_5 = arith.constant 0 : index
    %c0_6 = arith.constant 0 : index
    %7 = vector.load %arg3[%c0_5, %c0_6] : memref<8x24xbf16, #tpu.memory_space<vmem>>, vector<8x24xbf16>
    %cst_7 = arith.constant 1.000000e-24 : f32
    %c-65536_i32 = arith.constant -65536 : i32
    %c65535_i32 = arith.constant 65535 : i32
    %c0_i32 = arith.constant 0 : i32
    %c8_i32 = arith.constant 8 : i32
    %8 = arith.muli %c0_i32, %c8_i32 : i32
    %9 = tpu.assume_multiple %8, 8 : i32
    %10 = arith.index_cast %9 : i32 to index
    %c0_8 = arith.constant 0 : index
    %11 = vector.load %arg7[%10, %c0_8] : memref<8x768xf32, #tpu.memory_space<vmem>>, vector<8x768xf32>
    %12 = vector.extract_strided_slice %11 {offsets = [0, 0], sizes = [8, 256], strides = [1, 1]} : vector<8x768xf32> to vector<8x256xf32>
    %13 = vector.extract_strided_slice %11 {offsets = [0, 256], sizes = [8, 256], strides = [1, 1]} : vector<8x768xf32> to vector<8x256xf32>
    %14 = vector.extract_strided_slice %11 {offsets = [0, 512], sizes = [8, 256], strides = [1, 1]} : vector<8x768xf32> to vector<8x256xf32>
    %15 = arith.mulf %12, %12 : vector<8x256xf32>
    %cst_9 = arith.constant dense<0.000000e+00> : vector<256xf32>
    %16 = vector.multi_reduction <add>, %15, %cst_9 [0] : vector<8x256xf32> to vector<256xf32>
    %17 = vector.shape_cast %16 : vector<256xf32> to vector<1x256xf32>
    %18 = vector.broadcast %cst_7 : f32 to vector<1x256xf32>
    %19 = arith.maximumf %17, %18 : vector<1x256xf32>
    %20 = math.rsqrt %19 : vector<1x256xf32>
    %21 = vector.broadcast %20 : vector<1x256xf32> to vector<8x256xf32>
    %22 = arith.mulf %12, %21 : vector<8x256xf32>
    %23 = arith.mulf %13, %13 : vector<8x256xf32>
    %cst_10 = arith.constant dense<0.000000e+00> : vector<256xf32>
    %24 = vector.multi_reduction <add>, %23, %cst_10 [0] : vector<8x256xf32> to vector<256xf32>
    %25 = vector.shape_cast %24 : vector<256xf32> to vector<1x256xf32>
    %26 = vector.broadcast %cst_7 : f32 to vector<1x256xf32>
    %27 = arith.maximumf %25, %26 : vector<1x256xf32>
    %28 = math.rsqrt %27 : vector<1x256xf32>
    %29 = vector.broadcast %28 : vector<1x256xf32> to vector<8x256xf32>
    %30 = arith.mulf %13, %29 : vector<8x256xf32>
    %31 = arith.truncf %22 : vector<8x256xf32> to vector<8x256xbf16>
    %32 = arith.truncf %30 : vector<8x256xf32> to vector<8x256xbf16>
    %cst_11 = arith.constant dense<0.000000e+00> : vector<256x256xf32>
    %33 = tpu.matmul %31, %32, %cst_11 {dimension_numbers = #tpu.dot_dimension_numbers<[0], [0], [1], [1], [0, 1, 1, 1], [], []>} : vector<8x256xbf16>, vector<8x256xbf16>, vector<256x256xf32> -> vector<256x256xf32>
    %34 = tpu.bitcast %33 : vector<256x256xf32> -> vector<256x256xi32>
    %c0_i32_12 = arith.constant 0 : i32
    %35 = vector.broadcast %c0_i32_12 : i32 to vector<256x256xi32>
    %36 = arith.maxsi %34, %35 : vector<256x256xi32>
    %37 = vector.broadcast %c-65536_i32 : i32 to vector<256x256xi32>
    %38 = arith.andi %36, %37 : vector<256x256xi32>
    %39 = arith.ori %38, %6 : vector<256x256xi32>
    %40 = arith.truncf %14 : vector<8x256xf32> to vector<8x256xbf16>
    %cst_13 = arith.constant dense<-2147483648> : vector<256xi32>
    %41 = vector.multi_reduction <maxsi>, %39, %cst_13 [1] : vector<256x256xi32> to vector<256xi32>
    %42 = vector.shape_cast %41 : vector<256xi32> to vector<256x1xi32>
    %43 = vector.broadcast %c65535_i32 : i32 to vector<256x1xi32>
    %44 = arith.andi %42, %43 : vector<256x1xi32>
    %45 = vector.broadcast %44 : vector<256x1xi32> to vector<256x256xi32>
    %46 = arith.cmpi eq, %6, %45 : vector<256x256xi32>
    %47 = arith.extui %46 : vector<256x256xi1> to vector<256x256xi32>
    %48 = arith.sitofp %47 : vector<256x256xi32> to vector<256x256xf32>
    %49 = arith.truncf %48 : vector<256x256xf32> to vector<256x256xbf16>
    %cst_14 = arith.constant dense<0.000000e+00> : vector<8x256xf32>
    %50 = tpu.matmul %40, %49, %cst_14 {dimension_numbers = #tpu.dot_dimension_numbers<[1], [1], [0], [0], [0, 0, 1, 0], [], []>} : vector<8x256xbf16>, vector<256x256xbf16>, vector<8x256xf32> -> vector<8x256xf32>
    %c-1_i32 = arith.constant -1 : i32
    %51 = vector.broadcast %c-1_i32 : i32 to vector<256x256xi32>
    %52 = arith.select %46, %51, %39 : vector<256x256xi1>, vector<256x256xi32>
    %cst_15 = arith.constant dense<-2147483648> : vector<256xi32>
    %53 = vector.multi_reduction <maxsi>, %52, %cst_15 [1] : vector<256x256xi32> to vector<256xi32>
    %54 = vector.shape_cast %53 : vector<256xi32> to vector<256x1xi32>
    %55 = vector.broadcast %c65535_i32 : i32 to vector<256x1xi32>
    %56 = arith.andi %54, %55 : vector<256x1xi32>
    %57 = vector.broadcast %56 : vector<256x1xi32> to vector<256x256xi32>
    %58 = arith.cmpi eq, %6, %57 : vector<256x256xi32>
    %59 = arith.extui %58 : vector<256x256xi1> to vector<256x256xi32>
    %60 = arith.sitofp %59 : vector<256x256xi32> to vector<256x256xf32>
    %61 = arith.truncf %60 : vector<256x256xf32> to vector<256x256xbf16>
    %cst_16 = arith.constant dense<0.000000e+00> : vector<8x256xf32>
    %62 = tpu.matmul %40, %61, %cst_16 {dimension_numbers = #tpu.dot_dimension_numbers<[1], [1], [0], [0], [0, 0, 1, 0], [], []>} : vector<8x256xbf16>, vector<256x256xbf16>, vector<8x256xf32> -> vector<8x256xf32>
    %c-1_i32_17 = arith.constant -1 : i32
    %63 = vector.broadcast %c-1_i32_17 : i32 to vector<256x256xi32>
    %64 = arith.select %58, %63, %52 : vector<256x256xi1>, vector<256x256xi32>
    %cst_18 = arith.constant dense<-2147483648> : vector<256xi32>
    %65 = vector.multi_reduction <maxsi>, %64, %cst_18 [1] : vector<256x256xi32> to vector<256xi32>
    %66 = vector.shape_cast %65 : vector<256xi32> to vector<256x1xi32>
    %67 = vector.broadcast %c65535_i32 : i32 to vector<256x1xi32>
    %68 = arith.andi %66, %67 : vector<256x1xi32>
    %69 = vector.broadcast %68 : vector<256x1xi32> to vector<256x256xi32>
    %70 = arith.cmpi eq, %6, %69 : vector<256x256xi32>
    %71 = arith.extui %70 : vector<256x256xi1> to vector<256x256xi32>
    %72 = arith.sitofp %71 : vector<256x256xi32> to vector<256x256xf32>
    %73 = arith.truncf %72 : vector<256x256xf32> to vector<256x256xbf16>
    %cst_19 = arith.constant dense<0.000000e+00> : vector<8x256xf32>
    %74 = tpu.matmul %40, %73, %cst_19 {dimension_numbers = #tpu.dot_dimension_numbers<[1], [1], [0], [0], [0, 0, 1, 0], [], []>} : vector<8x256xbf16>, vector<256x256xbf16>, vector<8x256xf32> -> vector<8x256xf32>
    %75 = tpu.concatenate %50, %62, %74 in 0 : vector<8x256xf32>, vector<8x256xf32>, vector<8x256xf32> -> vector<24x256xf32>
    %76 = arith.truncf %75 : vector<24x256xf32> to vector<24x256xbf16>
    %c8_i32_20 = arith.constant 8 : i32
    %77 = arith.muli %c0_i32, %c8_i32_20 : i32
    %78 = tpu.assume_multiple %77, 8 : i32
    %cst_21 = arith.constant dense<0.000000e+00> : vector<8x256xf32>
    %79 = tpu.matmul %7, %76, %cst_21 {dimension_numbers = #tpu.dot_dimension_numbers<[1], [0], [0], [1], [0, 0, 1, 1], [], []>} : vector<8x24xbf16>, vector<24x256xbf16>, vector<8x256xf32> -> vector<8x256xf32>
    %80 = arith.index_cast %78 : i32 to index
    %c0_22 = arith.constant 0 : index
    %81 = vector.load %arg8[%80, %c0_22] : memref<8x256xf32, #tpu.memory_space<vmem>>, vector<8x256xf32>
    tpu.vector_store %arg8[%80, %c0_22], %79 {strides = array<i32>} : memref<8x256xf32, #tpu.memory_space<vmem>>, vector<8x256xf32>,
    %c1_i32 = arith.constant 1 : i32
    %c0_23 = arith.constant 0 : index
    %c0_24 = arith.constant 0 : index
    %82 = vector.load %arg8[%c0_23, %c0_24] : memref<8x256xf32, #tpu.memory_space<vmem>>, vector<8x256xf32>
    %c0_25 = arith.constant 0 : index
    %c0_26 = arith.constant 0 : index
    %83 = vector.load %arg4[%c0_25, %c0_26] : memref<8x1xf32, #tpu.memory_space<vmem>>, vector<8x1xf32>
    %84 = vector.broadcast %83 : vector<8x1xf32> to vector<8x256xf32>
    %85 = arith.addf %82, %84 : vector<8x256xf32>
    %86 = arith.truncf %85 : vector<8x256xf32> to vector<8x256xbf16>
    %c0_27 = arith.constant 0 : index
    %c0_28 = arith.constant 0 : index
    %87 = vector.load %arg5[%c0_27, %c0_28] : memref<256x256xbf16, #tpu.memory_space<vmem>>, vector<256x256xbf16>
    %cst_29 = arith.constant dense<0.000000e+00> : vector<8x256xf32>
    %88 = tpu.matmul %86, %87, %cst_29 {dimension_numbers = #tpu.dot_dimension_numbers<[1], [0], [0], [1], [0, 0, 1, 1], [], []>} : vector<8x256xbf16>, vector<256x256xbf16>, vector<8x256xf32> -> vector<8x256xf32>
    %c0_30 = arith.constant 0 : index
    %c0_31 = arith.constant 0 : index
    %89 = vector.load %arg6[%c0_30, %c0_31] : memref<8x256xf32, #tpu.memory_space<vmem>>, vector<8x256xf32>
    tpu.vector_store %arg6[%c0_30, %c0_31], %88 {strides = array<i32>} : memref<8x256xf32, #tpu.memory_space<vmem>>, vector<8x256xf32>,
    return
  }
  func.func @transform_0(%arg0: i32) -> (i32, i32) {
    %c0_i32 = arith.constant 0 : i32
    %c0_i32_0 = arith.constant 0 : i32
    return %arg0, %c0_i32 : i32, i32
  }
  func.func @transform_1(%arg0: i32) -> (i32, i32) {
    %c0_i32 = arith.constant 0 : i32
    %c0_i32_0 = arith.constant 0 : i32
    %c0_i32_1 = arith.constant 0 : i32
    return %c0_i32, %c0_i32_0 : i32, i32
  }
  func.func @transform_2(%arg0: i32) -> (i32, i32) {
    %c0_i32 = arith.constant 0 : i32
    %c0_i32_0 = arith.constant 0 : i32
    %c0_i32_1 = arith.constant 0 : i32
    return %c0_i32, %c0_i32_0 : i32, i32
  }
  func.func @transform_3(%arg0: i32) -> (i32, i32) {
    %c0_i32 = arith.constant 0 : i32
    %c0_i32_0 = arith.constant 0 : i32
    %c0_i32_1 = arith.constant 0 : i32
    return %c0_i32, %c0_i32_0 : i32, i32
  }
  func.func @transform_4(%arg0: i32) -> (i32, i32) {
    %c0_i32 = arith.constant 0 : i32
    %c0_i32_0 = arith.constant 0 : i32
    %c0_i32_1 = arith.constant 0 : i32
    return %c0_i32, %c0_i32_0 : i32, i32
  }
  func.func @transform_5(%arg0: i32) -> (i32, i32) {
    %c0_i32 = arith.constant 0 : i32
    %c0_i32_0 = arith.constant 0 : i32
    return %arg0, %c0_i32 : i32, i32
  }
}

</mosaic_0001>

<bundles_post_ra>
// kernel: tpu_custom_call.1
= control target key start
LH: loop header
LB: loop body
LE: loop exit
PB: predicated region body
PF: predicated region fallthrough
CT: control target
= control target key end

     0   :  { %10 = vsyncpa [#allocation5], 0  ;;  %s9034_s0 = inlined_call_operand.hbm [shape: bf16[16,256], index: 0, kind: input, shape index: {}]   ;;  %s9035_s1 = inlined_call_operand.hbm [shape: bf16[256,768], index: 1, kind: input, shape index: {}]   ;;  %s9036_s2 = inlined_call_operand.vmem [shape: bf16[8,24], index: 2, kind: input, shape index: {}]   ;;  %s9037_s3 = inlined_call_operand.vmem [shape: f32[8,1], index: 3, kind: input, shape index: {}]   ;;  %s9038_s4 = inlined_call_operand.hbm [shape: bf16[256,256], index: 4, kind: input, shape index: {}]   ;;  %s9039_s5 = inlined_call_operand.hbm [shape: f32[16,256], index: 5, kind: output, shape index: {}]  }
   0x1   :  { %12 = vsyncpa [#allocation5 + $0x1], 0 }
   0x2   :  { %13 = vsyncpa [#allocation8], 0 }
   0x3   :  { %14 = vsyncpa [#allocation6], 0 }
   0x4   :  { %16 = vsyncpa [#allocation6 + $0x1], 0  ;;  %s5639_s18 = smov 0   ;;  %s5641_s19 = smov 0  }
   0x5   :  { %s5643_s20 = smov 0   ;;  %s5645_s21 = smov 0  }
   0x6 LB: > { %s5660_s22 = sadd.s32 4294967295, %s5597_s21   ;;  %s4612_s23 = sadd.s32 4294967294, %s5597_s21   ;;  %s5597_s21 = sphi %s5645_s21, %s9730_s21   ;;  %s5593_s20 = sphi %s5643_s20, %s9729_s20   ;;  %s5589_s19 = sphi %s5641_s19, %s9728_s19   ;;  %s5585_s18 = sphi %s5639_s18, %s9727_s18  }
   0x7   : > { %p42_p0 = scmp.ne.s32.totalorder %s5589_s19, %s5585_s18  ;;  %p9040_p1 = scmp.eq.s32.totalorder %s5660_s22, 0 }
   0x8   : > { %p156_p3 = scmp.eq.s32.totalorder %s4612_s23, 1  ;;  %p4613_p5 = scmp.ge.s32.totalorder %s5597_s21, 1 }
   0x9   : > { %p5669_p4 = por %p9040_p1, %p42_p0  ;;  %p163_p7 = scmp.lt.s32.totalorder %s5597_s21, 3 }
   0xa   : > { %p5674_p6 = por %p156_p3, %p42_p0  ;;  %s5599_s27 = smov [#allocation7]  }
   0xb   : > { %s9205_s24 = scalar_select %p5669_p4, 1, 0 }
   0xc   : > { %s9206_s25 = scalar_select %p5674_p6, 1, 0 }
   0xd   : > { %p5679_p8 = pnand %p4613_p5, %p163_p7  ;;  %s175_s28 = sshll.u32 %s5599_s27, 4  ;;  %s5683_s28 = int_to_ptr.vmem [resolvable:$true] %s175_s28 }
   0xe   : > { %s5600_s30 = smov [#allocation9]   ;;  %s5441_s9 = scalar_lea.hbm %s9035_s1, 12288 }
   0xf   : > { %p5177_p9 = pneg %p5679_p8  ;;  %s194_s6 = sshll.u32 %s5600_s30, 4  ;;  %s5694_s6 = int_to_ptr.vmem [resolvable:$true] %s194_s6 }
  0x10   : > { %p5442_p12 = scmp.ne.s32.totalorder %s9035_s1, %s5441_s9  ;;  %p5448_p5 = scmp.lt.u32.totalorder %s5441_s9, %s9035_s1 }
  0x11   : > { %p5690_p11 = pnand %p5177_p9, %p9040_p1 }
  0x13   : > { %p5443_p13 = pneg %p5690_p11 }
  0x15   : > { %p5444_p0 = pnand %p5443_p13, %p5442_p12 }
  0x17   : > { %p5445_p3 = pneg %p5444_p0 }
  0x19   : > { %p5450_p7 = pnand %p5448_p5, %p5445_p3 }
  0x1b   : > { %5453 = shalt.err (!%p5450_p7)
}
  0x1c   : > { %s5454_s14 = scalar_lea.vmem %s5683_s28, 12288  ;;  %p5462_p2 = scmp.lt.s32.totalorder %s5683_s28, %s5683_s28 }
  0x1d   : > { %p5455_p9 = scmp.ne.s32.totalorder %s5683_s28, %s5454_s14  ;;  %p5463_p12 = scmp.lt.s32.totalorder %s5454_s14, %s5454_s14 }
  0x1f   : > { %p5457_p10 = pnand %p5455_p9, %p5443_p13  ;;  %p5464_p0 = por %p5463_p12, %p5462_p2 }
  0x21   : > { %p5458_p1 = pneg %p5457_p10 }
  0x23   : > { %p5465_p6 = pnand %p5464_p0, %p5458_p1 }
  0x25   : > { %5468 = shalt.err (!%p5465_p6)
}
  0x26   : > { %s5601_s15 = smov 384   ;;  %s5602_s16 = smov 24  }
  0x27   : > { %5180 = dma.hbm_to_vmem [thread:$0]  (!%p5690_p11), %s9035_s1, 12288, %s5683_s28, [#allocation8], %s5601_s15, %s5601_s15, %s5602_s16  }
  0x28   : > { %s5469_s7 = scalar_lea.hbm %s9038_s4, 4096 }
  0x29   : > { %p5470_p2 = scmp.ne.s32.totalorder %s9038_s4, %s5469_s7  ;;  %p5476_p10 = scmp.lt.u32.totalorder %s5469_s7, %s9038_s4 }
  0x2b   : > { %p5472_p1 = pnand %p5470_p2, %p5443_p13 }
  0x2d   : > { %p5473_p6 = pneg %p5472_p1 }
  0x2f   : > { %p5478_p3 = pnand %p5476_p10, %p5473_p6 }
  0x31   : > { %5481 = shalt.err (!%p5478_p3)
}
  0x32   : > { %s5482_s28 = scalar_lea.vmem %s5694_s6, 4096  ;;  %p5490_p12 = scmp.lt.s32.totalorder %s5694_s6, %s5694_s6 }
  0x33   : > { %p5483_p5 = scmp.ne.s32.totalorder %s5694_s6, %s5482_s28  ;;  %p5491_p0 = scmp.lt.s32.totalorder %s5482_s28, %s5482_s28 }
  0x35   : > { %p5485_p7 = pnand %p5483_p5, %p5443_p13  ;;  %p5492_p2 = por %p5491_p0, %p5490_p12 }
  0x37   : > { %p5486_p9 = pneg %p5485_p7 }
  0x39   : > { %p5493_p1 = pnand %p5492_p2, %p5486_p9 }
  0x3b   : > { %5496 = shalt.err (!%p5493_p1)
}
  0x3c   : > { %s5603_s12 = smov 128   ;;  %s5604_s13 = smov 8  }
  0x3d   : > { %5183 = dma.hbm_to_vmem [thread:$0]  (!%p5690_p11), %s9038_s4, 4096, %s5694_s6, [#allocation8], %s5603_s12, %s5603_s12, %s5604_s13  }
  0x3e   : > { %s5749_s16 = sadd.s32 1, %s5597_s21   ;;  %s29_s23 = sadd.s32 1, %s5593_s20 }
  0x3f   : > { %s26_s17 = ssub.s32 %s5597_s21, %s5749_s16  ;;  %p36_p6 = scmp.ne.s32.totalorder %s5593_s20, %s5589_s19 }
  0x40   : > { %p27_p13 = scmp.eq.s32.totalorder %s26_s17, 0  ;;  %p37_p10 = scmp.eq.s32.totalorder %s5597_s21, 0 }
  0x41   : > { %p9209_p5 = scmp.eq.s32.totalorder %s5660_s22, 1  ;;  %p5194_p9 = scmp.lt.s32.totalorder %s5597_s21, 2 }
  0x42   : > { %s5758_s27 = scalar_select %p27_p13, %s5593_s20, %s29_s23  }
  0x43   : > { %p38_p3 = por %p37_p10, %p36_p6  ;;  %p5762_p7 = por %p9209_p5, %p36_p6 }
  0x44   : > { %s208_s29 = sand.u32 1, %s5593_s20   ;;  %s5163_s6 = sshll.u32 %s5597_s21, 7 }
  0x45   : > { %s9210_s30 = scalar_select %p5762_p7, 1, 0 }
  0x46   : > { %s4617_s7 = sshll.u32 %s208_s29, 3  ;;  %s5772_s10 = scalar_lea.hbm %s9034_s0, %s5163_s6 }
  0x47   : > { %s212_s11 = scalar_lea.vmem [#allocation4], %s4617_s7  ;;  %p5776_p11 = pnand %p5194_p9, %p38_p3 }
  0x48   : > { %s220_s28 = sshll.u32 %s212_s11, 4  ;;  %s209_s13 = scalar_lea.sflag [#allocation5], %s208_s29  ;;  %s5774_s28 = int_to_ptr.vmem [resolvable:$true] %s220_s28 }
  0x49   : > { %s5497_s14 = scalar_lea.hbm %s5772_s10, 128  ;;  %p5499_p0 = pneg %p5776_p11 }
  0x4a   : > { %p5498_p12 = scmp.ne.s32.totalorder %s5772_s10, %s5497_s14  ;;  %s5502_s23 = scalar_lea.hbm %s9034_s0, 256 }
  0x4b   : > { %p5503_p13 = scmp.lt.u32.totalorder %s5772_s10, %s9034_s0  ;;  %p5504_p6 = scmp.lt.u32.totalorder %s5502_s23, %s5497_s14 }
  0x4c   : > { %p5500_p2 = pnand %p5499_p0, %p5498_p12  ;;  %p5506_p3 = scmp.lt.u32.totalorder %s5497_s14, %s5772_s10 }
  0x4d   : > { %p5505_p10 = por %p5504_p6, %p5503_p13 }
  0x4e   : > { %p5501_p1 = pneg %p5500_p2 }
  0x4f   : > { %p5507_p5 = por %p5506_p3, %p5505_p10 }
  0x51   : > { %p5508_p9 = pnand %p5507_p5, %p5501_p1 }
  0x53   : > { %5511 = shalt.err (!%p5508_p9)
}
  0x54   : > { %s5512_s29 = scalar_lea.vmem %s5774_s28, 128  ;;  %s5605_s8 = smov [#allocation4]  }
  0x55   : > { %p5513_p12 = scmp.ne.s32.totalorder %s5774_s28, %s5512_s29  ;;  %s5517_s9 = sshll.u32 %s5605_s8, 4  ;;  %s5518_s9 = int_to_ptr.vmem [resolvable:$false] %s5517_s9 }
  0x56   : > { %s5519_s11 = scalar_lea.vmem %s5518_s9, 256  ;;  %p5520_p4 = scmp.lt.s32.totalorder %s5774_s28, %s5518_s9 }
  0x57   : > { %p5515_p2 = pnand %p5513_p12, %p5499_p0  ;;  %p5521_p13 = scmp.lt.s32.totalorder %s5519_s11, %s5512_s29 }
  0x59   : > { %p5516_p7 = pneg %p5515_p2  ;;  %p5522_p6 = por %p5521_p13, %p5520_p4 }
  0x5b   : > { %p5523_p10 = pnand %p5522_p6, %p5516_p7 }
  0x5d   : > { %5526 = shalt.err (!%p5523_p10)
}
  0x5e   : > { %5187 = dma.hbm_to_vmem [thread:$0]  (!%p5776_p11), %s5772_s10, 128, %s5774_s28, %s209_s13  }
  0x5f   : > { %229 = sbr.rel (%p5679_p8) target bundleno = 2516 (0x9d4), region = 40 }
  0x66   : > { %s5808_s14 = sand.u32 1, %s5589_s19   ;;  %p9212_p4 = scmp.ne.s32.totalorder %s9205_s24, 0 }
  0x67   : > { %s4621_s15 = sshll.u32 %s5808_s14, 3  ;;  %s232_s17 = scalar_lea.sflag [#allocation5], %s5808_s14 }
  0x68   : > { %s235_s23 = scalar_lea.vmem [#allocation4], %s4621_s15 }
  0x69   : > { %5572 = dma.done.wait (%p9212_p4), %s232_s17, 128  }
  0x6a   : > { %5574 = vsyncadd (%p9212_p4), %s232_s17, 4294967168  ;;  %p9213_p7 = scmp.eq.s32.totalorder %s5660_s22, 0 }
  0x6c   : > { %5576 = dma.done.wait (%p9213_p7), [#allocation8], 16384   ;;  %p9214_p11 = pmov %p9213_p7 }
  0x6d   : > { %v5239_v0 = vld [vmem:[#allocation7 + $0x4] ss:$24 sps:$4 sm:$0xff]   ;;  %v5241_v1 = vld [vmem:[#allocation7] ss:$24 sps:$4 sm:$0xff]   ;;  %v5242_v2 = vld [vmem:[#allocation7 + $0x34] ss:$24 sps:$4 sm:$0xff]  }
  0x6e   : > { %5578 = vsyncadd (%p9214_p11), [#allocation8], 4294950912  ;;  %855 = vmatprep.subr.bf16.mxu0 %v5239_v0  ;;  %v5244_v3 = vld [vmem:[#allocation7 + $0x30] ss:$24 sps:$4 sm:$0xff]   ;;  %v5245_v4 = vld [vmem:[#allocation7 + $0x64] ss:$24 sps:$4 sm:$0xff]  }
  0x6f   : > { %856 = vmatpush1.bf16.msra.mxu0 %v5241_v1  ;;  %v5247_v5 = vld [vmem:[#allocation7 + $0x60] ss:$24 sps:$4 sm:$0xff]   ;;  %v5248_v6 = vld [vmem:[#allocation7 + $0x94] ss:$24 sps:$4 sm:$0xff]   ;;  %v5250_v7 = vld [vmem:[#allocation7 + $0x90] ss:$24 sps:$4 sm:$0xff]  }
  0x70   : > { %857 = vmatprep.subr.bf16.mxu0 %v5242_v2  ;;  %v5251_v8 = vld [vmem:[#allocation7 + $0xc4] ss:$24 sps:$4 sm:$0xff]   ;;  %v5253_v9 = vld [vmem:[#allocation7 + $0xc0] ss:$24 sps:$4 sm:$0xff]   ;;  %v5254_v10 = vld [vmem:[#allocation7 + $0xf4] ss:$24 sps:$4 sm:$0xff]  }
  0x71   : > { %v5256_v11 = vld [vmem:[#allocation7 + $0xf0] ss:$24 sps:$4 sm:$0xff]   ;;  %v5257_v12 = vld [vmem:[#allocation7 + $0x124] ss:$24 sps:$4 sm:$0xff]   ;;  %v5259_v13 = vld [vmem:[#allocation7 + $0x120] ss:$24 sps:$4 sm:$0xff]  }
  0x72   : > { %v5820_v14 = vld [vmem:[%s235_s23] sm:$0xff]  ;;  %v5289_v16 = vld [vmem:[#allocation7 + $0xc] ss:$24 sps:$4 sm:$0xff]   ;;  %v5291_v17 = vld [vmem:[#allocation7 + $0x8] ss:$24 sps:$4 sm:$0xff]   ;;  %vm1124_vm0 = vcmask 1043456  }
  0x73   : > { %858 = vmatpush1.bf16.msra.mxu0 %v5244_v3  ;;  %v5824_v15 = vcombine.high %v5820_v14, %v5820_v14  ;;  %v5292_v18 = vld [vmem:[#allocation7 + $0x3c] ss:$24 sps:$4 sm:$0xff]   ;;  %896 = vmatprep.subr.bf16.mxu1 %v5289_v16  ;;  %v5262_v20 = vld [vmem:[#allocation7 + $0x150] ss:$24 sps:$4 sm:$0xff]   ;;  %v5295_v22 = vld [vmem:[#allocation7 + $0x6c] ss:$24 sps:$4 sm:$0xff]   ;;  %v5830_v57 = vcombine.low %v5820_v14, %v5820_v14 }
  0x74   : > { %859 = vmatprep.subr.bf16.mxu0 %v5245_v4  ;;  %v5260_v19 = vld [vmem:[#allocation7 + $0x154] ss:$24 sps:$4 sm:$0xff]   ;;  %897 = vmatpush1.bf16.msra.mxu1 %v5291_v17  ;;  %v5294_v21 = vld [vmem:[#allocation7 + $0x38] ss:$24 sps:$4 sm:$0xff]   ;;  %v5263_v23 = vld [vmem:[#allocation7 + $0x184] ss:$24 sps:$4 sm:$0xff]  }
  0x75   : > { %887 = vmatprep.mubr.bf16.mxu0 %v5824_v15  ;;  %928 = vmatprep.mubr.bf16.mxu1 %v5824_v15  ;;  %v5265_v24 = vld [vmem:[#allocation7 + $0x180] ss:$24 sps:$4 sm:$0xff]   ;;  %v5298_v26 = vld [vmem:[#allocation7 + $0x9c] ss:$24 sps:$4 sm:$0xff]   ;;  %v5268_v28 = vld [vmem:[#allocation7 + $0x1b0] ss:$24 sps:$4 sm:$0xff]  }
  0x76   : > { %898 = vmatprep.subr.bf16.mxu1 %v5292_v18  ;;  %v5297_v25 = vld [vmem:[#allocation7 + $0x68] ss:$24 sps:$4 sm:$0xff]   ;;  %v5266_v27 = vld [vmem:[#allocation7 + $0x1b4] ss:$24 sps:$4 sm:$0xff]   ;;  %v5300_v29 = vld [vmem:[#allocation7 + $0x98] ss:$24 sps:$4 sm:$0xff]  }
  0x77   : > { %860 = vmatpush1.bf16.msra.mxu0 %v5247_v5  ;;  %v5301_v30 = vld [vmem:[#allocation7 + $0xcc] ss:$24 sps:$4 sm:$0xff]   ;;  %v5271_v32 = vld [vmem:[#allocation7 + $0x1e0] ss:$24 sps:$4 sm:$0xff]   ;;  %v5304_v34 = vld [vmem:[#allocation7 + $0xfc] ss:$24 sps:$4 sm:$0xff]  }
  0x78   : > { %861 = vmatprep.subr.bf16.mxu0 %v5248_v6  ;;  %899 = vmatpush1.bf16.msra.mxu1 %v5294_v21  ;;  %v5269_v31 = vld [vmem:[#allocation7 + $0x1e4] ss:$24 sps:$4 sm:$0xff]   ;;  %v5303_v33 = vld [vmem:[#allocation7 + $0xc8] ss:$24 sps:$4 sm:$0xff]   ;;  %v5272_v35 = vld [vmem:[#allocation7 + $0x214] ss:$24 sps:$4 sm:$0xff]  }
  0x79   : > { %900 = vmatprep.subr.bf16.mxu1 %v5295_v22  ;;  %v5274_v36 = vld [vmem:[#allocation7 + $0x210] ss:$24 sps:$4 sm:$0xff]   ;;  %v5275_v37 = vld [vmem:[#allocation7 + $0x244] ss:$24 sps:$4 sm:$0xff]   ;;  %v5277_v41 = vld [vmem:[#allocation7 + $0x240] ss:$24 sps:$4 sm:$0xff]  }
  0x7a   : > { %v5306_v38 = vld [vmem:[#allocation7 + $0xf8] ss:$24 sps:$4 sm:$0xff]   ;;  %v5307_v39 = vld [vmem:[#allocation7 + $0x12c] ss:$24 sps:$4 sm:$0xff]   ;;  %v5309_v40 = vld [vmem:[#allocation7 + $0x128] ss:$24 sps:$4 sm:$0xff]  }
  0x7b   : > { %862 = vmatpush1.bf16.msra.mxu0 %v5250_v7  ;;  %v5310_v42 = vld [vmem:[#allocation7 + $0x15c] ss:$24 sps:$4 sm:$0xff]   ;;  %v5312_v44 = vld [vmem:[#allocation7 + $0x158] ss:$24 sps:$4 sm:$0xff]   ;;  %v5313_v46 = vld [vmem:[#allocation7 + $0x18c] ss:$24 sps:$4 sm:$0xff]  }
  0x7c   : > { %863 = vmatprep.subr.bf16.mxu0 %v5251_v8  ;;  %901 = vmatpush1.bf16.msra.mxu1 %v5297_v25  ;;  %v5278_v43 = vld [vmem:[#allocation7 + $0x274] ss:$24 sps:$4 sm:$0xff]   ;;  %v5280_v45 = vld [vmem:[#allocation7 + $0x270] ss:$24 sps:$4 sm:$0xff]   ;;  %v5281_v47 = vld [vmem:[#allocation7 + $0x2a4] ss:$24 sps:$4 sm:$0xff]  }
  0x7d   : > { %902 = vmatprep.subr.bf16.mxu1 %v5298_v26  ;;  %v5315_v48 = vld [vmem:[#allocation7 + $0x188] ss:$24 sps:$4 sm:$0xff]   ;;  %v5316_v50 = vld [vmem:[#allocation7 + $0x1bc] ss:$24 sps:$4 sm:$0xff]   ;;  %v5318_v52 = vld [vmem:[#allocation7 + $0x1b8] ss:$24 sps:$4 sm:$0xff]  }
  0x7e   : > { %v5283_v49 = vld [vmem:[#allocation7 + $0x2a0] ss:$24 sps:$4 sm:$0xff]   ;;  %v5284_v51 = vld [vmem:[#allocation7 + $0x2d4] ss:$24 sps:$4 sm:$0xff]   ;;  %v5286_v53 = vld [vmem:[#allocation7 + $0x2d0] ss:$24 sps:$4 sm:$0xff]  }
  0x7f   : > { %864 = vmatpush1.bf16.msra.mxu0 %v5253_v9  ;;  %v5319_v54 = vld [vmem:[#allocation7 + $0x1ec] ss:$24 sps:$4 sm:$0xff]   ;;  %v5321_v55 = vld [vmem:[#allocation7 + $0x1e8] ss:$24 sps:$4 sm:$0xff]   ;;  %v5322_v56 = vld [vmem:[#allocation7 + $0x21c] ss:$24 sps:$4 sm:$0xff]  }
  0x80   : > { %865 = vmatprep.subr.bf16.mxu0 %v5254_v10  ;;  %903 = vmatpush1.bf16.msra.mxu1 %v5300_v29  ;;  %9215 = vst [vmem:[#allocation14_spill] sm:$0xff] %v5830_v57  ;;  %v5324_v58 = vld [vmem:[#allocation7 + $0x218] ss:$24 sps:$4 sm:$0xff]   ;;  %v5325_v59 = vld [vmem:[#allocation7 + $0x24c] ss:$24 sps:$4 sm:$0xff]   ;;  %v9043_v3 = vmov 0  }
  0x81   : > { %904 = vmatprep.subr.bf16.mxu1 %v5301_v30  ;;  %v5327_v60 = vld [vmem:[#allocation7 + $0x248] ss:$24 sps:$4 sm:$0xff]   ;;  %v5328_v61 = vld [vmem:[#allocation7 + $0x27c] ss:$24 sps:$4 sm:$0xff]   ;;  %v5330_v62 = vld [vmem:[#allocation7 + $0x278] ss:$24 sps:$4 sm:$0xff]  }
  0x82   : > { %v5331_v63 = vld [vmem:[#allocation7 + $0x2ac] ss:$24 sps:$4 sm:$0xff]   ;;  %v5333_v0 = vld [vmem:[#allocation7 + $0x2a8] ss:$24 sps:$4 sm:$0xff]   ;;  %v5334_v1 = vld [vmem:[#allocation7 + $0x2dc] ss:$24 sps:$4 sm:$0xff]  }
  0x83   : > { %866 = vmatpush1.bf16.msra.mxu0 %v5256_v11  ;;  %v5336_v2 = vld [vmem:[#allocation7 + $0x2d8] ss:$24 sps:$4 sm:$0xff]   ;;  %vm1075_vm1 = vcmask 64512   ;;  %s4624_s12 = sshll.u32 %s5808_s14, 4  ;;  %s5164_s6 = sshll.u32 %s5660_s22, 8 }
  0x84   : > { %867 = vmatprep.subr.bf16.mxu0 %v5257_v12  ;;  %905 = vmatpush1.bf16.msra.mxu1 %v5303_v33  ;;  %s269_s13 = scalar_lea.vmem [#allocation10], %s4624_s12  ;;  %s8992_s9 = scalar_lea.hbm %s9039_s5, %s5164_s6 }
  0x85   : > { %906 = vmatprep.subr.bf16.mxu1 %v5304_v34  ;;  %s4523_s7 = sshll.u32 %s269_s13, 4  ;;  %s4509_s11 = scalar_lea.sflag [#allocation6], %s5808_s14  ;;  %s8987_s7 = int_to_ptr.vmem [resolvable:$true] %s4523_s7 }
  0x86   : > { %s5527_s15 = scalar_lea.vmem %s8987_s7, 256  ;;  %p9724_p0 = scmp.ne.s32.totalorder %s9210_s30, 0 }
  0x87   : > { %868 = vmatpush1.bf16.msra.mxu0 %v5259_v13  ;;  %p5528_p8 = scmp.ne.s32.totalorder %s8987_s7, %s5527_s15  ;;  %s5608_s22 = smov [#allocation10]  }
  0x88   : > { %869 = vmatprep.subr.bf16.mxu0 %v5260_v19  ;;  %907 = vmatpush1.bf16.msra.mxu1 %v5306_v38  ;;  %s5531_s17 = sshll.u32 %s5608_s22, 4  ;;  %s5532_s17 = int_to_ptr.vmem [resolvable:$false] %s5531_s17 }
  0x89   : > { %908 = vmatprep.subr.bf16.mxu1 %v5307_v39  ;;  %p5529_p1 = pnand %p5528_p8, %p9724_p0  ;;  %s5533_s23 = scalar_lea.vmem %s5532_s17, 512 }
  0x8a   : > { %p5534_p5 = scmp.lt.s32.totalorder %s8987_s7, %s5532_s17  ;;  %p5535_p9 = scmp.lt.s32.totalorder %s5533_s23, %s5527_s15 }
  0x8b   : > { %870 = vmatpush1.bf16.msra.mxu0 %v5262_v20  ;;  %p5530_p3 = pneg %p5529_p1 }
  0x8c   : > { %871 = vmatprep.subr.bf16.mxu0 %v5263_v23  ;;  %909 = vmatpush1.bf16.msra.mxu1 %v5309_v40  ;;  %p5536_p12 = por %p5535_p9, %p5534_p5 }
  0x8d   : > { %910 = vmatprep.subr.bf16.mxu1 %v5310_v42 }
  0x8e   : > { %p5537_p2 = pnand %p5536_p12, %p5530_p3 }
  0x8f   : > { %872 = vmatpush1.bf16.msra.mxu0 %v5265_v24 }
  0x90   : > { %873 = vmatprep.subr.bf16.mxu0 %v5266_v27  ;;  %911 = vmatpush1.bf16.msra.mxu1 %v5312_v44 }
  0x91   : > { %912 = vmatprep.subr.bf16.mxu1 %v5313_v46 }
  0x93   : > { %874 = vmatpush1.bf16.msra.mxu0 %v5268_v28 }
  0x94   : > { %875 = vmatprep.subr.bf16.mxu0 %v5269_v31  ;;  %913 = vmatpush1.bf16.msra.mxu1 %v5315_v48 }
  0x95   : > { %914 = vmatprep.subr.bf16.mxu1 %v5316_v50 }
  0x97   : > { %876 = vmatpush1.bf16.msra.mxu0 %v5271_v32 }
  0x98   : > { %877 = vmatprep.subr.bf16.mxu0 %v5272_v35  ;;  %915 = vmatpush1.bf16.msra.mxu1 %v5318_v52 }
  0x99   : > { %916 = vmatprep.subr.bf16.mxu1 %v5319_v54 }
  0x9b   : > { %878 = vmatpush1.bf16.msra.mxu0 %v5274_v36 }
  0x9c   : > { %879 = vmatprep.subr.bf16.mxu0 %v5275_v37  ;;  %917 = vmatpush1.bf16.msra.mxu1 %v5321_v55 }
  0x9d   : > { %918 = vmatprep.subr.bf16.mxu1 %v5322_v56 }
  0x9f   : > { %880 = vmatpush1.bf16.msra.mxu0 %v5277_v41 }
  0xa0   : > { %881 = vmatprep.subr.bf16.mxu0 %v5278_v43  ;;  %919 = vmatpush1.bf16.msra.mxu1 %v5324_v58 }
  0xa1   : > { %920 = vmatprep.subr.bf16.mxu1 %v5325_v59 }
  0xa3   : > { %882 = vmatpush1.bf16.msra.mxu0 %v5280_v45 }
  0xa4   : > { %883 = vmatprep.subr.bf16.mxu0 %v5281_v47  ;;  %921 = vmatpush1.bf16.msra.mxu1 %v5327_v60 }
  0xa5   : > { %922 = vmatprep.subr.bf16.mxu1 %v5328_v61 }
  0xa7   : > { %884 = vmatpush1.bf16.msra.mxu0 %v5283_v49 }
  0xa8   : > { %885 = vmatprep.subr.bf16.mxu0 %v5284_v51  ;;  %923 = vmatpush1.bf16.msra.mxu1 %v5330_v62 }
  0xa9   : > { %924 = vmatprep.subr.bf16.mxu1 %v5331_v63 }
  0xab   : > { %886 = vmatpush1.bf16.msra.mxu0 %v5286_v53 }
  0xac   : > { %925 = vmatpush1.bf16.msra.mxu1 %v5333_v0 }
  0xad   : > { %926 = vmatprep.subr.bf16.mxu1 %v5334_v1 }
  0xae   : > { %888 = vmatmul.mubr.bf16.vlgmr.msra.gmra.mrb[0].mxu0 %v5830_v57 }
  0xaf   : > { %969 = vmatprep.mubr.bf16.mxu0 %v5824_v15 }
  0xb0   : > { %927 = vmatpush1.bf16.msra.mxu1 %v5336_v2 }
  0xb3   : > { %929 = vmatmul.mubr.bf16.vlgmr.msra.gmra.mrb[0].mxu1 %v5830_v57 }
  0xb4   : > { %1163 = vmatprep.mubr.bf16.mxu1 %v9043_v3 }
 0x181   : > { %v889_v4 = vpop.f32.mrb[0].mxu0 }
 0x182   : > { %v999_v5 = vmul.f32 %v889_v4, %v889_v4  ;;  %v891_v6 = vpop.f32.mrb[1].mxu0 }
 0x183   : > { %v893_v7 = vpop.f32.mrb[2].mxu0  ;;  %v1000_v13 = vmul.f32 %v891_v6, %v891_v6 }
 0x184   : > { %v1001_v8 = vrot.slane %v999_v5, 4  ;;  %v894_v9 = vpop.f32.mrb[3].mxu0 }
 0x185   : > { %v1007_v16 = vrot.slane %v1000_v13, 4 }
 0x186   : > { %v1002_v10 = vadd.f32 %v1001_v8, %v999_v5  ;;  %v930_v20 = vpop.f32.mrb[0].mxu1 }
 0x187   : > { %v1008_v18 = vadd.f32 %v1007_v16, %v1000_v13  ;;  %v1019_v21 = vmul.f32 %v930_v20, %v930_v20  ;;  %v932_v22 = vpop.f32.mrb[1].mxu1 }
 0x188   : > { %v1003_v11 = vrot.slane %v1002_v10, 2  ;;  %v1020_v23 = vmul.f32 %v932_v22, %v932_v22  ;;  %v934_v24 = vpop.f32.mrb[2].mxu1 }
 0x189   : > { %v1009_v19 = vrot.slane %v1008_v18, 2  ;;  %v1021_v26 = vrot.slane %v1019_v21, 4  ;;  %v935_v27 = vpop.f32.mrb[3].mxu1 }
 0x18a   : > { %v1004_v12 = vadd.f32 %v1003_v11, %v1002_v10  ;;  %v1027_v29 = vrot.slane %v1020_v23, 4  ;;  %v984_v11 = vlaneseq }
 0x18b   : > { %v1010_v25 = vadd.f32 %v1009_v19, %v1008_v18  ;;  %v1022_v31 = vadd.f32 %v1021_v26, %v1019_v21 }
 0x18c   : > { %v1005_v14 = vrot.slane %v1004_v12, 1  ;;  %v1028_v32 = vadd.f32 %v1027_v29, %v1020_v23 }
 0x18d   : > { %v1011_v33 = vrot.slane %v1010_v25, 1  ;;  %v1023_v35 = vrot.slane %v1022_v31, 2 }
 0x18e   : > { %v1006_v15 = vadd.f32 %v1005_v14, %v1004_v12  ;;  %v1029_v36 = vrot.slane %v1028_v32, 2  ;;  %v985_v12 = vand.u32 127, %v984_v11 }
 0x18f   : > { %v1024_v37 = vadd.f32 %v1023_v35, %v1022_v31  ;;  %v1012_v39 = vadd.f32 %v1011_v33, %v1010_v25 }
 0x190   : > { %v1013_v17 = vmax.f32 %v1006_v15, 1e-24  ;;  %v1030_v38 = vadd.f32 %v1029_v36, %v1028_v32  ;;  %v986_v13 = vadd.s32 128, %v985_v12  ;;  %v5870_v15 = vsub.s32 255, %v985_v12 }
 0x191   : > { %v1025_v40 = vrot.slane %v1024_v37, 1  ;;  %v1014_v44 = vmax.f32 %v1012_v39, 1e-24 }
 0x192   : > { %5433 = vrsqrt.f32 %v1013_v17  ;;  %v1031_v41 = vrot.slane %v1030_v38, 1  ;;  %v5872_v18 = vsub.s32 255, %v986_v13 }
 0x193   : > { %v1026_v42 = vadd.f32 %v1025_v40, %v1024_v37 }
 0x194   : > { %v1032_v43 = vadd.f32 %v1031_v41, %v1030_v38 }
 0x195   : > { %v1033_v45 = vmax.f32 %v1026_v42, 1e-24 }
 0x196   : > { %v1034_v46 = vmax.f32 %v1032_v43, 1e-24 }
 0x197   : > { %5435 = vrsqrt.f32 %v1033_v45 }
 0x198   : > { %5437 = vrsqrt.f32 %v1034_v46 }
 0x199   : > { %5439 = vrsqrt.f32 %v1014_v44 }
 0x19c   : > { %v5434_v28 = vpop.eup %5433 }
 0x19d   : > { %v1017_v30 = vmul.f32 %v5434_v28, %v889_v4 }
 0x19f   : > { %v1039_v34 = vpack.c.bf16 %v1017_v30, %v1017_v30 }
 0x1a1   : > { %1043 = vxpose.xlu0.c.b16.start.end [1/1] (short) %v1039_v34, 128  ;;  %v5436_v47 = vpop.eup %5435 }
 0x1a2   : > { %v5438_v48 = vpop.eup %5437  ;;  %v1037_v49 = vmul.f32 %v5436_v47, %v930_v20 }
 0x1a3   : > { %v5440_v50 = vpop.eup %5439  ;;  %v1038_v51 = vmul.f32 %v5438_v48, %v932_v22 }
 0x1a4   : > { %v1041_v52 = vpack.c.bf16 %v1037_v49, %v1037_v49  ;;  %v1018_v54 = vmul.f32 %v5440_v50, %v891_v6 }
 0x1a5   : > { %v1042_v53 = vpack.c.bf16 %v1038_v51, %v1038_v51 }
 0x1a6   : > { %v1126_v55 = vsel %vm1124_vm0, %v1041_v52, 0  ;;  %v1040_v56 = vpack.c.bf16 %v1018_v54, %v1018_v54 }
 0x1a7   : > { %4723 = vmatprep.subr.msk.bf16.mxu1 %vm1124_vm0, %v1042_v53 }
 0x1a8   : > { %1132 = vmatpush1.bf16.msra.mxu1 %v1126_v55 }
 0x1be   : > { %1059 = vxpose.xlu0.c.b16.start.end [1/1] (short) %v1040_v56, 128 }
 0x1c7   : > { %5238 = vset.pattern.permute.xlu0 %v9043_v3 }
 0x207   : > { %v1051_v58 = vpop.trf.xlu0 }
 0x208   : > { %4724 = vmatmul.mubr.msk.bf16.vlgmr.msra.gmra.mrb[4].mxu1 %vm1075_vm1, %v1051_v58 }
 0x209   : > { %1173 = vmatprep.mubr.bf16.mxu1 %v9043_v3 }
 0x20b   : > { %v1052_v59 = vpop.trf.xlu0 }
 0x20f   : > { %v1053_v60 = vpop.trf.xlu0 }
 0x210   : > { %4725 = vmatmul.mubr.msk.bf16.gmra.mrb[8].mxu1 %vm1075_vm1, %v1052_v59 }
 0x211   : > { %1183 = vmatprep.mubr.bf16.mxu1 %v9043_v3 }
 0x213   : > { %v1054_v61 = vpop.trf.xlu0 }
 0x217   : > { %v1055_v62 = vpop.trf.xlu0 }
 0x218   : > { %4726 = vmatmul.mubr.msk.bf16.gmra.mrb[12].mxu1 %vm1075_vm1, %v1053_v60 }
 0x219   : > { %1193 = vmatprep.mubr.bf16.mxu1 %v9043_v3 }
 0x21b   : > { %v1056_v63 = vpop.trf.xlu0 }
 0x21f   : > { %v1057_v0 = vpop.trf.xlu0 }
 0x220   : > { %4727 = vmatmul.mubr.msk.bf16.gmra.mrb[16].mxu1 %vm1075_vm1, %v1054_v61 }
 0x221   : > { %1203 = vmatprep.mubr.bf16.mxu1 %v9043_v3 }
 0x223   : > { %v1058_v1 = vpop.trf.xlu0 }
 0x227   : > { %v1067_v2 = vpop.trf.xlu0 }
 0x228   : > { %4728 = vmatmul.mubr.msk.bf16.gmra.mrb[20].mxu1 %vm1075_vm1, %v1055_v62 }
 0x229   : > { %1213 = vmatprep.mubr.bf16.mxu1 %v9043_v3 }
 0x22b   : > { %v1068_v4 = vpop.trf.xlu0 }
 0x22f   : > { %v1069_v5 = vpop.trf.xlu0 }
 0x230   : > { %4729 = vmatmul.mubr.msk.bf16.gmra.mrb[24].mxu1 %vm1075_vm1, %v1056_v63 }
 0x231   : > { %1223 = vmatprep.mubr.bf16.mxu1 %v9043_v3 }
 0x233   : > { %v1070_v6 = vpop.trf.xlu0 }
 0x237   : > { %v1071_v7 = vpop.trf.xlu0 }
 0x238   : > { %4730 = vmatmul.mubr.msk.bf16.gmra.mrb[28].mxu1 %vm1075_vm1, %v1057_v0 }
 0x239   : > { %1233 = vmatprep.mubr.bf16.mxu1 %v9043_v3 }
 0x23b   : > { %v1072_v8 = vpop.trf.xlu0 }
 0x23f   : > { %v1073_v9 = vpop.trf.xlu0 }
 0x240   : > { %4731 = vmatmul.mubr.msk.bf16.gmra.mrb[32].mxu1 %vm1075_vm1, %v1058_v1 }
 0x241   : > { %1243 = vmatprep.mubr.bf16.mxu1 %v9043_v3 }
 0x243   : > { %v1074_v10 = vpop.trf.xlu0 }
 0x248   : > { %4732 = vmatmul.mubr.msk.bf16.gmra.mrb[36].mxu1 %vm1075_vm1, %v1067_v2 }
 0x249   : > { %1253 = vmatprep.mubr.bf16.mxu1 %v9043_v3 }
 0x250   : > { %4733 = vmatmul.mubr.msk.bf16.gmra.mrb[40].mxu1 %vm1075_vm1, %v1068_v4 }
 0x251   : > { %1263 = vmatprep.mubr.bf16.mxu1 %v9043_v3 }
 0x258   : > { %4734 = vmatmul.mubr.msk.bf16.gmra.mrb[44].mxu1 %vm1075_vm1, %v1069_v5 }
 0x259   : > { %1273 = vmatprep.mubr.bf16.mxu1 %v9043_v3 }
 0x260   : > { %4735 = vmatmul.mubr.msk.bf16.gmra.mrb[48].mxu1 %vm1075_vm1, %v1070_v6 }
 0x261   : > { %1283 = vmatprep.mubr.bf16.mxu1 %v9043_v3 }
 0x268   : > { %4736 = vmatmul.mubr.msk.bf16.gmra.mrb[52].mxu1 %vm1075_vm1, %v1071_v7 }
 0x269   : > { %1293 = vmatprep.mubr.bf16.mxu1 %v9043_v3 }
 0x270   : > { %4737 = vmatmul.mubr.msk.bf16.gmra.mrb[56].mxu1 %vm1075_vm1, %v1072_v8 }
 0x271   : > { %1303 = vmatprep.mubr.bf16.mxu1 %v9043_v3 }
 0x278   : > { %4738 = vmatmul.mubr.msk.bf16.gmra.mrb[60].mxu1 %vm1075_vm1, %v1073_v9 }
 0x279   : > { %1313 = vmatprep.mubr.bf16.mxu1 %v9043_v3 }
 0x280   : > { %4739 = vmatmul.mubr.msk.bf16.gmra.mrb[64].mxu1 %vm1075_vm1, %v1074_v10 }
 0x2db   : > { %v1165_v14 = vpop.f32.mrb[4].mxu1 }
 0x2dc   : > { %vm1388_vm2 = vcmp.gt.s32.totalorder %v1165_v14, 0  ;;  %v1167_v16 = vpop.f32.mrb[5].mxu1 }
 0x2dd   : > { %v1389_v17 = vsel %vm1388_vm2, %v1165_v14, 0  ;;  %vm1390_vm3 = vcmp.gt.s32.totalorder %v1167_v16, 0  ;;  %v1169_v19 = vpop.f32.mrb[6].mxu1 }
 0x2de   : > { %v1516_v20 = vand.u32 4294901760, %v1389_v17  ;;  %v1391_v21 = vsel %vm1390_vm3, %v1167_v16, 0  ;;  %vm1392_vm4 = vcmp.gt.s32.totalorder %v1169_v19, 0  ;;  %v1171_v22 = vpop.f32.mrb[7].mxu1 }
 0x2df   : > { %v1517_v23 = vand.u32 4294901760, %v1391_v21  ;;  %v1393_v24 = vsel %vm1392_vm4, %v1169_v19, 0  ;;  %vm1394_vm5 = vcmp.gt.s32.totalorder %v1171_v22, 0 }
 0x2e0   : > { %v5875_v25 = vor.u32 %v1516_v20, %v5870_v15  ;;  %v1518_v26 = vand.u32 4294901760, %v1393_v24  ;;  %v1395_v27 = vsel %vm1394_vm5, %v1171_v22, 0 }
 0x2e1   : > { %v5878_v28 = vor.u32 %v1517_v23, %v5872_v18  ;;  %v1519_v29 = vand.u32 4294901760, %v1395_v27 }
 0x2e2   : > { %9216 = vst [vmem:[#allocation15_spill] sm:$0xff] %v5875_v25  ;;  %v5881_v30 = vor.u32 %v1518_v26, %v5870_v15 }
 0x2e3   : > { %9217 = vst [vmem:[#allocation16_spill] sm:$0xff] %v5878_v28  ;;  %v5884_v31 = vor.u32 %v1519_v29, %v5872_v18  ;;  %v1175_v32 = vpop.f32.mrb[8].mxu1  ;;  %vm1646_vm6 = vcmp.gt.s32.totalorder %v5875_v25, %v5878_v28 }
 0x2e4   : > { %9218 = vst [vmem:[#allocation17_spill] sm:$0xff] %v5881_v30  ;;  %vm1396_vm7 = vcmp.gt.s32.totalorder %v1175_v32, 0  ;;  %v1177_v33 = vpop.f32.mrb[9].mxu1  ;;  %v5890_v34 = vsel %vm1646_vm6, %v5875_v25, %v5878_v28 }
 0x2e5   : > { %9219 = vst [vmem:[#allocation18_spill] sm:$0xff] %v5884_v31  ;;  %v1397_v35 = vsel %vm1396_vm7, %v1175_v32, 0  ;;  %vm1398_vm8 = vcmp.gt.s32.totalorder %v1177_v33, 0  ;;  %v1179_v36 = vpop.f32.mrb[10].mxu1  ;;  %v1649_v37 = vshra.s32 %v5890_v34, 16  ;;  %vm1662_vm9 = vcmp.gt.s32.totalorder %v5881_v30, %v5884_v31 }
 0x2e6   : > { %v1520_v38 = vand.u32 4294901760, %v1397_v35  ;;  %v1399_v39 = vsel %vm1398_vm8, %v1177_v33, 0  ;;  %vm1400_vm10 = vcmp.gt.s32.totalorder %v1179_v36, 0  ;;  %v1181_v40 = vpop.f32.mrb[11].mxu1  ;;  %v5897_v41 = vsel %vm1662_vm9, %v5881_v30, %v5884_v31 }
 0x2e7   : > { %v1521_v42 = vand.u32 4294901760, %v1399_v39  ;;  %v1401_v43 = vsel %vm1400_vm10, %v1179_v36, 0  ;;  %vm1402_vm11 = vcmp.gt.s32.totalorder %v1181_v40, 0  ;;  %v5899_v44 = vcvt.s32.f32 %v1649_v37 }
 0x2e8   : > { %v5902_v45 = vor.u32 %v1520_v38, %v5870_v15  ;;  %v1522_v46 = vand.u32 4294901760, %v1401_v43  ;;  %v1403_v47 = vsel %vm1402_vm11, %v1181_v40, 0  ;;  %v1665_v48 = vshra.s32 %v5897_v41, 16 }
 0x2e9   : > { %v5906_v49 = vor.u32 %v1521_v42, %v5872_v18  ;;  %v1523_v50 = vand.u32 4294901760, %v1403_v47  ;;  %1652 = vmax.xlane.f32.xlu1 %v5899_v44 }
 0x2ea   : > { %9220 = vst [vmem:[#allocation19_spill] sm:$0xff] %v5902_v45  ;;  %v5910_v51 = vor.u32 %v1522_v46, %v5870_v15  ;;  %v5915_v54 = vcvt.s32.f32 %v1665_v48 }
 0x2eb   : > { %9221 = vst [vmem:[#allocation20_spill] sm:$0xff] %v5906_v49  ;;  %v5913_v52 = vor.u32 %v1523_v50, %v5872_v18  ;;  %v1185_v53 = vpop.f32.mrb[12].mxu1  ;;  %vm1678_vm12 = vcmp.gt.s32.totalorder %v5902_v45, %v5906_v49 }
 0x2ec   : > { %9222 = vst [vmem:[#allocation21_spill] sm:$0xff] %v5910_v51  ;;  %vm1404_vm13 = vcmp.gt.s32.totalorder %v1185_v53, 0  ;;  %v1187_v55 = vpop.f32.mrb[13].mxu1  ;;  %v5921_v56 = vsel %vm1678_vm12, %v5902_v45, %v5906_v49 }
 0x2ed   : > { %9223 = vst [vmem:[#allocation22_spill] sm:$0xff] %v5913_v52  ;;  %v1405_v58 = vsel %vm1404_vm13, %v1185_v53, 0  ;;  %vm1406_vm14 = vcmp.gt.s32.totalorder %v1187_v55, 0  ;;  %1668 = vmax.xlane.f32.xlu1 %v5915_v54  ;;  %v1189_v59 = vpop.f32.mrb[14].mxu1  ;;  %v1681_v60 = vshra.s32 %v5921_v56, 16  ;;  %vm1694_vm15 = vcmp.gt.s32.totalorder %v5910_v51, %v5913_v52 }
 0x2ee   : > { %v1524_v61 = vand.u32 4294901760, %v1405_v58  ;;  %v1407_v62 = vsel %vm1406_vm14, %v1187_v55, 0  ;;  %vm1408_vm1 = vcmp.gt.s32.totalorder %v1189_v59, 0  ;;  %v1191_v63 = vpop.f32.mrb[15].mxu1  ;;  %v5929_v0 = vsel %vm1694_vm15, %v5910_v51, %v5913_v52 }
 0x2ef   : > { %v1525_v1 = vand.u32 4294901760, %v1407_v62  ;;  %v1409_v2 = vsel %vm1408_vm1, %v1189_v59, 0  ;;  %vm1410_vm2 = vcmp.gt.s32.totalorder %v1191_v63, 0  ;;  %v5931_v4 = vcvt.s32.f32 %v1681_v60 }
 0x2f0   : > { %v5934_v5 = vor.u32 %v1524_v61, %v5870_v15  ;;  %v1526_v6 = vand.u32 4294901760, %v1409_v2  ;;  %v1411_v7 = vsel %vm1410_vm2, %v1191_v63, 0  ;;  %v1697_v8 = vshra.s32 %v5929_v0, 16 }
 0x2f1   : > { %v5938_v9 = vor.u32 %v1525_v1, %v5872_v18  ;;  %v1527_v10 = vand.u32 4294901760, %v1411_v7  ;;  %1684 = vmax.xlane.f32.xlu1 %v5931_v4 }
 0x2f2   : > { %9224 = vst [vmem:[#allocation23_spill] sm:$0xff] %v5934_v5  ;;  %v5942_v11 = vor.u32 %v1526_v6, %v5870_v15  ;;  %v5947_v14 = vcvt.s32.f32 %v1697_v8 }
 0x2f3   : > { %9225 = vst [vmem:[#allocation24_spill] sm:$0xff] %v5938_v9  ;;  %v5945_v12 = vor.u32 %v1527_v10, %v5872_v18  ;;  %v1195_v13 = vpop.f32.mrb[16].mxu1  ;;  %vm1710_vm3 = vcmp.gt.s32.totalorder %v5934_v5, %v5938_v9 }
 0x2f4   : > { %9226 = vst [vmem:[#allocation25_spill] sm:$0xff] %v5942_v11  ;;  %vm1412_vm4 = vcmp.gt.s32.totalorder %v1195_v13, 0  ;;  %v1197_v16 = vpop.f32.mrb[17].mxu1  ;;  %v5953_v17 = vsel %vm1710_vm3, %v5934_v5, %v5938_v9 }
 0x2f5   : > { %9227 = vst [vmem:[#allocation26_spill] sm:$0xff] %v5945_v12  ;;  %v1413_v19 = vsel %vm1412_vm4, %v1195_v13, 0  ;;  %vm1414_vm5 = vcmp.gt.s32.totalorder %v1197_v16, 0  ;;  %1700 = vmax.xlane.f32.xlu1 %v5947_v14  ;;  %v1199_v20 = vpop.f32.mrb[18].mxu1  ;;  %v1713_v21 = vshra.s32 %v5953_v17, 16  ;;  %vm1726_vm6 = vcmp.gt.s32.totalorder %v5942_v11, %v5945_v12 }
 0x2f6   : > { %v1528_v22 = vand.u32 4294901760, %v1413_v19  ;;  %v1415_v23 = vsel %vm1414_vm5, %v1197_v16, 0  ;;  %vm1416_vm7 = vcmp.gt.s32.totalorder %v1199_v20, 0  ;;  %v1201_v24 = vpop.f32.mrb[19].mxu1  ;;  %v5961_v26 = vsel %vm1726_vm6, %v5942_v11, %v5945_v12 }
 0x2f7   : > { %v1529_v27 = vand.u32 4294901760, %v1415_v23  ;;  %v1417_v29 = vsel %vm1416_vm7, %v1199_v20, 0  ;;  %vm1418_vm8 = vcmp.gt.s32.totalorder %v1201_v24, 0  ;;  %v5963_v32 = vcvt.s32.f32 %v1713_v21 }
 0x2f8   : > { %v5966_v33 = vor.u32 %v1528_v22, %v5870_v15  ;;  %v1530_v35 = vand.u32 4294901760, %v1417_v29  ;;  %v1419_v36 = vsel %vm1418_vm8, %v1201_v24, 0  ;;  %v1729_v37 = vshra.s32 %v5961_v26, 16 }
 0x2f9   : > { %v5970_v38 = vor.u32 %v1529_v27, %v5872_v18  ;;  %v1531_v39 = vand.u32 4294901760, %v1419_v36  ;;  %1716 = vmax.xlane.f32.xlu1 %v5963_v32 }
 0x2fa   : > { %9228 = vst [vmem:[#allocation27_spill] sm:$0xff] %v5966_v33  ;;  %v5974_v40 = vor.u32 %v1530_v35, %v5870_v15  ;;  %v5979_v46 = vcvt.s32.f32 %v1729_v37 }
 0x2fb   : > { %9229 = vst [vmem:[#allocation28_spill] sm:$0xff] %v5970_v38  ;;  %v5977_v42 = vor.u32 %v1531_v39, %v5872_v18  ;;  %v1205_v43 = vpop.f32.mrb[20].mxu1  ;;  %vm1742_vm9 = vcmp.gt.s32.totalorder %v5966_v33, %v5970_v38 }
 0x2fc   : > { %9230 = vst [vmem:[#allocation29_spill] sm:$0xff] %v5974_v40  ;;  %vm1420_vm10 = vcmp.gt.s32.totalorder %v1205_v43, 0  ;;  %v1207_v47 = vpop.f32.mrb[21].mxu1  ;;  %v5985_v48 = vsel %vm1742_vm9, %v5966_v33, %v5970_v38 }
 0x2fd   : > { %9231 = vst [vmem:[#allocation30_spill] sm:$0xff] %v5977_v42  ;;  %v1421_v50 = vsel %vm1420_vm10, %v1205_v43, 0  ;;  %vm1422_vm11 = vcmp.gt.s32.totalorder %v1207_v47, 0  ;;  %1732 = vmax.xlane.f32.xlu1 %v5979_v46  ;;  %v1209_v53 = vpop.f32.mrb[22].mxu1  ;;  %v1745_v55 = vshra.s32 %v5985_v48, 16  ;;  %vm1758_vm12 = vcmp.gt.s32.totalorder %v5974_v40, %v5977_v42 }
 0x2fe   : > { %v1532_v58 = vand.u32 4294901760, %v1421_v50  ;;  %v1423_v59 = vsel %vm1422_vm11, %v1207_v47, 0  ;;  %vm1424_vm13 = vcmp.gt.s32.totalorder %v1209_v53, 0  ;;  %v1211_v60 = vpop.f32.mrb[23].mxu1  ;;  %v5993_v61 = vsel %vm1758_vm12, %v5974_v40, %v5977_v42 }
 0x2ff   : > { %v1533_v62 = vand.u32 4294901760, %v1423_v59  ;;  %v1425_v63 = vsel %vm1424_vm13, %v1209_v53, 0  ;;  %vm1426_vm14 = vcmp.gt.s32.totalorder %v1211_v60, 0  ;;  %v5995_v1 = vcvt.s32.f32 %v1745_v55 }
 0x300   : > { %v5998_v2 = vor.u32 %v1532_v58, %v5870_v15  ;;  %v1534_v6 = vand.u32 4294901760, %v1425_v63  ;;  %v1427_v7 = vsel %vm1426_vm14, %v1211_v60, 0  ;;  %v1761_v8 = vshra.s32 %v5993_v61, 16 }
 0x301   : > { %v6002_v10 = vor.u32 %v1533_v62, %v5872_v18  ;;  %v1535_v13 = vand.u32 4294901760, %v1427_v7  ;;  %1748 = vmax.xlane.f32.xlu1 %v5995_v1 }
 0x302   : > { %9232 = vst [vmem:[#allocation31_spill] sm:$0xff] %v5998_v2  ;;  %v6006_v16 = vor.u32 %v1534_v6, %v5870_v15  ;;  %v6011_v21 = vcvt.s32.f32 %v1761_v8 }
 0x303   : > { %9233 = vst [vmem:[#allocation32_spill] sm:$0xff] %v6002_v10  ;;  %v6009_v19 = vor.u32 %v1535_v13, %v5872_v18  ;;  %v1215_v20 = vpop.f32.mrb[24].mxu1  ;;  %vm1774_vm15 = vcmp.gt.s32.totalorder %v5998_v2, %v6002_v10 }
 0x304   : > { %9234 = vst [vmem:[#allocation33_spill] sm:$0xff] %v6006_v16  ;;  %vm1428_vm1 = vcmp.gt.s32.totalorder %v1215_v20, 0  ;;  %v1217_v22 = vpop.f32.mrb[25].mxu1  ;;  %v6017_v23 = vsel %vm1774_vm15, %v5998_v2, %v6002_v10 }
 0x305   : > { %9235 = vst [vmem:[#allocation34_spill] sm:$0xff] %v6009_v19  ;;  %v1429_v24 = vsel %vm1428_vm1, %v1215_v20, 0  ;;  %vm1430_vm2 = vcmp.gt.s32.totalorder %v1217_v22, 0  ;;  %1764 = vmax.xlane.f32.xlu1 %v6011_v21  ;;  %v1219_v27 = vpop.f32.mrb[26].mxu1  ;;  %v1777_v29 = vshra.s32 %v6017_v23, 16  ;;  %vm1790_vm3 = vcmp.gt.s32.totalorder %v6006_v16, %v6009_v19 }
 0x306   : > { %v1536_v35 = vand.u32 4294901760, %v1429_v24  ;;  %v1431_v36 = vsel %vm1430_vm2, %v1217_v22, 0  ;;  %vm1432_vm4 = vcmp.gt.s32.totalorder %v1219_v27, 0  ;;  %v1221_v37 = vpop.f32.mrb[27].mxu1  ;;  %v6025_v39 = vsel %vm1790_vm3, %v6006_v16, %v6009_v19 }
 0x307   : > { %v1537_v43 = vand.u32 4294901760, %v1431_v36  ;;  %v1433_v47 = vsel %vm1432_vm4, %v1219_v27, 0  ;;  %vm1434_vm5 = vcmp.gt.s32.totalorder %v1221_v37, 0  ;;  %v6027_v50 = vcvt.s32.f32 %v1777_v29 }
 0x308   : > { %v6030_v53 = vor.u32 %v1536_v35, %v5870_v15  ;;  %v1538_v55 = vand.u32 4294901760, %v1433_v47  ;;  %v1435_v58 = vsel %vm1434_vm5, %v1221_v37, 0  ;;  %v1793_v59 = vshra.s32 %v6025_v39, 16 }
 0x309   : > { %v6034_v60 = vor.u32 %v1537_v43, %v5872_v18  ;;  %v1539_v62 = vand.u32 4294901760, %v1435_v58  ;;  %1780 = vmax.xlane.f32.xlu1 %v6027_v50 }
 0x30a   : > { %9236 = vst [vmem:[#allocation35_spill] sm:$0xff] %v6030_v53  ;;  %v6038_v63 = vor.u32 %v1538_v55, %v5870_v15  ;;  %v6040_v6 = vcvt.s32.f32 %v1793_v59 }
 0x30b   : > { %9237 = vst [vmem:[#allocation36_spill] sm:$0xff] %v6034_v60  ;;  %v6043_v7 = vor.u32 %v1539_v62, %v5872_v18  ;;  %v1225_v8 = vpop.f32.mrb[28].mxu1  ;;  %vm1806_vm6 = vcmp.gt.s32.totalorder %v6030_v53, %v6034_v60 }
 0x30c   : > { %9238 = vst [vmem:[#allocation37_spill] sm:$0xff] %v6038_v63  ;;  %vm1436_vm7 = vcmp.gt.s32.totalorder %v1225_v8, 0  ;;  %1796 = vmax.xlane.f32.xlu0 %v6040_v6  ;;  %v1227_v13 = vpop.f32.mrb[29].mxu1  ;;  %v6050_v20 = vsel %vm1806_vm6, %v6030_v53, %v6034_v60 }
 0x30d   : > { %9239 = vst [vmem:[#allocation38_spill] sm:$0xff] %v6043_v7  ;;  %v1437_v22 = vsel %vm1436_vm7, %v1225_v8, 0  ;;  %vm1438_vm8 = vcmp.gt.s32.totalorder %v1227_v13, 0  ;;  %v1229_v24 = vpop.f32.mrb[30].mxu1  ;;  %v1809_v27 = vshra.s32 %v6050_v20, 16  ;;  %vm1822_vm9 = vcmp.gt.s32.totalorder %v6038_v63, %v6043_v7 }
 0x30e   : > { %v1540_v29 = vand.u32 4294901760, %v1437_v22  ;;  %v1439_v35 = vsel %vm1438_vm8, %v1227_v13, 0  ;;  %vm1440_vm10 = vcmp.gt.s32.totalorder %v1229_v24, 0  ;;  %v1231_v36 = vpop.f32.mrb[31].mxu1  ;;  %v6057_v37 = vsel %vm1822_vm9, %v6038_v63, %v6043_v7 }
 0x30f   : > { %v1541_v43 = vand.u32 4294901760, %v1439_v35  ;;  %v1441_v47 = vsel %vm1440_vm10, %v1229_v24, 0  ;;  %vm1442_vm11 = vcmp.gt.s32.totalorder %v1231_v36, 0  ;;  %v6059_v55 = vcvt.s32.f32 %v1809_v27 }
 0x310   : > { %v6062_v58 = vor.u32 %v1540_v29, %v5870_v15  ;;  %v1542_v59 = vand.u32 4294901760, %v1441_v47  ;;  %v1443_v62 = vsel %vm1442_vm11, %v1231_v36, 0  ;;  %v1825_v8 = vshra.s32 %v6057_v37, 16 }
 0x311   : > { %v6066_v13 = vor.u32 %v1541_v43, %v5872_v18  ;;  %v1543_v22 = vand.u32 4294901760, %v1443_v62  ;;  %1812 = vmax.xlane.f32.xlu1 %v6059_v55 }
 0x312   : > { %9240 = vst [vmem:[#allocation39_spill] sm:$0xff] %v6062_v58  ;;  %v6070_v3 = vor.u32 %v1542_v59, %v5870_v15  ;;  %v6072_v24 = vcvt.s32.f32 %v1825_v8 }
 0x313   : > { %9241 = vst [vmem:[#allocation40_spill] sm:$0xff] %v6066_v13  ;;  %v6075_v27 = vor.u32 %v1543_v22, %v5872_v18  ;;  %v1235_v29 = vpop.f32.mrb[32].mxu1  ;;  %vm1838_vm12 = vcmp.gt.s32.totalorder %v6062_v58, %v6066_v13 }
 0x314   : > { %9242 = vst [vmem:[#allocation41_spill] sm:$0xff] %v6070_v3  ;;  %vm1444_vm13 = vcmp.gt.s32.totalorder %v1235_v29, 0  ;;  %v1237_v35 = vpop.f32.mrb[33].mxu1  ;;  %v6081_v36 = vsel %vm1838_vm12, %v6062_v58, %v6066_v13 }
 0x315   : > { %9243 = vst [vmem:[#allocation42_spill] sm:$0xff] %v6075_v27  ;;  %v1445_v43 = vsel %vm1444_vm13, %v1235_v29, 0  ;;  %vm1446_vm14 = vcmp.gt.s32.totalorder %v1237_v35, 0  ;;  %1828 = vmax.xlane.f32.xlu1 %v6072_v24  ;;  %v1239_v47 = vpop.f32.mrb[34].mxu1  ;;  %v1841_v59 = vshra.s32 %v6081_v36, 16  ;;  %vm1854_vm15 = vcmp.gt.s32.totalorder %v6070_v3, %v6075_v27 }
 0x316   : > { %v1544_v62 = vand.u32 4294901760, %v1445_v43  ;;  %v1447_v8 = vsel %vm1446_vm14, %v1237_v35, 0  ;;  %vm1448_vm1 = vcmp.gt.s32.totalorder %v1239_v47, 0  ;;  %v1241_v22 = vpop.f32.mrb[35].mxu1  ;;  %v6089_v57 = vsel %vm1854_vm15, %v6070_v3, %v6075_v27 }
 0x317   : > { %v1545_v13 = vand.u32 4294901760, %v1447_v8  ;;  %v1449_v58 = vsel %vm1448_vm1, %v1239_v47, 0  ;;  %vm1450_vm2 = vcmp.gt.s32.totalorder %v1241_v22, 0  ;;  %v6091_v29 = vcvt.s32.f32 %v1841_v59 }
 0x318   : > { %v6094_v7 = vor.u32 %v1544_v62, %v5870_v15  ;;  %v1546_v63 = vand.u32 4294901760, %v1449_v58  ;;  %v1451_v60 = vsel %vm1450_vm2, %v1241_v22, 0  ;;  %v1857_v53 = vshra.s32 %v6089_v57, 16 }
 0x319   : > { %9244 = vst [vmem:[#allocation43_spill] sm:$0xff] %v6091_v29  ;;  %v6098_v35 = vor.u32 %v1545_v13, %v5872_v18  ;;  %v1547_v43 = vand.u32 4294901760, %v1451_v60  ;;  %1844 = vmax.xlane.f32.xlu1 %v6091_v29 }
 0x31a   : > { %9245 = vst [vmem:[#allocation44_spill] sm:$0xff] %v6094_v7  ;;  %v6102_v27 = vor.u32 %v1546_v63, %v5870_v15  ;;  %v6104_v47 = vcvt.s32.f32 %v1857_v53 }
 0x31b   : > { %9246 = vst [vmem:[#allocation45_spill] sm:$0xff] %v6098_v35  ;;  %v6107_v59 = vor.u32 %v1547_v43, %v5872_v18  ;;  %v1245_v62 = vpop.f32.mrb[36].mxu1  ;;  %vm1870_vm3 = vcmp.gt.s32.totalorder %v6094_v7, %v6098_v35 }
 0x31c   : > { %9247 = vst [vmem:[#allocation46_spill] sm:$0xff] %v6102_v27  ;;  %9248 = vst [vmem:[#allocation47_spill] sm:$0xff] %v6104_v47  ;;  %vm1452_vm4 = vcmp.gt.s32.totalorder %v1245_v62, 0  ;;  %v1247_v58 = vpop.f32.mrb[37].mxu1  ;;  %v6113_v13 = vsel %vm1870_vm3, %v6094_v7, %v6098_v35 }
 0x31d   : > { %9249 = vst [vmem:[#allocation48_spill] sm:$0xff] %v6107_v59  ;;  %9250 = vst [vmem:[#allocation49_spill] sm:$0xff] %v6113_v13  ;;  %v1453_v60 = vsel %vm1452_vm4, %v1245_v62, 0  ;;  %vm1454_vm5 = vcmp.gt.s32.totalorder %v1247_v58, 0  ;;  %1860 = vmax.xlane.f32.xlu1 %v6104_v47  ;;  %v1249_v63 = vpop.f32.mrb[38].mxu1  ;;  %v1873_v53 = vshra.s32 %v6113_v13, 16  ;;  %vm1886_vm6 = vcmp.gt.s32.totalorder %v6102_v27, %v6107_v59 }
 0x31e   : > { %v1548_v8 = vand.u32 4294901760, %v1453_v60  ;;  %v1455_v22 = vsel %vm1454_vm5, %v1247_v58, 0  ;;  %vm1456_vm7 = vcmp.gt.s32.totalorder %v1249_v63, 0  ;;  %v1251_v43 = vpop.f32.mrb[39].mxu1  ;;  %v6121_v3 = vsel %vm1886_vm6, %v6102_v27, %v6107_v59 }
 0x31f   : > { %9251 = vst [vmem:[#allocation50_spill] sm:$0xff] %v6121_v3  ;;  %v1549_v35 = vand.u32 4294901760, %v1455_v22  ;;  %v1457_v7 = vsel %vm1456_vm7, %v1249_v63, 0  ;;  %vm1458_vm8 = vcmp.gt.s32.totalorder %v1251_v43, 0  ;;  %v6123_v62 = vcvt.s32.f32 %v1873_v53 }
 0x320   : > { %v6126_v19 = vor.u32 %v1548_v8, %v5870_v15  ;;  %v1550_v16 = vand.u32 4294901760, %v1457_v7  ;;  %v1459_v10 = vsel %vm1458_vm8, %v1251_v43, 0  ;;  %v1889_v2 = vshra.s32 %v6121_v3, 16 }
 0x321   : > { %9252 = vst [vmem:[#allocation51_spill] sm:$0xff] %v6123_v62  ;;  %v6130_v58 = vor.u32 %v1549_v35, %v5872_v18  ;;  %v1551_v60 = vand.u32 4294901760, %v1459_v10  ;;  %1876 = vmax.xlane.f32.xlu1 %v6123_v62 }
 0x322   : > { %9253 = vst [vmem:[#allocation52_spill] sm:$0xff] %v6126_v19  ;;  %v6134_v59 = vor.u32 %v1550_v16, %v5870_v15  ;;  %v6136_v63 = vcvt.s32.f32 %v1889_v2 }
 0x323   : > { %9254 = vst [vmem:[#allocation53_spill] sm:$0xff] %v6130_v58  ;;  %v6139_v53 = vor.u32 %v1551_v60, %v5872_v18  ;;  %v1255_v8 = vpop.f32.mrb[40].mxu1  ;;  %vm1902_vm9 = vcmp.gt.s32.totalorder %v6126_v19, %v6130_v58 }
 0x324   : > { %9255 = vst [vmem:[#allocation54_spill] sm:$0xff] %v6134_v59  ;;  %9256 = vst [vmem:[#allocation55_spill] sm:$0xff] %v6136_v63  ;;  %vm1460_vm10 = vcmp.gt.s32.totalorder %v1255_v8, 0  ;;  %v1257_v7 = vpop.f32.mrb[41].mxu1  ;;  %v6145_v35 = vsel %vm1902_vm9, %v6126_v19, %v6130_v58 }
 0x325   : > { %9257 = vst [vmem:[#allocation56_spill] sm:$0xff] %v6139_v53  ;;  %9258 = vst [vmem:[#allocation57_spill] sm:$0xff] %v6145_v35  ;;  %v1461_v10 = vsel %vm1460_vm10, %v1255_v8, 0  ;;  %vm1462_vm11 = vcmp.gt.s32.totalorder %v1257_v7, 0  ;;  %1892 = vmax.xlane.f32.xlu1 %v6136_v63  ;;  %v1259_v16 = vpop.f32.mrb[42].mxu1  ;;  %v1905_v2 = vshra.s32 %v6145_v35, 16  ;;  %vm1918_vm12 = vcmp.gt.s32.totalorder %v6134_v59, %v6139_v53 }
 0x326   : > { %v1552_v22 = vand.u32 4294901760, %v1461_v10  ;;  %v1463_v43 = vsel %vm1462_vm11, %v1257_v7, 0  ;;  %vm1464_vm13 = vcmp.gt.s32.totalorder %v1259_v16, 0  ;;  %v1261_v60 = vpop.f32.mrb[43].mxu1  ;;  %v6153_v27 = vsel %vm1918_vm12, %v6134_v59, %v6139_v53 }
 0x327   : > { %9259 = vst [vmem:[#allocation58_spill] sm:$0xff] %v6153_v27  ;;  %v1553_v58 = vand.u32 4294901760, %v1463_v43  ;;  %v1465_v19 = vsel %vm1464_vm13, %v1259_v16, 0  ;;  %vm1466_vm14 = vcmp.gt.s32.totalorder %v1261_v60, 0  ;;  %v6155_v8 = vcvt.s32.f32 %v1905_v2 }
 0x328   : > { %v6158_v42 = vor.u32 %v1552_v22, %v5870_v15  ;;  %v1554_v40 = vand.u32 4294901760, %v1465_v19  ;;  %v1467_v38 = vsel %vm1466_vm14, %v1261_v60, 0  ;;  %v1921_v33 = vshra.s32 %v6153_v27, 16 }
 0x329   : > { %9260 = vst [vmem:[#allocation59_spill] sm:$0xff] %v6155_v8  ;;  %v6162_v7 = vor.u32 %v1553_v58, %v5872_v18  ;;  %v1555_v10 = vand.u32 4294901760, %v1467_v38  ;;  %1908 = vmax.xlane.f32.xlu1 %v6155_v8 }
 0x32a   : > { %9261 = vst [vmem:[#allocation60_spill] sm:$0xff] %v6158_v42  ;;  %v6166_v53 = vor.u32 %v1554_v40, %v5870_v15  ;;  %v6168_v16 = vcvt.s32.f32 %v1921_v33 }
 0x32b   : > { %9262 = vst [vmem:[#allocation61_spill] sm:$0xff] %v6162_v7  ;;  %v6171_v2 = vor.u32 %v1555_v10, %v5872_v18  ;;  %vm1934_vm15 = vcmp.gt.s32.totalorder %v6158_v42, %v6162_v7  ;;  %v1265_v19 = vpop.f32.mrb[44].mxu1 }
 0x32c   : > { %9263 = vst [vmem:[#allocation62_spill] sm:$0xff] %v6166_v53  ;;  %9264 = vst [vmem:[#allocation63_spill] sm:$0xff] %v6168_v16  ;;  %v6177_v22 = vsel %vm1934_vm15, %v6158_v42, %v6162_v7  ;;  %v1267_v58 = vpop.f32.mrb[45].mxu1  ;;  %vm1468_vm2 = vcmp.gt.s32.totalorder %v1265_v19, 0 }
 0x32d   : > { %9265 = vst [vmem:[#allocation64_spill] sm:$0xff] %v6171_v2  ;;  %9266 = vst [vmem:[#allocation65_spill] sm:$0xff] %v6177_v22  ;;  %1924 = vmax.xlane.f32.xlu1 %v6168_v16  ;;  %v1937_v38 = vshra.s32 %v6177_v22, 16  ;;  %vm1950_vm1 = vcmp.gt.s32.totalorder %v6166_v53, %v6171_v2  ;;  %v1269_v33 = vpop.f32.mrb[46].mxu1  ;;  %vm1470_vm3 = vcmp.gt.s32.totalorder %v1267_v58, 0 }
 0x32e   : > { %v6185_v40 = vsel %vm1950_vm1, %v6166_v53, %v6171_v2  ;;  %v1271_v43 = vpop.f32.mrb[47].mxu1  ;;  %v1471_v16 = vsel %vm1470_vm3, %v1267_v58, 0  ;;  %vm1472_vm4 = vcmp.gt.s32.totalorder %v1269_v33, 0 }
 0x32f   : > { %9267 = vst [vmem:[#allocation66_spill] sm:$0xff] %v6185_v40  ;;  %v6187_v60 = vcvt.s32.f32 %v1937_v38  ;;  %v1953_v10 = vshra.s32 %v6185_v40, 16  ;;  %v1469_v40 = vsel %vm1468_vm2, %v1265_v19, 0  ;;  %vm1474_vm5 = vcmp.gt.s32.totalorder %v1271_v43, 0 }
 0x330   : > { %v1556_v22 = vand.u32 4294901760, %v1469_v40  ;;  %v1557_v8 = vand.u32 4294901760, %v1471_v16  ;;  %v1473_v27 = vsel %vm1472_vm4, %v1269_v33, 0  ;;  %v1475_v63 = vsel %vm1474_vm5, %v1271_v43, 0 }
 0x331   : > { %9268 = vst [vmem:[#allocation67_spill] sm:$0xff] %v6187_v60  ;;  %1940 = vmax.xlane.f32.xlu1 %v6187_v60  ;;  %v6191_v7 = vcvt.s32.f32 %v1953_v10  ;;  %v1558_v13 = vand.u32 4294901760, %v1473_v27  ;;  %v1559_v29 = vand.u32 4294901760, %v1475_v63 }
 0x332   : > { %v6219_v3 = vor.u32 %v1556_v22, %v5870_v15  ;;  %v6222_v47 = vor.u32 %v1557_v8, %v5872_v18 }
 0x333   : > { %9269 = vst [vmem:[#allocation68_spill] sm:$0xff] %v6191_v7  ;;  %v1275_v42 = vpop.f32.mrb[48].mxu1 }
 0x334   : > { %v1277_v59 = vpop.f32.mrb[49].mxu1  ;;  %vm1476_vm6 = vcmp.gt.s32.totalorder %v1275_v42, 0  ;;  %vm1966_vm10 = vcmp.gt.s32.totalorder %v6219_v3, %v6222_v47 }
 0x335   : > { %1956 = vmax.xlane.f32.xlu1 %v6191_v7  ;;  %v1279_v12 = vpop.f32.mrb[50].mxu1  ;;  %vm1478_vm7 = vcmp.gt.s32.totalorder %v1277_v59, 0  ;;  %v1477_v35 = vsel %vm1476_vm6, %v1275_v42, 0  ;;  %v6227_v42 = vor.u32 %v1558_v13, %v5870_v15 }
 0x336   : > { %v1281_v11 = vpop.f32.mrb[51].mxu1  ;;  %v1479_v62 = vsel %vm1478_vm7, %v1277_v59, 0  ;;  %vm1480_vm8 = vcmp.gt.s32.totalorder %v1279_v12, 0  ;;  %v1560_v19 = vand.u32 4294901760, %v1477_v35  ;;  %v6230_v59 = vor.u32 %v1559_v29, %v5872_v18 }
 0x337   : > { %vm1482_vm9 = vcmp.gt.s32.totalorder %v1281_v11, 0  ;;  %v1561_v58 = vand.u32 4294901760, %v1479_v62  ;;  %v1481_v40 = vsel %vm1480_vm8, %v1279_v12, 0  ;;  %9270 = vst [vmem:[#allocation69_spill] sm:$0xff] %v6227_v42  ;;  %v1648_v12 = vand.u32 65535, %v5890_v34 }
 0x338   : > { %v1483_v16 = vsel %vm1482_vm9, %v1281_v11, 0  ;;  %9271 = vst [vmem:[#allocation70_spill] sm:$0xff] %v6230_v59  ;;  %v6233_v27 = vor.u32 %v1560_v19, %v5870_v15  ;;  %v1562_v11 = vand.u32 4294901760, %v1481_v40  ;;  %v6241_v35 = vsel %vm1966_vm10, %v6219_v3, %v6222_v47 }
 0x339   : > { %v6236_v63 = vor.u32 %v1561_v58, %v5872_v18  ;;  %v1563_v62 = vand.u32 4294901760, %v1483_v16  ;;  %v1664_v29 = vand.u32 65535, %v5897_v41  ;;  %vm1982_vm15 = vcmp.gt.s32.totalorder %v6227_v42, %v6230_v59 }
 0x33a   : > { %9272 = vst [vmem:[#allocation71_spill] sm:$0xff] %v6233_v27  ;;  %v1650_v22 = vcvt.s32.f32 %v1648_v12  ;;  %v1969_v33 = vshra.s32 %v6241_v35, 16  ;;  %v1680_v34 = vand.u32 65535, %v5921_v56  ;;  %v6253_v40 = vor.u32 %v1562_v11, %v5870_v15 }
 0x33b   : > { %v1285_v9 = vpop.f32.mrb[52].mxu1  ;;  %9273 = vst [vmem:[#allocation72_spill] sm:$0xff] %v6236_v63  ;;  %vm1998_vm1 = vcmp.gt.s32.totalorder %v6233_v27, %v6236_v63  ;;  %v6256_v41 = vor.u32 %v1563_v62, %v5872_v18  ;;  %v6262_v56 = vsel %vm1982_vm15, %v6227_v42, %v6230_v59  ;;  %v1696_v12 = vand.u32 65535, %v5929_v0 }
 0x33c   : > { %v1287_v5 = vpop.f32.mrb[53].mxu1  ;;  %vm1484_vm11 = vcmp.gt.s32.totalorder %v1285_v9, 0  ;;  %9274 = vst [vmem:[#allocation73_spill] sm:$0xff] %v6253_v40 }
 0x33d   : > { %v1289_v52 = vpop.f32.mrb[54].mxu1  ;;  %vm1486_vm12 = vcmp.gt.s32.totalorder %v1287_v5, 0  ;;  %v1485_v13 = vsel %vm1484_vm11, %v1285_v9, 0  ;;  %9275 = vst [vmem:[#allocation74_spill] sm:$0xff] %v6256_v41  ;;  %vm2014_vm6 = vcmp.gt.s32.totalorder %v6253_v40, %v6256_v41 }
 0x33e   : > { %v1291_v2 = vpop.f32.mrb[55].mxu1  ;;  %v1487_v8 = vsel %vm1486_vm12, %v1287_v5, 0  ;;  %vm1488_vm13 = vcmp.gt.s32.totalorder %v1289_v52, 0  ;;  %v1564_v19 = vand.u32 4294901760, %v1485_v13  ;;  %v1666_v13 = vcvt.s32.f32 %v1664_v29 }
 0x33f   : > { %vm1490_vm14 = vcmp.gt.s32.totalorder %v1291_v2, 0  ;;  %v1565_v9 = vand.u32 4294901760, %v1487_v8  ;;  %v1489_v5 = vsel %vm1488_vm13, %v1289_v52, 0  ;;  %v6267_v52 = vcvt.s32.f32 %v1969_v33 }
 0x340   : > { %v1491_v58 = vsel %vm1490_vm14, %v1291_v2, 0  ;;  %v1566_v2 = vand.u32 4294901760, %v1489_v5  ;;  %v6279_v0 = vor.u32 %v1564_v19, %v5870_v15  ;;  %v1682_v19 = vcvt.s32.f32 %v1680_v34 }
 0x341   : > { %v1567_v11 = vand.u32 4294901760, %v1491_v58  ;;  %v6282_v8 = vor.u32 %v1565_v9, %v5872_v18 }
 0x342   : > { %9276 = vst [vmem:[#allocation75_spill] sm:$0xff] %v6279_v0 }
 0x343   : > { %v6194_v53 = vpop.f32.mrb[56].mxu1  ;;  %9277 = vst [vmem:[#allocation76_spill] sm:$0xff] %v6282_v8  ;;  %vm2030_vm9 = vcmp.gt.s32.totalorder %v6279_v0, %v6282_v8 }
 0x344   : > { %v6196_v38 = vpop.f32.mrb[57].mxu1  ;;  %vm1492_vm3 = vcmp.gt.s32.totalorder %v6194_v53, 0 }
 0x345   : > { %v6198_v51 = vpop.f32.mrb[58].mxu1  ;;  %vm1494_vm4 = vcmp.gt.s32.totalorder %v6196_v38, 0  ;;  %v1493_v33 = vsel %vm1492_vm3, %v6194_v53, 0  ;;  %v6299_v53 = vor.u32 %v1567_v11, %v5872_v18 }
 0x346   : > { %v6200_v49 = vpop.f32.mrb[59].mxu1  ;;  %v1495_v5 = vsel %vm1494_vm4, %v6196_v38, 0  ;;  %vm1496_vm7 = vcmp.gt.s32.totalorder %v6198_v51, 0  ;;  %v1698_v38 = vcvt.s32.f32 %v1696_v12 }
 0x347   : > { %vm1498_vm8 = vcmp.gt.s32.totalorder %v6200_v49, 0  ;;  %9279 = vst [vmem:[#allocation78_spill] sm:$0xff] %v6299_v53 }
 0x348   : > { %v1499_v12 = vsel %vm1498_vm8, %v6200_v49, 0 }
 0x34b   : > { %v6202_v10 = vpop.f32.mrb[60].mxu1 }
 0x34c   : > { %v6204_v45 = vpop.f32.mrb[61].mxu1  ;;  %vm1500_vm11 = vcmp.gt.s32.totalorder %v6202_v10, 0 }
 0x34d   : > { %v6206_v31 = vpop.f32.mrb[62].mxu1  ;;  %vm1502_vm12 = vcmp.gt.s32.totalorder %v6204_v45, 0 }
 0x34e   : > { %v6208_v30 = vpop.f32.mrb[63].mxu1  ;;  %vm1504_vm15 = vcmp.gt.s32.totalorder %v6206_v31, 0 }
 0x353   : > { %v6210_v28 = vpop.f32.mrb[64].mxu1 }
 0x354   : > { %v6212_v25 = vpop.f32.mrb[65].mxu1  ;;  %vm1508_vm4 = vcmp.gt.s32.totalorder %v6210_v28, 0 }
 0x355   : > { %v6214_v7 = vpop.f32.mrb[66].mxu1 }
 0x356   : > { %v6216_v60 = vpop.f32.mrb[67].mxu1  ;;  %vm1512_vm8 = vcmp.gt.s32.totalorder %v6214_v7, 0 }
 0x376   : > { %v6250_v43 = vpop.xlane.xlu1 %1652 }
 0x377   : > { %vm1654_vm2 = vcmp.eq.f32.partialorder %v5899_v44, %v6250_v43  ;;  %v6274_v44 = vsel %vm1998_vm1, %v6233_v27, %v6236_v63  ;;  %v6305_v63 = vsel %vm2014_vm6, %v6253_v40, %v6256_v41  ;;  %vm1506_vm1 = vcmp.gt.s32.totalorder %v6208_v30, 0  ;;  %v9304_v41 = vld [vmem:[#allocation67_spill] sm:$0xff] }
 0x378   : > { %v1655_v16 = vsel %vm1654_vm2, %v1650_v22, -inf  ;;  %v1985_v22 = vshra.s32 %v6262_v56, 16  ;;  %v2001_v29 = vshra.s32 %v6274_v44, 16 }
 0x379   : > { %1656 = vmax.xlane.f32.xlu0 %v1655_v16  ;;  %v1568_v16 = vand.u32 4294901760, %v1493_v33  ;;  %v1712_v33 = vand.u32 65535, %v5953_v17 }
 0x37a   : > { %v6276_v62 = vpop.xlane.xlu1 %1668  ;;  %v6311_v34 = vcvt.s32.f32 %v1985_v22 }
 0x37b   : > { %vm1670_vm5 = vcmp.eq.f32.partialorder %v5915_v54, %v6276_v62  ;;  %v6296_v54 = vor.u32 %v1566_v2, %v5870_v15  ;;  %v1497_v2 = vsel %vm1496_vm7, %v6198_v51, 0  ;;  %v6331_v51 = vor.u32 %v1568_v16, %v5870_v15 }
 0x37c   : > { %v1671_v58 = vsel %vm1670_vm5, %v1666_v13, -inf  ;;  %v1569_v13 = vand.u32 4294901760, %v1495_v5  ;;  %v2017_v5 = vshra.s32 %v6305_v63, 16  ;;  %v1570_v22 = vand.u32 4294901760, %v1497_v2 }
 0x37d   : > { %1672 = vmax.xlane.f32.xlu1 %v1671_v58  ;;  %1972 = vmax.xlane.f32.xlu0 %v6267_v52  ;;  %9278 = vst [vmem:[#allocation77_spill] sm:$0xff] %v6296_v54  ;;  %v6315_v58 = vcvt.s32.f32 %v2001_v29  ;;  %vm2046_vm13 = vcmp.gt.s32.totalorder %v6296_v54, %v6299_v53  ;;  %9280 = vst [vmem:[#allocation79_spill] sm:$0xff] %v6331_v51  ;;  %v1571_v29 = vand.u32 4294901760, %v1499_v12  ;;  %v1714_v16 = vcvt.s32.f32 %v1712_v33 }
 0x37e   : > { %v6301_v9 = vpop.xlane.xlu1 %1684  ;;  %v6334_v17 = vor.u32 %v1569_v13, %v5872_v18  ;;  %v6344_v13 = vcvt.s32.f32 %v2017_v5  ;;  %v1505_v12 = vsel %vm1504_vm15, %v6206_v31, 0  ;;  %v1507_v33 = vsel %vm1506_vm1, %v6208_v30, 0 }
 0x37f   : > { %vm1686_vm10 = vcmp.eq.f32.partialorder %v5931_v4, %v6301_v9  ;;  %v6323_v4 = vsel %vm2030_vm9, %v6279_v0, %v6282_v8  ;;  %v1503_v0 = vsel %vm1502_vm12, %v6204_v45, 0  ;;  %vm1510_vm5 = vcmp.gt.s32.totalorder %v6212_v25, 0 }
 0x380   : > { %v1687_v11 = vsel %vm1686_vm10, %v1682_v19, -inf  ;;  %9281 = vst [vmem:[#allocation80_spill] sm:$0xff] %v6334_v17  ;;  %v1728_v19 = vand.u32 65535, %v5961_v26  ;;  %v2033_v2 = vshra.s32 %v6323_v4, 16  ;;  %v6357_v26 = vor.u32 %v1570_v22, %v5870_v15 }
 0x381   : > { %1688 = vmax.xlane.f32.xlu0 %v1687_v11  ;;  %1988 = vmax.xlane.f32.xlu1 %v6311_v34  ;;  %v1501_v11 = vsel %vm1500_vm11, %v6202_v10, 0  ;;  %v6360_v10 = vor.u32 %v1571_v29, %v5872_v18  ;;  %vm2062_vm2 = vcmp.gt.s32.totalorder %v6331_v51, %v6334_v17  ;;  %v1574_v31 = vand.u32 4294901760, %v1505_v12 }
 0x382   : > { %v6328_v49 = vpop.xlane.xlu1 %1700  ;;  %9282 = vst [vmem:[#allocation81_spill] sm:$0xff] %v6357_v26  ;;  %v1730_v22 = vcvt.s32.f32 %v1728_v19  ;;  %v6371_v29 = vcvt.s32.f32 %v2033_v2  ;;  %v6382_v30 = vsel %vm2062_vm2, %v6331_v51, %v6334_v17  ;;  %vm1514_vm9 = vcmp.gt.s32.totalorder %v6216_v60, 0  ;;  %v9300_v51 = vld [vmem:[#allocation59_spill] sm:$0xff] }
 0x383   : > { %vm1702_vm14 = vcmp.eq.f32.partialorder %v5947_v14, %v6328_v49  ;;  %v6352_v14 = vsel %vm2046_vm13, %v6296_v54, %v6299_v53  ;;  %9283 = vst [vmem:[#allocation82_spill] sm:$0xff] %v6360_v10  ;;  %v1744_v53 = vand.u32 65535, %v5985_v48  ;;  %vm2078_vm6 = vcmp.gt.s32.totalorder %v6357_v26, %v6360_v10  ;;  %v9302_v54 = vld [vmem:[#allocation63_spill] sm:$0xff] }
 0x384   : > { %v1703_v8 = vsel %vm1702_vm14, %v1698_v38, -inf  ;;  %v1573_v38 = vand.u32 4294901760, %v1503_v0  ;;  %v1575_v0 = vand.u32 4294901760, %v1507_v33  ;;  %v1760_v33 = vand.u32 65535, %v5993_v61 }
 0x385   : > { %1704 = vmax.xlane.f32.xlu1 %v1703_v8  ;;  %2004 = vmax.xlane.f32.xlu0 %v6315_v58  ;;  %v1572_v8 = vand.u32 4294901760, %v1501_v11  ;;  %v2049_v11 = vshra.s32 %v6352_v14, 16  ;;  %v1746_v12 = vcvt.s32.f32 %v1744_v53  ;;  %v6416_v53 = vsel %vm2078_vm6, %v6357_v26, %v6360_v10  ;;  %v9298_v26 = vld [vmem:[#allocation55_spill] sm:$0xff] }
 0x386   : > { %v6354_v45 = vpop.xlane.xlu1 %1716  ;;  %v6392_v19 = vor.u32 %v1573_v38, %v5872_v18  ;;  %v6409_v61 = vor.u32 %v1575_v0, %v5872_v18  ;;  %v1762_v0 = vcvt.s32.f32 %v1760_v33 }
 0x387   : > { %vm1718_vm3 = vcmp.eq.f32.partialorder %v5963_v32, %v6354_v45  ;;  %v6389_v48 = vor.u32 %v1572_v8, %v5870_v15  ;;  %v6398_v17 = vcvt.s32.f32 %v2049_v11  ;;  %v1513_v11 = vsel %vm1512_vm8, %v6214_v7, 0 }
 0x388   : > { %v1719_v5 = vsel %vm1718_vm3, %v1714_v16, -inf  ;;  %9285 = vst [vmem:[#allocation84_spill] sm:$0xff] %v6392_v19  ;;  %v1509_v16 = vsel %vm1508_vm4, %v6210_v28, 0  ;;  %v6406_v28 = vor.u32 %v1574_v31, %v5870_v15  ;;  %9287 = vst [vmem:[#allocation86_spill] sm:$0xff] %v6409_v61  ;;  %v1515_v31 = vsel %vm1514_vm9, %v6216_v60, 0 }
 0x389   : > { %1720 = vmax.xlane.f32.xlu0 %v1719_v5  ;;  %2020 = vmax.xlane.f32.xlu1 %v6344_v13  ;;  %9284 = vst [vmem:[#allocation83_spill] sm:$0xff] %v6389_v48  ;;  %v1511_v5 = vsel %vm1510_vm5, %v6212_v25, 0  ;;  %v1576_v25 = vand.u32 4294901760, %v1509_v16  ;;  %vm2094_vm11 = vcmp.gt.s32.totalorder %v6389_v48, %v6392_v19  ;;  %v1579_v33 = vand.u32 4294901760, %v1515_v31 }
 0x38a   : > { %v6375_v32 = vpop.xlane.xlu1 %1732  ;;  %9286 = vst [vmem:[#allocation85_spill] sm:$0xff] %v6406_v28  ;;  %v1577_v38 = vand.u32 4294901760, %v1511_v5  ;;  %v1776_v5 = vand.u32 65535, %v6017_v23  ;;  %v6436_v7 = vsel %vm2094_vm11, %v6389_v48, %v6392_v19  ;;  %vm2110_vm12 = vcmp.gt.s32.totalorder %v6406_v28, %v6409_v61 }
 0x38b   : > { %vm1734_vm7 = vcmp.eq.f32.partialorder %v5979_v46, %v6375_v32  ;;  %v2065_v46 = vshra.s32 %v6382_v30, 16  ;;  %v1792_v48 = vand.u32 65535, %v6025_v39 }
 0x38c   : > { %v1735_v2 = vsel %vm1734_vm7, %v1730_v22, -inf  ;;  %v6443_v60 = vor.u32 %v1577_v38, %v5872_v18  ;;  %v1778_v19 = vcvt.s32.f32 %v1776_v5  ;;  %v1808_v5 = vand.u32 65535, %v6050_v20 }
 0x38d   : > { %1736 = vmax.xlane.f32.xlu1 %v1735_v2  ;;  %2036 = vmax.xlane.f32.xlu0 %v6371_v29  ;;  %v6425_v16 = vcvt.s32.f32 %v2065_v46  ;;  %v2081_v2 = vshra.s32 %v6416_v53, 16  ;;  %v1824_v20 = vand.u32 65535, %v6057_v37  ;;  %v1840_v37 = vand.u32 65535, %v6081_v36 }
 0x38e   : > { %v6403_v8 = vpop.xlane.xlu1 %1748  ;;  %9289 = vst [vmem:[#allocation88_spill] sm:$0xff] %v6443_v60 }
 0x38f   : > { %vm1750_vm10 = vcmp.eq.f32.partialorder %v5995_v1, %v6403_v8  ;;  %v6431_v1 = vor.u32 %v1576_v25, %v5870_v15  ;;  %v6446_v23 = vcvt.s32.f32 %v2081_v2  ;;  %v2097_v25 = vshra.s32 %v6436_v7, 16 }
 0x390   : > { %v1751_v22 = vsel %vm1750_vm10, %v1746_v12, -inf  ;;  %v1578_v12 = vand.u32 4294901760, %v1513_v11  ;;  %v6462_v11 = vor.u32 %v1579_v33, %v5872_v18 }
 0x391   : > { %1752 = vmax.xlane.f32.xlu0 %v1751_v22  ;;  %2052 = vmax.xlane.f32.xlu1 %v6398_v17  ;;  %9288 = vst [vmem:[#allocation87_spill] sm:$0xff] %v6431_v1  ;;  %vm2126_vm15 = vcmp.gt.s32.totalorder %v6431_v1, %v6443_v60  ;;  %v6469_v39 = vcvt.s32.f32 %v2097_v25 }
 0x392   : > { %v6428_v10 = vpop.xlane.xlu1 %1764  ;;  %v6459_v38 = vor.u32 %v1578_v12, %v5870_v15  ;;  %9291 = vst [vmem:[#allocation90_spill] sm:$0xff] %v6462_v11  ;;  %v6477_v12 = vsel %vm2126_vm15, %v6431_v1, %v6443_v60  ;;  %v9292_v60 = vld [vmem:[#allocation43_spill] sm:$0xff]  ;;  %v9295_v1 = vld [vmem:[#allocation50_spill] sm:$0xff] }
 0x393   : > { %vm1766_vm13 = vcmp.eq.f32.partialorder %v6011_v21, %v6428_v10  ;;  %v6454_v21 = vsel %vm2110_vm12, %v6406_v28, %v6409_v61  ;;  %v1888_v61 = vand.u32 65535, %v9295_v1  ;;  %v9297_v28 = vld [vmem:[#allocation57_spill] sm:$0xff] }
 0x394   : > { %v1767_v46 = vsel %vm1766_vm13, %v1762_v0, -inf  ;;  %9290 = vst [vmem:[#allocation89_spill] sm:$0xff] %v6459_v38  ;;  %v2113_v2 = vshra.s32 %v6454_v21, 16  ;;  %vm2142_vm2 = vcmp.gt.s32.totalorder %v6459_v38, %v6462_v11 }
 0x395   : > { %1768 = vmax.xlane.f32.xlu1 %v1767_v46  ;;  %2068 = vmax.xlane.f32.xlu0 %v6425_v16  ;;  %v6490_v25 = vsel %vm2142_vm2, %v6459_v38, %v6462_v11 }
 0x396   : > { %v6449_v22 = vpop.xlane.xlu1 %1780  ;;  %v6482_v33 = vcvt.s32.f32 %v2113_v2 }
 0x397   : > { %vm1782_vm14 = vcmp.eq.f32.partialorder %v6027_v50, %v6449_v22  ;;  %v1794_v50 = vcvt.s32.f32 %v1792_v48  ;;  %v2129_v48 = vshra.s32 %v6477_v12, 16 }
 0x398   : > { %v1783_v31 = vsel %vm1782_vm14, %v1778_v19, -inf }
 0x399   : > { %v6466_v0 = vpop.xlane.xlu0 %1796  ;;  %1784 = vmax.xlane.f32.xlu0 %v1783_v31  ;;  %2084 = vmax.xlane.f32.xlu1 %v6446_v23  ;;  %v6495_v2 = vcvt.s32.f32 %v2129_v48  ;;  %v1842_v48 = vcvt.s32.f32 %v1840_v37 }
 0x39a   : > { %vm1798_vm1 = vcmp.eq.f32.partialorder %v6040_v6, %v6466_v0  ;;  %v1810_v6 = vcvt.s32.f32 %v1808_v5  ;;  %v1826_v5 = vcvt.s32.f32 %v1824_v20 }
 0x39b   : > { %v1799_v19 = vsel %vm1798_vm1, %v1794_v50, -inf  ;;  %v2145_v50 = vshra.s32 %v6490_v25, 16 }
 0x39d   : > { %2100 = vmax.xlane.f32.xlu0 %v6469_v39  ;;  %1800 = vmax.xlane.f32.xlu1 %v1799_v19 }
 0x39e   : > { %v6485_v46 = vpop.xlane.xlu1 %1812 }
 0x39f   : > { %vm1814_vm3 = vcmp.eq.f32.partialorder %v6059_v55, %v6485_v46  ;;  %v6504_v55 = vcvt.s32.f32 %v2145_v50 }
 0x3a0   : > { %v1815_v31 = vsel %vm1814_vm3, %v1810_v6, -inf }
 0x3a1   : > { %1816 = vmax.xlane.f32.xlu0 %v1815_v31  ;;  %2116 = vmax.xlane.f32.xlu1 %v6482_v33  ;;  %v1856_v31 = vand.u32 65535, %v6089_v57 }
 0x3a2   : > { %v6498_v19 = vpop.xlane.xlu1 %1828 }
 0x3a3   : > { %vm1830_vm4 = vcmp.eq.f32.partialorder %v6072_v24, %v6498_v19  ;;  %v1858_v24 = vcvt.s32.f32 %v1856_v31  ;;  %v1890_v31 = vcvt.s32.f32 %v1888_v61 }
 0x3a4   : > { %v1831_v11 = vsel %vm1830_vm4, %v1826_v5, -inf  ;;  %v9293_v5 = vld [vmem:[#allocation49_spill] sm:$0xff] }
 0x3a5   : > { %2132 = vmax.xlane.f32.xlu0 %v6495_v2  ;;  %1832 = vmax.xlane.f32.xlu1 %v1831_v11  ;;  %v1872_v38 = vand.u32 65535, %v9293_v5  ;;  %v9294_v11 = vld [vmem:[#allocation47_spill] sm:$0xff]  ;;  %v1904_v5 = vand.u32 65535, %v9297_v28 }
 0x3a6   : > { %v6506_v6 = vpop.xlane.xlu1 %1844 }
 0x3a7   : > { %vm1846_vm5 = vcmp.eq.f32.partialorder %v9292_v60, %v6506_v6  ;;  %v1874_v57 = vcvt.s32.f32 %v1872_v38  ;;  %v9296_v60 = vld [vmem:[#allocation51_spill] sm:$0xff]  ;;  %v1906_v38 = vcvt.s32.f32 %v1904_v5 }
 0x3a8   : > { %v1847_v20 = vsel %vm1846_vm5, %v1842_v48, -inf }
 0x3a9   : > { %1848 = vmax.xlane.f32.xlu0 %v1847_v20  ;;  %2148 = vmax.xlane.f32.xlu1 %v6504_v55 }
 0x3aa   : > { %v6512_v36 = vpop.xlane.xlu1 %1860 }
 0x3ab   : > { %vm1862_vm6 = vcmp.eq.f32.partialorder %v9294_v11, %v6512_v36 }
 0x3ac   : > { %v1863_v50 = vsel %vm1862_vm6, %v1858_v24, -inf }
 0x3ad   : > { %1864 = vmax.xlane.f32.xlu1 %v1863_v50  ;;  %v9299_v50 = vld [vmem:[#allocation58_spill] sm:$0xff] }
 0x3ae   : > { %v6517_v37 = vpop.xlane.xlu1 %1876  ;;  %v1920_v1 = vand.u32 65535, %v9299_v50 }
 0x3af   : > { %vm1878_vm7 = vcmp.eq.f32.partialorder %v9296_v60, %v6517_v37 }
 0x3b0   : > { %v1879_v48 = vsel %vm1878_vm7, %v1874_v57, -inf  ;;  %v1922_v61 = vcvt.s32.f32 %v1920_v1 }
 0x3b1   : > { %1880 = vmax.xlane.f32.xlu0 %v1879_v48  ;;  %v9301_v48 = vld [vmem:[#allocation65_spill] sm:$0xff] }
 0x3b2   : > { %v6522_v20 = vpop.xlane.xlu1 %1892  ;;  %v1936_v28 = vand.u32 65535, %v9301_v48 }
 0x3b3   : > { %vm1894_vm8 = vcmp.eq.f32.partialorder %v9298_v26, %v6522_v20 }
 0x3b4   : > { %v1895_v24 = vsel %vm1894_vm8, %v1890_v31, -inf  ;;  %v1938_v5 = vcvt.s32.f32 %v1936_v28  ;;  %v1968_v28 = vand.u32 65535, %v6241_v35 }
 0x3b5   : > { %1896 = vmax.xlane.f32.xlu1 %v1895_v24  ;;  %v9303_v24 = vld [vmem:[#allocation66_spill] sm:$0xff] }
 0x3b6   : > { %v6527_v11 = vpop.xlane.xlu1 %1908  ;;  %v1952_v50 = vand.u32 65535, %v9303_v24 }
 0x3b7   : > { %vm1910_vm9 = vcmp.eq.f32.partialorder %v9300_v51, %v6527_v11 }
 0x3b8   : > { %v1911_v57 = vsel %vm1910_vm9, %v1906_v38, -inf  ;;  %v1954_v1 = vcvt.s32.f32 %v1952_v50  ;;  %v2016_v50 = vand.u32 65535, %v6305_v63  ;;  %v2032_v63 = vand.u32 65535, %v6323_v4 }
 0x3b9   : > { %1912 = vmax.xlane.f32.xlu0 %v1911_v57  ;;  %v9305_v57 = vld [vmem:[#allocation68_spill] sm:$0xff] }
 0x3ba   : > { %v6532_v60 = vpop.xlane.xlu1 %1924 }
 0x3bb   : > { %vm1926_vm10 = vcmp.eq.f32.partialorder %v9302_v54, %v6532_v60  ;;  %v1659_v54 = vcvt.f32.s32 %v6250_v43  ;;  %v1970_v43 = vcvt.s32.f32 %v1968_v28 }
 0x3bc   : > { %v1927_v26 = vsel %vm1926_vm10, %v1922_v61, -inf }
 0x3bd   : > { %1928 = vmax.xlane.f32.xlu1 %v1927_v26  ;;  %v1984_v26 = vand.u32 65535, %v6262_v56  ;;  %v1660_v24 = vshll.u32 %v1659_v54, 16 }
 0x3be   : > { %v6537_v31 = vpop.xlane.xlu1 %1940 }
 0x3bf   : > { %vm1942_vm11 = vcmp.eq.f32.partialorder %v9304_v41, %v6537_v31  ;;  %v1675_v41 = vcvt.f32.s32 %v6276_v62  ;;  %v1986_v27 = vcvt.s32.f32 %v1984_v26 }
 0x3c0   : > { %v1943_v51 = vsel %vm1942_vm11, %v1938_v5, -inf }
 0x3c1   : > { %1944 = vmax.xlane.f32.xlu0 %v1943_v51  ;;  %v2000_v51 = vand.u32 65535, %v6274_v44  ;;  %v1676_v59 = vshll.u32 %v1675_v41, 16  ;;  %v6559_v44 = vcvt.s32.f32 %v2016_v50  ;;  %v9312_v41 = vld [vmem:[#allocation16_spill] sm:$0xff] }
 0x3c2   : > { %v6542_v38 = vpop.xlane.xlu1 %1956 }
 0x3c3   : > { %vm1958_vm12 = vcmp.eq.f32.partialorder %v9305_v57, %v6542_v38  ;;  %v1691_v57 = vcvt.f32.s32 %v6301_v9  ;;  %v6557_v62 = vcvt.s32.f32 %v2000_v51 }
 0x3c4   : > { %v1959_v48 = vsel %vm1958_vm12, %v1954_v1, -inf }
 0x3c5   : > { %1960 = vmax.xlane.f32.xlu1 %v1959_v48 }
 0x406   : > { %v1657_v61 = vpop.xlane.xlu0 %1656 }
 0x407   : > { %v1658_v5 = vcvt.f32.s32 %v1657_v61  ;;  %v1692_v61 = vshll.u32 %v1691_v57, 16  ;;  %v2080_v57 = vand.u32 65535, %v6416_v53  ;;  %v9316_v53 = vld [vmem:[#allocation17_spill] sm:$0xff] }
 0x409   : > { %v1661_v40 = vadd.s32 %v1660_v24, %v1658_v5  ;;  %v9310_v24 = vld [vmem:[#allocation15_spill] sm:$0xff]  ;;  %v1707_v5 = vcvt.f32.s32 %v6328_v49  ;;  %v1739_v49 = vcvt.f32.s32 %v6375_v32 }
 0x40a   : > { %v1673_v1 = vpop.xlane.xlu1 %1672  ;;  %v6553_v48 = vpop.xlane.xlu0 %1972 }
 0x40b   : > { %v2158_v35 = vand.u32 65535, %v1661_v40  ;;  %v1674_v42 = vcvt.f32.s32 %v1673_v1  ;;  %vm1974_vm13 = vcmp.eq.f32.partialorder %v6267_v52, %v6553_v48  ;;  %v2048_v52 = vand.u32 65535, %v6352_v14 }
 0x40c   : > { %v1975_v56 = vsel %vm1974_vm13, %v1970_v43, -inf  ;;  %v1723_v1 = vcvt.f32.s32 %v6354_v45  ;;  %v6621_v40 = vcvt.s32.f32 %v2032_v63 }
 0x40d   : > { %vm6563_vm14 = vcmp.eq.s32.totalorder %v5870_v15, %v2158_v35  ;;  %v1677_v54 = vadd.s32 %v1676_v59, %v1674_v42  ;;  %1976 = vmax.xlane.f32.xlu0 %v1975_v56  ;;  %vm6568_vm15 = vcmp.eq.s32.totalorder %v5872_v18, %v2158_v35  ;;  %v2064_v59 = vand.u32 65535, %v6382_v30  ;;  %v9318_v56 = vld [vmem:[#allocation18_spill] sm:$0xff] }
 0x40e   : > { %v6573_v28 = vpop.xlane.xlu1 %1988  ;;  %v1689_v26 = vpop.xlane.xlu0 %1688  ;;  %v6578_v4 = vsel %vm6563_vm14, 4294967295, %v9310_v24  ;;  %v6583_v42 = vsel %vm6568_vm15, 4294967295, %v9312_v41  ;;  %v9121_v24 = vmov 1.0|1.0   ;;  %v1724_v43 = vshll.u32 %v1723_v1, 16  ;;  %v9324_v1 = vld [vmem:[#allocation19_spill] sm:$0xff] }
 0x40f   : > { %9311 = vst [vmem:[#allocation43_spill] sm:$0xff] %v6578_v4  ;;  %9313 = vst [vmem:[#allocation49_spill] sm:$0xff] %v6583_v42  ;;  %v2159_v51 = vand.u32 65535, %v1677_v54  ;;  %v1690_v14 = vcvt.f32.s32 %v1689_v26  ;;  %vm1990_vm1 = vcmp.eq.f32.partialorder %v6311_v34, %v6573_v28  ;;  %vm2519_vm2 = vcmp.gt.s32.totalorder %v6578_v4, %v6583_v42 }
 0x410   : > { %v1991_v50 = vsel %vm1990_vm1, %v1986_v27, -inf  ;;  %v6606_v45 = vsel %vm2519_vm2, %v6578_v4, %v6583_v42 }
 0x411   : > { %vm6594_vm3 = vcmp.eq.s32.totalorder %v5870_v15, %v2159_v51  ;;  %v1693_v30 = vadd.s32 %v1692_v61, %v1690_v14  ;;  %1992 = vmax.xlane.f32.xlu1 %v1991_v50  ;;  %vm2193_vm4 = vcmp.eq.s32.totalorder %v5872_v18, %v2159_v51  ;;  %v1708_v61 = vshll.u32 %v1707_v5, 16 }
 0x412   : > { %v1705_v34 = vpop.xlane.xlu1 %1704  ;;  %v6600_v27 = vpop.xlane.xlu0 %2004  ;;  %vm4804_vm5 = vmpackc.low %vm2193_vm4, %vm6568_vm15  ;;  %v6611_v35 = vsel %vm6594_vm3, 4294967295, %v9316_v53  ;;  %v6614_v54 = vsel %vm2193_vm4, 4294967295, %v9318_v56  ;;  %v2522_v41 = vshra.s32 %v6606_v45, 16  ;;  %v6627_v5 = vcvt.s32.f32 %v2048_v52 }
 0x413   : > { %9317 = vst [vmem:[#allocation47_spill] sm:$0xff] %v6611_v35  ;;  %9319 = vst [vmem:[#allocation50_spill] sm:$0xff] %v6614_v54  ;;  %v2160_v32 = vand.u32 65535, %v1693_v30  ;;  %v1706_v26 = vcvt.f32.s32 %v1705_v34  ;;  %4805 = vmatprep.subr.msk.bf16.mxu1 %vm4804_vm5, %v9121_v24  ;;  %vm2535_vm7 = vcmp.gt.s32.totalorder %v6611_v35, %v6614_v54  ;;  %v6629_v51 = vcvt.s32.f32 %v2064_v59 }
 0x414   : > { %vm4806_vm6 = vmpackc.low %vm6594_vm3, %vm6563_vm14  ;;  %v6638_v63 = vsel %vm2535_vm7, %v6611_v35, %v6614_v54  ;;  %v6640_v50 = vcvt.s32.f32 %v2080_v57  ;;  %v1740_v30 = vshll.u32 %v1739_v49, 16  ;;  %v6642_v34 = vcvt.s32.f32 %v2522_v41 }
 0x415   : > { %4807 = vmatpush1.bf16.xpose.msk.msra.mxu1 %vm4806_vm6, %v9121_v24  ;;  %vm6632_vm8 = vcmp.eq.s32.totalorder %v5870_v15, %v2160_v32  ;;  %v1709_v9 = vadd.s32 %v1708_v61, %v1706_v26  ;;  %v2538_v53 = vshra.s32 %v6638_v63, 16  ;;  %v1755_v56 = vcvt.f32.s32 %v6403_v8  ;;  %v9326_v8 = vld [vmem:[#allocation20_spill] sm:$0xff] }
 0x416   : > { %v6644_v52 = vpop.xlane.xlu1 %2020  ;;  %v1721_v59 = vpop.xlane.xlu0 %1720  ;;  %vm6649_vm9 = vcmp.eq.s32.totalorder %v5872_v18, %v2160_v32  ;;  %2525 = vmax.xlane.f32.xlu0 %v6642_v34  ;;  %vm2006_vm10 = vcmp.eq.f32.partialorder %v6315_v58, %v6600_v27  ;;  %v6661_v49 = vsel %vm6632_vm8, 4294967295, %v9324_v1  ;;  %v1771_v32 = vcvt.f32.s32 %v6428_v10  ;;  %v9330_v10 = vld [vmem:[#allocation21_spill] sm:$0xff] }
 0x417   : > { %v2161_v24 = vand.u32 65535, %v1709_v9  ;;  %v1722_v42 = vcvt.f32.s32 %v1721_v59  ;;  %v6654_v57 = vcvt.s32.f32 %v2538_v53  ;;  %9325 = vst [vmem:[#allocation51_spill] sm:$0xff] %v6661_v49  ;;  %v6666_v26 = vsel %vm6649_vm9, 4294967295, %v9326_v8 }
 0x418   : > { %9327 = vst [vmem:[#allocation57_spill] sm:$0xff] %v6666_v26  ;;  %vm2022_vm14 = vcmp.eq.f32.partialorder %v6344_v13, %v6644_v52  ;;  %vm2551_vm15 = vcmp.gt.s32.totalorder %v6661_v49, %v6666_v26  ;;  %v2007_v61 = vsel %vm2006_vm10, %v6557_v62, -inf  ;;  %v9334_v54 = vmov 1.0|1.0  }
 0x419   : > { %vm6670_vm11 = vcmp.eq.s32.totalorder %v5870_v15, %v2161_v24  ;;  %v1725_v9 = vadd.s32 %v1724_v43, %v1722_v42  ;;  %vm2197_vm12 = vcmp.eq.s32.totalorder %v5872_v18, %v2161_v24  ;;  %2541 = vmax.xlane.f32.xlu1 %v6654_v57  ;;  %v9332_v24 = vld [vmem:[#allocation22_spill] sm:$0xff]  ;;  %v2096_v58 = vand.u32 65535, %v6436_v7 }
 0x41a   : > { %v1737_v59 = vpop.xlane.xlu1 %1736  ;;  %v6676_v53 = vpop.xlane.xlu0 %2036  ;;  %vm4808_vm13 = vmpackc.low %vm2197_vm12, %vm6649_vm9  ;;  %v6687_v42 = vsel %vm6670_vm11, 4294967295, %v9330_v10  ;;  %v6690_v43 = vsel %vm2197_vm12, 4294967295, %v9332_v24  ;;  %v6703_v10 = vsel %vm2551_vm15, %v6661_v49, %v6666_v26  ;;  %2008 = vmax.xlane.f32.xlu0 %v2007_v61  ;;  %v2112_v62 = vand.u32 65535, %v6454_v21 }
 0x41b   : > { %9331 = vst [vmem:[#allocation55_spill] sm:$0xff] %v6687_v42  ;;  %9333 = vst [vmem:[#allocation58_spill] sm:$0xff] %v6690_v43  ;;  %v2162_v1 = vand.u32 65535, %v1725_v9  ;;  %v1738_v8 = vcvt.f32.s32 %v1737_v59  ;;  %4809 = vmatprep.subr.msk.bf16.mxu1 %vm4808_vm13, %v9334_v54  ;;  %v2554_v9 = vshra.s32 %v6703_v10, 16  ;;  %vm2567_vm2 = vcmp.gt.s32.totalorder %v6687_v42, %v6690_v43 }
 0x41c   : > { %vm4810_vm1 = vmpackc.low %vm6670_vm11, %vm6632_vm8  ;;  %v2023_v59 = vsel %vm2022_vm14, %v6559_v44, -inf  ;;  %v6722_v24 = vsel %vm2567_vm2, %v6687_v42, %v6690_v43  ;;  %v1756_v61 = vshll.u32 %v1755_v56, 16  ;;  %v1772_v26 = vshll.u32 %v1771_v32, 16  ;;  %v9339_v56 = vld [vmem:[#allocation23_spill] sm:$0xff] }
 0x41d   : > { %4811 = vmatpush1.bf16.xpose.msk.msra.mxu1 %vm4810_vm1, %v9334_v54  ;;  %vm6712_vm3 = vcmp.eq.s32.totalorder %v5870_v15, %v2162_v1  ;;  %v1741_v41 = vadd.s32 %v1740_v30, %v1738_v8  ;;  %2024 = vmax.xlane.f32.xlu1 %v2023_v59  ;;  %v6724_v7 = vcvt.s32.f32 %v2554_v9  ;;  %v2570_v35 = vshra.s32 %v6722_v24, 16 }
 0x41e   : > { %v6726_v21 = vpop.xlane.xlu1 %2052  ;;  %v1753_v49 = vpop.xlane.xlu0 %1752  ;;  %v1787_v30 = vcvt.f32.s32 %v6449_v22  ;;  %vm6731_vm4 = vcmp.eq.s32.totalorder %v5872_v18, %v2162_v1  ;;  %vm2038_vm5 = vcmp.eq.f32.partialorder %v6371_v29, %v6676_v53  ;;  %v6743_v32 = vsel %vm6712_vm3, 4294967295, %v9339_v56  ;;  %v9341_v22 = vld [vmem:[#allocation24_spill] sm:$0xff] }
 0x41f   : > { %v2163_v8 = vand.u32 65535, %v1741_v41  ;;  %v1754_v4 = vcvt.f32.s32 %v1753_v49  ;;  %2557 = vmax.xlane.f32.xlu0 %v6724_v7  ;;  %v6736_v44 = vcvt.s32.f32 %v2570_v35  ;;  %9340 = vst [vmem:[#allocation59_spill] sm:$0xff] %v6743_v32  ;;  %v6748_v49 = vsel %vm6731_vm4, 4294967295, %v9341_v22 }
 0x420   : > { %9342 = vst [vmem:[#allocation65_spill] sm:$0xff] %v6748_v49  ;;  %v1803_v1 = vcvt.f32.s32 %v6466_v0  ;;  %vm2054_vm9 = vcmp.eq.f32.partialorder %v6398_v17, %v6726_v21  ;;  %vm2583_vm10 = vcmp.gt.s32.totalorder %v6743_v32, %v6748_v49  ;;  %v9345_v0 = vld [vmem:[#allocation25_spill] sm:$0xff]  ;;  %v2039_v13 = vsel %vm2038_vm5, %v6621_v40, -inf }
 0x421   : > { %vm6752_vm6 = vcmp.eq.s32.totalorder %v5870_v15, %v2163_v8  ;;  %v1757_v35 = vadd.s32 %v1756_v61, %v1754_v4  ;;  %vm2201_vm7 = vcmp.eq.s32.totalorder %v5872_v18, %v2163_v8  ;;  %2573 = vmax.xlane.f32.xlu1 %v6736_v44  ;;  %v9347_v61 = vld [vmem:[#allocation26_spill] sm:$0xff]  ;;  %v6791_v29 = vcvt.s32.f32 %v2096_v58 }
 0x422   : > { %v1769_v41 = vpop.xlane.xlu1 %1768  ;;  %v6758_v59 = vpop.xlane.xlu0 %2068  ;;  %vm4812_vm8 = vmpackc.low %vm2201_vm7, %vm6731_vm4  ;;  %v6769_v4 = vsel %vm6752_vm6, 4294967295, %v9345_v0  ;;  %v6772_v8 = vsel %vm2201_vm7, 4294967295, %v9347_v61  ;;  %v6785_v0 = vsel %vm2583_vm10, %v6743_v32, %v6748_v49  ;;  %v6793_v40 = vcvt.s32.f32 %v2112_v62 }
 0x423   : > { %9346 = vst [vmem:[#allocation63_spill] sm:$0xff] %v6769_v4  ;;  %9348 = vst [vmem:[#allocation66_spill] sm:$0xff] %v6772_v8  ;;  %v2164_v56 = vand.u32 65535, %v1757_v35  ;;  %v1770_v22 = vcvt.f32.s32 %v1769_v41  ;;  %4813 = vmatprep.subr.msk.bf16.mxu1 %vm4812_vm8, %v9334_v54  ;;  %2040 = vmax.xlane.f32.xlu0 %v2039_v13  ;;  %v2586_v35 = vshra.s32 %v6785_v0, 16  ;;  %vm2599_vm12 = vcmp.gt.s32.totalorder %v6769_v4, %v6772_v8 }
 0x424   : > { %vm4814_vm11 = vmpackc.low %vm6752_vm6, %vm6712_vm3  ;;  %v2055_v41 = vsel %vm2054_vm9, %v6627_v5, -inf  ;;  %v6806_v61 = vsel %vm2599_vm12, %v6769_v4, %v6772_v8  ;;  %v1788_v13 = vshll.u32 %v1787_v30, 16  ;;  %v1804_v58 = vshll.u32 %v1803_v1, 16  ;;  %v9353_v30 = vld [vmem:[#allocation27_spill] sm:$0xff] }
 0x425   : > { %4815 = vmatpush1.bf16.xpose.msk.msra.mxu1 %vm4814_vm11, %v9334_v54  ;;  %vm6796_vm13 = vcmp.eq.s32.totalorder %v5870_v15, %v2164_v56  ;;  %v1773_v9 = vadd.s32 %v1772_v26, %v1770_v22  ;;  %2056 = vmax.xlane.f32.xlu1 %v2055_v41  ;;  %v6808_v62 = vcvt.s32.f32 %v2586_v35  ;;  %v2602_v43 = vshra.s32 %v6806_v61, 16 }
 0x426   : > { %v6810_v49 = vpop.xlane.xlu1 %2084  ;;  %v1785_v32 = vpop.xlane.xlu0 %1784  ;;  %v1819_v26 = vcvt.f32.s32 %v6485_v46  ;;  %vm6815_vm14 = vcmp.eq.s32.totalorder %v5872_v18, %v2164_v56  ;;  %vm2070_vm15 = vcmp.eq.f32.partialorder %v6425_v16, %v6758_v59  ;;  %v6827_v1 = vsel %vm6796_vm13, 4294967295, %v9353_v30  ;;  %v9355_v46 = vld [vmem:[#allocation28_spill] sm:$0xff] }
 0x427   : > { %v2165_v22 = vand.u32 65535, %v1773_v9  ;;  %v1786_v42 = vcvt.f32.s32 %v1785_v32  ;;  %2589 = vmax.xlane.f32.xlu0 %v6808_v62  ;;  %v6820_v5 = vcvt.s32.f32 %v2602_v43  ;;  %9354 = vst [vmem:[#allocation67_spill] sm:$0xff] %v6827_v1  ;;  %v6832_v32 = vsel %vm6815_vm14, 4294967295, %v9355_v46 }
 0x428   : > { %9356 = vst [vmem:[#allocation68_spill] sm:$0xff] %v6832_v32  ;;  %v1835_v56 = vcvt.f32.s32 %v6498_v19  ;;  %vm2086_vm4 = vcmp.eq.f32.partialorder %v6446_v23, %v6810_v49  ;;  %vm2615_vm5 = vcmp.gt.s32.totalorder %v6827_v1, %v6832_v32  ;;  %v9359_v19 = vld [vmem:[#allocation29_spill] sm:$0xff]  ;;  %v2071_v17 = vsel %vm2070_vm15, %v6629_v51, -inf }
 0x429   : > { %vm6836_vm1 = vcmp.eq.s32.totalorder %v5870_v15, %v2165_v22  ;;  %v1789_v43 = vadd.s32 %v1788_v13, %v1786_v42  ;;  %vm2205_vm2 = vcmp.eq.s32.totalorder %v5872_v18, %v2165_v22  ;;  %2605 = vmax.xlane.f32.xlu1 %v6820_v5  ;;  %v9361_v13 = vld [vmem:[#allocation30_spill] sm:$0xff]  ;;  %v2128_v16 = vand.u32 65535, %v6477_v12 }
 0x42a   : > { %v1801_v9 = vpop.xlane.xlu1 %1800  ;;  %v6842_v41 = vpop.xlane.xlu0 %2100  ;;  %vm4816_vm3 = vmpackc.low %vm2205_vm2, %vm6815_vm14  ;;  %v6853_v42 = vsel %vm6836_vm1, 4294967295, %v9359_v19  ;;  %v6856_v22 = vsel %vm2205_vm2, 4294967295, %v9361_v13  ;;  %v6869_v19 = vsel %vm2615_vm5, %v6827_v1, %v6832_v32  ;;  %v2144_v51 = vand.u32 65535, %v6490_v25 }
 0x42b   : > { %9360 = vst [vmem:[#allocation15_spill] sm:$0xff] %v6853_v42  ;;  %9362 = vst [vmem:[#allocation16_spill] sm:$0xff] %v6856_v22  ;;  %v2166_v30 = vand.u32 65535, %v1789_v43  ;;  %v1802_v46 = vcvt.f32.s32 %v1801_v9  ;;  %4817 = vmatprep.subr.msk.bf16.mxu1 %vm4816_vm3, %v9334_v54  ;;  %2072 = vmax.xlane.f32.xlu0 %v2071_v17  ;;  %v2618_v43 = vshra.s32 %v6869_v19, 16  ;;  %vm2631_vm7 = vcmp.gt.s32.totalorder %v6853_v42, %v6856_v22 }
 0x42c   : > { %vm4818_vm6 = vmpackc.low %vm6836_vm1, %vm6796_vm13  ;;  %v2087_v9 = vsel %vm2086_vm4, %v6640_v50, -inf  ;;  %v6888_v13 = vsel %vm2631_vm7, %v6853_v42, %v6856_v22  ;;  %v1820_v17 = vshll.u32 %v1819_v26, 16  ;;  %v1836_v32 = vshll.u32 %v1835_v56, 16  ;;  %v9367_v26 = vld [vmem:[#allocation31_spill] sm:$0xff] }
 0x42d   : > { %4819 = vmatpush1.bf16.xpose.msk.msra.mxu1 %vm4818_vm6, %v9334_v54  ;;  %vm6878_vm8 = vcmp.eq.s32.totalorder %v5870_v15, %v2166_v30  ;;  %v1805_v35 = vadd.s32 %v1804_v58, %v1802_v46  ;;  %2088 = vmax.xlane.f32.xlu1 %v2087_v9  ;;  %v6890_v12 = vcvt.s32.f32 %v2618_v43  ;;  %v2634_v8 = vshra.s32 %v6888_v13, 16 }
 0x42e   : > { %v6892_v25 = vpop.xlane.xlu1 %2116  ;;  %v1817_v1 = vpop.xlane.xlu0 %1816  ;;  %v1851_v58 = vcvt.f32.s32 %v6506_v6  ;;  %vm6897_vm9 = vcmp.eq.s32.totalorder %v5872_v18, %v2166_v30  ;;  %vm2102_vm10 = vcmp.eq.f32.partialorder %v6469_v39, %v6842_v41  ;;  %v6909_v56 = vsel %vm6878_vm8, 4294967295, %v9367_v26  ;;  %v9369_v6 = vld [vmem:[#allocation32_spill] sm:$0xff] }
 0x42f   : > { %v2167_v46 = vand.u32 65535, %v1805_v35  ;;  %v1818_v4 = vcvt.f32.s32 %v1817_v1  ;;  %2621 = vmax.xlane.f32.xlu0 %v6890_v12  ;;  %v6902_v50 = vcvt.s32.f32 %v2634_v8  ;;  %9368 = vst [vmem:[#allocation17_spill] sm:$0xff] %v6909_v56  ;;  %v6914_v1 = vsel %vm6897_vm9, 4294967295, %v9369_v6 }
 0x430   : > { %9370 = vst [vmem:[#allocation18_spill] sm:$0xff] %v6914_v1  ;;  %v1867_v30 = vcvt.f32.s32 %v6512_v36  ;;  %vm2118_vm14 = vcmp.eq.f32.partialorder %v6482_v33, %v6892_v25  ;;  %vm2647_vm15 = vcmp.gt.s32.totalorder %v6909_v56, %v6914_v1  ;;  %v9373_v36 = vld [vmem:[#allocation33_spill] sm:$0xff]  ;;  %v2103_v23 = vsel %vm2102_vm10, %v6791_v29, -inf }
 0x431   : > { %vm6918_vm11 = vcmp.eq.s32.totalorder %v5870_v15, %v2167_v46  ;;  %v1821_v8 = vadd.s32 %v1820_v17, %v1818_v4  ;;  %vm2209_vm12 = vcmp.eq.s32.totalorder %v5872_v18, %v2167_v46  ;;  %2637 = vmax.xlane.f32.xlu1 %v6902_v50  ;;  %v9375_v17 = vld [vmem:[#allocation34_spill] sm:$0xff]  ;;  %v2130_v39 = vcvt.s32.f32 %v2128_v16 }
 0x432   : > { %v1833_v35 = vpop.xlane.xlu1 %1832  ;;  %v6924_v9 = vpop.xlane.xlu0 %2132  ;;  %vm4820_vm13 = vmpackc.low %vm2209_vm12, %vm6897_vm9  ;;  %v6935_v4 = vsel %vm6918_vm11, 4294967295, %v9373_v36  ;;  %v6938_v46 = vsel %vm2209_vm12, 4294967295, %v9375_v17  ;;  %v6951_v36 = vsel %vm2647_vm15, %v6909_v56, %v6914_v1  ;;  %v2146_v29 = vcvt.s32.f32 %v2144_v51 }
 0x433   : > { %9374 = vst [vmem:[#allocation19_spill] sm:$0xff] %v6935_v4  ;;  %9376 = vst [vmem:[#allocation20_spill] sm:$0xff] %v6938_v46  ;;  %v2168_v26 = vand.u32 65535, %v1821_v8  ;;  %v1834_v6 = vcvt.f32.s32 %v1833_v35  ;;  %4821 = vmatprep.subr.msk.bf16.mxu1 %vm4820_vm13, %v9334_v54  ;;  %2104 = vmax.xlane.f32.xlu0 %v2103_v23  ;;  %v2650_v8 = vshra.s32 %v6951_v36, 16  ;;  %vm2663_vm2 = vcmp.gt.s32.totalorder %v6935_v4, %v6938_v46 }
 0x434   : > { %vm4822_vm1 = vmpackc.low %vm6918_vm11, %vm6878_vm8  ;;  %v2119_v35 = vsel %vm2118_vm14, %v6793_v40, -inf  ;;  %v6968_v17 = vsel %vm2663_vm2, %v6935_v4, %v6938_v46  ;;  %v1852_v23 = vshll.u32 %v1851_v58, 16  ;;  %vm2134_vm4 = vcmp.eq.f32.partialorder %v6495_v2, %v6924_v9  ;;  %v9383_v2 = vld [vmem:[#allocation36_spill] sm:$0xff] }
 0x435   : > { %4823 = vmatpush1.bf16.xpose.msk.msra.mxu1 %vm4822_vm1, %v9334_v54  ;;  %vm6958_vm3 = vcmp.eq.s32.totalorder %v5870_v15, %v2168_v26  ;;  %v1837_v43 = vadd.s32 %v1836_v32, %v1834_v6  ;;  %2120 = vmax.xlane.f32.xlu1 %v2119_v35  ;;  %v6970_v1 = vcvt.s32.f32 %v2650_v8  ;;  %v2666_v56 = vshra.s32 %v6968_v17, 16  ;;  %v9381_v35 = vld [vmem:[#allocation35_spill] sm:$0xff] }
 0x436   : > { %v6972_v16 = vpop.xlane.xlu1 %2148  ;;  %v1849_v51 = vpop.xlane.xlu0 %1848  ;;  %v1868_v32 = vshll.u32 %v1867_v30, 16  ;;  %vm6978_vm5 = vcmp.eq.s32.totalorder %v5872_v18, %v2168_v26  ;;  %v1883_v58 = vcvt.f32.s32 %v6517_v37  ;;  %v6989_v46 = vsel %vm6958_vm3, 4294967295, %v9381_v35 }
 0x437   : > { %v2169_v6 = vand.u32 65535, %v1837_v43  ;;  %v1850_v33 = vcvt.f32.s32 %v1849_v51  ;;  %2653 = vmax.xlane.f32.xlu0 %v6970_v1  ;;  %v6984_v8 = vcvt.s32.f32 %v2666_v56  ;;  %9382 = vst [vmem:[#allocation21_spill] sm:$0xff] %v6989_v46  ;;  %v6994_v30 = vsel %vm6978_vm5, 4294967295, %v9383_v2  ;;  %v9387_v51 = vld [vmem:[#allocation37_spill] sm:$0xff] }
 0x438   : > { %9384 = vst [vmem:[#allocation22_spill] sm:$0xff] %v6994_v30  ;;  %v2135_v43 = vsel %vm2134_vm4, %v2130_v39, -inf  ;;  %vm2150_vm9 = vcmp.eq.f32.partialorder %v6504_v55, %v6972_v16  ;;  %vm2679_vm10 = vcmp.gt.s32.totalorder %v6989_v46, %v6994_v30  ;;  %v9389_v39 = vld [vmem:[#allocation38_spill] sm:$0xff]  ;;  %v1884_v2 = vshll.u32 %v1883_v58, 16 }
 0x439   : > { %vm6997_vm6 = vcmp.eq.s32.totalorder %v5870_v15, %v2169_v6  ;;  %v1853_v37 = vadd.s32 %v1852_v23, %v1850_v33  ;;  %vm2213_vm7 = vcmp.eq.s32.totalorder %v5872_v18, %v2169_v6  ;;  %2669 = vmax.xlane.f32.xlu1 %v6984_v8  ;;  %v7024_v40 = vsel %vm2679_vm10, %v6989_v46, %v6994_v30  ;;  %v9397_v46 = vld [vmem:[#allocation40_spill] sm:$0xff] }
 0x43a   : > { %v1865_v56 = vpop.xlane.xlu1 %1864  ;;  %vm4824_vm8 = vmpackc.low %vm2213_vm7, %vm6978_vm5  ;;  %v7012_v35 = vsel %vm6997_vm6, 4294967295, %v9387_v51  ;;  %v7015_v23 = vsel %vm2213_vm7, 4294967295, %v9389_v39  ;;  %v2151_v51 = vsel %vm2150_vm9, %v2146_v29, -inf }
 0x43b   : > { %9388 = vst [vmem:[#allocation23_spill] sm:$0xff] %v7012_v35  ;;  %9390 = vst [vmem:[#allocation24_spill] sm:$0xff] %v7015_v23  ;;  %v2170_v6 = vand.u32 65535, %v1853_v37  ;;  %v1866_v33 = vcvt.f32.s32 %v1865_v56  ;;  %4825 = vmatprep.subr.msk.bf16.mxu1 %vm4824_vm8, %v9334_v54  ;;  %vm2695_vm12 = vcmp.gt.s32.totalorder %v7012_v35, %v7015_v23  ;;  %2136 = vmax.xlane.f32.xlu0 %v2135_v43  ;;  %v2682_v37 = vshra.s32 %v7024_v40, 16 }
 0x43c   : > { %vm4826_vm11 = vmpackc.low %vm6997_vm6, %vm6958_vm3  ;;  %v7032_v56 = vsel %vm2695_vm12, %v7012_v35, %v7015_v23  ;;  %v1899_v43 = vcvt.f32.s32 %v6522_v20  ;;  %v9395_v35 = vld [vmem:[#allocation39_spill] sm:$0xff] }
 0x43d   : > { %4827 = vmatpush1.bf16.xpose.msk.msra.mxu1 %vm4826_vm11, %v9334_v54  ;;  %vm7035_vm13 = vcmp.eq.s32.totalorder %v5870_v15, %v2170_v6  ;;  %v1869_v26 = vadd.s32 %v1868_v32, %v1866_v33  ;;  %v2698_v58 = vshra.s32 %v7032_v56, 16  ;;  %2152 = vmax.xlane.f32.xlu1 %v2151_v51  ;;  %v7044_v39 = vcvt.s32.f32 %v2682_v37  ;;  %v9401_v51 = vld [vmem:[#allocation41_spill] sm:$0xff] }
 0x43e   : > { %v1881_v30 = vpop.xlane.xlu0 %1880  ;;  %vm7047_vm14 = vcmp.eq.s32.totalorder %v5872_v18, %v2170_v6  ;;  %v7054_v32 = vsel %vm7035_vm13, 4294967295, %v9395_v35 }
 0x43f   : > { %9396 = vst [vmem:[#allocation25_spill] sm:$0xff] %v7054_v32  ;;  %v2171_v55 = vand.u32 65535, %v1869_v26  ;;  %v1882_v29 = vcvt.f32.s32 %v1881_v30  ;;  %v7056_v33 = vcvt.s32.f32 %v2698_v58  ;;  %v7061_v20 = vsel %vm7047_vm14, 4294967295, %v9397_v46  ;;  %2685 = vmax.xlane.f32.xlu0 %v7044_v39  ;;  %v9403_v58 = vld [vmem:[#allocation42_spill] sm:$0xff] }
 0x440   : > { %9398 = vst [vmem:[#allocation26_spill] sm:$0xff] %v7061_v20  ;;  %vm2711_vm15 = vcmp.gt.s32.totalorder %v7054_v32, %v7061_v20  ;;  %v1915_v46 = vcvt.f32.s32 %v6527_v11 }
 0x441   : > { %vm7067_vm1 = vcmp.eq.s32.totalorder %v5870_v15, %v2171_v55  ;;  %v1885_v35 = vadd.s32 %v1884_v2, %v1882_v29  ;;  %vm2217_vm2 = vcmp.eq.s32.totalorder %v5872_v18, %v2171_v55  ;;  %v7074_v30 = vsel %vm2711_vm15, %v7054_v32, %v7061_v20  ;;  %2701 = vmax.xlane.f32.xlu1 %v7056_v33 }
 0x442   : > { %v1897_v37 = vpop.xlane.xlu1 %1896  ;;  %vm4828_vm3 = vmpackc.low %vm2217_vm2, %vm7047_vm14  ;;  %v2714_v26 = vshra.s32 %v7074_v30, 16  ;;  %v7084_v2 = vsel %vm7067_vm1, 4294967295, %v9401_v51  ;;  %v7087_v55 = vsel %vm2217_vm2, 4294967295, %v9403_v58  ;;  %v1900_v29 = vshll.u32 %v1899_v43, 16  ;;  %v9409_v58 = vld [vmem:[#allocation44_spill] sm:$0xff] }
 0x443   : > { %9402 = vst [vmem:[#allocation27_spill] sm:$0xff] %v7084_v2  ;;  %9404 = vst [vmem:[#allocation28_spill] sm:$0xff] %v7087_v55  ;;  %v2172_v20 = vand.u32 65535, %v1885_v35  ;;  %v1898_v32 = vcvt.f32.s32 %v1897_v37  ;;  %4829 = vmatprep.subr.msk.bf16.mxu1 %vm4828_vm3, %v9334_v54  ;;  %vm2727_vm5 = vcmp.gt.s32.totalorder %v7084_v2, %v7087_v55  ;;  %v1916_v35 = vshll.u32 %v1915_v46, 16  ;;  %v9411_v46 = vld [vmem:[#allocation45_spill] sm:$0xff] }
 0x444   : > { %vm4830_vm4 = vmpackc.low %vm7067_vm1, %vm7035_vm13  ;;  %v7097_v11 = vcvt.s32.f32 %v2714_v26  ;;  %v7101_v23 = vsel %vm2727_vm5, %v7084_v2, %v7087_v55  ;;  %v1931_v37 = vcvt.f32.s32 %v6532_v60 }
 0x445   : > { %4831 = vmatpush1.bf16.xpose.msk.msra.mxu1 %vm4830_vm4, %v9334_v54  ;;  %vm7104_vm6 = vcmp.eq.s32.totalorder %v5870_v15, %v2172_v20  ;;  %v1901_v14 = vadd.s32 %v1900_v29, %v1898_v32  ;;  %v2730_v6 = vshra.s32 %v7101_v23, 16  ;;  %vm7112_vm7 = vcmp.eq.s32.totalorder %v5872_v18, %v2172_v20 }
 0x446   : > { %2717 = vmax.xlane.f32.xlu0 %v7097_v11  ;;  %v1913_v51 = vpop.xlane.xlu0 %1912  ;;  %v7119_v55 = vsel %vm7104_vm6, 4294967295, %v9409_v58  ;;  %v7126_v60 = vsel %vm7112_vm7, 4294967295, %v9411_v46  ;;  %v9415_v46 = vld [vmem:[#allocation46_spill] sm:$0xff] }
 0x447   : > { %9410 = vst [vmem:[#allocation29_spill] sm:$0xff] %v7119_v55  ;;  %v2173_v2 = vand.u32 65535, %v1901_v14  ;;  %v1914_v32 = vcvt.f32.s32 %v1913_v51  ;;  %v7121_v29 = vcvt.s32.f32 %v2730_v6  ;;  %9412 = vst [vmem:[#allocation30_spill] sm:$0xff] %v7126_v60  ;;  %vm2743_vm8 = vcmp.gt.s32.totalorder %v7119_v55, %v7126_v60 }
 0x448   : > { %v7139_v14 = vsel %vm2743_vm8, %v7119_v55, %v7126_v60  ;;  %v1947_v6 = vcvt.f32.s32 %v6537_v31 }
 0x449   : > { %vm7131_vm9 = vcmp.eq.s32.totalorder %v5870_v15, %v2173_v2  ;;  %v1917_v4 = vadd.s32 %v1916_v35, %v1914_v32  ;;  %2733 = vmax.xlane.f32.xlu1 %v7121_v29  ;;  %vm2221_vm10 = vcmp.eq.s32.totalorder %v5872_v18, %v2173_v2  ;;  %v2746_v58 = vshra.s32 %v7139_v14, 16  ;;  %v9417_v32 = vld [vmem:[#allocation48_spill] sm:$0xff] }
 0x44a   : > { %v1929_v51 = vpop.xlane.xlu1 %1928  ;;  %vm4832_vm11 = vmpackc.low %vm2221_vm10, %vm7112_vm7  ;;  %v7148_v35 = vsel %vm7131_vm9, 4294967295, %v9415_v46  ;;  %v7151_v22 = vsel %vm2221_vm10, 4294967295, %v9417_v32  ;;  %v1932_v2 = vshll.u32 %v1931_v37, 16  ;;  %v1948_v20 = vshll.u32 %v1947_v6, 16  ;;  %v9424_v32 = vld [vmem:[#allocation52_spill] sm:$0xff]  ;;  %v9427_v6 = vld [vmem:[#allocation53_spill] sm:$0xff] }
 0x44b   : > { %9416 = vst [vmem:[#allocation31_spill] sm:$0xff] %v7148_v35  ;;  %9418 = vst [vmem:[#allocation32_spill] sm:$0xff] %v7151_v22  ;;  %v2174_v42 = vand.u32 65535, %v1917_v4  ;;  %v1930_v60 = vcvt.f32.s32 %v1929_v51  ;;  %4833 = vmatprep.subr.msk.bf16.mxu1 %vm4832_vm11, %v9334_v54  ;;  %vm2759_vm13 = vcmp.gt.s32.totalorder %v7148_v35, %v7151_v22  ;;  %v7161_v31 = vcvt.s32.f32 %v2746_v58 }
 0x44c   : > { %vm4834_vm12 = vmpackc.low %vm7131_vm9, %vm7104_vm6  ;;  %v7165_v26 = vsel %vm2759_vm13, %v7148_v35, %v7151_v22  ;;  %v1963_v51 = vcvt.f32.s32 %v6542_v38 }
 0x44d   : > { %4835 = vmatpush1.bf16.xpose.msk.msra.mxu1 %vm4834_vm12, %v9334_v54  ;;  %9419 = vst [vmem:[#allocation33_spill] sm:$0xff] %v7161_v31  ;;  %vm7168_vm14 = vcmp.eq.s32.totalorder %v5870_v15, %v2174_v42  ;;  %v1933_v43 = vadd.s32 %v1932_v2, %v1930_v60  ;;  %v2762_v37 = vshra.s32 %v7165_v26, 16  ;;  %2749 = vmax.xlane.f32.xlu0 %v7161_v31 }
 0x44e   : > { %v1945_v46 = vpop.xlane.xlu0 %1944  ;;  %vm7176_vm15 = vcmp.eq.s32.totalorder %v5872_v18, %v2174_v42  ;;  %v7183_v22 = vsel %vm7168_vm14, 4294967295, %v9424_v32 }
 0x44f   : > { %9425 = vst [vmem:[#allocation34_spill] sm:$0xff] %v7183_v22  ;;  %v2175_v35 = vand.u32 65535, %v1933_v43  ;;  %v1946_v60 = vcvt.f32.s32 %v1945_v46  ;;  %v7185_v2 = vcvt.s32.f32 %v2762_v37  ;;  %v7190_v38 = vsel %vm7176_vm15, 4294967295, %v9427_v6  ;;  %v9431_v37 = vld [vmem:[#allocation54_spill] sm:$0xff]  ;;  %v9433_v6 = vld [vmem:[#allocation56_spill] sm:$0xff] }
 0x450   : > { %9428 = vst [vmem:[#allocation36_spill] sm:$0xff] %v7190_v38  ;;  %vm2775_vm1 = vcmp.gt.s32.totalorder %v7183_v22, %v7190_v38 }
 0x451   : > { %9426 = vst [vmem:[#allocation35_spill] sm:$0xff] %v7185_v2  ;;  %vm7195_vm2 = vcmp.eq.s32.totalorder %v5870_v15, %v2175_v35  ;;  %v1949_v55 = vadd.s32 %v1948_v20, %v1946_v60  ;;  %2765 = vmax.xlane.f32.xlu1 %v7185_v2  ;;  %vm2225_vm3 = vcmp.eq.s32.totalorder %v5872_v18, %v2175_v35  ;;  %v1964_v60 = vshll.u32 %v1963_v51, 16 }
 0x452   : > { %v7203_v43 = vsel %vm2775_vm1, %v7183_v22, %v7190_v38  ;;  %v7208_v46 = vsel %vm7195_vm2, 4294967295, %v9431_v37  ;;  %v1961_v32 = vpop.xlane.xlu1 %1960  ;;  %vm4836_vm4 = vmpackc.low %vm2225_vm3, %vm7176_vm15  ;;  %v7213_v31 = vsel %vm2225_vm3, 4294967295, %v9433_v6  ;;  %v5343_v22 = vld [vmem:[#allocation7 + $0x70] ss:$24 sps:$4 sm:$0xff]  }
 0x453   : > { %9432 = vst [vmem:[#allocation37_spill] sm:$0xff] %v7208_v46  ;;  %9434 = vst [vmem:[#allocation38_spill] sm:$0xff] %v7213_v31  ;;  %v2778_v20 = vshra.s32 %v7203_v43, 16  ;;  %v2176_v35 = vand.u32 65535, %v1949_v55  ;;  %v1962_v2 = vcvt.f32.s32 %v1961_v32  ;;  %4837 = vmatprep.subr.msk.bf16.mxu1 %vm4836_vm4, %v9334_v54  ;;  %vm2791_vm6 = vcmp.gt.s32.totalorder %v7208_v46, %v7213_v31  ;;  %v9441_v32 = vld [vmem:[#allocation60_spill] sm:$0xff] }
 0x454   : > { %vm4838_vm5 = vmpackc.low %vm7195_vm2, %vm7168_vm14  ;;  %v7228_v37 = vsel %vm2791_vm6, %v7208_v46, %v7213_v31  ;;  %v5337_v55 = vld [vmem:[#allocation7 + $0x10] ss:$24 sps:$4 sm:$0xff]   ;;  %v5345_v46 = vld [vmem:[#allocation7 + $0x74] ss:$24 sps:$4 sm:$0xff]  }
 0x455   : > { %4839 = vmatpush1.bf16.xpose.msk.msra.mxu1 %vm4838_vm5, %v9334_v54  ;;  %v7224_v58 = vcvt.s32.f32 %v2778_v20  ;;  %9436 = vst [vmem:[#allocation40_spill] sm:$0xff] %v7228_v37  ;;  %vm7231_vm7 = vcmp.eq.s32.totalorder %v5870_v15, %v2176_v35  ;;  %v1965_v4 = vadd.s32 %v1964_v60, %v1962_v2  ;;  %v2794_v51 = vshra.s32 %v7228_v37, 16  ;;  %v9443_v20 = vld [vmem:[#allocation61_spill] sm:$0xff] }
 0x456   : > { %vm7237_vm8 = vcmp.eq.s32.totalorder %v5872_v18, %v2176_v35  ;;  %v7245_v6 = vsel %vm7231_vm7, 4294967295, %v9441_v32 }
 0x457   : > { %9435 = vst [vmem:[#allocation39_spill] sm:$0xff] %v7224_v58  ;;  %2781 = vmax.xlane.f32.xlu0 %v7224_v58  ;;  %9442 = vst [vmem:[#allocation41_spill] sm:$0xff] %v7245_v6  ;;  %v7250_v31 = vsel %vm7237_vm8, 4294967295, %v9443_v20  ;;  %v2177_v2 = vand.u32 65535, %v1965_v4  ;;  %v7252_v60 = vcvt.s32.f32 %v2794_v51  ;;  %v9447_v20 = vld [vmem:[#allocation62_spill] sm:$0xff]  ;;  %v9449_v4 = vld [vmem:[#allocation64_spill] sm:$0xff] }
 0x458   : > { %9444 = vst [vmem:[#allocation42_spill] sm:$0xff] %v7250_v31  ;;  %vm2807_vm9 = vcmp.gt.s32.totalorder %v7245_v6, %v7250_v31 }
 0x459   : > { %9445 = vst [vmem:[#allocation44_spill] sm:$0xff] %v7252_v60  ;;  %v7258_v35 = vsel %vm2807_vm9, %v7245_v6, %v7250_v31  ;;  %vm2228_vm10 = vcmp.eq.s32.totalorder %v5870_v15, %v2177_v2  ;;  %2797 = vmax.xlane.f32.xlu1 %v7252_v60  ;;  %vm2229_vm11 = vcmp.eq.s32.totalorder %v5872_v18, %v2177_v2  ;;  %v5340_v6 = vld [vmem:[#allocation7 + $0x40] ss:$24 sps:$4 sm:$0xff]  }
 0x45a   : > { %9446 = vst [vmem:[#allocation45_spill] sm:$0xff] %v7258_v35  ;;  %v2810_v32 = vshra.s32 %v7258_v35, 16  ;;  %v7265_v38 = vsel %vm2228_vm10, 4294967295, %v9447_v20  ;;  %vm4840_vm12 = vmpackc.low %vm2229_vm11, %vm7237_vm8  ;;  %v7270_v51 = vsel %vm2229_vm11, 4294967295, %v9449_v4  ;;  %v5342_v4 = vld [vmem:[#allocation7 + $0x44] ss:$24 sps:$4 sm:$0xff]  }
 0x45b   : > { %9448 = vst [vmem:[#allocation46_spill] sm:$0xff] %v7265_v38  ;;  %9450 = vst [vmem:[#allocation48_spill] sm:$0xff] %v7270_v51  ;;  %4841 = vmatprep.subr.msk.bf16.mxu1 %vm4840_vm12, %v9334_v54  ;;  %vm2823_vm14 = vcmp.gt.s32.totalorder %v7265_v38, %v7270_v51 }
 0x45c   : > { %vm4842_vm13 = vmpackc.low %vm2228_vm10, %vm7231_vm7  ;;  %v7275_v31 = vcvt.s32.f32 %v2810_v32  ;;  %v7282_v2 = vsel %vm2823_vm14, %v7265_v38, %v7270_v51  ;;  %v5339_v32 = vld [vmem:[#allocation7 + $0x14] ss:$24 sps:$4 sm:$0xff]   ;;  %v5348_v51 = vld [vmem:[#allocation7 + $0xa4] ss:$24 sps:$4 sm:$0xff]  }
 0x45d   : > { %4843 = vmatpush1.bf16.xpose.msk.msra.mxu1 %vm4842_vm13, %v9334_v54  ;;  %9452 = vst [vmem:[#allocation53_spill] sm:$0xff] %v7282_v2  ;;  %v2826_v42 = vshra.s32 %v7282_v2, 16  ;;  %937 = vmatprep.subr.bf16.mxu0 %v5339_v32  ;;  %v5346_v38 = vld [vmem:[#allocation7 + $0xa0] ss:$24 sps:$4 sm:$0xff]   ;;  %v5357_v32 = vld [vmem:[#allocation7 + $0x134] ss:$24 sps:$4 sm:$0xff]  }
 0x45e   : > { %9451 = vst [vmem:[#allocation52_spill] sm:$0xff] %v7275_v31  ;;  %2813 = vmax.xlane.f32.xlu0 %v7275_v31  ;;  %938 = vmatpush1.bf16.msra.mxu0 %v5337_v55  ;;  %v5351_v31 = vld [vmem:[#allocation7 + $0xd4] ss:$24 sps:$4 sm:$0xff]   ;;  %v5352_v2 = vld [vmem:[#allocation7 + $0x100] ss:$24 sps:$4 sm:$0xff]  }
 0x45f   : > { %v7286_v20 = vcvt.s32.f32 %v2826_v42  ;;  %939 = vmatprep.subr.bf16.mxu0 %v5342_v4  ;;  %v5349_v42 = vld [vmem:[#allocation7 + $0xd0] ss:$24 sps:$4 sm:$0xff]   ;;  %v5360_v4 = vld [vmem:[#allocation7 + $0x164] ss:$24 sps:$4 sm:$0xff]  }
 0x460   : > { %v5355_v55 = vld [vmem:[#allocation7 + $0x130] ss:$24 sps:$4 sm:$0xff]  }
 0x461   : > { %9453 = vst [vmem:[#allocation54_spill] sm:$0xff] %v7286_v20  ;;  %2829 = vmax.xlane.f32.xlu1 %v7286_v20  ;;  %v5354_v20 = vld [vmem:[#allocation7 + $0x104] ss:$24 sps:$4 sm:$0xff]  }
 0x462   : > { %940 = vmatpush1.bf16.msra.mxu0 %v5340_v6  ;;  %v5358_v6 = vld [vmem:[#allocation7 + $0x160] ss:$24 sps:$4 sm:$0xff]  }
 0x463   : > { %941 = vmatprep.subr.bf16.mxu0 %v5345_v46  ;;  %v5363_v46 = vld [vmem:[#allocation7 + $0x194] ss:$24 sps:$4 sm:$0xff]  }
 0x466   : > { %942 = vmatpush1.bf16.msra.mxu0 %v5343_v22  ;;  %v5361_v22 = vld [vmem:[#allocation7 + $0x190] ss:$24 sps:$4 sm:$0xff]  }
 0x467   : > { %943 = vmatprep.subr.bf16.mxu0 %v5348_v51  ;;  %v5366_v51 = vld [vmem:[#allocation7 + $0x1c4] ss:$24 sps:$4 sm:$0xff]  }
 0x46a   : > { %944 = vmatpush1.bf16.msra.mxu0 %v5346_v38  ;;  %v5364_v38 = vld [vmem:[#allocation7 + $0x1c0] ss:$24 sps:$4 sm:$0xff]  }
 0x46b   : > { %945 = vmatprep.subr.bf16.mxu0 %v5351_v31  ;;  %v5369_v31 = vld [vmem:[#allocation7 + $0x1f4] ss:$24 sps:$4 sm:$0xff]  }
 0x46e   : > { %946 = vmatpush1.bf16.msra.mxu0 %v5349_v42  ;;  %v1979_v42 = vcvt.f32.s32 %v6553_v48  ;;  %v5373_v48 = vld [vmem:[#allocation7 + $0x250] ss:$24 sps:$4 sm:$0xff]  }
 0x46f   : > { %947 = vmatprep.subr.bf16.mxu0 %v5354_v20  ;;  %v5367_v20 = vld [vmem:[#allocation7 + $0x1f0] ss:$24 sps:$4 sm:$0xff]  }
 0x470   : > { %v1980_v60 = vshll.u32 %v1979_v42, 16 }
 0x472   : > { %948 = vmatpush1.bf16.msra.mxu0 %v5352_v2  ;;  %v5372_v2 = vld [vmem:[#allocation7 + $0x224] ss:$24 sps:$4 sm:$0xff]  }
 0x473   : > { %949 = vmatprep.subr.bf16.mxu0 %v5357_v32 }
 0x476   : > { %950 = vmatpush1.bf16.msra.mxu0 %v5355_v55  ;;  %v1995_v55 = vcvt.f32.s32 %v6573_v28 }
 0x477   : > { %951 = vmatprep.subr.bf16.mxu0 %v5360_v4 }
 0x478   : > { %v1996_v58 = vshll.u32 %v1995_v55, 16  ;;  %v2011_v55 = vcvt.f32.s32 %v6600_v27 }
 0x47a   : > { %952 = vmatpush1.bf16.msra.mxu0 %v5358_v6  ;;  %v5370_v6 = vld [vmem:[#allocation7 + $0x220] ss:$24 sps:$4 sm:$0xff]  }
 0x47b   : > { %953 = vmatprep.subr.bf16.mxu0 %v5363_v46  ;;  %v5375_v46 = vld [vmem:[#allocation7 + $0x254] ss:$24 sps:$4 sm:$0xff]  }
 0x47e   : > { %954 = vmatpush1.bf16.msra.mxu0 %v5361_v22 }
 0x47f   : > { %955 = vmatprep.subr.bf16.mxu0 %v5366_v51 }
 0x482   : > { %956 = vmatpush1.bf16.msra.mxu0 %v5364_v38  ;;  %v2521_v38 = vand.u32 65535, %v6606_v45 }
 0x483   : > { %957 = vmatprep.subr.bf16.mxu0 %v5369_v31  ;;  %v2553_v31 = vand.u32 65535, %v6703_v10 }
 0x486   : > { %958 = vmatpush1.bf16.msra.mxu0 %v5367_v20  ;;  %v2537_v20 = vand.u32 65535, %v6638_v63 }
 0x487   : > { %959 = vmatprep.subr.bf16.mxu0 %v5372_v2 }
 0x488   : > { %v2539_v27 = vcvt.s32.f32 %v2537_v20 }
 0x48a   : > { %960 = vmatpush1.bf16.msra.mxu0 %v5370_v6 }
 0x48b   : > { %961 = vmatprep.subr.bf16.mxu0 %v5375_v46  ;;  %v9463_v46 = vld [vmem:[#allocation70_spill] sm:$0xff] }
 0x48e   : > { %962 = vmatpush1.bf16.msra.mxu0 %v5373_v48  ;;  %v2027_v48 = vcvt.f32.s32 %v6644_v52 }
 0x49a   : > { %v1977_v32 = vpop.xlane.xlu0 %1976 }
 0x49b   : > { %v1978_v4 = vcvt.f32.s32 %v1977_v32  ;;  %v5376_v32 = vld [vmem:[#allocation7 + $0x280] ss:$24 sps:$4 sm:$0xff]  }
 0x49d   : > { %v1981_v35 = vadd.s32 %v1980_v60, %v1978_v4  ;;  %v5378_v60 = vld [vmem:[#allocation7 + $0x284] ss:$24 sps:$4 sm:$0xff]  }
 0x49e   : > { %v1993_v22 = vpop.xlane.xlu1 %1992  ;;  %963 = vmatprep.subr.bf16.mxu0 %v5378_v60  ;;  %v9461_v4 = vld [vmem:[#allocation69_spill] sm:$0xff] }
 0x49f   : > { %v2178_v51 = vand.u32 65535, %v1981_v35  ;;  %v1994_v37 = vcvt.f32.s32 %v1993_v22  ;;  %964 = vmatpush1.bf16.msra.mxu0 %v5376_v32 }
 0x4a1   : > { %vm7293_vm15 = vcmp.eq.s32.totalorder %v5870_v15, %v2178_v51  ;;  %v1997_v28 = vadd.s32 %v1996_v58, %v1994_v37  ;;  %vm7298_vm1 = vcmp.eq.s32.totalorder %v5872_v18, %v2178_v51  ;;  %v5381_v51 = vld [vmem:[#allocation7 + $0x2b4] ss:$24 sps:$4 sm:$0xff]  }
 0x4a2   : > { %v7305_v35 = vsel %vm7293_vm15, 4294967295, %v6219_v3  ;;  %v7310_v45 = vsel %vm7298_vm1, 4294967295, %v6222_v47  ;;  %v2523_v47 = vcvt.s32.f32 %v2521_v38  ;;  %v2012_v3 = vshll.u32 %v2011_v55, 16  ;;  %965 = vmatprep.subr.bf16.mxu0 %v5381_v51 }
 0x4a3   : > { %9458 = vst [vmem:[#allocation56_spill] sm:$0xff] %v7310_v45  ;;  %v2179_v58 = vand.u32 65535, %v1997_v28  ;;  %vm2839_vm2 = vcmp.gt.s32.totalorder %v7305_v35, %v7310_v45  ;;  %v7324_v2 = vpop.xlane.xlu0 %2525  ;;  %v2555_v55 = vcvt.s32.f32 %v2553_v31 }
 0x4a4   : > { %v7317_v37 = vsel %vm2839_vm2, %v7305_v35, %v7310_v45  ;;  %vm2527_vm5 = vcmp.eq.f32.partialorder %v6642_v34, %v7324_v2 }
 0x4a5   : > { %vm7320_vm3 = vcmp.eq.s32.totalorder %v5870_v15, %v2179_v58  ;;  %vm2233_vm4 = vcmp.eq.s32.totalorder %v5872_v18, %v2179_v58  ;;  %v2842_v63 = vshra.s32 %v7317_v37, 16  ;;  %v2528_v38 = vsel %vm2527_vm5, %v2523_v47, -inf  ;;  %v5379_v58 = vld [vmem:[#allocation7 + $0x2b0] ss:$24 sps:$4 sm:$0xff]  }
 0x4a6   : > { %v7332_v6 = vsel %vm7320_vm3, 4294967295, %v9461_v4  ;;  %vm4844_vm6 = vmpackc.low %vm2233_vm4, %vm7298_vm1  ;;  %v7339_v22 = vsel %vm2233_vm4, 4294967295, %v9463_v46  ;;  %v7342_v28 = vpop.xlane.xlu1 %2541  ;;  %2529 = vmax.xlane.f32.xlu0 %v2528_v38  ;;  %v2028_v4 = vshll.u32 %v2027_v48, 16  ;;  %v2043_v46 = vcvt.f32.s32 %v6676_v53  ;;  %966 = vmatpush1.bf16.msra.mxu0 %v5379_v58 }
 0x4a7   : > { %9462 = vst [vmem:[#allocation60_spill] sm:$0xff] %v7332_v6  ;;  %9464 = vst [vmem:[#allocation61_spill] sm:$0xff] %v7339_v22  ;;  %4845 = vmatprep.subr.msk.bf16.mxu1 %vm4844_vm6, %v9334_v54  ;;  %vm2855_vm8 = vcmp.gt.s32.totalorder %v7332_v6, %v7339_v22  ;;  %vm2543_vm9 = vcmp.eq.f32.partialorder %v6654_v57, %v7342_v28  ;;  %v7354_v34 = vcvt.s32.f32 %v2842_v63  ;;  %v2009_v42 = vpop.xlane.xlu0 %2008  ;;  %v2569_v38 = vand.u32 65535, %v6722_v24 }
 0x4a8   : > { %vm4846_vm7 = vmpackc.low %vm7320_vm3, %vm7293_vm15  ;;  %v7358_v52 = vsel %vm2855_vm8, %v7332_v6, %v7339_v22  ;;  %v2544_v60 = vsel %vm2543_vm9, %v2539_v27, -inf  ;;  %v2010_v47 = vcvt.f32.s32 %v2009_v42  ;;  %v2059_v27 = vcvt.f32.s32 %v6726_v21 }
 0x4a9   : > { %4847 = vmatpush1.bf16.xpose.msk.msra.mxu1 %vm4846_vm7, %v9334_v54  ;;  %v2858_v20 = vshra.s32 %v7358_v52, 16  ;;  %2545 = vmax.xlane.f32.xlu1 %v2544_v60  ;;  %v2044_v24 = vshll.u32 %v2043_v46, 16  ;;  %v2571_v31 = vcvt.s32.f32 %v2569_v38  ;;  %v2091_v38 = vcvt.f32.s32 %v6810_v49 }
 0x4aa   : > { %v2025_v57 = vpop.xlane.xlu1 %2024  ;;  %v2013_v22 = vadd.s32 %v2012_v3, %v2010_v47  ;;  %2845 = vmax.xlane.f32.xlu0 %v7354_v34  ;;  %v2075_v47 = vcvt.f32.s32 %v6758_v59 }
 0x4ab   : > { %v7362_v63 = vcvt.s32.f32 %v2858_v20  ;;  %v2026_v10 = vcvt.f32.s32 %v2025_v57  ;;  %v2060_v20 = vshll.u32 %v2059_v27, 16 }
 0x4ac   : > { %v7368_v32 = vpop.xlane.xlu0 %2557  ;;  %v2180_v42 = vand.u32 65535, %v2013_v22  ;;  %v9467_v22 = vld [vmem:[#allocation71_spill] sm:$0xff] }
 0x4ad   : > { %v2029_v51 = vadd.s32 %v2028_v4, %v2026_v10  ;;  %2861 = vmax.xlane.f32.xlu1 %v7362_v63  ;;  %vm2559_vm10 = vcmp.eq.f32.partialorder %v6724_v7, %v7368_v32  ;;  %v9473_v10 = vld [vmem:[#allocation73_spill] sm:$0xff]  ;;  %v2092_v4 = vshll.u32 %v2091_v38, 16  ;;  %v9481_v38 = vld [vmem:[#allocation75_spill] sm:$0xff] }
 0x4ae   : > { %v2560_v53 = vsel %vm2559_vm10, %v2555_v55, -inf  ;;  %v7373_v48 = vpop.xlane.xlu1 %2573  ;;  %vm7376_vm11 = vcmp.eq.s32.totalorder %v5870_v15, %v2180_v42  ;;  %vm7388_vm13 = vcmp.eq.s32.totalorder %v5872_v18, %v2180_v42  ;;  %v9475_v55 = vld [vmem:[#allocation72_spill] sm:$0xff] }
 0x4af   : > { %v2181_v21 = vand.u32 65535, %v2029_v51  ;;  %2561 = vmax.xlane.f32.xlu0 %v2560_v53  ;;  %v7383_v58 = vsel %vm7376_vm11, 4294967295, %v9467_v22  ;;  %vm2575_vm12 = vcmp.eq.f32.partialorder %v6736_v44, %v7373_v48  ;;  %v7408_v59 = vsel %vm7388_vm13, 4294967295, %v9475_v55  ;;  %v9477_v51 = vld [vmem:[#allocation74_spill] sm:$0xff] }
 0x4b0   : > { %9468 = vst [vmem:[#allocation62_spill] sm:$0xff] %v7383_v58  ;;  %v2041_v3 = vpop.xlane.xlu0 %2040  ;;  %v2576_v46 = vsel %vm2575_vm12, %v2571_v31, -inf  ;;  %9476 = vst [vmem:[#allocation69_spill] sm:$0xff] %v7408_v59  ;;  %vm2871_vm3 = vcmp.gt.s32.totalorder %v7383_v58, %v7408_v59 }
 0x4b1   : > { %vm7394_vm14 = vcmp.eq.s32.totalorder %v5870_v15, %v2181_v21  ;;  %v2042_v57 = vcvt.f32.s32 %v2041_v3  ;;  %2577 = vmax.xlane.f32.xlu1 %v2576_v46  ;;  %vm2237_vm15 = vcmp.eq.s32.totalorder %v5872_v18, %v2181_v21  ;;  %v2585_v21 = vand.u32 65535, %v6785_v0 }
 0x4b2   : > { %v7402_v44 = vsel %vm7394_vm14, 4294967295, %v9473_v10  ;;  %v2057_v27 = vpop.xlane.xlu1 %2056  ;;  %vm4850_vm1 = vmpackc.low %vm7394_vm14, %vm7376_vm11  ;;  %v7417_v53 = vsel %vm2237_vm15, 4294967295, %v9477_v51  ;;  %v7427_v60 = vsel %vm2871_vm3, %v7383_v58, %v7408_v59  ;;  %v2601_v0 = vand.u32 65535, %v6806_v61 }
 0x4b3   : > { %9474 = vst [vmem:[#allocation64_spill] sm:$0xff] %v7402_v44  ;;  %v2045_v49 = vadd.s32 %v2044_v24, %v2042_v57  ;;  %v2058_v42 = vcvt.f32.s32 %v2057_v27  ;;  %vm4848_vm2 = vmpackc.low %vm2237_vm15, %vm7388_vm13  ;;  %vm2887_vm4 = vcmp.gt.s32.totalorder %v7402_v44, %v7417_v53  ;;  %v2076_v24 = vshll.u32 %v2075_v47, 16 }
 0x4b4   : > { %9478 = vst [vmem:[#allocation70_spill] sm:$0xff] %v7417_v53  ;;  %v7422_v31 = vpop.xlane.xlu0 %2589  ;;  %4849 = vmatprep.subr.msk.bf16.mxu1 %vm4848_vm2, %v9334_v54  ;;  %v2874_v7 = vshra.s32 %v7427_v60, 16  ;;  %v2107_v57 = vcvt.f32.s32 %v6842_v41  ;;  %v7439_v10 = vsel %vm2887_vm4, %v7402_v44, %v7417_v53  ;;  %v2123_v61 = vcvt.f32.s32 %v6892_v25  ;;  %v9485_v25 = vld [vmem:[#allocation77_spill] sm:$0xff]  ;;  %v9487_v44 = vld [vmem:[#allocation76_spill] sm:$0xff] }
 0x4b5   : > { %v2182_v22 = vand.u32 65535, %v2045_v49  ;;  %v2061_v3 = vadd.s32 %v2060_v20, %v2058_v42  ;;  %4851 = vmatpush1.bf16.xpose.msk.msra.mxu1 %vm4850_vm1, %v9334_v54  ;;  %v2890_v42 = vshra.s32 %v7439_v10, 16  ;;  %vm2591_vm6 = vcmp.eq.f32.partialorder %v6808_v62, %v7422_v31 }
 0x4b6   : > { %v7435_v46 = vpop.xlane.xlu1 %2605  ;;  %v7447_v55 = vcvt.s32.f32 %v2874_v7  ;;  %v2587_v27 = vcvt.s32.f32 %v2585_v21  ;;  %v2108_v58 = vshll.u32 %v2107_v57, 16  ;;  %v2603_v62 = vcvt.s32.f32 %v2601_v0 }
 0x4b7   : > { %vm7443_vm5 = vcmp.eq.s32.totalorder %v5870_v15, %v2182_v22  ;;  %v2183_v47 = vand.u32 65535, %v2061_v3  ;;  %vm2239_vm8 = vcmp.eq.s32.totalorder %v5872_v18, %v2182_v22  ;;  %v9489_v22 = vld [vmem:[#allocation78_spill] sm:$0xff]  ;;  %vm2607_vm12 = vcmp.eq.f32.partialorder %v6820_v5, %v7435_v46 }
 0x4b8   : > { %v7453_v41 = vsel %vm7443_vm5, 4294967295, %v9481_v38  ;;  %v2073_v49 = vpop.xlane.xlu0 %2072  ;;  %2877 = vmax.xlane.f32.xlu0 %v7447_v55  ;;  %v7471_v38 = vcvt.s32.f32 %v2890_v42  ;;  %v7474_v59 = vsel %vm2239_vm8, 4294967295, %v9487_v44  ;;  %v2592_v44 = vsel %vm2591_vm6, %v2587_v27, -inf }
 0x4b9   : > { %9482 = vst [vmem:[#allocation71_spill] sm:$0xff] %v7453_v41  ;;  %vm7459_vm7 = vcmp.eq.s32.totalorder %v5870_v15, %v2183_v47  ;;  %v2074_v3 = vcvt.f32.s32 %v2073_v49  ;;  %vm2241_vm9 = vcmp.eq.s32.totalorder %v5872_v18, %v2183_v47  ;;  %9488 = vst [vmem:[#allocation72_spill] sm:$0xff] %v7474_v59  ;;  %vm2903_vm13 = vcmp.gt.s32.totalorder %v7453_v41, %v7474_v59 }
 0x4ba   : > { %v7469_v7 = vsel %vm7459_vm7, 4294967295, %v9485_v25  ;;  %v2089_v53 = vpop.xlane.xlu1 %2088  ;;  %vm4852_vm10 = vmpackc.low %vm2241_vm9, %vm2239_vm8  ;;  %v7478_v47 = vsel %vm2241_vm9, 4294967295, %v9489_v22  ;;  %2893 = vmax.xlane.f32.xlu1 %v7471_v38  ;;  %v7499_v27 = vsel %vm2903_vm13, %v7453_v41, %v7474_v59  ;;  %v2124_v42 = vshll.u32 %v2123_v61, 16 }
 0x4bb   : > { %9486 = vst [vmem:[#allocation73_spill] sm:$0xff] %v7469_v7  ;;  %v2077_v6 = vadd.s32 %v2076_v24, %v2074_v3  ;;  %v2090_v49 = vcvt.f32.s32 %v2089_v53  ;;  %4853 = vmatprep.subr.msk.bf16.mxu1 %vm4852_vm10, %v9334_v54  ;;  %9490 = vst [vmem:[#allocation74_spill] sm:$0xff] %v7478_v47  ;;  %vm2919_vm14 = vcmp.gt.s32.totalorder %v7469_v7, %v7478_v47  ;;  %v5382_v53 = vld [vmem:[#allocation7 + $0x2e0] ss:$24 sps:$4 sm:$0xff]   ;;  %v5384_v24 = vld [vmem:[#allocation7 + $0x2e4] ss:$24 sps:$4 sm:$0xff]   ;;  %v2155_v61 = vcvt.f32.s32 %v6972_v16 }
 0x4bc   : > { %vm4854_vm11 = vmpackc.low %vm7459_vm7, %vm7443_vm5  ;;  %v7488_v21 = vpop.xlane.xlu0 %2621  ;;  %2593 = vmax.xlane.f32.xlu0 %v2592_v44  ;;  %v2633_v51 = vand.u32 65535, %v6888_v13  ;;  %v2906_v3 = vshra.s32 %v7499_v27, 16  ;;  %v7507_v22 = vsel %vm2919_vm14, %v7469_v7, %v7478_v47  ;;  %967 = vmatprep.subr.bf16.mxu0 %v5384_v24  ;;  %v2608_v13 = vsel %vm2607_vm12, %v2603_v62, -inf  ;;  %v9498_v62 = vld [vmem:[#allocation81_spill] sm:$0xff]  ;;  %v9500_v47 = vld [vmem:[#allocation80_spill] sm:$0xff] }
 0x4bd   : > { %v2184_v57 = vand.u32 65535, %v2077_v6  ;;  %v2093_v20 = vadd.s32 %v2092_v4, %v2090_v49  ;;  %4855 = vmatpush1.bf16.xpose.msk.msra.mxu1 %vm4854_vm11, %v9334_v54  ;;  %v2139_v6 = vcvt.f32.s32 %v6924_v9  ;;  %968 = vmatpush1.bf16.msra.mxu0 %v5382_v53  ;;  %v2922_v24 = vshra.s32 %v7507_v22, 16  ;;  %v9493_v9 = vld [vmem:[#allocation79_spill] sm:$0xff] }
 0x4be   : > { %v7503_v25 = vpop.xlane.xlu1 %2637  ;;  %2609 = vmax.xlane.f32.xlu1 %v2608_v13  ;;  %v7519_v49 = vcvt.s32.f32 %v2906_v3  ;;  %vm2623_vm1 = vcmp.eq.f32.partialorder %v6890_v12, %v7488_v21  ;;  %v9503_v7 = vand.u32 65535, %v6869_v19  ;;  %v2635_v45 = vcvt.s32.f32 %v2633_v51 }
 0x4bf   : > { %vm7511_vm15 = vcmp.eq.s32.totalorder %v5870_v15, %v2184_v57  ;;  %v2185_v0 = vand.u32 65535, %v2093_v20  ;;  %vm7535_vm3 = vcmp.eq.s32.totalorder %v5872_v18, %v2184_v57  ;;  %v7545_v13 = vcvt.s32.f32 %v2922_v24  ;;  %v9502_v57 = vld [vmem:[#allocation14_spill] sm:$0xff] }
 0x4c0   : > { %v2105_v44 = vpop.xlane.xlu0 %2104  ;;  %v7527_v20 = vsel %vm7511_vm15, 4294967295, %v9493_v9  ;;  %2909 = vmax.xlane.f32.xlu0 %v7519_v49  ;;  %970 = vmatmul.mubr.bf16.vlgmr.msra.gmra.mrb[4].mxu0 %v9502_v57  ;;  %v2619_v24 = vcvt.s32.f32 %v9503_v7  ;;  %vm2639_vm7 = vcmp.eq.f32.partialorder %v6902_v50, %v7503_v25  ;;  %v2649_v53 = vand.u32 65535, %v6951_v36 }
 0x4c1   : > { %vm7530_vm2 = vcmp.eq.s32.totalorder %v5870_v15, %v2185_v0  ;;  %v2106_v16 = vcvt.f32.s32 %v2105_v44  ;;  %vm2245_vm4 = vcmp.eq.s32.totalorder %v5872_v18, %v2185_v0  ;;  %v7551_v44 = vsel %vm7535_vm3, 4294967295, %v9500_v47  ;;  %v9504_v0 = vld [vmem:[#allocation82_spill] sm:$0xff] }
 0x4c2   : > { %v7542_v3 = vsel %vm7530_vm2, 4294967295, %v9498_v62  ;;  %v2121_v9 = vpop.xlane.xlu1 %2120  ;;  %9501 = vst [vmem:[#allocation77_spill] sm:$0xff] %v7551_v44  ;;  %vm4858_vm5 = vmpackc.low %vm7530_vm2, %vm7511_vm15  ;;  %v7563_v41 = vsel %vm2245_vm4, 4294967295, %v9504_v0  ;;  %2925 = vmax.xlane.f32.xlu1 %v7545_v13  ;;  %vm2935_vm8 = vcmp.gt.s32.totalorder %v7527_v20, %v7551_v44  ;;  %v2640_v36 = vsel %vm2639_vm7, %v2635_v45, -inf  ;;  %v9512_v45 = vld [vmem:[#allocation85_spill] sm:$0xff] }
 0x4c3   : > { %9499 = vst [vmem:[#allocation75_spill] sm:$0xff] %v7542_v3  ;;  %v2109_v62 = vadd.s32 %v2108_v58, %v2106_v16  ;;  %v2122_v59 = vcvt.f32.s32 %v2121_v9  ;;  %vm4856_vm6 = vmpackc.low %vm2245_vm4, %vm7535_vm3  ;;  %vm2951_vm9 = vcmp.gt.s32.totalorder %v7542_v3, %v7563_v41  ;;  %v2624_v58 = vsel %vm2623_vm1, %v2619_v24, -inf }
 0x4c4   : > { %9505 = vst [vmem:[#allocation76_spill] sm:$0xff] %v7563_v41  ;;  %v7566_v47 = vpop.xlane.xlu0 %2653  ;;  %4857 = vmatprep.subr.msk.bf16.mxu1 %vm4856_vm6, %v9334_v54  ;;  %v7586_v51 = vsel %vm2935_vm8, %v7527_v20, %v7551_v44  ;;  %v2140_v16 = vshll.u32 %v2139_v6, 16  ;;  %2625 = vmax.xlane.f32.xlu0 %v2624_v58  ;;  %v2156_v6 = vshll.u32 %v2155_v61, 16 }
 0x4c5   : > { %v2186_v19 = vand.u32 65535, %v2109_v62  ;;  %v2125_v7 = vadd.s32 %v2124_v42, %v2122_v59  ;;  %4859 = vmatpush1.bf16.xpose.msk.msra.mxu1 %vm4858_vm5, %v9334_v54  ;;  %v2938_v9 = vshra.s32 %v7586_v51, 16  ;;  %v7594_v59 = vsel %vm2951_vm9, %v7542_v3, %v7563_v41 }
 0x4c6   : > { %v7590_v12 = vpop.xlane.xlu1 %2669  ;;  %v2665_v42 = vand.u32 65535, %v6968_v17  ;;  %2641 = vmax.xlane.f32.xlu1 %v2640_v36  ;;  %v2954_v24 = vshra.s32 %v7594_v59, 16  ;;  %vm2655_vm11 = vcmp.eq.f32.partialorder %v6970_v1, %v7566_v47  ;;  %v9508_v17 = vld [vmem:[#allocation83_spill] sm:$0xff]  ;;  %v9514_v36 = vld [vmem:[#allocation84_spill] sm:$0xff] }
 0x4c7   : > { %vm7598_vm10 = vcmp.eq.s32.totalorder %v5870_v15, %v2186_v19  ;;  %v2187_v5 = vand.u32 65535, %v2125_v7  ;;  %v7605_v57 = vcvt.s32.f32 %v2938_v9  ;;  %vm2247_vm13 = vcmp.eq.s32.totalorder %v5872_v18, %v2186_v19 }
 0x4c8   : > { %v2137_v62 = vpop.xlane.xlu0 %2136  ;;  %v7613_v0 = vsel %vm7598_vm10, 4294967295, %v9508_v17  ;;  %v7627_v7 = vcvt.s32.f32 %v2954_v24  ;;  %v7631_v17 = vsel %vm2247_vm13, 4294967295, %v9514_v36  ;;  %vm2671_vm2 = vcmp.eq.f32.partialorder %v6984_v8, %v7590_v12  ;;  %v9520_v36 = vld [vmem:[#allocation87_spill] sm:$0xff] }
 0x4c9   : > { %9509 = vst [vmem:[#allocation78_spill] sm:$0xff] %v7613_v0  ;;  %vm7616_vm12 = vcmp.eq.s32.totalorder %v5870_v15, %v2187_v5  ;;  %v2138_v50 = vcvt.f32.s32 %v2137_v62  ;;  %2941 = vmax.xlane.f32.xlu0 %v7605_v57  ;;  %vm2249_vm14 = vcmp.eq.s32.totalorder %v5872_v18, %v2187_v5  ;;  %9515 = vst [vmem:[#allocation81_spill] sm:$0xff] %v7631_v17  ;;  %v2651_v62 = vcvt.s32.f32 %v2649_v53 }
 0x4ca   : > { %v7624_v61 = vsel %vm7616_vm12, 4294967295, %v9512_v45  ;;  %v2153_v9 = vpop.xlane.xlu1 %2152  ;;  %vm4862_vm15 = vmpackc.low %vm7616_vm12, %vm7598_vm10  ;;  %v9516_v45 = vld [vmem:[#allocation86_spill] sm:$0xff]  ;;  %2957 = vmax.xlane.f32.xlu1 %v7627_v7  ;;  %v2667_v5 = vcvt.s32.f32 %v2665_v42  ;;  %vm2967_vm3 = vcmp.gt.s32.totalorder %v7613_v0, %v7631_v17 }
 0x4cb   : > { %9513 = vst [vmem:[#allocation79_spill] sm:$0xff] %v7624_v61  ;;  %v2141_v19 = vadd.s32 %v2140_v16, %v2138_v50  ;;  %v2154_v41 = vcvt.f32.s32 %v2153_v9  ;;  %vm4860_vm1 = vmpackc.low %vm2249_vm14, %vm2247_vm13  ;;  %v7638_v44 = vsel %vm2249_vm14, 4294967295, %v9516_v45  ;;  %v2656_v53 = vsel %vm2655_vm11, %v2651_v62, -inf }
 0x4cc   : > { %9517 = vst [vmem:[#allocation80_spill] sm:$0xff] %v7638_v44  ;;  %4861 = vmatprep.subr.msk.bf16.mxu1 %vm4860_vm1, %v9334_v54  ;;  %vm2983_vm4 = vcmp.gt.s32.totalorder %v7624_v61, %v7638_v44  ;;  %v7654_v42 = vsel %vm2967_vm3, %v7613_v0, %v7631_v17  ;;  %v7656_v8 = vpop.xlane.xlu0 %2685  ;;  %v2681_v50 = vand.u32 65535, %v7024_v40  ;;  %v2697_v9 = vand.u32 65535, %v7032_v56  ;;  %v9524_v56 = vld [vmem:[#allocation89_spill] sm:$0xff] }
 0x4cd   : > { %v2188_v16 = vand.u32 65535, %v2141_v19  ;;  %v2157_v4 = vadd.s32 %v2156_v6, %v2154_v41  ;;  %4863 = vmatpush1.bf16.xpose.msk.msra.mxu1 %vm4862_vm15, %v9334_v54  ;;  %2657 = vmax.xlane.f32.xlu0 %v2656_v53  ;;  %v2970_v24 = vshra.s32 %v7654_v42, 16  ;;  %v7661_v58 = vsel %vm2983_vm4, %v7624_v61, %v7638_v44 }
 0x4ce   : > { %v2672_v6 = vsel %vm2671_vm2, %v2667_v5, -inf  ;;  %v2986_v45 = vshra.s32 %v7661_v58, 16  ;;  %v7683_v53 = vpop.xlane.xlu1 %2701  ;;  %vm2687_vm7 = vcmp.eq.f32.partialorder %v7044_v39, %v7656_v8  ;;  %v2683_v17 = vcvt.s32.f32 %v2681_v50 }
 0x4cf   : > { %vm7665_vm5 = vcmp.eq.s32.totalorder %v5870_v15, %v2188_v16  ;;  %v2189_v41 = vand.u32 65535, %v2157_v4  ;;  %2673 = vmax.xlane.f32.xlu1 %v2672_v6  ;;  %v7675_v62 = vcvt.s32.f32 %v2970_v24  ;;  %vm2251_vm8 = vcmp.eq.s32.totalorder %v5872_v18, %v2188_v16  ;;  %v9526_v24 = vld [vmem:[#allocation88_spill] sm:$0xff] }
 0x4d0   : > { %v7673_v19 = vsel %vm7665_vm5, 4294967295, %v9520_v36  ;;  %v7695_v4 = vcvt.s32.f32 %v2986_v45  ;;  %v7698_v6 = vsel %vm2251_vm8, 4294967295, %v9526_v24  ;;  %v9528_v36 = vld [vmem:[#allocation90_spill] sm:$0xff]  ;;  %vm2703_vm14 = vcmp.eq.f32.partialorder %v7056_v33, %v7683_v53 }
 0x4d1   : > { %9521 = vst [vmem:[#allocation14_spill] sm:$0xff] %v7673_v19  ;;  %vm7679_vm6 = vcmp.eq.s32.totalorder %v5870_v15, %v2189_v41  ;;  %vm2253_vm9 = vcmp.eq.s32.totalorder %v5872_v18, %v2189_v41  ;;  %2973 = vmax.xlane.f32.xlu0 %v7675_v62  ;;  %9527 = vst [vmem:[#allocation83_spill] sm:$0xff] %v7698_v6  ;;  %vm2999_vm12 = vcmp.gt.s32.totalorder %v7673_v19, %v7698_v6 }
 0x4d2   : > { %v7692_v5 = vsel %vm7679_vm6, 4294967295, %v9524_v56  ;;  %vm4864_vm10 = vmpackc.low %vm2253_vm9, %vm2251_vm8  ;;  %v7701_v44 = vsel %vm2253_vm9, 4294967295, %v9528_v36  ;;  %v7717_v16 = vsel %vm2999_vm12, %v7673_v19, %v7698_v6  ;;  %v2688_v1 = vsel %vm2687_vm7, %v2683_v17, -inf  ;;  %v9531_v6 = vld [vmem:[#allocation35_spill] sm:$0xff] }
 0x4d3   : > { %9525 = vst [vmem:[#allocation82_spill] sm:$0xff] %v7692_v5  ;;  %9529 = vst [vmem:[#allocation85_spill] sm:$0xff] %v7701_v44  ;;  %4865 = vmatprep.subr.msk.bf16.mxu1 %vm4864_vm10, %v9334_v54  ;;  %vm3015_vm13 = vcmp.gt.s32.totalorder %v7692_v5, %v7701_v44  ;;  %2989 = vmax.xlane.f32.xlu1 %v7695_v4  ;;  %v2699_v41 = vcvt.s32.f32 %v2697_v9  ;;  %v3002_v45 = vshra.s32 %v7717_v16, 16  ;;  %v7729_v33 = vpop.xlane.xlu0 %2717  ;;  %v2713_v56 = vand.u32 65535, %v7074_v30 }
 0x4d4   : > { %vm4866_vm11 = vmpackc.low %vm7679_vm6, %vm7665_vm5  ;;  %v7721_v50 = vsel %vm3015_vm13, %v7692_v5, %v7701_v44  ;;  %v2729_v39 = vand.u32 65535, %v7101_v23  ;;  %v2745_v17 = vand.u32 65535, %v7139_v14  ;;  %vm2719_vm15 = vcmp.eq.f32.partialorder %v7097_v11, %v7729_v33  ;;  %v9530_v23 = vld [vmem:[#allocation33_spill] sm:$0xff] }
 0x4d5   : > { %4867 = vmatpush1.bf16.xpose.msk.msra.mxu1 %vm4866_vm11, %v9334_v54  ;;  %v3018_v40 = vshra.s32 %v7721_v50, 16  ;;  %2689 = vmax.xlane.f32.xlu0 %v2688_v1  ;;  %v2704_v24 = vsel %vm2703_vm14, %v2699_v41, -inf  ;;  %v7732_v36 = vcvt.s32.f32 %v3002_v45  ;;  %v2761_v30 = vand.u32 65535, %v7165_v26 }
 0x4d6   : > { %v7738_v9 = vpop.xlane.xlu1 %2733  ;;  %v2715_v41 = vcvt.s32.f32 %v2713_v56  ;;  %v2731_v45 = vcvt.s32.f32 %v2729_v39  ;;  %v2777_v11 = vand.u32 65535, %v7203_v43 }
 0x4d7   : > { %2705 = vmax.xlane.f32.xlu1 %v2704_v24  ;;  %v7734_v44 = vcvt.s32.f32 %v3018_v40  ;;  %vm2735_vm1 = vcmp.eq.f32.partialorder %v7121_v29, %v7738_v9  ;;  %v2747_v40 = vcvt.s32.f32 %v2745_v17  ;;  %v2763_v5 = vcvt.s32.f32 %v2761_v30  ;;  %v9532_v29 = vld [vmem:[#allocation40_spill] sm:$0xff]  ;;  %v9533_v17 = vld [vmem:[#allocation39_spill] sm:$0xff] }
 0x4d8   : > { %v2720_v14 = vsel %vm2719_vm15, %v2715_v41, -inf  ;;  %v2736_v26 = vsel %vm2735_vm1, %v2731_v45, -inf  ;;  %v2793_v61 = vand.u32 65535, %v9532_v29  ;;  %v2779_v39 = vcvt.s32.f32 %v2777_v11  ;;  %v9534_v41 = vld [vmem:[#allocation45_spill] sm:$0xff]  ;;  %v9535_v30 = vld [vmem:[#allocation44_spill] sm:$0xff] }
 0x4d9   : > { %3005 = vmax.xlane.f32.xlu0 %v7732_v36  ;;  %v9536_v11 = vld [vmem:[#allocation53_spill] sm:$0xff] }
 0x4da   : > { %v7743_v1 = vpop.xlane.xlu0 %2749 }
 0x4db   : > { %3021 = vmax.xlane.f32.xlu1 %v7734_v44  ;;  %vm2751_vm2 = vcmp.eq.f32.partialorder %v9530_v23, %v7743_v1 }
 0x4dc   : > { %v2752_v56 = vsel %vm2751_vm2, %v2747_v40, -inf }
 0x4dd   : > { %2721 = vmax.xlane.f32.xlu0 %v2720_v14  ;;  %v2809_v14 = vand.u32 65535, %v9534_v41  ;;  %v2548_v41 = vcvt.f32.s32 %v7342_v28 }
 0x4de   : > { %v7751_v24 = vpop.xlane.xlu1 %2765 }
 0x4df   : > { %vm2767_vm3 = vcmp.eq.f32.partialorder %v9531_v6, %v7751_v24  ;;  %2737 = vmax.xlane.f32.xlu1 %v2736_v26  ;;  %v2795_v6 = vcvt.s32.f32 %v2793_v61  ;;  %v2811_v40 = vcvt.s32.f32 %v2809_v14  ;;  %v2825_v26 = vand.u32 65535, %v9536_v11  ;;  %v9538_v61 = vld [vmem:[#allocation54_spill] sm:$0xff] }
 0x4e0   : > { %v2768_v19 = vsel %vm2767_vm3, %v2763_v5, -inf }
 0x4e1   : > { %2753 = vmax.xlane.f32.xlu0 %v2752_v56  ;;  %v9537_v56 = vld [vmem:[#allocation52_spill] sm:$0xff] }
 0x4e3   : > { %2769 = vmax.xlane.f32.xlu1 %v2768_v19 }
 0x4e4   : > { %v7757_v23 = vpop.xlane.xlu0 %2781 }
 0x4e5   : > { %vm2783_vm4 = vcmp.eq.f32.partialorder %v9533_v17, %v7757_v23 }
 0x4e6   : > { %v2784_v43 = vsel %vm2783_vm4, %v2779_v39, -inf  ;;  %v7762_v0 = vpop.xlane.xlu1 %2797  ;;  %v2827_v39 = vcvt.s32.f32 %v2825_v26  ;;  %v2857_v26 = vand.u32 65535, %v7358_v52 }
 0x4e7   : > { %2785 = vmax.xlane.f32.xlu0 %v2784_v43  ;;  %vm2799_vm5 = vcmp.eq.f32.partialorder %v9535_v30, %v7762_v0  ;;  %v2532_v43 = vcvt.f32.s32 %v7324_v2 }
 0x4e8   : > { %v2800_v5 = vsel %vm2799_vm5, %v2795_v6, -inf  ;;  %v2841_v6 = vand.u32 65535, %v7317_v37  ;;  %v2859_v52 = vcvt.s32.f32 %v2857_v26 }
 0x4e9   : > { %2801 = vmax.xlane.f32.xlu1 %v2800_v5  ;;  %v2533_v30 = vshll.u32 %v2532_v43, 16 }
 0x4eb   : > { %v7766_v45 = vpop.xlane.xlu0 %2813 }
 0x4ec   : > { %vm2815_vm6 = vcmp.eq.f32.partialorder %v9537_v56, %v7766_v45 }
 0x4ed   : > { %v2816_v19 = vsel %vm2815_vm6, %v2811_v40, -inf  ;;  %v2549_v40 = vshll.u32 %v2548_v41, 16 }
 0x4ee   : > { %2817 = vmax.xlane.f32.xlu0 %v2816_v19  ;;  %v7771_v29 = vpop.xlane.xlu1 %2829 }
 0x4ef   : > { %vm2831_vm7 = vcmp.eq.f32.partialorder %v9538_v61, %v7771_v29  ;;  %v2843_v61 = vcvt.s32.f32 %v2841_v6  ;;  %v9541_v6 = vld [vmem:[#allocation43_spill] sm:$0xff] }
 0x4f0   : > { %v2832_v17 = vsel %vm2831_vm7, %v2827_v39, -inf  ;;  %v2564_v39 = vcvt.f32.s32 %v7368_v32 }
 0x4f1   : > { %2833 = vmax.xlane.f32.xlu1 %v2832_v17 }
 0x533   : > { %v2530_v14 = vpop.xlane.xlu0 %2529 }
 0x534   : > { %v2531_v5 = vcvt.f32.s32 %v2530_v14  ;;  %v2580_v14 = vcvt.f32.s32 %v7373_v48 }
 0x536   : > { %v2546_v11 = vpop.xlane.xlu1 %2545  ;;  %v2534_v56 = vadd.s32 %v2533_v30, %v2531_v5  ;;  %v2565_v5 = vshll.u32 %v2564_v39, 16 }
 0x537   : > { %v2547_v19 = vcvt.f32.s32 %v2546_v11  ;;  %v7779_v3 = vpop.xlane.xlu0 %2845  ;;  %v2873_v11 = vand.u32 65535, %v7427_v60 }
 0x538   : > { %v3031_v17 = vand.u32 65535, %v2534_v56  ;;  %vm2847_vm8 = vcmp.eq.f32.partialorder %v7354_v34, %v7779_v3  ;;  %v9546_v56 = vld [vmem:[#allocation47_spill] sm:$0xff] }
 0x539   : > { %v2550_v2 = vadd.s32 %v2549_v40, %v2547_v19  ;;  %v2848_v28 = vsel %vm2847_vm8, %v2843_v61, -inf }
 0x53a   : > { %v7784_v37 = vpop.xlane.xlu1 %2861  ;;  %vm7787_vm9 = vcmp.eq.s32.totalorder %v5870_v15, %v3031_v17  ;;  %2849 = vmax.xlane.f32.xlu0 %v2848_v28  ;;  %vm7798_vm11 = vcmp.eq.s32.totalorder %v5872_v18, %v3031_v17  ;;  %v9548_v17 = vld [vmem:[#allocation50_spill] sm:$0xff]  ;;  %v2581_v28 = vshll.u32 %v2580_v14, 16  ;;  %v2596_v14 = vcvt.f32.s32 %v7422_v31  ;;  %v9554_v31 = vld [vmem:[#allocation57_spill] sm:$0xff] }
 0x53b   : > { %v3032_v41 = vand.u32 65535, %v2550_v2  ;;  %v3328_v32 = vsel %vm7787_vm9, 4294967295, %v9541_v6  ;;  %vm2863_vm10 = vcmp.eq.f32.partialorder %v7362_v63, %v7784_v37  ;;  %v9547_v63 = vld [vmem:[#allocation49_spill] sm:$0xff] }
 0x53c   : > { %v2562_v30 = vpop.xlane.xlu0 %2561  ;;  %v2864_v40 = vsel %vm2863_vm10, %v2859_v52, -inf  ;;  %v3329_v26 = vsel %vm7798_vm11, 4294967295, %v9547_v63 }
 0x53d   : > { %vm7803_vm12 = vcmp.eq.s32.totalorder %v5870_v15, %v3032_v41  ;;  %v2563_v48 = vcvt.f32.s32 %v2562_v30  ;;  %2865 = vmax.xlane.f32.xlu1 %v2864_v40  ;;  %vm3066_vm13 = vcmp.eq.s32.totalorder %v5872_v18, %v3032_v41  ;;  %vm3392_vm1 = vcmp.gt.s32.totalorder %v3328_v32, %v3329_v26 }
 0x53e   : > { %v3330_v19 = vsel %vm7803_vm12, 4294967295, %v9546_v56  ;;  %vm4934_vm14 = vmpackc.low %vm7803_vm12, %vm7787_vm9  ;;  %v2578_v39 = vpop.xlane.xlu1 %2577  ;;  %v3331_v2 = vsel %vm3066_vm13, 4294967295, %v9548_v17  ;;  %v7822_v41 = vsel %vm3392_vm1, %v3328_v32, %v3329_v26  ;;  %v9553_v56 = vld [vmem:[#allocation51_spill] sm:$0xff]  ;;  %v2644_v40 = vcvt.f32.s32 %v7503_v25 }
 0x53f   : > { %v2566_v61 = vadd.s32 %v2565_v5, %v2563_v48  ;;  %vm4932_vm15 = vmpackc.low %vm3066_vm13, %vm7798_vm11  ;;  %v2579_v52 = vcvt.f32.s32 %v2578_v39  ;;  %vm3408_vm2 = vcmp.gt.s32.totalorder %v3330_v19, %v3331_v2  ;;  %v3395_v43 = vshra.s32 %v7822_v41, 16 }
 0x540   : > { %4933 = vmatprep.subr.msk.bf16.mxu0 %vm4932_vm15, %v9334_v54  ;;  %v7826_v30 = vsel %vm3408_vm2, %v3330_v19, %v3331_v2  ;;  %v2875_v2 = vcvt.s32.f32 %v2873_v11  ;;  %v2676_v25 = vcvt.f32.s32 %v7590_v12 }
 0x541   : > { %v3033_v6 = vand.u32 65535, %v2566_v61  ;;  %4935 = vmatpush1.bf16.xpose.msk.msra.mxu0 %vm4934_vm14, %v9334_v54  ;;  %v2582_v5 = vadd.s32 %v2581_v28, %v2579_v52  ;;  %v3411_v34 = vshra.s32 %v7826_v30, 16  ;;  %v7836_v32 = vcvt.s32.f32 %v3395_v43 }
 0x542   : > { %v2889_v61 = vand.u32 65535, %v7439_v10  ;;  %v2597_v52 = vshll.u32 %v2596_v14, 16  ;;  %v9558_v10 = vld [vmem:[#allocation58_spill] sm:$0xff] }
 0x543   : > { %vm7832_vm3 = vcmp.eq.s32.totalorder %v5870_v15, %v3033_v6  ;;  %vm7839_vm4 = vcmp.eq.s32.totalorder %v5872_v18, %v3033_v6  ;;  %v3034_v63 = vand.u32 65535, %v2582_v5  ;;  %v7846_v60 = vcvt.s32.f32 %v3411_v34  ;;  %3398 = vmax.xlane.f32.xlu0 %v7836_v32  ;;  %v9557_v6 = vld [vmem:[#allocation55_spill] sm:$0xff] }
 0x544   : > { %v3332_v19 = vsel %vm7832_vm3, 4294967295, %v9553_v56  ;;  %v3333_v26 = vsel %vm7839_vm4, 4294967295, %v9554_v31  ;;  %v2612_v34 = vcvt.f32.s32 %v7435_v46  ;;  %v2891_v46 = vcvt.s32.f32 %v2889_v61 }
 0x545   : > { %vm3424_vm5 = vcmp.gt.s32.totalorder %v3332_v19, %v3333_v26  ;;  %vm7854_vm6 = vcmp.eq.s32.totalorder %v5870_v15, %v3034_v63  ;;  %v7858_v17 = vpop.xlane.xlu0 %2877  ;;  %3414 = vmax.xlane.f32.xlu1 %v7846_v60  ;;  %vm3070_vm7 = vcmp.eq.s32.totalorder %v5872_v18, %v3034_v63  ;;  %v2660_v63 = vcvt.f32.s32 %v7566_v47 }
 0x546   : > { %v7862_v28 = vsel %vm3424_vm5, %v3332_v19, %v3333_v26  ;;  %v3334_v43 = vsel %vm7854_vm6, 4294967295, %v9557_v6  ;;  %vm2879_vm8 = vcmp.eq.f32.partialorder %v7447_v55, %v7858_v17  ;;  %vm4936_vm9 = vmpackc.low %vm3070_vm7, %vm7839_vm4  ;;  %v3335_v5 = vsel %vm3070_vm7, 4294967295, %v9558_v10 }
 0x547   : > { %v2880_v11 = vsel %vm2879_vm8, %v2875_v2, -inf  ;;  %4937 = vmatprep.subr.msk.bf16.mxu0 %vm4936_vm9, %v9334_v54  ;;  %vm3440_vm10 = vcmp.gt.s32.totalorder %v3334_v43, %v3335_v5  ;;  %vm4938_vm11 = vmpackc.low %vm7854_vm6, %vm7832_vm3  ;;  %v3427_v14 = vshra.s32 %v7862_v28, 16  ;;  %v2628_v55 = vcvt.f32.s32 %v7488_v21  ;;  %v7881_v56 = vpop.xlane.xlu1 %2893 }
 0x548   : > { %2881 = vmax.xlane.f32.xlu0 %v2880_v11  ;;  %v7884_v19 = vsel %vm3440_vm10, %v3334_v43, %v3335_v5  ;;  %vm2895_vm12 = vcmp.eq.f32.partialorder %v7471_v38, %v7881_v56  ;;  %v2905_v2 = vand.u32 65535, %v7499_v27  ;;  %v2692_v61 = vcvt.f32.s32 %v7656_v8 }
 0x549   : > { %4939 = vmatpush1.bf16.xpose.msk.msra.mxu0 %vm4938_vm11, %v9334_v54  ;;  %v2594_v48 = vpop.xlane.xlu0 %2593  ;;  %v7889_v31 = vcvt.s32.f32 %v3427_v14  ;;  %v3443_v21 = vshra.s32 %v7884_v19, 16  ;;  %v2896_v39 = vsel %vm2895_vm12, %v2891_v46, -inf  ;;  %v2921_v38 = vand.u32 65535, %v7507_v22 }
 0x54a   : > { %v2595_v26 = vcvt.f32.s32 %v2594_v48  ;;  %2897 = vmax.xlane.f32.xlu1 %v2896_v39  ;;  %v2613_v10 = vshll.u32 %v2612_v34, 16  ;;  %v2629_v5 = vshll.u32 %v2628_v55, 16  ;;  %v2645_v11 = vshll.u32 %v2644_v40, 16 }
 0x54b   : > { %v7895_v6 = vcvt.s32.f32 %v3443_v21  ;;  %v2610_v43 = vpop.xlane.xlu1 %2609  ;;  %v7899_v12 = vshll.u32 %v2660_v63, 16  ;;  %v7901_v46 = vshll.u32 %v2676_v25, 16  ;;  %v2907_v8 = vcvt.s32.f32 %v2905_v2  ;;  %v9563_v25 = vld [vmem:[#allocation59_spill] sm:$0xff] }
 0x54c   : > { %v2598_v47 = vadd.s32 %v2597_v52, %v2595_v26  ;;  %3430 = vmax.xlane.f32.xlu0 %v7889_v31  ;;  %v2611_v14 = vcvt.f32.s32 %v2610_v43  ;;  %v7905_v21 = vshll.u32 %v2692_v61, 16  ;;  %v2708_v52 = vcvt.f32.s32 %v7683_v53  ;;  %v9564_v43 = vld [vmem:[#allocation65_spill] sm:$0xff] }
 0x54d   : > { %v7903_v48 = vpop.xlane.xlu0 %2909  ;;  %v2923_v40 = vcvt.s32.f32 %v2921_v38  ;;  %v2724_v53 = vcvt.f32.s32 %v7729_v33  ;;  %v2740_v2 = vcvt.f32.s32 %v7738_v9 }
 0x54e   : > { %v3035_v27 = vand.u32 65535, %v2598_v47  ;;  %v2614_v26 = vadd.s32 %v2613_v10, %v2611_v14  ;;  %3446 = vmax.xlane.f32.xlu1 %v7895_v6  ;;  %vm2911_vm13 = vcmp.eq.f32.partialorder %v7519_v49, %v7903_v48  ;;  %v2937_v10 = vand.u32 65535, %v7586_v51 }
 0x54f   : > { %v2912_v34 = vsel %vm2911_vm13, %v2907_v8, -inf  ;;  %v7916_v55 = vpop.xlane.xlu1 %2925  ;;  %v9568_v8 = vld [vmem:[#allocation66_spill] sm:$0xff]  ;;  %v7955_v63 = vshll.u32 %v2708_v52, 16 }
 0x550   : > { %vm7912_vm14 = vcmp.eq.s32.totalorder %v5870_v15, %v3035_v27  ;;  %vm7919_vm15 = vcmp.eq.s32.totalorder %v5872_v18, %v3035_v27  ;;  %v3036_v39 = vand.u32 65535, %v2614_v26  ;;  %2913 = vmax.xlane.f32.xlu0 %v2912_v34  ;;  %vm2927_vm1 = vcmp.eq.f32.partialorder %v7545_v13, %v7916_v55  ;;  %v9567_v13 = vld [vmem:[#allocation63_spill] sm:$0xff] }
 0x551   : > { %v3336_v49 = vsel %vm7912_vm14, 4294967295, %v9563_v25  ;;  %v2626_v61 = vpop.xlane.xlu0 %2625  ;;  %v2928_v47 = vsel %vm2927_vm1, %v2923_v40, -inf  ;;  %v3337_v38 = vsel %vm7919_vm15, 4294967295, %v9564_v43  ;;  %v2953_v34 = vand.u32 65535, %v7594_v59 }
 0x552   : > { %vm7935_vm2 = vcmp.eq.s32.totalorder %v5870_v15, %v3036_v39  ;;  %v2627_v14 = vcvt.f32.s32 %v2626_v61  ;;  %2929 = vmax.xlane.f32.xlu1 %v2928_v47  ;;  %vm3074_vm3 = vcmp.eq.s32.totalorder %v5872_v18, %v3036_v39  ;;  %vm3456_vm4 = vcmp.gt.s32.totalorder %v3336_v49, %v3337_v38 }
 0x553   : > { %v3338_v9 = vsel %vm7935_vm2, 4294967295, %v9567_v13  ;;  %v2642_v27 = vpop.xlane.xlu1 %2641  ;;  %vm4940_vm5 = vmpackc.low %vm3074_vm3, %vm7919_vm15  ;;  %v3339_v51 = vsel %vm3074_vm3, 4294967295, %v9568_v8  ;;  %v7946_v26 = vsel %vm3456_vm4, %v3336_v49, %v3337_v38  ;;  %v7957_v61 = vshll.u32 %v2724_v53, 16 }
 0x554   : > { %v2630_v40 = vadd.s32 %v2629_v5, %v2627_v14  ;;  %v2643_v25 = vcvt.f32.s32 %v2642_v27  ;;  %4941 = vmatprep.subr.msk.bf16.mxu0 %vm4940_vm5, %v9334_v54  ;;  %vm3472_vm6 = vcmp.gt.s32.totalorder %v3338_v9, %v3339_v51  ;;  %vm4942_vm7 = vmpackc.low %vm7935_vm2, %vm7912_vm14  ;;  %v3459_v39 = vshra.s32 %v7946_v26, 16 }
 0x555   : > { %v7959_v49 = vshll.u32 %v2740_v2, 16  ;;  %4943 = vmatpush1.bf16.xpose.msk.msra.mxu0 %vm4942_vm7, %v9334_v54  ;;  %v7964_v59 = vsel %vm3472_vm6, %v3338_v9, %v3339_v51  ;;  %v2939_v22 = vcvt.s32.f32 %v2937_v10  ;;  %v2969_v38 = vand.u32 65535, %v7654_v42  ;;  %v9571_v42 = vld [vmem:[#allocation67_spill] sm:$0xff] }
 0x556   : > { %v7961_v47 = vpop.xlane.xlu0 %2941  ;;  %v3037_v5 = vand.u32 65535, %v2630_v40  ;;  %v2646_v43 = vadd.s32 %v2645_v11, %v2643_v25  ;;  %v7967_v33 = vcvt.s32.f32 %v3459_v39  ;;  %v3475_v52 = vshra.s32 %v7964_v59, 16  ;;  %v9577_v25 = vld [vmem:[#allocation15_spill] sm:$0xff] }
 0x557   : > { %v7969_v14 = vpop.xlane.xlu1 %2957  ;;  %v2955_v53 = vcvt.s32.f32 %v2953_v34  ;;  %v2985_v2 = vand.u32 65535, %v7661_v58  ;;  %v3001_v11 = vand.u32 65535, %v7717_v16  ;;  %v3017_v10 = vand.u32 65535, %v7721_v50  ;;  %v9576_v34 = vld [vmem:[#allocation68_spill] sm:$0xff] }
 0x558   : > { %vm7974_vm8 = vcmp.eq.s32.totalorder %v5870_v15, %v3037_v5  ;;  %v3038_v9 = vand.u32 65535, %v2646_v43  ;;  %vm2943_vm9 = vcmp.eq.f32.partialorder %v7605_v57, %v7961_v47  ;;  %3462 = vmax.xlane.f32.xlu0 %v7967_v33  ;;  %v7986_v8 = vcvt.s32.f32 %v3475_v52  ;;  %v9578_v43 = vld [vmem:[#allocation16_spill] sm:$0xff] }
 0x559   : > { %v3340_v27 = vsel %vm7974_vm8, 4294967295, %v9571_v42  ;;  %vm7989_vm10 = vcmp.eq.s32.totalorder %v5872_v18, %v3037_v5  ;;  %vm2959_vm13 = vcmp.eq.f32.partialorder %v7627_v7, %v7969_v14  ;;  %v2944_v42 = vsel %vm2943_vm9, %v2939_v22, -inf }
 0x55a   : > { %v2658_v58 = vpop.xlane.xlu0 %2657  ;;  %vm7994_vm11 = vcmp.eq.s32.totalorder %v5870_v15, %v3038_v9  ;;  %vm3078_vm12 = vcmp.eq.s32.totalorder %v5872_v18, %v3038_v9  ;;  %v3341_v40 = vsel %vm7989_vm10, 4294967295, %v9576_v34  ;;  %3478 = vmax.xlane.f32.xlu1 %v7986_v8  ;;  %v2971_v57 = vcvt.s32.f32 %v2969_v38 }
 0x55b   : > { %v2659_v50 = vcvt.f32.s32 %v2658_v58  ;;  %v3342_v39 = vsel %vm7994_vm11, 4294967295, %v9577_v25  ;;  %vm4944_vm14 = vmpackc.low %vm3078_vm12, %vm7989_vm10  ;;  %v3343_v52 = vsel %vm3078_vm12, 4294967295, %v9578_v43  ;;  %vm3488_vm15 = vcmp.gt.s32.totalorder %v3340_v27, %v3341_v40 }
 0x55c   : > { %v2674_v5 = vpop.xlane.xlu1 %2673  ;;  %4945 = vmatprep.subr.msk.bf16.mxu0 %vm4944_vm14, %v9334_v54  ;;  %vm3504_vm1 = vcmp.gt.s32.totalorder %v3342_v39, %v3343_v52  ;;  %vm4946_vm2 = vmpackc.low %vm7994_vm11, %vm7974_vm8  ;;  %2945 = vmax.xlane.f32.xlu0 %v2944_v42  ;;  %v8023_v34 = vsel %vm3488_vm15, %v3340_v27, %v3341_v40  ;;  %v2987_v22 = vcvt.s32.f32 %v2985_v2  ;;  %v2960_v13 = vsel %vm2959_vm13, %v2955_v53, -inf  ;;  %v9581_v53 = vld [vmem:[#allocation17_spill] sm:$0xff] }
 0x55d   : > { %v2662_v9 = vadd.s32 %v7899_v12, %v2659_v50  ;;  %v2675_v58 = vcvt.f32.s32 %v2674_v5  ;;  %4947 = vmatpush1.bf16.xpose.msk.msra.mxu0 %vm4946_vm2, %v9334_v54  ;;  %v8025_v12 = vsel %vm3504_vm1, %v3342_v39, %v3343_v52  ;;  %v2756_v50 = vcvt.f32.s32 %v7743_v1 }
 0x55e   : > { %v8020_v51 = vpop.xlane.xlu0 %2973  ;;  %2961 = vmax.xlane.f32.xlu1 %v2960_v13  ;;  %v3491_v16 = vshra.s32 %v8023_v34, 16  ;;  %v3507_v27 = vshra.s32 %v8025_v12, 16  ;;  %v8036_v40 = vcvt.s32.f32 %v3001_v11  ;;  %v8038_v38 = vcvt.s32.f32 %v3017_v10 }
 0x55f   : > { %v3039_v25 = vand.u32 65535, %v2662_v9  ;;  %v2678_v5 = vadd.s32 %v7901_v46, %v2675_v58  ;;  %v2772_v1 = vcvt.f32.s32 %v7751_v24  ;;  %v2788_v2 = vcvt.f32.s32 %v7757_v23  ;;  %v9584_v9 = vld [vmem:[#allocation19_spill] sm:$0xff] }
 0x560   : > { %v8033_v43 = vpop.xlane.xlu1 %2989  ;;  %vm2975_vm4 = vcmp.eq.f32.partialorder %v7675_v62, %v8020_v51  ;;  %v8052_v11 = vcvt.s32.f32 %v3491_v16  ;;  %v8054_v52 = vcvt.s32.f32 %v3507_v27  ;;  %v9586_v16 = vld [vmem:[#allocation20_spill] sm:$0xff]  ;;  %v2820_v62 = vcvt.f32.s32 %v7766_v45 }
 0x561   : > { %vm8043_vm3 = vcmp.eq.s32.totalorder %v5870_v15, %v3039_v25  ;;  %v3040_v7 = vand.u32 65535, %v2678_v5  ;;  %vm3080_vm6 = vcmp.eq.s32.totalorder %v5872_v18, %v3039_v25  ;;  %vm2991_vm8 = vcmp.eq.f32.partialorder %v7695_v4, %v8033_v43  ;;  %v9585_v5 = vld [vmem:[#allocation18_spill] sm:$0xff] }
 0x562   : > { %v3344_v39 = vsel %vm8043_vm3, 4294967295, %v9581_v53  ;;  %v2690_v10 = vpop.xlane.xlu0 %2689  ;;  %3494 = vmax.xlane.f32.xlu0 %v8052_v11  ;;  %3510 = vmax.xlane.f32.xlu1 %v8054_v52  ;;  %v3345_v13 = vsel %vm3080_vm6, 4294967295, %v9585_v5  ;;  %v8078_v53 = vshll.u32 %v2756_v50, 16  ;;  %v2976_v46 = vsel %vm2975_vm4, %v2971_v57, -inf }
 0x563   : > { %vm8057_vm5 = vcmp.eq.s32.totalorder %v5870_v15, %v3040_v7  ;;  %v2691_v23 = vcvt.f32.s32 %v2690_v10  ;;  %vm3082_vm7 = vcmp.eq.s32.totalorder %v5872_v18, %v3040_v7  ;;  %vm3520_vm10 = vcmp.gt.s32.totalorder %v3344_v39, %v3345_v13 }
 0x564   : > { %v3346_v42 = vsel %vm8057_vm5, 4294967295, %v9584_v9  ;;  %v2706_v58 = vpop.xlane.xlu1 %2705  ;;  %vm4948_vm9 = vmpackc.low %vm3082_vm7, %vm3080_vm6  ;;  %v3347_v27 = vsel %vm3082_vm7, 4294967295, %v9586_v16  ;;  %v8080_v10 = vshll.u32 %v2772_v1, 16  ;;  %v8085_v5 = vsel %vm3520_vm10, %v3344_v39, %v3345_v13 }
 0x565   : > { %v2694_v25 = vadd.s32 %v7905_v21, %v2691_v23  ;;  %v2707_v7 = vcvt.f32.s32 %v2706_v58  ;;  %4949 = vmatprep.subr.msk.bf16.mxu0 %vm4948_vm9, %v9334_v54  ;;  %vm3536_vm11 = vcmp.gt.s32.totalorder %v3346_v42, %v3347_v27  ;;  %vm4950_vm12 = vmpackc.low %vm8057_vm5, %vm8043_vm3  ;;  %v2992_v50 = vsel %vm2991_vm8, %v2987_v22, -inf }
 0x566   : > { %v8082_v9 = vpop.xlane.xlu0 %3005  ;;  %4951 = vmatpush1.bf16.xpose.msk.msra.mxu0 %vm4950_vm12, %v9334_v54  ;;  %v8087_v21 = vsel %vm3536_vm11, %v3346_v42, %v3347_v27  ;;  %v8096_v1 = vshll.u32 %v2788_v2, 16  ;;  %v2804_v58 = vcvt.f32.s32 %v7762_v0  ;;  %2977 = vmax.xlane.f32.xlu0 %v2976_v46  ;;  %v3523_v39 = vshra.s32 %v8085_v5, 16  ;;  %v9589_v0 = vld [vmem:[#allocation21_spill] sm:$0xff] }
 0x567   : > { %v3041_v23 = vand.u32 65535, %v2694_v25  ;;  %v2710_v24 = vadd.s32 %v7955_v63, %v2707_v7  ;;  %2993 = vmax.xlane.f32.xlu1 %v2992_v50  ;;  %v3539_v13 = vshra.s32 %v8087_v21, 16  ;;  %vm3007_vm14 = vcmp.eq.f32.partialorder %v7732_v36, %v8082_v9  ;;  %v9593_v7 = vld [vmem:[#allocation23_spill] sm:$0xff]  ;;  %v9594_v50 = vld [vmem:[#allocation22_spill] sm:$0xff] }
 0x568   : > { %v8100_v42 = vpop.xlane.xlu1 %3021  ;;  %v8114_v22 = vcvt.s32.f32 %v3523_v39  ;;  %v2836_v25 = vcvt.f32.s32 %v7771_v29  ;;  %v3008_v29 = vsel %vm3007_vm14, %v8036_v40, -inf  ;;  %v2805_v36 = vshll.u32 %v2804_v58, 16  ;;  %v9598_v58 = vld [vmem:[#allocation25_spill] sm:$0xff] }
 0x569   : > { %vm8105_vm13 = vcmp.eq.s32.totalorder %v5870_v15, %v3041_v23  ;;  %v3042_v4 = vand.u32 65535, %v2710_v24  ;;  %vm3023_vm15 = vcmp.eq.f32.partialorder %v7734_v44, %v8100_v42  ;;  %v8118_v45 = vcvt.s32.f32 %v3539_v13  ;;  %v9595_v13 = vld [vmem:[#allocation24_spill] sm:$0xff] }
 0x56a   : > { %v3348_v57 = vsel %vm8105_vm13, 4294967295, %v9589_v0  ;;  %v2722_v2 = vpop.xlane.xlu0 %2721  ;;  %vm3084_vm2 = vcmp.eq.s32.totalorder %v5872_v18, %v3041_v23  ;;  %3526 = vmax.xlane.f32.xlu0 %v8114_v22  ;;  %v8156_v40 = vshll.u32 %v2820_v62, 16 }
 0x56b   : > { %9590 = vst [vmem:[#allocation84_spill] sm:$0xff] %v8118_v45  ;;  %vm8121_vm1 = vcmp.eq.s32.totalorder %v5870_v15, %v3042_v4  ;;  %v2723_v27 = vcvt.f32.s32 %v2722_v2  ;;  %vm3086_vm3 = vcmp.eq.s32.totalorder %v5872_v18, %v3042_v4  ;;  %3542 = vmax.xlane.f32.xlu1 %v8118_v45  ;;  %v3349_v39 = vsel %vm3084_vm2, 4294967295, %v9594_v50 }
 0x56c   : > { %v3350_v46 = vsel %vm8121_vm1, 4294967295, %v9593_v7  ;;  %v2738_v24 = vpop.xlane.xlu1 %2737  ;;  %vm4952_vm4 = vmpackc.low %vm3086_vm3, %vm3084_vm2  ;;  %v3351_v0 = vsel %vm3086_vm3, 4294967295, %v9595_v13  ;;  %vm3552_vm5 = vcmp.gt.s32.totalorder %v3348_v57, %v3349_v39  ;;  %v8158_v13 = vshll.u32 %v2836_v25, 16 }
 0x56d   : > { %v2726_v23 = vadd.s32 %v7957_v61, %v2723_v27  ;;  %v2739_v2 = vcvt.f32.s32 %v2738_v24  ;;  %4953 = vmatprep.subr.msk.bf16.mxu0 %vm4952_vm4, %v9334_v54  ;;  %vm3568_vm6 = vcmp.gt.s32.totalorder %v3350_v46, %v3351_v0  ;;  %vm4954_vm7 = vmpackc.low %vm8121_vm1, %vm8105_vm13  ;;  %v3024_v61 = vsel %vm3023_vm15, %v8038_v38, -inf  ;;  %v9626_v38 = vld [vmem:[#allocation38_spill] sm:$0xff] }
 0x56e   : > { %v2754_v4 = vpop.xlane.xlu0 %2753  ;;  %4955 = vmatpush1.bf16.xpose.msk.msra.mxu0 %vm4954_vm7, %v9334_v54  ;;  %v8150_v27 = vsel %vm3552_vm5, %v3348_v57, %v3349_v39  ;;  %v8152_v7 = vsel %vm3568_vm6, %v3350_v46, %v3351_v0  ;;  %3009 = vmax.xlane.f32.xlu0 %v3008_v29 }
 0x56f   : > { %v3043_v63 = vand.u32 65535, %v2726_v23  ;;  %v2742_v16 = vadd.s32 %v7959_v49, %v2739_v2  ;;  %v2755_v24 = vcvt.f32.s32 %v2754_v4  ;;  %v3555_v50 = vshra.s32 %v8150_v27, 16  ;;  %3025 = vmax.xlane.f32.xlu1 %v3024_v61  ;;  %v9603_v4 = vld [vmem:[#allocation27_spill] sm:$0xff] }
 0x570   : > { %v2770_v45 = vpop.xlane.xlu1 %2769  ;;  %v3571_v44 = vshra.s32 %v8152_v7, 16 }
 0x571   : > { %vm8162_vm8 = vcmp.eq.s32.totalorder %v5870_v15, %v3043_v63  ;;  %v3044_v57 = vand.u32 65535, %v2742_v16  ;;  %v2758_v49 = vadd.s32 %v8078_v53, %v2755_v24  ;;  %v8167_v46 = vcvt.s32.f32 %v3555_v50  ;;  %v9605_v24 = vld [vmem:[#allocation28_spill] sm:$0xff] }
 0x572   : > { %v3352_v62 = vsel %vm8162_vm8, 4294967295, %v9598_v58  ;;  %v2771_v25 = vcvt.f32.s32 %v2770_v45  ;;  %v8172_v39 = vcvt.s32.f32 %v3571_v44  ;;  %vm8175_vm9 = vcmp.eq.s32.totalorder %v5872_v18, %v3043_v63  ;;  %v9604_v63 = vld [vmem:[#allocation26_spill] sm:$0xff] }
 0x573   : > { %vm8180_vm10 = vcmp.eq.s32.totalorder %v5870_v15, %v3044_v57  ;;  %v3045_v53 = vand.u32 65535, %v2758_v49  ;;  %vm3090_vm11 = vcmp.eq.s32.totalorder %v5872_v18, %v3044_v57  ;;  %3558 = vmax.xlane.f32.xlu0 %v8167_v46  ;;  %v3353_v16 = vsel %vm8175_vm9, 4294967295, %v9604_v63 }
 0x574   : > { %v2786_v0 = vpop.xlane.xlu0 %2785  ;;  %v3354_v45 = vsel %vm8180_vm10, 4294967295, %v9603_v4  ;;  %v2774_v61 = vadd.s32 %v8080_v10, %v2771_v25  ;;  %3574 = vmax.xlane.f32.xlu1 %v8172_v39  ;;  %vm4956_vm12 = vmpackc.low %vm3090_vm11, %vm8175_vm9  ;;  %v3355_v50 = vsel %vm3090_vm11, 4294967295, %v9605_v24  ;;  %vm3584_vm14 = vcmp.gt.s32.totalorder %v3352_v62, %v3353_v16  ;;  %v9608_v10 = vld [vmem:[#allocation29_spill] sm:$0xff] }
 0x575   : > { %v2787_v29 = vcvt.f32.s32 %v2786_v0  ;;  %vm8198_vm13 = vcmp.eq.s32.totalorder %v5870_v15, %v3045_v53  ;;  %4957 = vmatprep.subr.msk.bf16.mxu0 %vm4956_vm12, %v9334_v54  ;;  %vm3600_vm15 = vcmp.gt.s32.totalorder %v3354_v45, %v3355_v50  ;;  %vm4958_vm1 = vmpackc.low %vm8180_vm10, %vm8162_vm8  ;;  %v8212_v0 = vsel %vm3584_vm14, %v3352_v62, %v3353_v16  ;;  %v9612_v16 = vld [vmem:[#allocation31_spill] sm:$0xff] }
 0x576   : > { %v2802_v44 = vpop.xlane.xlu1 %2801  ;;  %v3356_v58 = vsel %vm8198_vm13, 4294967295, %v9608_v10  ;;  %v3046_v25 = vand.u32 65535, %v2774_v61  ;;  %4959 = vmatpush1.bf16.xpose.msk.msra.mxu0 %vm4958_vm1, %v9334_v54  ;;  %vm3092_vm2 = vcmp.eq.s32.totalorder %v5872_v18, %v3045_v53  ;;  %v8216_v4 = vsel %vm3600_vm15, %v3354_v45, %v3355_v50  ;;  %v9611_v61 = vld [vmem:[#allocation30_spill] sm:$0xff]  ;;  %v9616_v50 = vld [vmem:[#allocation32_spill] sm:$0xff] }
 0x577   : > { %v2790_v49 = vadd.s32 %v8096_v1, %v2787_v29  ;;  %v2803_v23 = vcvt.f32.s32 %v2802_v44  ;;  %v3587_v29 = vshra.s32 %v8212_v0, 16  ;;  %v3357_v63 = vsel %vm3092_vm2, 4294967295, %v9611_v61 }
 0x578   : > { %vm8219_vm3 = vcmp.eq.s32.totalorder %v5870_v15, %v3046_v25  ;;  %vm3094_vm4 = vcmp.eq.s32.totalorder %v5872_v18, %v3046_v25  ;;  %vm3616_vm7 = vcmp.gt.s32.totalorder %v3356_v58, %v3357_v63  ;;  %v3603_v25 = vshra.s32 %v8216_v4, 16 }
 0x579   : > { %v3047_v1 = vand.u32 65535, %v2790_v49  ;;  %v2806_v2 = vadd.s32 %v2805_v36, %v2803_v23  ;;  %v3358_v24 = vsel %vm8219_vm3, 4294967295, %v9612_v16  ;;  %v8233_v45 = vcvt.s32.f32 %v3587_v29  ;;  %vm4960_vm6 = vmpackc.low %vm3094_vm4, %vm3092_vm2  ;;  %v9617_v36 = vld [vmem:[#allocation34_spill] sm:$0xff] }
 0x57a   : > { %v3359_v44 = vsel %vm3094_vm4, 4294967295, %v9616_v50  ;;  %4961 = vmatprep.subr.msk.bf16.mxu0 %vm4960_vm6, %v9334_v54  ;;  %v8242_v23 = vsel %vm3616_vm7, %v3356_v58, %v3357_v63  ;;  %v9624_v58 = vld [vmem:[#allocation37_spill] sm:$0xff]  ;;  %vm4962_vm11 = vmpackc.low %vm8219_vm3, %vm8198_vm13  ;;  %v2852_v16 = vcvt.f32.s32 %v7779_v3  ;;  %v2900_v3 = vcvt.f32.s32 %v7881_v56 }
 0x57b   : > { %v2818_v62 = vpop.xlane.xlu0 %2817  ;;  %vm8229_vm5 = vcmp.eq.s32.totalorder %v5870_v15, %v3047_v1  ;;  %9615 = vst [vmem:[#allocation86_spill] sm:$0xff] %v8233_v45  ;;  %v3048_v10 = vand.u32 65535, %v2806_v2  ;;  %vm3632_vm8 = vcmp.gt.s32.totalorder %v3358_v24, %v3359_v44  ;;  %3590 = vmax.xlane.f32.xlu0 %v8233_v45  ;;  %9618 = vst [vmem:[#allocation87_spill] sm:$0xff] %v8242_v23  ;;  %v3619_v2 = vshra.s32 %v8242_v23, 16  ;;  %v9625_v23 = vld [vmem:[#allocation36_spill] sm:$0xff] }
 0x57c   : > { %v3360_v49 = vsel %vm8229_vm5, 4294967295, %v9617_v36  ;;  %v2819_v29 = vcvt.f32.s32 %v2818_v62  ;;  %v8244_v61 = vsel %vm3632_vm8, %v3358_v24, %v3359_v44  ;;  %vm8254_vm10 = vcmp.eq.s32.totalorder %v5872_v18, %v3047_v1 }
 0x57d   : > { %9619 = vst [vmem:[#allocation89_spill] sm:$0xff] %v8244_v61  ;;  %vm8247_vm9 = vcmp.eq.s32.totalorder %v5870_v15, %v3048_v10  ;;  %v3635_v50 = vshra.s32 %v8244_v61, 16  ;;  %v8261_v62 = vcvt.s32.f32 %v3603_v25  ;;  %v8268_v61 = vcvt.s32.f32 %v3619_v2 }
 0x57e   : > { %v2834_v36 = vpop.xlane.xlu1 %2833  ;;  %v3362_v63 = vsel %vm8247_vm9, 4294967295, %v9624_v58  ;;  %v2822_v24 = vadd.s32 %v8156_v40, %v2819_v29  ;;  %4963 = vmatpush1.bf16.xpose.msk.msra.mxu0 %vm4962_vm11, %v9334_v54  ;;  %vm3098_vm12 = vcmp.eq.s32.totalorder %v5872_v18, %v3048_v10  ;;  %v3361_v25 = vsel %vm8254_vm10, 4294967295, %v9625_v23  ;;  %vm4966_vm8 = vmpackc.low %vm8247_vm9, %vm8229_vm5 }
 0x57f   : > { %v2835_v44 = vcvt.f32.s32 %v2834_v36  ;;  %v8271_v1 = vcvt.s32.f32 %v3635_v50  ;;  %3606 = vmax.xlane.f32.xlu1 %v8261_v62  ;;  %vm4964_vm13 = vmpackc.low %vm3098_vm12, %vm8254_vm10  ;;  %v3363_v29 = vsel %vm3098_vm12, 4294967295, %v9626_v38  ;;  %vm3648_vm14 = vcmp.gt.s32.totalorder %v3360_v49, %v3361_v25  ;;  %3622 = vmax.xlane.f32.xlu0 %v8268_v61  ;;  %v9629_v50 = vld [vmem:[#allocation41_spill] sm:$0xff] }
 0x580   : > { %v3049_v40 = vand.u32 65535, %v2822_v24  ;;  %4965 = vmatprep.subr.msk.bf16.mxu0 %vm4964_vm13, %v9334_v54  ;;  %vm3664_vm15 = vcmp.gt.s32.totalorder %v3362_v63, %v3363_v29  ;;  %v8284_v10 = vsel %vm3648_vm14, %v3360_v49, %v3361_v25  ;;  %v9636_v25 = vld [vmem:[#allocation42_spill] sm:$0xff]  ;;  %v3410_v24 = vand.u32 65535, %v7826_v30 }
 0x581   : > { %v2838_v57 = vadd.s32 %v8158_v13, %v2835_v44  ;;  %v3651_v13 = vshra.s32 %v8284_v10, 16  ;;  %v8292_v45 = vsel %vm3664_vm15, %v3362_v63, %v3363_v29 }
 0x582   : > { %vm8287_vm1 = vcmp.eq.s32.totalorder %v5870_v15, %v3049_v40  ;;  %v3667_v58 = vshra.s32 %v8292_v45, 16  ;;  %vm8299_vm2 = vcmp.eq.s32.totalorder %v5872_v18, %v3049_v40 }
 0x583   : > { %v3050_v2 = vand.u32 65535, %v2838_v57  ;;  %v3364_v36 = vsel %vm8287_vm1, 4294967295, %v9629_v50  ;;  %3638 = vmax.xlane.f32.xlu1 %v8271_v1  ;;  %v8309_v63 = vcvt.s32.f32 %v3651_v13  ;;  %v3365_v40 = vsel %vm8299_vm2, 4294967295, %v9636_v25  ;;  %v9637_v57 = vld [vmem:[#allocation46_spill] sm:$0xff]  ;;  %v9638_v13 = vld [vmem:[#allocation48_spill] sm:$0xff] }
 0x584   : > { %v8322_v29 = vcvt.s32.f32 %v3667_v58  ;;  %vm3680_vm7 = vcmp.gt.s32.totalorder %v3364_v36, %v3365_v40 }
 0x585   : > { %vm8305_vm3 = vcmp.eq.s32.totalorder %v5870_v15, %v3050_v2  ;;  %vm8312_vm4 = vcmp.eq.s32.totalorder %v5872_v18, %v3050_v2  ;;  %3654 = vmax.xlane.f32.xlu0 %v8309_v63  ;;  %v8336_v50 = vsel %vm3680_vm7, %v3364_v36, %v3365_v40  ;;  %v2868_v36 = vcvt.f32.s32 %v7784_v37 }
 0x586   : > { %v3366_v38 = vsel %vm8305_vm3, 4294967295, %v9637_v57  ;;  %vm4968_vm6 = vmpackc.low %vm8312_vm4, %vm8299_vm2  ;;  %v3367_v2 = vsel %vm8312_vm4, 4294967295, %v9638_v13  ;;  %4967 = vmatpush1.bf16.xpose.msk.msra.mxu0 %vm4966_vm8, %v9334_v54  ;;  %v3683_v58 = vshra.s32 %v8336_v50, 16  ;;  %v2853_v57 = vshll.u32 %v2852_v16, 16 }
 0x587   : > { %vm3696_vm10 = vcmp.gt.s32.totalorder %v3366_v38, %v3367_v2  ;;  %3670 = vmax.xlane.f32.xlu1 %v8322_v29  ;;  %4969 = vmatprep.subr.msk.bf16.mxu0 %vm4968_vm6, %v9334_v54  ;;  %vm4970_vm5 = vmpackc.low %vm8305_vm3, %vm8287_vm1 }
 0x588   : > { %v8340_v49 = vsel %vm3696_vm10, %v3366_v38, %v3367_v2  ;;  %v8345_v25 = vcvt.s32.f32 %v3683_v58  ;;  %v2869_v58 = vshll.u32 %v2868_v36, 16  ;;  %v9646_v36 = vld [vmem:[#allocation56_spill] sm:$0xff] }
 0x589   : > { %9639 = vst [vmem:[#allocation88_spill] sm:$0xff] %v8340_v49  ;;  %v3699_v44 = vshra.s32 %v8340_v49, 16 }
 0x58a   : > { %9640 = vst [vmem:[#allocation90_spill] sm:$0xff] %v8345_v25  ;;  %3686 = vmax.xlane.f32.xlu0 %v8345_v25 }
 0x58b   : > { %v8347_v53 = vcvt.s32.f32 %v3699_v44 }
 0x58d   : > { %9641 = vst [vmem:[#allocation33_spill] sm:$0xff] %v8347_v53  ;;  %3702 = vmax.xlane.f32.xlu1 %v8347_v53  ;;  %v3394_v53 = vand.u32 65535, %v7822_v41 }
 0x58e   : > { %4971 = vmatpush1.bf16.xpose.msk.msra.mxu0 %vm4970_vm5, %v9334_v54 }
 0x58f   : > { %v3396_v30 = vcvt.s32.f32 %v3394_v53 }
 0x5c7   : > { %v2850_v40 = vpop.xlane.xlu0 %2849 }
 0x5c8   : > { %v2851_v38 = vcvt.f32.s32 %v2850_v40 }
 0x5ca   : > { %v2854_v13 = vadd.s32 %v2853_v57, %v2851_v38  ;;  %v2866_v2 = vpop.xlane.xlu1 %2865  ;;  %v3412_v57 = vcvt.s32.f32 %v3410_v24 }
 0x5cb   : > { %v2867_v44 = vcvt.f32.s32 %v2866_v2 }
 0x5cc   : > { %v3051_v25 = vand.u32 65535, %v2854_v13  ;;  %v9649_v13 = vld [vmem:[#allocation60_spill] sm:$0xff] }
 0x5cd   : > { %v2870_v23 = vadd.s32 %v2869_v58, %v2867_v44  ;;  %v9650_v58 = vld [vmem:[#allocation61_spill] sm:$0xff] }
 0x5ce   : > { %vm8361_vm9 = vcmp.eq.s32.totalorder %v5870_v15, %v3051_v25  ;;  %vm8366_vm11 = vcmp.eq.s32.totalorder %v5872_v18, %v3051_v25 }
 0x5cf   : > { %v3368_v37 = vsel %vm8361_vm9, 4294967295, %v7305_v35  ;;  %v3052_v16 = vand.u32 65535, %v2870_v23  ;;  %v3369_v41 = vsel %vm8366_vm11, 4294967295, %v9646_v36  ;;  %v2884_v35 = vcvt.f32.s32 %v7858_v17 }
 0x5d0   : > { %vm3712_vm12 = vcmp.gt.s32.totalorder %v3368_v37, %v3369_v41  ;;  %v8381_v25 = vpop.xlane.xlu0 %3398 }
 0x5d1   : > { %vm8377_vm13 = vcmp.eq.s32.totalorder %v5870_v15, %v3052_v16  ;;  %vm3106_vm14 = vcmp.eq.s32.totalorder %v5872_v18, %v3052_v16  ;;  %v8384_v38 = vsel %vm3712_vm12, %v3368_v37, %v3369_v41  ;;  %vm3400_vm15 = vcmp.eq.f32.partialorder %v7836_v32, %v8381_v25 }
 0x5d2   : > { %v3370_v2 = vsel %vm8377_vm13, 4294967295, %v9649_v13  ;;  %v8392_v53 = vpop.xlane.xlu1 %3414  ;;  %vm4972_vm1 = vmpackc.low %vm3106_vm14, %vm8366_vm11  ;;  %v3371_v44 = vsel %vm3106_vm14, 4294967295, %v9650_v58  ;;  %v3401_v23 = vsel %vm3400_vm15, %v3396_v30, -inf  ;;  %v3715_v17 = vshra.s32 %v8384_v38, 16 }
 0x5d3   : > { %vm3416_vm2 = vcmp.eq.f32.partialorder %v7846_v60, %v8392_v53  ;;  %4973 = vmatprep.subr.msk.bf16.mxu0 %vm4972_vm1, %v9334_v54  ;;  %vm3728_vm3 = vcmp.gt.s32.totalorder %v3370_v2, %v3371_v44  ;;  %vm4974_vm4 = vmpackc.low %vm8377_vm13, %vm8361_vm9  ;;  %3402 = vmax.xlane.f32.xlu0 %v3401_v23  ;;  %v3426_v16 = vand.u32 65535, %v7862_v28  ;;  %v2885_v49 = vshll.u32 %v2884_v35, 16 }
 0x5d4   : > { %4975 = vmatpush1.bf16.xpose.msk.msra.mxu0 %vm4974_vm4, %v9334_v54  ;;  %v3417_v32 = vsel %vm3416_vm2, %v3412_v57, -inf  ;;  %v8406_v24 = vsel %vm3728_vm3, %v3370_v2, %v3371_v44  ;;  %v8411_v41 = vcvt.s32.f32 %v3715_v17  ;;  %v3442_v13 = vand.u32 65535, %v7884_v19 }
 0x5d5   : > { %v2882_v37 = vpop.xlane.xlu0 %2881  ;;  %3418 = vmax.xlane.f32.xlu1 %v3417_v32  ;;  %v3731_v60 = vshra.s32 %v8406_v24, 16  ;;  %v2901_v2 = vshll.u32 %v2900_v3, 16  ;;  %v3428_v44 = vcvt.s32.f32 %v3426_v16  ;;  %v2916_v35 = vcvt.f32.s32 %v7903_v48 }
 0x5d6   : > { %v2883_v36 = vcvt.f32.s32 %v2882_v37  ;;  %v2932_v17 = vcvt.f32.s32 %v7916_v55  ;;  %v3444_v37 = vcvt.s32.f32 %v3442_v13  ;;  %v3474_v19 = vand.u32 65535, %v7964_v59  ;;  %v9666_v59 = vld [vmem:[#allocation72_spill] sm:$0xff] }
 0x5d7   : > { %v8413_v30 = vcvt.s32.f32 %v3731_v60  ;;  %3718 = vmax.xlane.f32.xlu0 %v8411_v41  ;;  %v2898_v57 = vpop.xlane.xlu1 %2897 }
 0x5d8   : > { %v2886_v40 = vadd.s32 %v2885_v49, %v2883_v36  ;;  %v2899_v56 = vcvt.f32.s32 %v2898_v57  ;;  %v9656_v36 = vld [vmem:[#allocation69_spill] sm:$0xff]  ;;  %v2917_v57 = vshll.u32 %v2916_v35, 16 }
 0x5d9   : > { %v8417_v58 = vpop.xlane.xlu0 %3430  ;;  %3734 = vmax.xlane.f32.xlu1 %v8413_v30 }
 0x5da   : > { %v3053_v28 = vand.u32 65535, %v2886_v40  ;;  %vm3432_vm6 = vcmp.eq.f32.partialorder %v7889_v31, %v8417_v58  ;;  %v2902_v23 = vadd.s32 %v2901_v2, %v2899_v56  ;;  %v9655_v31 = vld [vmem:[#allocation62_spill] sm:$0xff]  ;;  %v2933_v56 = vshll.u32 %v2932_v17, 16 }
 0x5db   : > { %v3433_v32 = vsel %vm3432_vm6, %v3428_v44, -inf  ;;  %v8429_v3 = vpop.xlane.xlu1 %3446  ;;  %v9659_v44 = vld [vmem:[#allocation64_spill] sm:$0xff] }
 0x5dc   : > { %vm8425_vm7 = vcmp.eq.s32.totalorder %v5870_v15, %v3053_v28  ;;  %3434 = vmax.xlane.f32.xlu0 %v3433_v32  ;;  %vm8432_vm8 = vcmp.eq.s32.totalorder %v5872_v18, %v3053_v28  ;;  %v3054_v16 = vand.u32 65535, %v2902_v23  ;;  %vm3448_vm10 = vcmp.eq.f32.partialorder %v7895_v6, %v8429_v3  ;;  %v9660_v23 = vld [vmem:[#allocation70_spill] sm:$0xff] }
 0x5dd   : > { %v3372_v48 = vsel %vm8425_vm7, 4294967295, %v9655_v31  ;;  %v2914_v55 = vpop.xlane.xlu0 %2913  ;;  %v3449_v49 = vsel %vm3448_vm10, %v3444_v37, -inf  ;;  %v3373_v40 = vsel %vm8432_vm8, 4294967295, %v9656_v36  ;;  %v3458_v36 = vand.u32 65535, %v7946_v26  ;;  %v9665_v26 = vld [vmem:[#allocation71_spill] sm:$0xff] }
 0x5de   : > { %vm8445_vm5 = vcmp.eq.s32.totalorder %v5870_v15, %v3054_v16  ;;  %v2915_v2 = vcvt.f32.s32 %v2914_v55  ;;  %3450 = vmax.xlane.f32.xlu1 %v3449_v49  ;;  %vm3110_vm9 = vcmp.eq.s32.totalorder %v5872_v18, %v3054_v16  ;;  %vm3744_vm12 = vcmp.gt.s32.totalorder %v3372_v48, %v3373_v40 }
 0x5df   : > { %v3374_v6 = vsel %vm8445_vm5, 4294967295, %v9659_v44  ;;  %v2930_v28 = vpop.xlane.xlu1 %2929  ;;  %vm4976_vm11 = vmpackc.low %vm3110_vm9, %vm8432_vm8  ;;  %v3375_v35 = vsel %vm3110_vm9, 4294967295, %v9660_v23  ;;  %v8461_v17 = vsel %vm3744_vm12, %v3372_v48, %v3373_v40 }
 0x5e0   : > { %v2918_v32 = vadd.s32 %v2917_v57, %v2915_v2  ;;  %v2931_v37 = vcvt.f32.s32 %v2930_v28  ;;  %4977 = vmatprep.subr.msk.bf16.mxu0 %vm4976_vm11, %v9334_v54  ;;  %vm3760_vm13 = vcmp.gt.s32.totalorder %v3374_v6, %v3375_v35  ;;  %vm4978_vm14 = vmpackc.low %vm8445_vm5, %vm8425_vm7  ;;  %v3747_v60 = vshra.s32 %v8461_v17, 16 }
 0x5e1   : > { %4979 = vmatpush1.bf16.xpose.msk.msra.mxu0 %vm4978_vm14, %v9334_v54  ;;  %v8465_v31 = vsel %vm3760_vm13, %v3374_v6, %v3375_v35  ;;  %v2964_v35 = vcvt.f32.s32 %v7969_v14  ;;  %v3476_v14 = vcvt.s32.f32 %v3474_v19 }
 0x5e2   : > { %v3055_v16 = vand.u32 65535, %v2918_v32  ;;  %v2934_v55 = vadd.s32 %v2933_v56, %v2931_v37  ;;  %v3763_v49 = vshra.s32 %v8465_v31, 16  ;;  %v8469_v57 = vcvt.s32.f32 %v3747_v60  ;;  %v9669_v32 = vld [vmem:[#allocation73_spill] sm:$0xff]  ;;  %v9670_v60 = vld [vmem:[#allocation74_spill] sm:$0xff] }
 0x5e3   : > { %v2948_v56 = vcvt.f32.s32 %v7961_v47  ;;  %v3460_v47 = vcvt.s32.f32 %v3458_v36 }
 0x5e4   : > { %vm8473_vm15 = vcmp.eq.s32.totalorder %v5870_v15, %v3055_v16  ;;  %v3056_v40 = vand.u32 65535, %v2934_v55  ;;  %v8477_v13 = vcvt.s32.f32 %v3763_v49  ;;  %vm8480_vm1 = vcmp.eq.s32.totalorder %v5872_v18, %v3055_v16  ;;  %3750 = vmax.xlane.f32.xlu0 %v8469_v57 }
 0x5e5   : > { %v3376_v44 = vsel %vm8473_vm15, 4294967295, %v9665_v26  ;;  %v3377_v6 = vsel %vm8480_vm1, 4294967295, %v9666_v59  ;;  %v8497_v23 = vpop.xlane.xlu0 %3462  ;;  %v2949_v59 = vshll.u32 %v2948_v56, 16  ;;  %v3506_v56 = vand.u32 65535, %v8025_v12 }
 0x5e6   : > { %vm8493_vm2 = vcmp.eq.s32.totalorder %v5870_v15, %v3056_v40  ;;  %3766 = vmax.xlane.f32.xlu1 %v8477_v13  ;;  %vm3114_vm3 = vcmp.eq.s32.totalorder %v5872_v18, %v3056_v40  ;;  %vm3776_vm4 = vcmp.gt.s32.totalorder %v3376_v44, %v3377_v6  ;;  %vm3464_vm6 = vcmp.eq.f32.partialorder %v7967_v33, %v8497_v23 }
 0x5e7   : > { %v3378_v37 = vsel %vm8493_vm2, 4294967295, %v9669_v32  ;;  %vm4980_vm7 = vmpackc.low %vm3114_vm3, %vm8480_vm1  ;;  %v3379_v16 = vsel %vm3114_vm3, 4294967295, %v9670_v60  ;;  %v3465_v55 = vsel %vm3464_vm6, %v3460_v47, -inf  ;;  %v8510_v49 = vpop.xlane.xlu1 %3478  ;;  %v8517_v36 = vsel %vm3776_vm4, %v3376_v44, %v3377_v6 }
 0x5e8   : > { %4981 = vmatprep.subr.msk.bf16.mxu0 %vm4980_vm7, %v9334_v54  ;;  %vm3792_vm8 = vcmp.gt.s32.totalorder %v3378_v37, %v3379_v16  ;;  %vm4982_vm10 = vmpackc.low %vm8493_vm2, %vm8473_vm15  ;;  %3466 = vmax.xlane.f32.xlu0 %v3465_v55  ;;  %vm3480_vm5 = vcmp.eq.f32.partialorder %v7986_v8, %v8510_v49  ;;  %v3779_v33 = vshra.s32 %v8517_v36, 16  ;;  %v2965_v44 = vshll.u32 %v2964_v35, 16  ;;  %v971_v35 = vpop.f32.mrb[4].mxu0 }
 0x5e9   : > { %4983 = vmatpush1.bf16.xpose.msk.msra.mxu0 %vm4982_vm10, %v9334_v54  ;;  %v2946_v40 = vpop.xlane.xlu0 %2945  ;;  %v3481_v2 = vsel %vm3480_vm5, %v3476_v14, -inf  ;;  %v8523_v26 = vsel %vm3792_vm8, %v3378_v37, %v3379_v16  ;;  %v2980_v6 = vcvt.f32.s32 %v8020_v51  ;;  %v2996_v8 = vcvt.f32.s32 %v8033_v43 }
 0x5ea   : > { %v2947_v48 = vcvt.f32.s32 %v2946_v40  ;;  %3482 = vmax.xlane.f32.xlu1 %v3481_v2  ;;  %v8525_v28 = vcvt.s32.f32 %v3779_v33  ;;  %v3795_v19 = vshra.s32 %v8523_v26, 16  ;;  %v3490_v32 = vand.u32 65535, %v8023_v34 }
 0x5eb   : > { %v2962_v47 = vpop.xlane.xlu1 %2961  ;;  %v2981_v33 = vshll.u32 %v2980_v6, 16  ;;  %v2997_v51 = vshll.u32 %v2996_v8, 16  ;;  %v3508_v12 = vcvt.s32.f32 %v3506_v56  ;;  %v9678_v56 = vld [vmem:[#allocation77_spill] sm:$0xff]  ;;  %v3522_v34 = vand.u32 65535, %v8085_v5 }
 0x5ec   : > { %v2950_v60 = vadd.s32 %v2949_v59, %v2947_v48  ;;  %3782 = vmax.xlane.f32.xlu0 %v8525_v28  ;;  %v2963_v37 = vcvt.f32.s32 %v2962_v47  ;;  %v8532_v16 = vcvt.s32.f32 %v3795_v19  ;;  %v3492_v43 = vcvt.s32.f32 %v3490_v32  ;;  %v973_v48 = vpop.f32.mrb[5].mxu0 }
 0x5ed   : > { %v3012_v19 = vcvt.f32.s32 %v8082_v9  ;;  %v975_v8 = vpop.f32.mrb[6].mxu0  ;;  %v3028_v47 = vcvt.f32.s32 %v8100_v42 }
 0x5ee   : > { %v3057_v55 = vand.u32 65535, %v2950_v60  ;;  %v2966_v14 = vadd.s32 %v2965_v44, %v2963_v37  ;;  %3798 = vmax.xlane.f32.xlu1 %v8532_v16  ;;  %v9677_v60 = vld [vmem:[#allocation75_spill] sm:$0xff] }
 0x5ef   : > { %v8536_v40 = vpop.xlane.xlu0 %3494  ;;  %v8538_v2 = vpop.xlane.xlu1 %3510 }
 0x5f0   : > { %vm8541_vm9 = vcmp.eq.s32.totalorder %v5870_v15, %v3057_v55  ;;  %v3058_v59 = vand.u32 65535, %v2966_v14  ;;  %vm3496_vm11 = vcmp.eq.f32.partialorder %v8052_v11, %v8536_v40  ;;  %vm3512_vm12 = vcmp.eq.f32.partialorder %v8054_v52, %v8538_v2 }
 0x5f1   : > { %v3380_v44 = vsel %vm8541_vm9, 4294967295, %v7527_v20  ;;  %v3497_v6 = vsel %vm3496_vm11, %v3492_v43, -inf  ;;  %v3513_v11 = vsel %vm3512_vm12, %v3508_v12, -inf  ;;  %vm8560_vm14 = vcmp.eq.s32.totalorder %v5872_v18, %v3057_v55  ;;  %v976_v20 = vpop.f32.mrb[7].mxu0 }
 0x5f2   : > { %vm8555_vm13 = vcmp.eq.s32.totalorder %v5870_v15, %v3058_v59  ;;  %3498 = vmax.xlane.f32.xlu0 %v3497_v6  ;;  %3514 = vmax.xlane.f32.xlu1 %v3513_v11  ;;  %vm3118_vm15 = vcmp.eq.s32.totalorder %v5872_v18, %v3058_v59  ;;  %v3381_v14 = vsel %vm8560_vm14, 4294967295, %v9678_v56  ;;  %v8575_v55 = vpack.c.bf16 %v971_v35, %v971_v35  ;;  %v9679_v6 = vld [vmem:[#allocation76_spill] sm:$0xff] }
 0x5f3   : > { %v3382_v52 = vsel %vm8555_vm13, 4294967295, %v9677_v60  ;;  %v2978_v37 = vpop.xlane.xlu0 %2977  ;;  %vm4986_vm1 = vmpackc.low %vm8555_vm13, %vm8541_vm9  ;;  %v3383_v8 = vsel %vm3118_vm15, 4294967295, %v9679_v6  ;;  %vm3808_vm3 = vcmp.gt.s32.totalorder %v3380_v44, %v3381_v14  ;;  %v1645_v11 = vpack.c.bf16 %v973_v48, %v973_v48 }
 0x5f4   : > { %v2994_v42 = vpop.xlane.xlu1 %2993  ;;  %v2979_v43 = vcvt.f32.s32 %v2978_v37  ;;  %vm4984_vm2 = vmpackc.low %vm3118_vm15, %vm8560_vm14  ;;  %vm3824_vm4 = vcmp.gt.s32.totalorder %v3382_v52, %v3383_v8  ;;  %v8581_v59 = vsel %vm3808_vm3, %v3380_v44, %v3381_v14  ;;  %v3013_v44 = vshll.u32 %v3012_v19, 16 }
 0x5f5   : > { %v2995_v12 = vcvt.f32.s32 %v2994_v42  ;;  %4985 = vmatprep.subr.msk.bf16.mxu0 %vm4984_vm2, %v9334_v54  ;;  %v3811_v35 = vshra.s32 %v8581_v59, 16  ;;  %v8586_v60 = vsel %vm3824_vm4, %v3382_v52, %v3383_v8  ;;  %2446 = vmatprep.mubr.bf16.mxu1 %v1645_v11  ;;  %v3538_v52 = vand.u32 65535, %v8087_v21  ;;  %v9688_v21 = vld [vmem:[#allocation79_spill] sm:$0xff]  ;;  %v9689_v8 = vld [vmem:[#allocation84_spill] sm:$0xff] }
 0x5f6   : > { %v2982_v32 = vadd.s32 %v2981_v33, %v2979_v43  ;;  %4987 = vmatpush1.bf16.xpose.msk.msra.mxu0 %vm4986_vm1, %v9334_v54  ;;  %v3827_v42 = vshra.s32 %v8586_v60, 16  ;;  %3319 = vmatprep.mubr.bf16.mxu0 %v1645_v11  ;;  %v3029_v33 = vshll.u32 %v3028_v47, 16  ;;  %v3524_v47 = vcvt.s32.f32 %v3522_v34  ;;  %v9687_v43 = vld [vmem:[#allocation78_spill] sm:$0xff] }
 0x5f7   : > { %v2998_v20 = vadd.s32 %v2997_v51, %v2995_v12  ;;  %v8588_v9 = vpop.xlane.xlu0 %3526  ;;  %2447 = vmatmul.mubr.bf16.vlgmr.msra.gmra.mrb[68].mxu1 %v8575_v55  ;;  %v8594_v51 = vcvt.s32.f32 %v3811_v35 }
 0x5f8   : > { %9680 = vst [vmem:[#allocation35_spill] sm:$0xff] %v8588_v9  ;;  %v8590_v37 = vpop.xlane.xlu1 %3542  ;;  %v3059_v56 = vand.u32 65535, %v2982_v32  ;;  %v8596_v48 = vcvt.s32.f32 %v3827_v42  ;;  %4192 = vmatprep.mubr.bf16.mxu1 %v1645_v11  ;;  %vm3528_vm8 = vcmp.eq.f32.partialorder %v8114_v22, %v8588_v9 }
 0x5f9   : > { %v3060_v5 = vand.u32 65535, %v2998_v20  ;;  %9681 = vst [vmem:[#allocation40_spill] sm:$0xff] %v8594_v51  ;;  %3814 = vmax.xlane.f32.xlu0 %v8594_v51  ;;  %vm3544_vm10 = vcmp.eq.f32.partialorder %v9689_v8, %v8590_v37  ;;  %v9690_v20 = vld [vmem:[#allocation81_spill] sm:$0xff]  ;;  %v3529_v42 = vsel %vm3528_vm8, %v3524_v47, -inf  ;;  %v9697_v8 = vld [vmem:[#allocation82_spill] sm:$0xff] }
 0x5fa   : > { %9682 = vst [vmem:[#allocation39_spill] sm:$0xff] %v8596_v48  ;;  %vm8600_vm6 = vcmp.eq.s32.totalorder %v5870_v15, %v3059_v56  ;;  %3830 = vmax.xlane.f32.xlu1 %v8596_v48  ;;  %vm3120_vm5 = vcmp.eq.s32.totalorder %v5872_v18, %v3059_v56  ;;  %v3540_v48 = vcvt.s32.f32 %v3538_v52 }
 0x5fb   : > { %vm8605_vm7 = vcmp.eq.s32.totalorder %v5870_v15, %v3060_v5  ;;  %v3384_v12 = vsel %vm8600_vm6, 4294967295, %v9687_v43  ;;  %v3010_v11 = vpop.xlane.xlu0 %3009  ;;  %vm3122_vm11 = vcmp.eq.s32.totalorder %v5872_v18, %v3060_v5  ;;  %v3385_v35 = vsel %vm3120_vm5, 4294967295, %v9690_v20  ;;  %v9691_v43 = vld [vmem:[#allocation80_spill] sm:$0xff] }
 0x5fc   : > { %v3386_v6 = vsel %vm8605_vm7, 4294967295, %v9688_v21  ;;  %v3026_v32 = vpop.xlane.xlu1 %3025  ;;  %vm4990_vm9 = vmpackc.low %vm8605_vm7, %vm8600_vm6  ;;  %v3011_v22 = vcvt.f32.s32 %v3010_v11  ;;  %v3387_v21 = vsel %vm3122_vm11, 4294967295, %v9691_v43  ;;  %vm3840_vm13 = vcmp.gt.s32.totalorder %v3384_v12, %v3385_v35 }
 0x5fd   : > { %v3027_v34 = vcvt.f32.s32 %v3026_v32  ;;  %vm4988_vm12 = vmpackc.low %vm3122_vm11, %vm3120_vm5  ;;  %vm3856_vm14 = vcmp.gt.s32.totalorder %v3386_v6, %v3387_v21  ;;  %v8630_v56 = vsel %vm3840_vm13, %v3384_v12, %v3385_v35  ;;  %3530 = vmax.xlane.f32.xlu0 %v3529_v42  ;;  %v3545_v5 = vsel %vm3544_vm10, %v3540_v48, -inf  ;;  %v9699_v35 = vld [vmem:[#allocation85_spill] sm:$0xff] }
 0x5fe   : > { %v3014_v51 = vadd.s32 %v3013_v44, %v3011_v22  ;;  %4989 = vmatprep.subr.msk.bf16.mxu0 %vm4988_vm12, %v9334_v54  ;;  %v3843_v44 = vshra.s32 %v8630_v56, 16  ;;  %3546 = vmax.xlane.f32.xlu1 %v3545_v5  ;;  %v3554_v11 = vand.u32 65535, %v8150_v27  ;;  %v3602_v32 = vand.u32 65535, %v8216_v4 }
 0x5ff   : > { %v3030_v9 = vadd.s32 %v3029_v33, %v3027_v34  ;;  %4991 = vmatpush1.bf16.xpose.msk.msra.mxu0 %vm4990_vm9, %v9334_v54  ;;  %v8642_v33 = vsel %vm3856_vm14, %v3386_v6, %v3387_v21  ;;  %v9696_v6 = vld [vmem:[#allocation14_spill] sm:$0xff] }
 0x600   : > { %v3061_v52 = vand.u32 65535, %v3014_v51  ;;  %v8644_v12 = vpop.xlane.xlu0 %3558  ;;  %v8647_v19 = vcvt.s32.f32 %v3843_v44  ;;  %v3859_v14 = vshra.s32 %v8642_v33, 16  ;;  %v3570_v51 = vand.u32 65535, %v8152_v7 }
 0x601   : > { %v3062_v47 = vand.u32 65535, %v3030_v9  ;;  %v8660_v9 = vpop.xlane.xlu1 %3574  ;;  %vm3560_vm2 = vcmp.eq.f32.partialorder %v8167_v46, %v8644_v12  ;;  %v3556_v7 = vcvt.s32.f32 %v3554_v11  ;;  %v9698_v46 = vld [vmem:[#allocation83_spill] sm:$0xff] }
 0x602   : > { %vm8651_vm15 = vcmp.eq.s32.totalorder %v5870_v15, %v3061_v52  ;;  %3846 = vmax.xlane.f32.xlu0 %v8647_v19  ;;  %v8672_v34 = vcvt.s32.f32 %v3859_v14  ;;  %vm3124_vm4 = vcmp.eq.s32.totalorder %v5872_v18, %v3061_v52  ;;  %vm3576_vm7 = vcmp.eq.f32.partialorder %v8172_v39, %v8660_v9 }
 0x603   : > { %vm8656_vm1 = vcmp.eq.s32.totalorder %v5870_v15, %v3062_v47  ;;  %v3388_v27 = vsel %vm8651_vm15, 4294967295, %v9696_v6  ;;  %vm3126_vm6 = vcmp.eq.s32.totalorder %v5872_v18, %v3062_v47  ;;  %v3389_v20 = vsel %vm3124_vm4, 4294967295, %v9698_v46 }
 0x604   : > { %v3390_v22 = vsel %vm8656_vm1, 4294967295, %v9697_v8  ;;  %vm4994_vm3 = vmpackc.low %vm8656_vm1, %vm8651_vm15  ;;  %3862 = vmax.xlane.f32.xlu1 %v8672_v34  ;;  %v3391_v42 = vsel %vm3126_vm6, 4294967295, %v9699_v35  ;;  %v3561_v43 = vsel %vm3560_vm2, %v3556_v7, -inf  ;;  %vm3872_vm10 = vcmp.gt.s32.totalorder %v3388_v27, %v3389_v20  ;;  %v9702_v35 = vld [vmem:[#allocation89_spill] sm:$0xff] }
 0x605   : > { %vm4992_vm8 = vmpackc.low %vm3126_vm6, %vm3124_vm4  ;;  %vm3888_vm5 = vcmp.gt.s32.totalorder %v3390_v22, %v3391_v42  ;;  %v3572_v5 = vcvt.s32.f32 %v3570_v51  ;;  %v8694_v39 = vsel %vm3872_vm10, %v3388_v27, %v3389_v20  ;;  %v3586_v14 = vand.u32 65535, %v8212_v0  ;;  %v9700_v27 = vld [vmem:[#allocation86_spill] sm:$0xff] }
 0x606   : > { %4993 = vmatprep.subr.msk.bf16.mxu0 %vm4992_vm8, %v9334_v54  ;;  %3562 = vmax.xlane.f32.xlu0 %v3561_v43  ;;  %v8696_v44 = vsel %vm3888_vm5, %v3390_v22, %v3391_v42  ;;  %v3875_v47 = vshra.s32 %v8694_v39, 16  ;;  %v9701_v22 = vld [vmem:[#allocation87_spill] sm:$0xff]  ;;  %v3604_v20 = vcvt.s32.f32 %v3602_v32  ;;  %v3634_v4 = vand.u32 65535, %v9702_v35  ;;  %v9705_v35 = vld [vmem:[#allocation90_spill] sm:$0xff] }
 0x607   : > { %4995 = vmatpush1.bf16.xpose.msk.msra.mxu0 %vm4994_vm3, %v9334_v54  ;;  %v3577_v52 = vsel %vm3576_vm7, %v3572_v5, -inf  ;;  %v3891_v11 = vshra.s32 %v8696_v44, 16  ;;  %v3588_v0 = vcvt.s32.f32 %v3586_v14  ;;  %v3618_v7 = vand.u32 65535, %v9701_v22  ;;  %v9704_v22 = vld [vmem:[#allocation88_spill] sm:$0xff] }
 0x608   : > { %v8685_v21 = vpop.xlane.xlu0 %3590  ;;  %3578 = vmax.xlane.f32.xlu1 %v3577_v52  ;;  %v8701_v51 = vcvt.s32.f32 %v3875_v47  ;;  %v3650_v43 = vand.u32 65535, %v8284_v10  ;;  %v9703_v5 = vmov 0   ;;  %v3666_v47 = vand.u32 65535, %v8292_v45 }
 0x609   : > { %v8705_v48 = vcvt.s32.f32 %v3891_v11  ;;  %vm3592_vm9 = vcmp.eq.f32.partialorder %v9700_v27, %v8685_v21  ;;  %v3620_v11 = vcvt.s32.f32 %v3618_v7  ;;  %v3636_v10 = vcvt.s32.f32 %v3634_v4 }
 0x60a   : > { %3878 = vmax.xlane.f32.xlu0 %v8701_v51  ;;  %v3593_v42 = vsel %vm3592_vm9, %v3588_v0, -inf  ;;  %v3652_v27 = vcvt.s32.f32 %v3650_v43  ;;  %v3668_v0 = vcvt.s32.f32 %v3666_v47  ;;  %v3421_v47 = vcvt.f32.s32 %v8392_v53 }
 0x60c   : > { %v8703_v6 = vpop.xlane.xlu1 %3606  ;;  %v8711_v8 = vpop.xlane.xlu0 %3622  ;;  %3894 = vmax.xlane.f32.xlu1 %v8705_v48 }
 0x60d   : > { %vm3608_vm11 = vcmp.eq.f32.partialorder %v8261_v62, %v8703_v6  ;;  %vm3624_vm12 = vcmp.eq.f32.partialorder %v8268_v61, %v8711_v8  ;;  %v3682_v61 = vand.u32 65535, %v8336_v50 }
 0x60e   : > { %3320 = vmatmul.mubr.bf16.vlgmr.msra.gmra.mrb[8].mxu0 %v8575_v55  ;;  %3594 = vmax.xlane.f32.xlu0 %v3593_v42  ;;  %v3609_v62 = vsel %vm3608_vm11, %v3604_v20, -inf  ;;  %v3625_v32 = vsel %vm3624_vm12, %v3620_v11, -inf }
 0x60f   : > { %4247 = vmatprep.mubr.bf16.mxu0 %v9703_v5  ;;  %v3684_v42 = vcvt.s32.f32 %v3682_v61 }
 0x610   : > { %v8717_v46 = vpop.xlane.xlu1 %3638  ;;  %3610 = vmax.xlane.f32.xlu1 %v3609_v62  ;;  %v3405_v62 = vcvt.f32.s32 %v8381_v25 }
 0x611   : > { %vm3640_vm13 = vcmp.eq.f32.partialorder %v8271_v1, %v8717_v46  ;;  %v3698_v1 = vand.u32 65535, %v9704_v22 }
 0x612   : > { %v8725_v52 = vpop.xlane.xlu0 %3654  ;;  %3626 = vmax.xlane.f32.xlu0 %v3625_v32  ;;  %v3641_v45 = vsel %vm3640_vm13, %v3636_v10, -inf  ;;  %v3714_v10 = vand.u32 65535, %v8384_v38  ;;  %v3406_v32 = vshll.u32 %v3405_v62, 16 }
 0x613   : > { %vm3656_vm14 = vcmp.eq.f32.partialorder %v8309_v63, %v8725_v52  ;;  %v3700_v50 = vcvt.s32.f32 %v3698_v1 }
 0x614   : > { %v8732_v14 = vpop.xlane.xlu1 %3670  ;;  %3642 = vmax.xlane.f32.xlu1 %v3641_v45  ;;  %v3657_v7 = vsel %vm3656_vm14, %v3652_v27, -inf  ;;  %v3730_v45 = vand.u32 65535, %v8406_v24 }
 0x615   : > { %vm3672_vm15 = vcmp.eq.f32.partialorder %v8322_v29, %v8732_v14  ;;  %v9706_v29 = vld [vmem:[#allocation33_spill] sm:$0xff] }
 0x616   : > { %v3673_v63 = vsel %vm3672_vm15, %v3668_v0, -inf  ;;  %3658 = vmax.xlane.f32.xlu0 %v3657_v7  ;;  %v3422_v0 = vshll.u32 %v3421_v47, 16  ;;  %v3732_v38 = vcvt.s32.f32 %v3730_v45 }
 0x617   : > { %v8738_v20 = vpop.xlane.xlu0 %3686 }
 0x618   : > { %vm3688_vm1 = vcmp.eq.f32.partialorder %v9705_v35, %v8738_v20  ;;  %3674 = vmax.xlane.f32.xlu1 %v3673_v63  ;;  %v3716_v35 = vcvt.s32.f32 %v3714_v10 }
 0x619   : > { %v3689_v43 = vsel %vm3688_vm1, %v3684_v42, -inf  ;;  %v3437_v42 = vcvt.f32.s32 %v8417_v58 }
 0x61a   : > { %v8742_v4 = vpop.xlane.xlu1 %3702  ;;  %3690 = vmax.xlane.f32.xlu0 %v3689_v43  ;;  %v3453_v43 = vcvt.f32.s32 %v8429_v3 }
 0x61b   : > { %vm3704_vm2 = vcmp.eq.f32.partialorder %v9706_v29, %v8742_v4 }
 0x61c   : > { %v3705_v5 = vsel %vm3704_vm2, %v3700_v50, -inf  ;;  %v3454_v3 = vshll.u32 %v3453_v43, 16 }
 0x61d   : > { %3706 = vmax.xlane.f32.xlu1 %v3705_v5 }
 0x660   : > { %v3403_v11 = vpop.xlane.xlu0 %3402 }
 0x661   : > { %v3404_v27 = vcvt.f32.s32 %v3403_v11 }
 0x662   : > { %v3419_v61 = vpop.xlane.xlu1 %3418 }
 0x663   : > { %v3420_v22 = vcvt.f32.s32 %v3419_v61  ;;  %v3407_v1 = vadd.s32 %v3406_v32, %v3404_v27  ;;  %v3746_v32 = vand.u32 65535, %v8461_v17  ;;  %v3762_v27 = vand.u32 65535, %v8465_v31 }
 0x664   : > { %v8750_v63 = vpop.xlane.xlu0 %3718 }
 0x665   : > { %v3423_v7 = vadd.s32 %v3422_v0, %v3420_v22  ;;  %v3904_v25 = vand.u32 65535, %v3407_v1  ;;  %vm3720_vm3 = vcmp.eq.f32.partialorder %v8411_v41, %v8750_v63  ;;  %v3438_v41 = vshll.u32 %v3437_v42, 16 }
 0x666   : > { %v8755_v53 = vpop.xlane.xlu1 %3734  ;;  %v3721_v50 = vsel %vm3720_vm3, %v3716_v35, -inf  ;;  %v3748_v22 = vcvt.s32.f32 %v3746_v32  ;;  %v3469_v1 = vcvt.f32.s32 %v8497_v23  ;;  %v3764_v31 = vcvt.s32.f32 %v3762_v27 }
 0x667   : > { %v3905_v29 = vand.u32 65535, %v3423_v7  ;;  %vm3736_vm4 = vcmp.eq.f32.partialorder %v8413_v30, %v8755_v53  ;;  %3722 = vmax.xlane.f32.xlu0 %v3721_v50  ;;  %vm3937_vm7 = vcmp.eq.s32.totalorder %v5872_v18, %v3904_v25  ;;  %vm3936_vm10 = vcmp.eq.s32.totalorder %v5870_v15, %v3904_v25 }
 0x668   : > { %v3737_v24 = vsel %vm3736_vm4, %v3732_v38, -inf  ;;  %v3485_v23 = vcvt.f32.s32 %v8510_v49  ;;  %v3778_v42 = vand.u32 65535, %v8517_v36  ;;  %v3470_v25 = vshll.u32 %v3469_v1, 16 }
 0x669   : > { %vm3938_vm6 = vcmp.eq.s32.totalorder %v5870_v15, %v3905_v29  ;;  %v3435_v5 = vpop.xlane.xlu0 %3434  ;;  %3738 = vmax.xlane.f32.xlu1 %v3737_v24  ;;  %vm3939_vm8 = vcmp.eq.s32.totalorder %v5872_v18, %v3905_v29  ;;  %v3826_v1 = vand.u32 65535, %v8586_v60  ;;  %v9711_v60 = vld [vmem:[#allocation35_spill] sm:$0xff] }
 0x66a   : > { %v3436_v58 = vcvt.f32.s32 %v3435_v5  ;;  %vm5060_vm5 = vmpackc.low %vm3939_vm8, %vm3937_vm7  ;;  %v3486_v50 = vshll.u32 %v3485_v23, 16 }
 0x66b   : > { %5061 = vmatprep.subr.msk.bf16.mxu1 %vm5060_vm5, %v9334_v54  ;;  %vm5062_vm9 = vmpackc.low %vm3938_vm6, %vm3936_vm10  ;;  %v3451_v62 = vpop.xlane.xlu1 %3450 }
 0x66c   : > { %v3439_v30 = vadd.s32 %v3438_v41, %v3436_v58  ;;  %5063 = vmatpush1.bf16.xpose.msk.msra.mxu1 %vm5062_vm9, %v9334_v54  ;;  %v3452_v47 = vcvt.f32.s32 %v3451_v62  ;;  %v3780_v41 = vcvt.s32.f32 %v3778_v42  ;;  %v3533_v42 = vcvt.f32.s32 %v9711_v60 }
 0x66e   : > { %v3906_v11 = vand.u32 65535, %v3439_v30  ;;  %v3455_v10 = vadd.s32 %v3454_v3, %v3452_v47  ;;  %v3501_v3 = vcvt.f32.s32 %v8536_v40 }
 0x670   : > { %v3907_v61 = vand.u32 65535, %v3455_v10  ;;  %vm3941_vm12 = vcmp.eq.s32.totalorder %v5872_v18, %v3906_v11  ;;  %vm3940_vm14 = vcmp.eq.s32.totalorder %v5870_v15, %v3906_v11  ;;  %v3502_v40 = vshll.u32 %v3501_v3, 16 }
 0x671   : > { %v8773_v0 = vpop.xlane.xlu0 %3750  ;;  %v3858_v3 = vand.u32 65535, %v8642_v33 }
 0x672   : > { %vm8769_vm11 = vcmp.eq.s32.totalorder %v5870_v15, %v3907_v61  ;;  %vm3943_vm13 = vcmp.eq.s32.totalorder %v5872_v18, %v3907_v61  ;;  %vm3752_vm15 = vcmp.eq.f32.partialorder %v8469_v57, %v8773_v0 }
 0x673   : > { %v8781_v17 = vpop.xlane.xlu1 %3766  ;;  %vm5064_vm1 = vmpackc.low %vm3943_vm13, %vm3941_vm12  ;;  %v3753_v7 = vsel %vm3752_vm15, %v3748_v22, -inf  ;;  %v3810_v22 = vand.u32 65535, %v8581_v59  ;;  %v3828_v59 = vcvt.s32.f32 %v3826_v1 }
 0x674   : > { %vm3768_vm2 = vcmp.eq.f32.partialorder %v8477_v13, %v8781_v17  ;;  %5065 = vmatprep.subr.msk.bf16.mxu1 %vm5064_vm1, %v9334_v54  ;;  %vm5066_vm3 = vmpackc.low %vm8769_vm11, %vm3940_vm14  ;;  %3754 = vmax.xlane.f32.xlu0 %v3753_v7  ;;  %v3794_v13 = vand.u32 65535, %v8523_v26  ;;  %v3517_v26 = vcvt.f32.s32 %v8538_v2 }
 0x675   : > { %5067 = vmatpush1.bf16.xpose.msk.msra.mxu1 %vm5066_vm3, %v9334_v54  ;;  %v3769_v35 = vsel %vm3768_vm2, %v3764_v31, -inf  ;;  %v3467_v57 = vpop.xlane.xlu0 %3466 }
 0x676   : > { %3770 = vmax.xlane.f32.xlu1 %v3769_v35  ;;  %v3468_v38 = vcvt.f32.s32 %v3467_v57  ;;  %v3796_v36 = vcvt.s32.f32 %v3794_v13  ;;  %v3812_v35 = vcvt.s32.f32 %v3810_v22 }
 0x677   : > { %v3483_v29 = vpop.xlane.xlu1 %3482 }
 0x678   : > { %v3471_v24 = vadd.s32 %v3470_v25, %v3468_v38  ;;  %v3484_v43 = vcvt.f32.s32 %v3483_v29  ;;  %v9712_v25 = vld [vmem:[#allocation40_spill] sm:$0xff]  ;;  %v9713_v38 = vld [vmem:[#allocation39_spill] sm:$0xff]  ;;  %v3549_v29 = vcvt.f32.s32 %v8590_v37 }
 0x679   : > { %v8792_v5 = vpop.xlane.xlu0 %3782 }
 0x67a   : > { %v3908_v49 = vand.u32 65535, %v3471_v24  ;;  %v3487_v58 = vadd.s32 %v3486_v50, %v3484_v43  ;;  %vm3784_vm4 = vcmp.eq.f32.partialorder %v8525_v28, %v8792_v5  ;;  %v3842_v43 = vand.u32 65535, %v8630_v56 }
 0x67b   : > { %v3785_v30 = vsel %vm3784_vm4, %v3780_v41, -inf  ;;  %v8796_v62 = vpop.xlane.xlu1 %3798  ;;  %v3534_v41 = vshll.u32 %v3533_v42, 16 }
 0x67c   : > { %v3909_v47 = vand.u32 65535, %v3487_v58  ;;  %3786 = vmax.xlane.f32.xlu0 %v3785_v30  ;;  %vm3800_vm6 = vcmp.eq.f32.partialorder %v8532_v16, %v8796_v62  ;;  %vm3945_vm8 = vcmp.eq.s32.totalorder %v5872_v18, %v3908_v49  ;;  %vm3944_vm5 = vcmp.eq.s32.totalorder %v5870_v15, %v3908_v49 }
 0x67d   : > { %v3801_v11 = vsel %vm3800_vm6, %v3796_v36, -inf  ;;  %v3518_v16 = vshll.u32 %v3517_v26, 16  ;;  %v3550_v30 = vshll.u32 %v3549_v29, 16  ;;  %v3844_v37 = vcvt.s32.f32 %v3842_v43 }
 0x67e   : > { %vm3946_vm7 = vcmp.eq.s32.totalorder %v5870_v15, %v3909_v47  ;;  %3802 = vmax.xlane.f32.xlu1 %v3801_v11  ;;  %vm3947_vm10 = vcmp.eq.s32.totalorder %v5872_v18, %v3909_v47 }
 0x67f   : > { %v3499_v28 = vpop.xlane.xlu0 %3498  ;;  %vm5068_vm9 = vmpackc.low %vm3947_vm10, %vm3945_vm8  ;;  %v3515_v32 = vpop.xlane.xlu1 %3514 }
 0x680   : > { %v3500_v10 = vcvt.f32.s32 %v3499_v28  ;;  %5069 = vmatprep.subr.msk.bf16.mxu1 %vm5068_vm9, %v9334_v54  ;;  %vm5070_vm11 = vmpackc.low %vm3946_vm7, %vm3944_vm5  ;;  %v3516_v2 = vcvt.f32.s32 %v3515_v32  ;;  %v3565_v28 = vcvt.f32.s32 %v8644_v12 }
 0x681   : > { %5071 = vmatpush1.bf16.xpose.msk.msra.mxu1 %vm5070_vm11, %v9334_v54 }
 0x682   : > { %v3503_v27 = vadd.s32 %v3502_v40, %v3500_v10  ;;  %v3519_v61 = vadd.s32 %v3518_v16, %v3516_v2  ;;  %v3860_v16 = vcvt.s32.f32 %v3858_v3  ;;  %v3581_v2 = vcvt.f32.s32 %v8660_v9 }
 0x683   : > { %v3874_v9 = vand.u32 65535, %v8694_v39  ;;  %v3597_v39 = vcvt.f32.s32 %v8685_v21  ;;  %v3661_v3 = vcvt.f32.s32 %v8725_v52 }
 0x684   : > { %v3910_v45 = vand.u32 65535, %v3503_v27  ;;  %v3911_v31 = vand.u32 65535, %v3519_v61  ;;  %v3582_v22 = vshll.u32 %v3581_v2, 16 }
 0x685   : > { %v3876_v60 = vcvt.s32.f32 %v3874_v9  ;;  %v3662_v52 = vshll.u32 %v3661_v3, 16  ;;  %v3741_v3 = vcvt.f32.s32 %v8755_v53  ;;  %v3773_v53 = vcvt.f32.s32 %v8781_v17 }
 0x686   : > { %vm8811_vm12 = vcmp.eq.s32.totalorder %v5870_v15, %v3911_v31  ;;  %vm3949_vm13 = vcmp.eq.s32.totalorder %v5872_v18, %v3910_v45  ;;  %vm3951_vm14 = vcmp.eq.s32.totalorder %v5872_v18, %v3911_v31  ;;  %vm3948_vm15 = vcmp.eq.s32.totalorder %v5870_v15, %v3910_v45  ;;  %v8818_v23 = vpop.xlane.xlu0 %3814 }
 0x687   : > { %v8820_v57 = vpop.xlane.xlu1 %3830  ;;  %vm5072_vm1 = vmpackc.low %vm3951_vm14, %vm3949_vm13  ;;  %vm3816_vm2 = vcmp.eq.f32.partialorder %v9712_v25, %v8818_v23  ;;  %v3890_v45 = vand.u32 65535, %v8696_v44  ;;  %v3613_v44 = vcvt.f32.s32 %v8703_v6  ;;  %v3629_v6 = vcvt.f32.s32 %v8711_v8 }
 0x688   : > { %vm3832_vm3 = vcmp.eq.f32.partialorder %v9713_v38, %v8820_v57  ;;  %5073 = vmatprep.subr.msk.bf16.mxu1 %vm5072_vm1, %v9334_v54  ;;  %vm5074_vm4 = vmpackc.low %vm8811_vm12, %vm3948_vm15  ;;  %v3817_v13 = vsel %vm3816_vm2, %v3812_v35, -inf }
 0x689   : > { %5075 = vmatpush1.bf16.xpose.msk.msra.mxu1 %vm5074_vm4, %v9334_v54  ;;  %v3833_v50 = vsel %vm3832_vm3, %v3828_v59, -inf  ;;  %3818 = vmax.xlane.f32.xlu0 %v3817_v13  ;;  %v3892_v25 = vcvt.s32.f32 %v3890_v45  ;;  %v3614_v43 = vshll.u32 %v3613_v44, 16  ;;  %v3630_v8 = vshll.u32 %v3629_v6, 16 }
 0x68a   : > { %3834 = vmax.xlane.f32.xlu1 %v3833_v50  ;;  %v3531_v24 = vpop.xlane.xlu0 %3530  ;;  %v3693_v45 = vcvt.f32.s32 %v8738_v20 }
 0x68b   : > { %v3532_v49 = vcvt.f32.s32 %v3531_v24  ;;  %v3547_v58 = vpop.xlane.xlu1 %3546 }
 0x68c   : > { %v3548_v36 = vcvt.f32.s32 %v3547_v58 }
 0x68d   : > { %v3535_v47 = vadd.s32 %v3534_v41, %v3532_v49  ;;  %v3645_v41 = vcvt.f32.s32 %v8717_v46  ;;  %v3677_v46 = vcvt.f32.s32 %v8732_v14 }
 0x68e   : > { %v3551_v26 = vadd.s32 %v3550_v30, %v3548_v36 }
 0x68f   : > { %v8834_v11 = vpop.xlane.xlu0 %3846  ;;  %v3912_v40 = vand.u32 65535, %v3535_v47 }
 0x690   : > { %vm3848_vm6 = vcmp.eq.f32.partialorder %v8647_v19, %v8834_v11  ;;  %v3913_v10 = vand.u32 65535, %v3551_v26  ;;  %v3566_v19 = vshll.u32 %v3565_v28, 16  ;;  %v3646_v28 = vshll.u32 %v3645_v41, 16 }
 0x691   : > { %v3849_v56 = vsel %vm3848_vm6, %v3844_v37, -inf  ;;  %v8839_v32 = vpop.xlane.xlu1 %3862  ;;  %vm3953_vm10 = vcmp.eq.s32.totalorder %v5872_v18, %v3912_v40  ;;  %vm3952_vm9 = vcmp.eq.s32.totalorder %v5870_v15, %v3912_v40 }
 0x692   : > { %3850 = vmax.xlane.f32.xlu0 %v3849_v56  ;;  %vm3864_vm7 = vcmp.eq.f32.partialorder %v8672_v34, %v8839_v32  ;;  %vm8845_vm8 = vcmp.eq.s32.totalorder %v5870_v15, %v3913_v10  ;;  %vm3955_vm5 = vcmp.eq.s32.totalorder %v5872_v18, %v3913_v10 }
 0x693   : > { %v3563_v12 = vpop.xlane.xlu0 %3562  ;;  %v3865_v27 = vsel %vm3864_vm7, %v3860_v16, -inf  ;;  %vm5076_vm11 = vmpackc.low %vm3955_vm5, %vm3953_vm10 }
 0x694   : > { %v3564_v61 = vcvt.f32.s32 %v3563_v12  ;;  %3866 = vmax.xlane.f32.xlu1 %v3865_v27  ;;  %5077 = vmatprep.subr.msk.bf16.mxu1 %vm5076_vm11, %v9334_v54  ;;  %vm5078_vm12 = vmpackc.low %vm8845_vm8, %vm3952_vm9 }
 0x695   : > { %v3579_v34 = vpop.xlane.xlu1 %3578  ;;  %5079 = vmatpush1.bf16.xpose.msk.msra.mxu1 %vm5078_vm12, %v9334_v54 }
 0x696   : > { %v3567_v1 = vadd.s32 %v3566_v19, %v3564_v61  ;;  %v3580_v31 = vcvt.f32.s32 %v3579_v34  ;;  %v3678_v19 = vshll.u32 %v3677_v46, 16  ;;  %v3709_v61 = vcvt.f32.s32 %v8742_v4 }
 0x697   : > { %v8858_v59 = vpop.xlane.xlu0 %3878  ;;  %v3742_v46 = vshll.u32 %v3741_v3, 16 }
 0x698   : > { %v3914_v7 = vand.u32 65535, %v3567_v1  ;;  %v3583_v35 = vadd.s32 %v3582_v22, %v3580_v31  ;;  %vm3880_vm13 = vcmp.eq.f32.partialorder %v8701_v51, %v8858_v59  ;;  %v3598_v51 = vshll.u32 %v3597_v39, 16 }
 0x699   : > { %v8863_v42 = vpop.xlane.xlu1 %3894  ;;  %v3881_v29 = vsel %vm3880_vm13, %v3876_v60, -inf  ;;  %v3710_v60 = vshll.u32 %v3709_v61, 16  ;;  %v3805_v1 = vcvt.f32.s32 %v8796_v62  ;;  %v3885_v3 = vcvt.f32.s32 %v8858_v59 }
 0x69a   : > { %v3915_v38 = vand.u32 65535, %v3583_v35  ;;  %vm3896_vm14 = vcmp.eq.f32.partialorder %v8705_v48, %v8863_v42  ;;  %3882 = vmax.xlane.f32.xlu0 %v3881_v29  ;;  %vm3957_vm1 = vcmp.eq.s32.totalorder %v5872_v18, %v3914_v7  ;;  %vm3956_vm3 = vcmp.eq.s32.totalorder %v5870_v15, %v3914_v7 }
 0x69b   : > { %v3897_v13 = vsel %vm3896_vm14, %v3892_v25, -inf  ;;  %v3595_v21 = vpop.xlane.xlu0 %3594 }
 0x69c   : > { %vm8869_vm15 = vcmp.eq.s32.totalorder %v5870_v15, %v3915_v38  ;;  %3898 = vmax.xlane.f32.xlu1 %v3897_v13  ;;  %vm3959_vm2 = vcmp.eq.s32.totalorder %v5872_v18, %v3915_v38  ;;  %v3596_v24 = vcvt.f32.s32 %v3595_v21  ;;  %v3694_v38 = vshll.u32 %v3693_v45, 16 }
 0x69d   : > { %v3611_v48 = vpop.xlane.xlu1 %3610  ;;  %vm5080_vm4 = vmpackc.low %vm3959_vm2, %vm3957_vm1 }
 0x69e   : > { %v3612_v49 = vcvt.f32.s32 %v3611_v48  ;;  %5081 = vmatprep.subr.msk.bf16.mxu1 %vm5080_vm4, %v9334_v54  ;;  %vm5082_vm6 = vmpackc.low %vm8869_vm15, %vm3956_vm3  ;;  %v3599_v58 = vadd.s32 %v3598_v51, %v3596_v24 }
 0x69f   : > { %5083 = vmatpush1.bf16.xpose.msk.msra.mxu1 %vm5082_vm6, %v9334_v54  ;;  %v3627_v36 = vpop.xlane.xlu0 %3626 }
 0x6a0   : > { %v3615_v30 = vadd.s32 %v3614_v43, %v3612_v49  ;;  %v3916_v47 = vand.u32 65535, %v3599_v58  ;;  %v3628_v26 = vcvt.f32.s32 %v3627_v36 }
 0x6a1   : > { %v3643_v37 = vpop.xlane.xlu1 %3642 }
 0x6a2   : > { %v3917_v40 = vand.u32 65535, %v3615_v30  ;;  %v3644_v10 = vcvt.f32.s32 %v3643_v37  ;;  %v3631_v56 = vadd.s32 %v3630_v8, %v3628_v26  ;;  %vm3961_vm8 = vcmp.eq.s32.totalorder %v5872_v18, %v3916_v47 }
 0x6a3   : > { %v3659_v33 = vpop.xlane.xlu0 %3658  ;;  %vm3960_vm5 = vcmp.eq.s32.totalorder %v5870_v15, %v3916_v47  ;;  %v3725_v8 = vcvt.f32.s32 %v8750_v63  ;;  %v3757_v63 = vcvt.f32.s32 %v8773_v0 }
 0x6a4   : > { %vm8885_vm7 = vcmp.eq.s32.totalorder %v5870_v15, %v3917_v40  ;;  %v3647_v2 = vadd.s32 %v3646_v28, %v3644_v10  ;;  %vm3963_vm10 = vcmp.eq.s32.totalorder %v5872_v18, %v3917_v40  ;;  %v3918_v12 = vand.u32 65535, %v3631_v56 }
 0x6a5   : > { %v3660_v27 = vcvt.f32.s32 %v3659_v33  ;;  %v3675_v14 = vpop.xlane.xlu1 %3674  ;;  %vm5084_vm9 = vmpackc.low %vm3963_vm10, %vm3961_vm8  ;;  %v3726_v26 = vshll.u32 %v3725_v8, 16 }
 0x6a6   : > { %v3919_v9 = vand.u32 65535, %v3647_v2  ;;  %v3676_v34 = vcvt.f32.s32 %v3675_v14  ;;  %5085 = vmatprep.subr.msk.bf16.mxu1 %vm5084_vm9, %v9334_v54  ;;  %vm5086_vm11 = vmpackc.low %vm8885_vm7, %vm3960_vm5  ;;  %vm3965_vm13 = vcmp.eq.s32.totalorder %v5872_v18, %v3918_v12  ;;  %vm8906_vm15 = vcmp.eq.s32.totalorder %v5870_v15, %v3918_v12 }
 0x6a7   : > { %v3663_v22 = vadd.s32 %v3662_v52, %v3660_v27  ;;  %5087 = vmatpush1.bf16.xpose.msk.msra.mxu1 %vm5086_vm11, %v9334_v54  ;;  %v3691_v7 = vpop.xlane.xlu0 %3690  ;;  %v3758_v52 = vshll.u32 %v3757_v63, 16  ;;  %v3774_v14 = vshll.u32 %v3773_v53, 16  ;;  %v4263_v63 = vld [vmem:[%s9037_s3] sm:$0xff] }
 0x6a8   : > { %vm8899_vm12 = vcmp.eq.s32.totalorder %v5870_v15, %v3919_v9  ;;  %v3679_v31 = vadd.s32 %v3678_v19, %v3676_v34  ;;  %vm3967_vm14 = vcmp.eq.s32.totalorder %v5872_v18, %v3919_v9  ;;  %v3692_v25 = vcvt.f32.s32 %v3691_v7 }
 0x6a9   : > { %v3920_v20 = vand.u32 65535, %v3663_v22  ;;  %vm5088_vm1 = vmpackc.low %vm3967_vm14, %vm3965_vm13  ;;  %v3789_v34 = vcvt.f32.s32 %v8792_v5  ;;  %v3806_v5 = vshll.u32 %v3805_v1, 16  ;;  %v5399_v1 = vld [vmem:[#allocation9 + $0x44] ss:$8 sps:$4 sm:$0xff]  }
 0x6aa   : > { %v3707_v35 = vpop.xlane.xlu1 %3706  ;;  %v3921_v39 = vand.u32 65535, %v3679_v31  ;;  %5089 = vmatprep.subr.msk.bf16.mxu1 %vm5088_vm1, %v9334_v54  ;;  %vm5090_vm2 = vmpackc.low %vm8899_vm12, %vm8906_vm15  ;;  %v3695_v13 = vadd.s32 %v3694_v38, %v3692_v25  ;;  %v3837_v25 = vcvt.f32.s32 %v8820_v57 }
 0x6ab   : > { %v3708_v44 = vcvt.f32.s32 %v3707_v35  ;;  %vm3969_vm4 = vcmp.eq.s32.totalorder %v5872_v18, %v3920_v20  ;;  %vm3968_vm7 = vcmp.eq.s32.totalorder %v5870_v15, %v3920_v20  ;;  %v3790_v17 = vshll.u32 %v3789_v34, 16  ;;  %v5391_v34 = vld [vmem:[#allocation9 + $0x20] ss:$8 sps:$4 sm:$0xff]  }
 0x6ac   : > { %vm3970_vm3 = vcmp.eq.s32.totalorder %v5870_v15, %v3921_v39  ;;  %vm3971_vm6 = vcmp.eq.s32.totalorder %v5872_v18, %v3921_v39  ;;  %v3922_v21 = vand.u32 65535, %v3695_v13  ;;  %v3821_v39 = vcvt.f32.s32 %v8818_v23 }
 0x6ad   : > { %v3711_v29 = vadd.s32 %v3710_v60, %v3708_v44  ;;  %vm5092_vm8 = vmpackc.low %vm3971_vm6, %vm3969_vm4  ;;  %v3838_v13 = vshll.u32 %v3837_v25, 16  ;;  %v5417_v25 = vld [vmem:[#allocation9 + $0xa4] ss:$8 sps:$4 sm:$0xff]  }
 0x6ae   : > { %vm5094_vm10 = vmpackc.low %vm3970_vm3, %vm3968_vm7  ;;  %vm3973_vm9 = vcmp.eq.s32.totalorder %v5872_v18, %v3922_v21  ;;  %vm3972_vm13 = vcmp.eq.s32.totalorder %v5870_v15, %v3922_v21 }
 0x6af   : > { %5091 = vmatpush1.bf16.xpose.msk.msra.mxu1 %vm5090_vm2, %v9334_v54  ;;  %v3923_v50 = vand.u32 65535, %v3711_v29  ;;  %v3822_v29 = vshll.u32 %v3821_v39, 16  ;;  %v5412_v39 = vld [vmem:[#allocation9 + $0x90] ss:$8 sps:$4 sm:$0xff]  }
 0x6b0   : > { %5093 = vmatprep.subr.msk.bf16.mxu1 %vm5092_vm8, %v9334_v54  ;;  %4266 = vperm.xlu0 %5238, %v4263_v63  }
 0x6b1   : > { %vm3975_vm5 = vcmp.eq.s32.totalorder %v5872_v18, %v3923_v50  ;;  %vm3974_vm12 = vcmp.eq.s32.totalorder %v5870_v15, %v3923_v50 }
 0x6b2   : > { %vm5096_vm11 = vmpackc.low %vm3975_vm5, %vm3973_vm9 }
 0x6b3   : > { %vm5098_vm14 = vmpackc.low %vm3974_vm12, %vm3972_vm13 }
 0x6b7   : > { %5095 = vmatpush1.bf16.xpose.msk.msra.mxu1 %vm5094_vm10, %v9334_v54 }
 0x6b8   : > { %5097 = vmatprep.subr.msk.bf16.mxu1 %vm5096_vm11, %v9334_v54 }
 0x6bf   : > { %5099 = vmatpush1.bf16.xpose.msk.msra.mxu1 %vm5098_vm14, %v9334_v54 }
 0x6ca   : > { %v2448_v51 = vpop.f32.mrb[68].mxu1 }
 0x6cb   : > { %v2450_v6 = vpop.f32.mrb[69].mxu1 }
 0x6cc   : > { %v2452_v24 = vpop.f32.mrb[70].mxu1 }
 0x6cd   : > { %v2453_v48 = vpop.f32.mrb[71].mxu1  ;;  %v3853_v24 = vcvt.f32.s32 %v8834_v11 }
 0x6cf   : > { %v3854_v57 = vshll.u32 %v3853_v24, 16  ;;  %v5427_v24 = vld [vmem:[#allocation9 + $0xe0] ss:$8 sps:$4 sm:$0xff]  }
 0x6e1   : > { %v3321_v43 = vpop.f32.mrb[8].mxu0 }
 0x6e2   : > { %v4201_v41 = vpack.c.bf16 %v3321_v43, %v2448_v51  ;;  %v3323_v49 = vpop.f32.mrb[9].mxu0 }
 0x6e3   : > { %v4202_v58 = vpack.c.bf16 %v3323_v49, %v2450_v6  ;;  %v3325_v30 = vpop.f32.mrb[10].mxu0 }
 0x6e4   : > { %v3326_v36 = vpop.f32.mrb[11].mxu0 }
 0x6e5   : > { %4215 = vmatprep.subr.bf16.mxu0 %v4202_v58 }
 0x6e6   : > { %4216 = vmatpush1.bf16.msra.mxu0 %v4201_v41  ;;  %v3869_v41 = vcvt.f32.s32 %v8839_v32 }
 0x6e8   : > { %v3870_v58 = vshll.u32 %v3869_v41, 16 }
 0x6f4   : > { %v3723_v47 = vpop.xlane.xlu0 %3722 }
 0x6f5   : > { %v3724_v37 = vcvt.f32.s32 %v3723_v47  ;;  %v3901_v47 = vcvt.f32.s32 %v8863_v42 }
 0x6f6   : > { %v3739_v28 = vpop.xlane.xlu1 %3738 }
 0x6f7   : > { %v3740_v40 = vcvt.f32.s32 %v3739_v28  ;;  %v3727_v10 = vadd.s32 %v3726_v26, %v3724_v37  ;;  %v3886_v28 = vshll.u32 %v3885_v3, 16 }
 0x6f9   : > { %v3743_v56 = vadd.s32 %v3742_v46, %v3740_v40  ;;  %v3924_v16 = vand.u32 65535, %v3727_v10  ;;  %v3902_v10 = vshll.u32 %v3901_v47, 16 }
 0x6fb   : > { %v3925_v2 = vand.u32 65535, %v3743_v56  ;;  %vm3977_vm1 = vcmp.eq.s32.totalorder %v5872_v18, %v3924_v16  ;;  %vm3976_vm3 = vcmp.eq.s32.totalorder %v5870_v15, %v3924_v16 }
 0x6fd   : > { %vm3978_vm15 = vcmp.eq.s32.totalorder %v5870_v15, %v3925_v2  ;;  %vm3979_vm2 = vcmp.eq.s32.totalorder %v5872_v18, %v3925_v2 }
 0x6fe   : > { %vm5100_vm4 = vmpackc.low %vm3979_vm2, %vm3977_vm1 }
 0x6ff   : > { %5101 = vmatprep.subr.msk.bf16.mxu1 %vm5100_vm4, %v9334_v54  ;;  %vm5102_vm6 = vmpackc.low %vm3978_vm15, %vm3976_vm3 }
 0x700   : > { %5103 = vmatpush1.bf16.xpose.msk.msra.mxu1 %vm5102_vm6, %v9334_v54 }
 0x701   : > { %v3755_v33 = vpop.xlane.xlu0 %3754 }
 0x702   : > { %v3756_v12 = vcvt.f32.s32 %v3755_v33 }
 0x703   : > { %v3771_v27 = vpop.xlane.xlu1 %3770 }
 0x704   : > { %v3772_v19 = vcvt.f32.s32 %v3771_v27  ;;  %v3759_v61 = vadd.s32 %v3758_v52, %v3756_v12  ;;  %v5387_v27 = vld [vmem:[#allocation9 + $0x4] ss:$8 sps:$4 sm:$0xff]  }
 0x706   : > { %v3775_v9 = vadd.s32 %v3774_v14, %v3772_v19  ;;  %v3926_v45 = vand.u32 65535, %v3759_v61  ;;  %v5390_v19 = vld [vmem:[#allocation9 + $0x14] ss:$8 sps:$4 sm:$0xff]   ;;  %v5388_v61 = vld [vmem:[#allocation9 + $0x10] ss:$8 sps:$4 sm:$0xff]  }
 0x708   : > { %v3927_v22 = vand.u32 65535, %v3775_v9  ;;  %vm3981_vm8 = vcmp.eq.s32.totalorder %v5872_v18, %v3926_v45  ;;  %vm3980_vm5 = vcmp.eq.s32.totalorder %v5870_v15, %v3926_v45  ;;  %v5393_v9 = vld [vmem:[#allocation9 + $0x24] ss:$8 sps:$4 sm:$0xff]   ;;  %v5396_v45 = vld [vmem:[#allocation9 + $0x34] ss:$8 sps:$4 sm:$0xff]  }
 0x709   : > { %v3787_v0 = vpop.xlane.xlu0 %3786 }
 0x70a   : > { %vm3982_vm7 = vcmp.eq.s32.totalorder %v5870_v15, %v3927_v22  ;;  %vm3983_vm10 = vcmp.eq.s32.totalorder %v5872_v18, %v3927_v22  ;;  %v3788_v31 = vcvt.f32.s32 %v3787_v0  ;;  %v5394_v22 = vld [vmem:[#allocation9 + $0x30] ss:$8 sps:$4 sm:$0xff]   ;;  %v5397_v0 = vld [vmem:[#allocation9 + $0x40] ss:$8 sps:$4 sm:$0xff]  }
 0x70b   : > { %vm5104_vm9 = vmpackc.low %vm3983_vm10, %vm3981_vm8  ;;  %v3803_v7 = vpop.xlane.xlu1 %3802 }
 0x70c   : > { %5105 = vmatprep.subr.msk.bf16.mxu1 %vm5104_vm9, %v9334_v54  ;;  %vm5106_vm11 = vmpackc.low %vm3982_vm7, %vm3980_vm5  ;;  %v3791_v4 = vadd.s32 %v3790_v17, %v3788_v31  ;;  %v3804_v20 = vcvt.f32.s32 %v3803_v7  ;;  %v5402_v17 = vld [vmem:[#allocation9 + $0x54] ss:$8 sps:$4 sm:$0xff]   ;;  %v5400_v31 = vld [vmem:[#allocation9 + $0x50] ss:$8 sps:$4 sm:$0xff]  }
 0x70d   : > { %5107 = vmatpush1.bf16.xpose.msk.msra.mxu1 %vm5106_vm11, %v9334_v54  ;;  %v5405_v7 = vld [vmem:[#allocation9 + $0x64] ss:$8 sps:$4 sm:$0xff]  }
 0x70e   : > { %v3928_v62 = vand.u32 65535, %v3791_v4  ;;  %v3807_v35 = vadd.s32 %v3806_v5, %v3804_v20  ;;  %v5403_v5 = vld [vmem:[#allocation9 + $0x60] ss:$8 sps:$4 sm:$0xff]   ;;  %v5408_v4 = vld [vmem:[#allocation9 + $0x74] ss:$8 sps:$4 sm:$0xff]  }
 0x70f   : > { %v5406_v20 = vld [vmem:[#allocation9 + $0x70] ss:$8 sps:$4 sm:$0xff]  }
 0x710   : > { %v3929_v60 = vand.u32 65535, %v3807_v35  ;;  %vm3985_vm13 = vcmp.eq.s32.totalorder %v5872_v18, %v3928_v62  ;;  %vm3984_vm15 = vcmp.eq.s32.totalorder %v5870_v15, %v3928_v62  ;;  %v5411_v62 = vld [vmem:[#allocation9 + $0x84] ss:$8 sps:$4 sm:$0xff]   ;;  %v5409_v35 = vld [vmem:[#allocation9 + $0x80] ss:$8 sps:$4 sm:$0xff]  }
 0x712   : > { %vm3986_vm12 = vcmp.eq.s32.totalorder %v5870_v15, %v3929_v60  ;;  %vm3987_vm14 = vcmp.eq.s32.totalorder %v5872_v18, %v3929_v60  ;;  %v5414_v60 = vld [vmem:[#allocation9 + $0x94] ss:$8 sps:$4 sm:$0xff]  }
 0x713   : > { %vm5108_vm1 = vmpackc.low %vm3987_vm14, %vm3985_vm13 }
 0x714   : > { %5109 = vmatprep.subr.msk.bf16.mxu1 %vm5108_vm1, %v9334_v54  ;;  %vm5110_vm2 = vmpackc.low %vm3986_vm12, %vm3984_vm15 }
 0x715   : > { %5111 = vmatpush1.bf16.xpose.msk.msra.mxu1 %vm5110_vm2, %v9334_v54 }
 0x716   : > { %v3819_v44 = vpop.xlane.xlu0 %3818 }
 0x717   : > { %v3835_v38 = vpop.xlane.xlu1 %3834  ;;  %v3820_v50 = vcvt.f32.s32 %v3819_v44  ;;  %v5415_v44 = vld [vmem:[#allocation9 + $0xa0] ss:$8 sps:$4 sm:$0xff]  }
 0x718   : > { %v3836_v21 = vcvt.f32.s32 %v3835_v38  ;;  %v5420_v38 = vld [vmem:[#allocation9 + $0xb4] ss:$8 sps:$4 sm:$0xff]  }
 0x719   : > { %v3823_v51 = vadd.s32 %v3822_v29, %v3820_v50  ;;  %v5418_v29 = vld [vmem:[#allocation9 + $0xb0] ss:$8 sps:$4 sm:$0xff]   ;;  %v5421_v50 = vld [vmem:[#allocation9 + $0xc0] ss:$8 sps:$4 sm:$0xff]  }
 0x71a   : > { %v3839_v6 = vadd.s32 %v3838_v13, %v3836_v21  ;;  %v5423_v13 = vld [vmem:[#allocation9 + $0xc4] ss:$8 sps:$4 sm:$0xff]   ;;  %v5426_v21 = vld [vmem:[#allocation9 + $0xd4] ss:$8 sps:$4 sm:$0xff]  }
 0x71b   : > { %v3930_v48 = vand.u32 65535, %v3823_v51  ;;  %v5424_v51 = vld [vmem:[#allocation9 + $0xd0] ss:$8 sps:$4 sm:$0xff]  }
 0x71c   : > { %v3931_v43 = vand.u32 65535, %v3839_v6  ;;  %v5429_v6 = vld [vmem:[#allocation9 + $0xe4] ss:$8 sps:$4 sm:$0xff]  }
 0x71d   : > { %vm3989_vm4 = vcmp.eq.s32.totalorder %v5872_v18, %v3930_v48  ;;  %vm3988_vm7 = vcmp.eq.s32.totalorder %v5870_v15, %v3930_v48  ;;  %v5430_v48 = vld [vmem:[#allocation9 + $0xf0] ss:$8 sps:$4 sm:$0xff]  }
 0x71e   : > { %vm3990_vm3 = vcmp.eq.s32.totalorder %v5870_v15, %v3931_v43  ;;  %vm3991_vm6 = vcmp.eq.s32.totalorder %v5872_v18, %v3931_v43  ;;  %v5432_v43 = vld [vmem:[#allocation9 + $0xf4] ss:$8 sps:$4 sm:$0xff]  }
 0x71f   : > { %v3851_v23 = vpop.xlane.xlu0 %3850  ;;  %vm5112_vm8 = vmpackc.low %vm3991_vm6, %vm3989_vm4 }
 0x720   : > { %v3852_v49 = vcvt.f32.s32 %v3851_v23  ;;  %5113 = vmatprep.subr.msk.bf16.mxu1 %vm5112_vm8, %v9334_v54  ;;  %vm5114_vm10 = vmpackc.low %vm3990_vm3, %vm3988_vm7  ;;  %vm4205_vm7 = vcmask 195584  }
 0x721   : > { %v3867_v11 = vpop.xlane.xlu1 %3866  ;;  %5115 = vmatpush1.bf16.xpose.msk.msra.mxu1 %vm5114_vm10, %v9334_v54 }
 0x722   : > { %v3855_v32 = vadd.s32 %v3854_v57, %v3852_v49  ;;  %v3868_v30 = vcvt.f32.s32 %v3867_v11 }
 0x724   : > { %v3932_v36 = vand.u32 65535, %v3855_v32  ;;  %v3871_v8 = vadd.s32 %v3870_v58, %v3868_v30 }
 0x726   : > { %v3933_v26 = vand.u32 65535, %v3871_v8  ;;  %vm3993_vm9 = vcmp.eq.s32.totalorder %v5872_v18, %v3932_v36  ;;  %vm3992_vm12 = vcmp.eq.s32.totalorder %v5870_v15, %v3932_v36 }
 0x727   : > { %v3883_v37 = vpop.xlane.xlu0 %3882 }
 0x728   : > { %vm3994_vm5 = vcmp.eq.s32.totalorder %v5870_v15, %v3933_v26  ;;  %vm3995_vm11 = vcmp.eq.s32.totalorder %v5872_v18, %v3933_v26  ;;  %v3884_v46 = vcvt.f32.s32 %v3883_v37 }
 0x729   : > { %v3899_v40 = vpop.xlane.xlu1 %3898  ;;  %vm5116_vm13 = vmpackc.low %vm3995_vm11, %vm3993_vm9 }
 0x72a   : > { %v3900_v56 = vcvt.f32.s32 %v3899_v40  ;;  %5117 = vmatprep.subr.msk.bf16.mxu1 %vm5116_vm13, %v9334_v54  ;;  %vm5118_vm14 = vmpackc.low %vm3994_vm5, %vm3992_vm12  ;;  %v3887_v59 = vadd.s32 %v3886_v28, %v3884_v46 }
 0x72b   : > { %5119 = vmatpush1.bf16.xpose.msk.msra.mxu1 %vm5118_vm14, %v9334_v54 }
 0x72c   : > { %v3903_v42 = vadd.s32 %v3902_v10, %v3900_v56  ;;  %v3934_v16 = vand.u32 65535, %v3887_v59 }
 0x72e   : > { %v3935_v2 = vand.u32 65535, %v3903_v42  ;;  %vm3996_vm15 = vcmp.eq.s32.totalorder %v5870_v15, %v3934_v16  ;;  %vm3997_vm4 = vcmp.eq.s32.totalorder %v5872_v18, %v3934_v16 }
 0x72f   : > { %v4267_v41 = vpop.permute.xlu0 %4266 }
 0x730   : > { %vm3998_vm1 = vcmp.eq.s32.totalorder %v5870_v15, %v3935_v2  ;;  %vm3999_vm2 = vcmp.eq.s32.totalorder %v5872_v18, %v3935_v2 }
 0x731   : > { %vm5122_vm3 = vmpackc.low %vm3998_vm1, %vm3996_vm15 }
 0x732   : > { %vm5120_vm6 = vmpackc.low %vm3999_vm2, %vm3997_vm4 }
 0x733   : > { %5121 = vmatprep.subr.msk.bf16.mxu1 %vm5120_vm6, %v9334_v54 }
 0x734   : > { %5123 = vmatpush1.bf16.xpose.msk.msra.mxu1 %vm5122_vm3, %v9334_v54  ;;  %v989_v54 = vld [vmem:[%s9036_s2] sm:$0xf] }
 0x73b   : > { %4193 = vmatmul.mubr.bf16.vlgmr.msra.gmra.mrb[72].mxu1 %v8575_v55  ;;  %v5385_v55 = vld [vmem:[#allocation9] ss:$8 sps:$4 sm:$0xff]  }
 0x80e   : > { %v4194_v53 = vpop.f32.mrb[72].mxu1 }
 0x80f   : > { %v4203_v33 = vpack.c.bf16 %v4194_v53, %v4194_v53  ;;  %v4196_v15 = vpop.f32.mrb[73].mxu1 }
 0x810   : > { %v4204_v52 = vpack.c.bf16 %v4196_v15, %v4196_v15  ;;  %v4198_v12 = vpop.f32.mrb[74].mxu1 }
 0x811   : > { %v4210_v18 = vsel %vm1124_vm0, %v4203_v33, 0  ;;  %v4199_v14 = vpop.f32.mrb[75].mxu1 }
 0x812   : > { %5124 = vmatprep.subr.msk.bf16.mxu0 %vm1124_vm0, %v4204_v52 }
 0x813   : > { %4218 = vmatpush1.bf16.msra.mxu0 %v4210_v18 }
 0x814   : > { %4465 = vmatprep.subr.bf16.mxu0 %v5387_v27 }
 0x816   : > { %5125 = vmatmul.mubr.msk.bf16.vlgmr.msra.gmra.mrb[12].mxu0 %vm4205_vm7, %v989_v54 }
 0x817   : > { %4466 = vmatpush1.bf16.msra.mxu0 %v5385_v55 }
 0x818   : > { %4467 = vmatprep.subr.bf16.mxu0 %v5390_v19 }
 0x81b   : > { %4468 = vmatpush1.bf16.msra.mxu0 %v5388_v61 }
 0x81c   : > { %4469 = vmatprep.subr.bf16.mxu0 %v5393_v9 }
 0x81f   : > { %4470 = vmatpush1.bf16.msra.mxu0 %v5391_v34 }
 0x820   : > { %4471 = vmatprep.subr.bf16.mxu0 %v5396_v45 }
 0x823   : > { %4472 = vmatpush1.bf16.msra.mxu0 %v5394_v22 }
 0x824   : > { %4473 = vmatprep.subr.bf16.mxu0 %v5399_v1 }
 0x827   : > { %4474 = vmatpush1.bf16.msra.mxu0 %v5397_v0 }
 0x828   : > { %4475 = vmatprep.subr.bf16.mxu0 %v5402_v17 }
 0x82b   : > { %4476 = vmatpush1.bf16.msra.mxu0 %v5400_v31 }
 0x82c   : > { %4477 = vmatprep.subr.bf16.mxu0 %v5405_v7 }
 0x82f   : > { %4478 = vmatpush1.bf16.msra.mxu0 %v5403_v5 }
 0x830   : > { %4479 = vmatprep.subr.bf16.mxu0 %v5408_v4 }
 0x833   : > { %4480 = vmatpush1.bf16.msra.mxu0 %v5406_v20 }
 0x834   : > { %4481 = vmatprep.subr.bf16.mxu0 %v5411_v62 }
 0x837   : > { %4482 = vmatpush1.bf16.msra.mxu0 %v5409_v35 }
 0x838   : > { %4483 = vmatprep.subr.bf16.mxu0 %v5414_v60 }
 0x83b   : > { %4484 = vmatpush1.bf16.msra.mxu0 %v5412_v39 }
 0x83c   : > { %4485 = vmatprep.subr.bf16.mxu0 %v5417_v25 }
 0x83f   : > { %4486 = vmatpush1.bf16.msra.mxu0 %v5415_v44 }
 0x840   : > { %4487 = vmatprep.subr.bf16.mxu0 %v5420_v38 }
 0x843   : > { %4488 = vmatpush1.bf16.msra.mxu0 %v5418_v29 }
 0x844   : > { %4489 = vmatprep.subr.bf16.mxu0 %v5423_v13 }
 0x847   : > { %4490 = vmatpush1.bf16.msra.mxu0 %v5421_v50 }
 0x848   : > { %4491 = vmatprep.subr.bf16.mxu0 %v5426_v21 }
 0x84b   : > { %4492 = vmatpush1.bf16.msra.mxu0 %v5424_v51 }
 0x84c   : > { %4493 = vmatprep.subr.bf16.mxu0 %v5429_v6 }
 0x84f   : > { %4494 = vmatpush1.bf16.msra.mxu0 %v5427_v24 }
 0x850   : > { %4495 = vmatprep.subr.bf16.mxu0 %v5432_v43 }
 0x853   : > { %4496 = vmatpush1.bf16.msra.mxu0 %v5430_v48 }
 0x8e9   : > { %v4249_v23 = vpop.f32.mrb[12].mxu0 }
 0x8ea   : > { %v4269_v57 = vadd.f32 %v4267_v41, %v4249_v23  ;;  %v4251_v49 = vpop.f32.mrb[13].mxu0 }
 0x8eb   : > { %v4270_v11 = vadd.f32 %v4267_v41, %v4251_v49  ;;  %v4253_v58 = vpop.f32.mrb[14].mxu0 }
 0x8ec   : > { %v4254_v32 = vpop.f32.mrb[15].mxu0  ;;  %v4271_v36 = vpack.c.bf16 %v4269_v57, %v4269_v57 }
 0x8ed   : > { %v4272_v30 = vpack.c.bf16 %v4270_v11, %v4270_v11 }
 0x8ef   : > { %4497 = vmatprep.mubr.bf16.mxu0 %v4272_v30 }
 0x8f0   : > { %4498 = vmatmul.mubr.bf16.vlgmr.msra.gmra.mrb[16].mxu0 %v4271_v36 }
 0x9c3   : > { %v4499_v8 = vpop.f32.mrb[16].mxu0 }
 0x9c4   : > { %4506 = vst [vmem:[%s269_s13] sm:$0xff] %v4499_v8  ;;  %v4501_v3 = vpop.f32.mrb[17].mxu0 }
 0x9c5   : > { %4507 = vst [vmem:[%s269_s13 + $0x8] sm:$0xff] %v4501_v3  ;;  %v4503_v47 = vpop.f32.mrb[18].mxu0 }
 0x9c6   : > { %v4504_v26 = vpop.f32.mrb[19].mxu0 }
 0x9c7   : > { %5540 = shalt.err (!%p5537_p2)
}
 0x9c8   : > { %s5541_s14 = scalar_lea.hbm %s8992_s9, 256  ;;  %s5545_s10 = scalar_lea.hbm %s9039_s5, 512 }
 0x9c9   : > { %p5542_p13 = scmp.ne.s32.totalorder %s8992_s9, %s5541_s14  ;;  %p5546_p4 = scmp.lt.u32.totalorder %s8992_s9, %s9039_s5 }
 0x9ca   : > { %p5547_p7 = scmp.lt.u32.totalorder %s5545_s10, %s5541_s14  ;;  %p5549_p8 = scmp.lt.u32.totalorder %s5541_s14, %s8992_s9 }
 0x9cb   : > { %p5543_p6 = pnand %p5542_p13, %p9724_p0 }
 0x9cc   : > { %p5548_p11 = por %p5547_p7, %p5546_p4 }
 0x9cd   : > { %p5544_p10 = pneg %p5543_p6 }
 0x9ce   : > { %p5550_p1 = por %p5549_p8, %p5548_p11 }
 0x9d0   : > { %p5551_p3 = pnand %p5550_p1, %p5544_p10 }
 0x9d2   : > { %5554 = shalt.err (!%p5551_p3)
}
 0x9d3   : > { %5175 = dma.vmem_to_hbm [thread:$0]  (%p9724_p0), %s8987_s7, 256, %s8992_s9, %s4509_s11  }
 0x9d4 PF: > { %s4535_s13 = sand.u32 1, %s5585_s18   ;;  %p9725_p5 = scmp.ne.s32.totalorder %s9206_s25, 0 }
 0x9d5   : > { %p9726_p9 = scmp.ge.s32.totalorder %s5597_s21, 2  ;;  %s4536_s6 = scalar_lea.sflag [#allocation6], %s4535_s13 }
 0x9d7   : > { %p5189_p12 = pnand %p9726_p9, %p9725_p5 }
 0x9d9   : > { %5580 = dma.done.wait (!%p5189_p12), %s4536_s6, 256  }
 0x9da   : > { %5582 = vsyncadd (!%p5189_p12), %s4536_s6, 4294967040  ;;  %p19_p2 = scmp.ge.s32.totalorder %s5749_s16, 4   ;;  %s9727_s18 = smov %s5589_s19 }
 0x9db   : > { %s9728_s19 = smov %s5593_s20  ;;  %s9729_s20 = smov %s5758_s27 }
 0x9dc   : > { %s9730_s21 = smov %s5749_s16  ;;  %21 = sbr.rel (!%p19_p2) target bundleno = 6 (0x6), region = 95 }
 0x9e3   :  { %4541 = vsyncpa [#allocation5], 1 }
 0x9e4   :  { %4543 = vsyncpa [#allocation5 + $0x1], 1 }
 0x9e5   :  { %4544 = vsyncpa [#allocation8], 1 }
 0x9e6   :  { %4545 = vsyncpa [#allocation6], 1 }
 0x9e7   :  { %4547 = vsyncpa [#allocation6 + $0x1], 1 }

// kernel: tpu_custom_call.1
= control target key start
LH: loop header
LB: loop body
LE: loop exit
PB: predicated region body
PF: predicated region fallthrough
CT: control target
= control target key end

     0   :  { %10 = vsyncpa [#allocation5], 0  ;;  %s9034_s0 = inlined_call_operand.hbm [shape: bf16[16,256], index: 0, kind: input, shape index: {}]   ;;  %s9035_s1 = inlined_call_operand.hbm [shape: bf16[256,768], index: 1, kind: input, shape index: {}]   ;;  %s9036_s2 = inlined_call_operand.vmem [shape: bf16[8,24], index: 2, kind: input, shape index: {}]   ;;  %s9037_s3 = inlined_call_operand.vmem [shape: f32[8,1], index: 3, kind: input, shape index: {}]   ;;  %s9038_s4 = inlined_call_operand.hbm [shape: bf16[256,256], index: 4, kind: input, shape index: {}]   ;;  %s9039_s5 = inlined_call_operand.hbm [shape: f32[16,256], index: 5, kind: output, shape index: {}]  }
   0x1   :  { %12 = vsyncpa [#allocation5 + $0x1], 0 }
   0x2   :  { %13 = vsyncpa [#allocation8], 0 }
   0x3   :  { %14 = vsyncpa [#allocation6], 0 }
   0x4   :  { %16 = vsyncpa [#allocation6 + $0x1], 0  ;;  %s5639_s18 = smov 0   ;;  %s5641_s19 = smov 0  }
   0x5   :  { %s5643_s20 = smov 0   ;;  %s5645_s21 = smov 0  }
   0x6 LB: > { %s5660_s22 = sadd.s32 4294967295, %s5597_s21   ;;  %s4612_s23 = sadd.s32 4294967294, %s5597_s21   ;;  %s5597_s21 = sphi %s5645_s21, %s9730_s21   ;;  %s5593_s20 = sphi %s5643_s20, %s9729_s20   ;;  %s5589_s19 = sphi %s5641_s19, %s9728_s19   ;;  %s5585_s18 = sphi %s5639_s18, %s9727_s18  }
   0x7   : > { %p42_p0 = scmp.ne.s32.totalorder %s5589_s19, %s5585_s18  ;;  %p9040_p1 = scmp.eq.s32.totalorder %s5660_s22, 0 }
   0x8   : > { %p156_p3 = scmp.eq.s32.totalorder %s4612_s23, 1  ;;  %p4613_p5 = scmp.ge.s32.totalorder %s5597_s21, 1 }
   0x9   : > { %p5669_p4 = por %p9040_p1, %p42_p0  ;;  %p163_p7 = scmp.lt.s32.totalorder %s5597_s21, 3 }
   0xa   : > { %p5674_p6 = por %p156_p3, %p42_p0  ;;  %s5599_s27 = smov [#allocation7]  }
   0xb   : > { %s9205_s24 = scalar_select %p5669_p4, 1, 0 }
   0xc   : > { %s9206_s25 = scalar_select %p5674_p6, 1, 0 }
   0xd   : > { %p5679_p8 = pnand %p4613_p5, %p163_p7  ;;  %s175_s28 = sshll.u32 %s5599_s27, 4  ;;  %s5683_s28 = int_to_ptr.vmem [resolvable:$true] %s175_s28 }
   0xe   : > { %s5600_s30 = smov [#allocation9]   ;;  %s5441_s9 = scalar_lea.hbm %s9035_s1, 12288 }
   0xf   : > { %p5177_p9 = pneg %p5679_p8  ;;  %s194_s6 = sshll.u32 %s5600_s30, 4  ;;  %s5694_s6 = int_to_ptr.vmem [resolvable:$true] %s194_s6 }
  0x10   : > { %p5442_p12 = scmp.ne.s32.totalorder %s9035_s1, %s5441_s9  ;;  %p5448_p5 = scmp.lt.u32.totalorder %s5441_s9, %s9035_s1 }
  0x11   : > { %p5690_p11 = pnand %p5177_p9, %p9040_p1 }
  0x13   : > { %p5443_p13 = pneg %p5690_p11 }
  0x15   : > { %p5444_p0 = pnand %p5443_p13, %p5442_p12 }
  0x17   : > { %p5445_p3 = pneg %p5444_p0 }
  0x19   : > { %p5450_p7 = pnand %p5448_p5, %p5445_p3 }
  0x1b   : > { %5453 = shalt.err (!%p5450_p7)
}
  0x1c   : > { %s5454_s14 = scalar_lea.vmem %s5683_s28, 12288  ;;  %p5462_p2 = scmp.lt.s32.totalorder %s5683_s28, %s5683_s28 }
  0x1d   : > { %p5455_p9 = scmp.ne.s32.totalorder %s5683_s28, %s5454_s14  ;;  %p5463_p12 = scmp.lt.s32.totalorder %s5454_s14, %s5454_s14 }
  0x1f   : > { %p5457_p10 = pnand %p5455_p9, %p5443_p13  ;;  %p5464_p0 = por %p5463_p12, %p5462_p2 }
  0x21   : > { %p5458_p1 = pneg %p5457_p10 }
  0x23   : > { %p5465_p6 = pnand %p5464_p0, %p5458_p1 }
  0x25   : > { %5468 = shalt.err (!%p5465_p6)
}
  0x26   : > { %s5601_s15 = smov 384   ;;  %s5602_s16 = smov 24  }
  0x27   : > { %5180 = dma.hbm_to_vmem [thread:$0]  (!%p5690_p11), %s9035_s1, 12288, %s5683_s28, [#allocation8], %s5601_s15, %s5601_s15, %s5602_s16  }
  0x28   : > { %s5469_s7 = scalar_lea.hbm %s9038_s4, 4096 }
  0x29   : > { %p5470_p2 = scmp.ne.s32.totalorder %s9038_s4, %s5469_s7  ;;  %p5476_p10 = scmp.lt.u32.totalorder %s5469_s7, %s9038_s4 }
  0x2b   : > { %p5472_p1 = pnand %p5470_p2, %p5443_p13 }
  0x2d   : > { %p5473_p6 = pneg %p5472_p1 }
  0x2f   : > { %p5478_p3 = pnand %p5476_p10, %p5473_p6 }
  0x31   : > { %5481 = shalt.err (!%p5478_p3)
}
  0x32   : > { %s5482_s28 = scalar_lea.vmem %s5694_s6, 4096  ;;  %p5490_p12 = scmp.lt.s32.totalorder %s5694_s6, %s5694_s6 }
  0x33   : > { %p5483_p5 = scmp.ne.s32.totalorder %s5694_s6, %s5482_s28  ;;  %p5491_p0 = scmp.lt.s32.totalorder %s5482_s28, %s5482_s28 }
  0x35   : > { %p5485_p7 = pnand %p5483_p5, %p5443_p13  ;;  %p5492_p2 = por %p5491_p0, %p5490_p12 }
  0x37   : > { %p5486_p9 = pneg %p5485_p7 }
  0x39   : > { %p5493_p1 = pnand %p5492_p2, %p5486_p9 }
  0x3b   : > { %5496 = shalt.err (!%p5493_p1)
}
  0x3c   : > { %s5603_s12 = smov 128   ;;  %s5604_s13 = smov 8  }
  0x3d   : > { %5183 = dma.hbm_to_vmem [thread:$0]  (!%p5690_p11), %s9038_s4, 4096, %s5694_s6, [#allocation8], %s5603_s12, %s5603_s12, %s5604_s13  }
  0x3e   : > { %s5749_s16 = sadd.s32 1, %s5597_s21   ;;  %s29_s23 = sadd.s32 1, %s5593_s20 }
  0x3f   : > { %s26_s17 = ssub.s32 %s5597_s21, %s5749_s16  ;;  %p36_p6 = scmp.ne.s32.totalorder %s5593_s20, %s5589_s19 }
  0x40   : > { %p27_p13 = scmp.eq.s32.totalorder %s26_s17, 0  ;;  %p37_p10 = scmp.eq.s32.totalorder %s5597_s21, 0 }
  0x41   : > { %p9209_p5 = scmp.eq.s32.totalorder %s5660_s22, 1  ;;  %p5194_p9 = scmp.lt.s32.totalorder %s5597_s21, 2 }
  0x42   : > { %s5758_s27 = scalar_select %p27_p13, %s5593_s20, %s29_s23  }
  0x43   : > { %p38_p3 = por %p37_p10, %p36_p6  ;;  %p5762_p7 = por %p9209_p5, %p36_p6 }
  0x44   : > { %s208_s29 = sand.u32 1, %s5593_s20   ;;  %s5163_s6 = sshll.u32 %s5597_s21, 7 }
  0x45   : > { %s9210_s30 = scalar_select %p5762_p7, 1, 0 }
  0x46   : > { %s4617_s7 = sshll.u32 %s208_s29, 3  ;;  %s5772_s10 = scalar_lea.hbm %s9034_s0, %s5163_s6 }
  0x47   : > { %s212_s11 = scalar_lea.vmem [#allocation4], %s4617_s7  ;;  %p5776_p11 = pnand %p5194_p9, %p38_p3 }
  0x48   : > { %s220_s28 = sshll.u32 %s212_s11, 4  ;;  %s209_s13 = scalar_lea.sflag [#allocation5], %s208_s29  ;;  %s5774_s28 = int_to_ptr.vmem [resolvable:$true] %s220_s28 }
  0x49   : > { %s5497_s14 = scalar_lea.hbm %s5772_s10, 128  ;;  %p5499_p0 = pneg %p5776_p11 }
  0x4a   : > { %p5498_p12 = scmp.ne.s32.totalorder %s5772_s10, %s5497_s14  ;;  %s5502_s23 = scalar_lea.hbm %s9034_s0, 256 }
  0x4b   : > { %p5503_p13 = scmp.lt.u32.totalorder %s5772_s10, %s9034_s0  ;;  %p5504_p6 = scmp.lt.u32.totalorder %s5502_s23, %s5497_s14 }
  0x4c   : > { %p5500_p2 = pnand %p5499_p0, %p5498_p12  ;;  %p5506_p3 = scmp.lt.u32.totalorder %s5497_s14, %s5772_s10 }
  0x4d   : > { %p5505_p10 = por %p5504_p6, %p5503_p13 }
  0x4e   : > { %p5501_p1 = pneg %p5500_p2 }
  0x4f   : > { %p5507_p5 = por %p5506_p3, %p5505_p10 }
  0x51   : > { %p5508_p9 = pnand %p5507_p5, %p5501_p1 }
  0x53   : > { %5511 = shalt.err (!%p5508_p9)
}
  0x54   : > { %s5512_s29 = scalar_lea.vmem %s5774_s28, 128  ;;  %s5605_s8 = smov [#allocation4]  }
  0x55   : > { %p5513_p12 = scmp.ne.s32.totalorder %s5774_s28, %s5512_s29  ;;  %s5517_s9 = sshll.u32 %s5605_s8, 4  ;;  %s5518_s9 = int_to_ptr.vmem [resolvable:$false] %s5517_s9 }
  0x56   : > { %s5519_s11 = scalar_lea.vmem %s5518_s9, 256  ;;  %p5520_p4 = scmp.lt.s32.totalorder %s5774_s28, %s5518_s9 }
  0x57   : > { %p5515_p2 = pnand %p5513_p12, %p5499_p0  ;;  %p5521_p13 = scmp.lt.s32.totalorder %s5519_s11, %s5512_s29 }
  0x59   : > { %p5516_p7 = pneg %p5515_p2  ;;  %p5522_p6 = por %p5521_p13, %p5520_p4 }
  0x5b   : > { %p5523_p10 = pnand %p5522_p6, %p5516_p7 }
  0x5d   : > { %5526 = shalt.err (!%p5523_p10)
}
  0x5e   : > { %5187 = dma.hbm_to_vmem [thread:$0]  (!%p5776_p11), %s5772_s10, 128, %s5774_s28, %s209_s13  }
  0x5f   : > { %229 = sbr.rel (%p5679_p8) target bundleno = 2516 (0x9d4), region = 40 }
  0x66   : > { %s5808_s14 = sand.u32 1, %s5589_s19   ;;  %p9212_p4 = scmp.ne.s32.totalorder %s9205_s24, 0 }
  0x67   : > { %s4621_s15 = sshll.u32 %s5808_s14, 3  ;;  %s232_s17 = scalar_lea.sflag [#allocation5], %s5808_s14 }
  0x68   : > { %s235_s23 = scalar_lea.vmem [#allocation4], %s4621_s15 }
  0x69   : > { %5572 = dma.done.wait (%p9212_p4), %s232_s17, 128  }
  0x6a   : > { %5574 = vsyncadd (%p9212_p4), %s232_s17, 4294967168  ;;  %p9213_p7 = scmp.eq.s32.totalorder %s5660_s22, 0 }
  0x6c   : > { %5576 = dma.done.wait (%p9213_p7), [#allocation8], 16384   ;;  %p9214_p11 = pmov %p9213_p7 }
  0x6d   : > { %v5239_v0 = vld [vmem:[#allocation7 + $0x4] ss:$24 sps:$4 sm:$0xff]   ;;  %v5241_v1 = vld [vmem:[#allocation7] ss:$24 sps:$4 sm:$0xff]   ;;  %v5242_v2 = vld [vmem:[#allocation7 + $0x34] ss:$24 sps:$4 sm:$0xff]  }
  0x6e   : > { %5578 = vsyncadd (%p9214_p11), [#allocation8], 4294950912  ;;  %855 = vmatprep.subr.bf16.mxu0 %v5239_v0  ;;  %v5244_v3 = vld [vmem:[#allocation7 + $0x30] ss:$24 sps:$4 sm:$0xff]   ;;  %v5245_v4 = vld [vmem:[#allocation7 + $0x64] ss:$24 sps:$4 sm:$0xff]  }
  0x6f   : > { %856 = vmatpush1.bf16.msra.mxu0 %v5241_v1  ;;  %v5247_v5 = vld [vmem:[#allocation7 + $0x60] ss:$24 sps:$4 sm:$0xff]   ;;  %v5248_v6 = vld [vmem:[#allocation7 + $0x94] ss:$24 sps:$4 sm:$0xff]   ;;  %v5250_v7 = vld [vmem:[#allocation7 + $0x90] ss:$24 sps:$4 sm:$0xff]  }
  0x70   : > { %857 = vmatprep.subr.bf16.mxu0 %v5242_v2  ;;  %v5251_v8 = vld [vmem:[#allocation7 + $0xc4] ss:$24 sps:$4 sm:$0xff]   ;;  %v5253_v9 = vld [vmem:[#allocation7 + $0xc0] ss:$24 sps:$4 sm:$0xff]   ;;  %v5254_v10 = vld [vmem:[#allocation7 + $0xf4] ss:$24 sps:$4 sm:$0xff]  }
  0x71   : > { %v5256_v11 = vld [vmem:[#allocation7 + $0xf0] ss:$24 sps:$4 sm:$0xff]   ;;  %v5257_v12 = vld [vmem:[#allocation7 + $0x124] ss:$24 sps:$4 sm:$0xff]   ;;  %v5259_v13 = vld [vmem:[#allocation7 + $0x120] ss:$24 sps:$4 sm:$0xff]  }
  0x72   : > { %v5820_v14 = vld [vmem:[%s235_s23] sm:$0xff]  ;;  %v5289_v16 = vld [vmem:[#allocation7 + $0xc] ss:$24 sps:$4 sm:$0xff]   ;;  %v5291_v17 = vld [vmem:[#allocation7 + $0x8] ss:$24 sps:$4 sm:$0xff]   ;;  %vm1124_vm0 = vcmask 1043456  }
  0x73   : > { %858 = vmatpush1.bf16.msra.mxu0 %v5244_v3  ;;  %v5824_v15 = vcombine.high %v5820_v14, %v5820_v14  ;;  %v5292_v18 = vld [vmem:[#allocation7 + $0x3c] ss:$24 sps:$4 sm:$0xff]   ;;  %896 = vmatprep.subr.bf16.mxu1 %v5289_v16  ;;  %v5262_v20 = vld [vmem:[#allocation7 + $0x150] ss:$24 sps:$4 sm:$0xff]   ;;  %v5295_v22 = vld [vmem:[#allocation7 + $0x6c] ss:$24 sps:$4 sm:$0xff]   ;;  %v5830_v57 = vcombine.low %v5820_v14, %v5820_v14 }
  0x74   : > { %859 = vmatprep.subr.bf16.mxu0 %v5245_v4  ;;  %v5260_v19 = vld [vmem:[#allocation7 + $0x154] ss:$24 sps:$4 sm:$0xff]   ;;  %897 = vmatpush1.bf16.msra.mxu1 %v5291_v17  ;;  %v5294_v21 = vld [vmem:[#allocation7 + $0x38] ss:$24 sps:$4 sm:$0xff]   ;;  %v5263_v23 = vld [vmem:[#allocation7 + $0x184] ss:$24 sps:$4 sm:$0xff]  }
  0x75   : > { %887 = vmatprep.mubr.bf16.mxu0 %v5824_v15  ;;  %928 = vmatprep.mubr.bf16.mxu1 %v5824_v15  ;;  %v5265_v24 = vld [vmem:[#allocation7 + $0x180] ss:$24 sps:$4 sm:$0xff]   ;;  %v5298_v26 = vld [vmem:[#allocation7 + $0x9c] ss:$24 sps:$4 sm:$0xff]   ;;  %v5268_v28 = vld [vmem:[#allocation7 + $0x1b0] ss:$24 sps:$4 sm:$0xff]  }
  0x76   : > { %898 = vmatprep.subr.bf16.mxu1 %v5292_v18  ;;  %v5297_v25 = vld [vmem:[#allocation7 + $0x68] ss:$24 sps:$4 sm:$0xff]   ;;  %v5266_v27 = vld [vmem:[#allocation7 + $0x1b4] ss:$24 sps:$4 sm:$0xff]   ;;  %v5300_v29 = vld [vmem:[#allocation7 + $0x98] ss:$24 sps:$4 sm:$0xff]  }
  0x77   : > { %860 = vmatpush1.bf16.msra.mxu0 %v5247_v5  ;;  %v5301_v30 = vld [vmem:[#allocation7 + $0xcc] ss:$24 sps:$4 sm:$0xff]   ;;  %v5271_v32 = vld [vmem:[#allocation7 + $0x1e0] ss:$24 sps:$4 sm:$0xff]   ;;  %v5304_v34 = vld [vmem:[#allocation7 + $0xfc] ss:$24 sps:$4 sm:$0xff]  }
  0x78   : > { %861 = vmatprep.subr.bf16.mxu0 %v5248_v6  ;;  %899 = vmatpush1.bf16.msra.mxu1 %v5294_v21  ;;  %v5269_v31 = vld [vmem:[#allocation7 + $0x1e4] ss:$24 sps:$4 sm:$0xff]   ;;  %v5303_v33 = vld [vmem:[#allocation7 + $0xc8] ss:$24 sps:$4 sm:$0xff]   ;;  %v5272_v35 = vld [vmem:[#allocation7 + $0x214] ss:$24 sps:$4 sm:$0xff]  }
  0x79   : > { %900 = vmatprep.subr.bf16.mxu1 %v5295_v22  ;;  %v5274_v36 = vld [vmem:[#allocation7 + $0x210] ss:$24 sps:$4 sm:$0xff]   ;;  %v5275_v37 = vld [vmem:[#allocation7 + $0x244] ss:$24 sps:$4 sm:$0xff]   ;;  %v5277_v41 = vld [vmem:[#allocation7 + $0x240] ss:$24 sps:$4 sm:$0xff]  }
  0x7a   : > { %v5306_v38 = vld [vmem:[#allocation7 + $0xf8] ss:$24 sps:$4 sm:$0xff]   ;;  %v5307_v39 = vld [vmem:[#allocation7 + $0x12c] ss:$24 sps:$4 sm:$0xff]   ;;  %v5309_v40 = vld [vmem:[#allocation7 + $0x128] ss:$24 sps:$4 sm:$0xff]  }
  0x7b   : > { %862 = vmatpush1.bf16.msra.mxu0 %v5250_v7  ;;  %v5310_v42 = vld [vmem:[#allocation7 + $0x15c] ss:$24 sps:$4 sm:$0xff]   ;;  %v5312_v44 = vld [vmem:[#allocation7 + $0x158] ss:$24 sps:$4 sm:$0xff]   ;;  %v5313_v46 = vld [vmem:[#allocation7 + $0x18c] ss:$24 sps:$4 sm:$0xff]  }
  0x7c   : > { %863 = vmatprep.subr.bf16.mxu0 %v5251_v8  ;;  %901 = vmatpush1.bf16.msra.mxu1 %v5297_v25  ;;  %v5278_v43 = vld [vmem:[#allocation7 + $0x274] ss:$24 sps:$4 sm:$0xff]   ;;  %v5280_v45 = vld [vmem:[#allocation7 + $0x270] ss:$24 sps:$4 sm:$0xff]   ;;  %v5281_v47 = vld [vmem:[#allocation7 + $0x2a4] ss:$24 sps:$4 sm:$0xff]  }
  0x7d   : > { %902 = vmatprep.subr.bf16.mxu1 %v5298_v26  ;;  %v5315_v48 = vld [vmem:[#allocation7 + $0x188] ss:$24 sps:$4 sm:$0xff]   ;;  %v5316_v50 = vld [vmem:[#allocation7 + $0x1bc] ss:$24 sps:$4 sm:$0xff]   ;;  %v5318_v52 = vld [vmem:[#allocation7 + $0x1b8] ss:$24 sps:$4 sm:$0xff]  }
  0x7e   : > { %v5283_v49 = vld [vmem:[#allocation7 + $0x2a0] ss:$24 sps:$4 sm:$0xff]   ;;  %v5284_v51 = vld [vmem:[#allocation7 + $0x2d4] ss:$24 sps:$4 sm:$0xff]   ;;  %v5286_v53 = vld [vmem:[#allocation7 + $0x2d0] ss:$24 sps:$4 sm:$0xff]  }
  0x7f   : > { %864 = vmatpush1.bf16.msra.mxu0 %v5253_v9  ;;  %v5319_v54 = vld [vmem:[#allocation7 + $0x1ec] ss:$24 sps:$4 sm:$0xff]   ;;  %v5321_v55 = vld [vmem:[#allocation7 + $0x1e8] ss:$24 sps:$4 sm:$0xff]   ;;  %v5322_v56 = vld [vmem:[#allocation7 + $0x21c] ss:$24 sps:$4 sm:$0xff]  }
  0x80   : > { %865 = vmatprep.subr.bf16.mxu0 %v5254_v10  ;;  %903 = vmatpush1.bf16.msra.mxu1 %v5300_v29  ;;  %9215 = vst [vmem:[#allocation14_spill] sm:$0xff] %v5830_v57  ;;  %v5324_v58 = vld [vmem:[#allocation7 + $0x218] ss:$24 sps:$4 sm:$0xff]   ;;  %v5325_v59 = vld [vmem:[#allocation7 + $0x24c] ss:$24 sps:$4 sm:$0xff]   ;;  %v9043_v3 = vmov 0  }
  0x81   : > { %904 = vmatprep.subr.bf16.mxu1 %v5301_v30  ;;  %v5327_v60 = vld [vmem:[#allocation7 + $0x248] ss:$24 sps:$4 sm:$0xff]   ;;  %v5328_v61 = vld [vmem:[#allocation7 + $0x27c] ss:$24 sps:$4 sm:$0xff]   ;;  %v5330_v62 = vld [vmem:[#allocation7 + $0x278] ss:$24 sps:$4 sm:$0xff]  }
  0x82   : > { %v5331_v63 = vld [vmem:[#allocation7 + $0x2ac] ss:$24 sps:$4 sm:$0xff]   ;;  %v5333_v0 = vld [vmem:[#allocation7 + $0x2a8] ss:$24 sps:$4 sm:$0xff]   ;;  %v5334_v1 = vld [vmem:[#allocation7 + $0x2dc] ss:$24 sps:$4 sm:$0xff]  }
  0x83   : > { %866 = vmatpush1.bf16.msra.mxu0 %v5256_v11  ;;  %v5336_v2 = vld [vmem:[#allocation7 + $0x2d8] ss:$24 sps:$4 sm:$0xff]   ;;  %vm1075_vm1 = vcmask 64512   ;;  %s4624_s12 = sshll.u32 %s5808_s14, 4  ;;  %s5164_s6 = sshll.u32 %s5660_s22, 8 }
  0x84   : > { %867 = vmatprep.subr.bf16.mxu0 %v5257_v12  ;;  %905 = vmatpush1.bf16.msra.mxu1 %v5303_v33  ;;  %s269_s13 = scalar_lea.vmem [#allocation10], %s4624_s12  ;;  %s8992_s9 = scalar_lea.hbm %s9039_s5, %s5164_s6 }
  0x85   : > { %906 = vmatprep.subr.bf16.mxu1 %v5304_v34  ;;  %s4523_s7 = sshll.u32 %s269_s13, 4  ;;  %s4509_s11 = scalar_lea.sflag [#allocation6], %s5808_s14  ;;  %s8987_s7 = int_to_ptr.vmem [resolvable:$true] %s4523_s7 }
  0x86   : > { %s5527_s15 = scalar_lea.vmem %s8987_s7, 256  ;;  %p9724_p0 = scmp.ne.s32.totalorder %s9210_s30, 0 }
  0x87   : > { %868 = vmatpush1.bf16.msra.mxu0 %v5259_v13  ;;  %p5528_p8 = scmp.ne.s32.totalorder %s8987_s7, %s5527_s15  ;;  %s5608_s22 = smov [#allocation10]  }
  0x88   : > { %869 = vmatprep.subr.bf16.mxu0 %v5260_v19  ;;  %907 = vmatpush1.bf16.msra.mxu1 %v5306_v38  ;;  %s5531_s17 = sshll.u32 %s5608_s22, 4  ;;  %s5532_s17 = int_to_ptr.vmem [resolvable:$false] %s5531_s17 }
  0x89   : > { %908 = vmatprep.subr.bf16.mxu1 %v5307_v39  ;;  %p5529_p1 = pnand %p5528_p8, %p9724_p0  ;;  %s5533_s23 = scalar_lea.vmem %s5532_s17, 512 }
  0x8a   : > { %p5534_p5 = scmp.lt.s32.totalorder %s8987_s7, %s5532_s17  ;;  %p5535_p9 = scmp.lt.s32.totalorder %s5533_s23, %s5527_s15 }
  0x8b   : > { %870 = vmatpush1.bf16.msra.mxu0 %v5262_v20  ;;  %p5530_p3 = pneg %p5529_p1 }
  0x8c   : > { %871 = vmatprep.subr.bf16.mxu0 %v5263_v23  ;;  %909 = vmatpush1.bf16.msra.mxu1 %v5309_v40  ;;  %p5536_p12 = por %p5535_p9, %p5534_p5 }
  0x8d   : > { %910 = vmatprep.subr.bf16.mxu1 %v5310_v42 }
  0x8e   : > { %p5537_p2 = pnand %p5536_p12, %p5530_p3 }
  0x8f   : > { %872 = vmatpush1.bf16.msra.mxu0 %v5265_v24 }
  0x90   : > { %873 = vmatprep.subr.bf16.mxu0 %v5266_v27  ;;  %911 = vmatpush1.bf16.msra.mxu1 %v5312_v44 }
  0x91   : > { %912 = vmatprep.subr.bf16.mxu1 %v5313_v46 }
  0x93   : > { %874 = vmatpush1.bf16.msra.mxu0 %v5268_v28 }
  0x94   : > { %875 = vmatprep.subr.bf16.mxu0 %v5269_v31  ;;  %913 = vmatpush1.bf16.msra.mxu1 %v5315_v48 }
  0x95   : > { %914 = vmatprep.subr.bf16.mxu1 %v5316_v50 }
  0x97   : > { %876 = vmatpush1.bf16.msra.mxu0 %v5271_v32 }
  0x98   : > { %877 = vmatprep.subr.bf16.mxu0 %v5272_v35  ;;  %915 = vmatpush1.bf16.msra.mxu1 %v5318_v52 }
  0x99   : > { %916 = vmatprep.subr.bf16.mxu1 %v5319_v54 }
  0x9b   : > { %878 = vmatpush1.bf16.msra.mxu0 %v5274_v36 }
  0x9c   : > { %879 = vmatprep.subr.bf16.mxu0 %v5275_v37  ;;  %917 = vmatpush1.bf16.msra.mxu1 %v5321_v55 }
  0x9d   : > { %918 = vmatprep.subr.bf16.mxu1 %v5322_v56 }
  0x9f   : > { %880 = vmatpush1.bf16.msra.mxu0 %v5277_v41 }
  0xa0   : > { %881 = vmatprep.subr.bf16.mxu0 %v5278_v43  ;;  %919 = vmatpush1.bf16.msra.mxu1 %v5324_v58 }
  0xa1   : > { %920 = vmatprep.subr.bf16.mxu1 %v5325_v59 }
  0xa3   : > { %882 = vmatpush1.bf16.msra.mxu0 %v5280_v45 }
  0xa4   : > { %883 = vmatprep.subr.bf16.mxu0 %v5281_v47  ;;  %921 = vmatpush1.bf16.msra.mxu1 %v5327_v60 }
  0xa5   : > { %922 = vmatprep.subr.bf16.mxu1 %v5328_v61 }
  0xa7   : > { %884 = vmatpush1.bf16.msra.mxu0 %v5283_v49 }
  0xa8   : > { %885 = vmatprep.subr.bf16.mxu0 %v5284_v51  ;;  %923 = vmatpush1.bf16.msra.mxu1 %v5330_v62 }
  0xa9   : > { %924 = vmatprep.subr.bf16.mxu1 %v5331_v63 }
  0xab   : > { %886 = vmatpush1.bf16.msra.mxu0 %v5286_v53 }
  0xac   : > { %925 = vmatpush1.bf16.msra.mxu1 %v5333_v0 }
  0xad   : > { %926 = vmatprep.subr.bf16.mxu1 %v5334_v1 }
  0xae   : > { %888 = vmatmul.mubr.bf16.vlgmr.msra.gmra.mrb[0].mxu0 %v5830_v57 }
  0xaf   : > { %969 = vmatprep.mubr.bf16.mxu0 %v5824_v15 }
  0xb0   : > { %927 = vmatpush1.bf16.msra.mxu1 %v5336_v2 }
  0xb3   : > { %929 = vmatmul.mubr.bf16.vlgmr.msra.gmra.mrb[0].mxu1 %v5830_v57 }
  0xb4   : > { %1163 = vmatprep.mubr.bf16.mxu1 %v9043_v3 }
 0x181   : > { %v889_v4 = vpop.f32.mrb[0].mxu0 }
 0x182   : > { %v999_v5 = vmul.f32 %v889_v4, %v889_v4  ;;  %v891_v6 = vpop.f32.mrb[1].mxu0 }
 0x183   : > { %v893_v7 = vpop.f32.mrb[2].mxu0  ;;  %v1000_v13 = vmul.f32 %v891_v6, %v891_v6 }
 0x184   : > { %v1001_v8 = vrot.slane %v999_v5, 4  ;;  %v894_v9 = vpop.f32.mrb[3].mxu0 }
 0x185   : > { %v1007_v16 = vrot.slane %v1000_v13, 4 }
 0x186   : > { %v1002_v10 = vadd.f32 %v1001_v8, %v999_v5  ;;  %v930_v20 = vpop.f32.mrb[0].mxu1 }
 0x187   : > { %v1008_v18 = vadd.f32 %v1007_v16, %v1000_v13  ;;  %v1019_v21 = vmul.f32 %v930_v20, %v930_v20  ;;  %v932_v22 = vpop.f32.mrb[1].mxu1 }
 0x188   : > { %v1003_v11 = vrot.slane %v1002_v10, 2  ;;  %v1020_v23 = vmul.f32 %v932_v22, %v932_v22  ;;  %v934_v24 = vpop.f32.mrb[2].mxu1 }
 0x189   : > { %v1009_v19 = vrot.slane %v1008_v18, 2  ;;  %v1021_v26 = vrot.slane %v1019_v21, 4  ;;  %v935_v27 = vpop.f32.mrb[3].mxu1 }
 0x18a   : > { %v1004_v12 = vadd.f32 %v1003_v11, %v1002_v10  ;;  %v1027_v29 = vrot.slane %v1020_v23, 4  ;;  %v984_v11 = vlaneseq }
 0x18b   : > { %v1010_v25 = vadd.f32 %v1009_v19, %v1008_v18  ;;  %v1022_v31 = vadd.f32 %v1021_v26, %v1019_v21 }
 0x18c   : > { %v1005_v14 = vrot.slane %v1004_v12, 1  ;;  %v1028_v32 = vadd.f32 %v1027_v29, %v1020_v23 }
 0x18d   : > { %v1011_v33 = vrot.slane %v1010_v25, 1  ;;  %v1023_v35 = vrot.slane %v1022_v31, 2 }
 0x18e   : > { %v1006_v15 = vadd.f32 %v1005_v14, %v1004_v12  ;;  %v1029_v36 = vrot.slane %v1028_v32, 2  ;;  %v985_v12 = vand.u32 127, %v984_v11 }
 0x18f   : > { %v1024_v37 = vadd.f32 %v1023_v35, %v1022_v31  ;;  %v1012_v39 = vadd.f32 %v1011_v33, %v1010_v25 }
 0x190   : > { %v1013_v17 = vmax.f32 %v1006_v15, 1e-24  ;;  %v1030_v38 = vadd.f32 %v1029_v36, %v1028_v32  ;;  %v986_v13 = vadd.s32 128, %v985_v12  ;;  %v5870_v15 = vsub.s32 255, %v985_v12 }
 0x191   : > { %v1025_v40 = vrot.slane %v1024_v37, 1  ;;  %v1014_v44 = vmax.f32 %v1012_v39, 1e-24 }
 0x192   : > { %5433 = vrsqrt.f32 %v1013_v17  ;;  %v1031_v41 = vrot.slane %v1030_v38, 1  ;;  %v5872_v18 = vsub.s32 255, %v986_v13 }
 0x193   : > { %v1026_v42 = vadd.f32 %v1025_v40, %v1024_v37 }
 0x194   : > { %v1032_v43 = vadd.f32 %v1031_v41, %v1030_v38 }
 0x195   : > { %v1033_v45 = vmax.f32 %v1026_v42, 1e-24 }
 0x196   : > { %v1034_v46 = vmax.f32 %v1032_v43, 1e-24 }
 0x197   : > { %5435 = vrsqrt.f32 %v1033_v45 }
 0x198   : > { %5437 = vrsqrt.f32 %v1034_v46 }
 0x199   : > { %5439 = vrsqrt.f32 %v1014_v44 }
 0x19c   : > { %v5434_v28 = vpop.eup %5433 }
 0x19d   : > { %v1017_v30 = vmul.f32 %v5434_v28, %v889_v4 }
 0x19f   : > { %v1039_v34 = vpack.c.bf16 %v1017_v30, %v1017_v30 }
 0x1a1   : > { %1043 = vxpose.xlu0.c.b16.start.end [1/1] (short) %v1039_v34, 128  ;;  %v5436_v47 = vpop.eup %5435 }
 0x1a2   : > { %v5438_v48 = vpop.eup %5437  ;;  %v1037_v49 = vmul.f32 %v5436_v47, %v930_v20 }
 0x1a3   : > { %v5440_v50 = vpop.eup %5439  ;;  %v1038_v51 = vmul.f32 %v5438_v48, %v932_v22 }
 0x1a4   : > { %v1041_v52 = vpack.c.bf16 %v1037_v49, %v1037_v49  ;;  %v1018_v54 = vmul.f32 %v5440_v50, %v891_v6 }
 0x1a5   : > { %v1042_v53 = vpack.c.bf16 %v1038_v51, %v1038_v51 }
 0x1a6   : > { %v1126_v55 = vsel %vm1124_vm0, %v1041_v52, 0  ;;  %v1040_v56 = vpack.c.bf16 %v1018_v54, %v1018_v54 }
 0x1a7   : > { %4723 = vmatprep.subr.msk.bf16.mxu1 %vm1124_vm0, %v1042_v53 }
 0x1a8   : > { %1132 = vmatpush1.bf16.msra.mxu1 %v1126_v55 }
 0x1be   : > { %1059 = vxpose.xlu0.c.b16.start.end [1/1] (short) %v1040_v56, 128 }
 0x1c7   : > { %5238 = vset.pattern.permute.xlu0 %v9043_v3 }
 0x207   : > { %v1051_v58 = vpop.trf.xlu0 }
 0x208   : > { %4724 = vmatmul.mubr.msk.bf16.vlgmr.msra.gmra.mrb[4].mxu1 %vm1075_vm1, %v1051_v58 }
 0x209   : > { %1173 = vmatprep.mubr.bf16.mxu1 %v9043_v3 }
 0x20b   : > { %v1052_v59 = vpop.trf.xlu0 }
 0x20f   : > { %v1053_v60 = vpop.trf.xlu0 }
 0x210   : > { %4725 = vmatmul.mubr.msk.bf16.gmra.mrb[8].mxu1 %vm1075_vm1, %v1052_v59 }
 0x211   : > { %1183 = vmatprep.mubr.bf16.mxu1 %v9043_v3 }
 0x213   : > { %v1054_v61 = vpop.trf.xlu0 }
 0x217   : > { %v1055_v62 = vpop.trf.xlu0 }
 0x218   : > { %4726 = vmatmul.mubr.msk.bf16.gmra.mrb[12].mxu1 %vm1075_vm1, %v1053_v60 }
 0x219   : > { %1193 = vmatprep.mubr.bf16.mxu1 %v9043_v3 }
 0x21b   : > { %v1056_v63 = vpop.trf.xlu0 }
 0x21f   : > { %v1057_v0 = vpop.trf.xlu0 }
 0x220   : > { %4727 = vmatmul.mubr.msk.bf16.gmra.mrb[16].mxu1 %vm1075_vm1, %v1054_v61 }
 0x221   : > { %1203 = vmatprep.mubr.bf16.mxu1 %v9043_v3 }
 0x223   : > { %v1058_v1 = vpop.trf.xlu0 }
 0x227   : > { %v1067_v2 = vpop.trf.xlu0 }
 0x228   : > { %4728 = vmatmul.mubr.msk.bf16.gmra.mrb[20].mxu1 %vm1075_vm1, %v1055_v62 }
 0x229   : > { %1213 = vmatprep.mubr.bf16.mxu1 %v9043_v3 }
 0x22b   : > { %v1068_v4 = vpop.trf.xlu0 }
 0x22f   : > { %v1069_v5 = vpop.trf.xlu0 }
 0x230   : > { %4729 = vmatmul.mubr.msk.bf16.gmra.mrb[24].mxu1 %vm1075_vm1, %v1056_v63 }
 0x231   : > { %1223 = vmatprep.mubr.bf16.mxu1 %v9043_v3 }
 0x233   : > { %v1070_v6 = vpop.trf.xlu0 }
 0x237   : > { %v1071_v7 = vpop.trf.xlu0 }
 0x238   : > { %4730 = vmatmul.mubr.msk.bf16.gmra.mrb[28].mxu1 %vm1075_vm1, %v1057_v0 }
 0x239   : > { %1233 = vmatprep.mubr.bf16.mxu1 %v9043_v3 }
 0x23b   : > { %v1072_v8 = vpop.trf.xlu0 }
 0x23f   : > { %v1073_v9 = vpop.trf.xlu0 }
 0x240   : > { %4731 = vmatmul.mubr.msk.bf16.gmra.mrb[32].mxu1 %vm1075_vm1, %v1058_v1 }
 0x241   : > { %1243 = vmatprep.mubr.bf16.mxu1 %v9043_v3 }
 0x243   : > { %v1074_v10 = vpop.trf.xlu0 }
 0x248   : > { %4732 = vmatmul.mubr.msk.bf16.gmra.mrb[36].mxu1 %vm1075_vm1, %v1067_v2 }
 0x249   : > { %1253 = vmatprep.mubr.bf16.mxu1 %v9043_v3 }
 0x250   : > { %4733 = vmatmul.mubr.msk.bf16.gmra.mrb[40].mxu1 %vm1075_vm1, %v1068_v4 }
 0x251   : > { %1263 = vmatprep.mubr.bf16.mxu1 %v9043_v3 }
 0x258   : > { %4734 = vmatmul.mubr.msk.bf16.gmra.mrb[44].mxu1 %vm1075_vm1, %v1069_v5 }
 0x259   : > { %1273 = vmatprep.mubr.bf16.mxu1 %v9043_v3 }
 0x260   : > { %4735 = vmatmul.mubr.msk.bf16.gmra.mrb[48].mxu1 %vm1075_vm1, %v1070_v6 }
 0x261   : > { %1283 = vmatprep.mubr.bf16.mxu1 %v9043_v3 }
 0x268   : > { %4736 = vmatmul.mubr.msk.bf16.gmra.mrb[52].mxu1 %vm1075_vm1, %v1071_v7 }
 0x269   : > { %1293 = vmatprep.mubr.bf16.mxu1 %v9043_v3 }
 0x270   : > { %4737 = vmatmul.mubr.msk.bf16.gmra.mrb[56].mxu1 %vm1075_vm1, %v1072_v8 }
 0x271   : > { %1303 = vmatprep.mubr.bf16.mxu1 %v9043_v3 }
 0x278   : > { %4738 = vmatmul.mubr.msk.bf16.gmra.mrb[60].mxu1 %vm1075_vm1, %v1073_v9 }
 0x279   : > { %1313 = vmatprep.mubr.bf16.mxu1 %v9043_v3 }
 0x280   : > { %4739 = vmatmul.mubr.msk.bf16.gmra.mrb[64].mxu1 %vm1075_vm1, %v1074_v10 }
 0x2db   : > { %v1165_v14 = vpop.f32.mrb[4].mxu1 }
 0x2dc   : > { %vm1388_vm2 = vcmp.gt.s32.totalorder %v1165_v14, 0  ;;  %v1167_v16 = vpop.f32.mrb[5].mxu1 }
 0x2dd   : > { %v1389_v17 = vsel %vm1388_vm2, %v1165_v14, 0  ;;  %vm1390_vm3 = vcmp.gt.s32.totalorder %v1167_v16, 0  ;;  %v1169_v19 = vpop.f32.mrb[6].mxu1 }
 0x2de   : > { %v1516_v20 = vand.u32 4294901760, %v1389_v17  ;;  %v1391_v21 = vsel %vm1390_vm3, %v1167_v16, 0  ;;  %vm1392_vm4 = vcmp.gt.s32.totalorder %v1169_v19, 0  ;;  %v1171_v22 = vpop.f32.mrb[7].mxu1 }
 0x2df   : > { %v1517_v23 = vand.u32 4294901760, %v1391_v21  ;;  %v1393_v24 = vsel %vm1392_vm4, %v1169_v19, 0  ;;  %vm1394_vm5 = vcmp.gt.s32.totalorder %v1171_v22, 0 }
 0x2e0   : > { %v5875_v25 = vor.u32 %v1516_v20, %v5870_v15  ;;  %v1518_v26 = vand.u32 4294901760, %v1393_v24  ;;  %v1395_v27 = vsel %vm1394_vm5, %v1171_v22, 0 }
 0x2e1   : > { %v5878_v28 = vor.u32 %v1517_v23, %v5872_v18  ;;  %v1519_v29 = vand.u32 4294901760, %v1395_v27 }
 0x2e2   : > { %9216 = vst [vmem:[#allocation15_spill] sm:$0xff] %v5875_v25  ;;  %v5881_v30 = vor.u32 %v1518_v26, %v5870_v15 }
 0x2e3   : > { %9217 = vst [vmem:[#allocation16_spill] sm:$0xff] %v5878_v28  ;;  %v5884_v31 = vor.u32 %v1519_v29, %v5872_v18  ;;  %v1175_v32 = vpop.f32.mrb[8].mxu1  ;;  %vm1646_vm6 = vcmp.gt.s32.totalorder %v5875_v25, %v5878_v28 }
 0x2e4   : > { %9218 = vst [vmem:[#allocation17_spill] sm:$0xff] %v5881_v30  ;;  %vm1396_vm7 = vcmp.gt.s32.totalorder %v1175_v32, 0  ;;  %v1177_v33 = vpop.f32.mrb[9].mxu1  ;;  %v5890_v34 = vsel %vm1646_vm6, %v5875_v25, %v5878_v28 }
 0x2e5   : > { %9219 = vst [vmem:[#allocation18_spill] sm:$0xff] %v5884_v31  ;;  %v1397_v35 = vsel %vm1396_vm7, %v1175_v32, 0  ;;  %vm1398_vm8 = vcmp.gt.s32.totalorder %v1177_v33, 0  ;;  %v1179_v36 = vpop.f32.mrb[10].mxu1  ;;  %v1649_v37 = vshra.s32 %v5890_v34, 16  ;;  %vm1662_vm9 = vcmp.gt.s32.totalorder %v5881_v30, %v5884_v31 }
 0x2e6   : > { %v1520_v38 = vand.u32 4294901760, %v1397_v35  ;;  %v1399_v39 = vsel %vm1398_vm8, %v1177_v33, 0  ;;  %vm1400_vm10 = vcmp.gt.s32.totalorder %v1179_v36, 0  ;;  %v1181_v40 = vpop.f32.mrb[11].mxu1  ;;  %v5897_v41 = vsel %vm1662_vm9, %v5881_v30, %v5884_v31 }
 0x2e7   : > { %v1521_v42 = vand.u32 4294901760, %v1399_v39  ;;  %v1401_v43 = vsel %vm1400_vm10, %v1179_v36, 0  ;;  %vm1402_vm11 = vcmp.gt.s32.totalorder %v1181_v40, 0  ;;  %v5899_v44 = vcvt.s32.f32 %v1649_v37 }
 0x2e8   : > { %v5902_v45 = vor.u32 %v1520_v38, %v5870_v15  ;;  %v1522_v46 = vand.u32 4294901760, %v1401_v43  ;;  %v1403_v47 = vsel %vm1402_vm11, %v1181_v40, 0  ;;  %v1665_v48 = vshra.s32 %v5897_v41, 16 }
 0x2e9   : > { %v5906_v49 = vor.u32 %v1521_v42, %v5872_v18  ;;  %v1523_v50 = vand.u32 4294901760, %v1403_v47  ;;  %1652 = vmax.xlane.f32.xlu1 %v5899_v44 }
 0x2ea   : > { %9220 = vst [vmem:[#allocation19_spill] sm:$0xff] %v5902_v45  ;;  %v5910_v51 = vor.u32 %v1522_v46, %v5870_v15  ;;  %v5915_v54 = vcvt.s32.f32 %v1665_v48 }
 0x2eb   : > { %9221 = vst [vmem:[#allocation20_spill] sm:$0xff] %v5906_v49  ;;  %v5913_v52 = vor.u32 %v1523_v50, %v5872_v18  ;;  %v1185_v53 = vpop.f32.mrb[12].mxu1  ;;  %vm1678_vm12 = vcmp.gt.s32.totalorder %v5902_v45, %v5906_v49 }
 0x2ec   : > { %9222 = vst [vmem:[#allocation21_spill] sm:$0xff] %v5910_v51  ;;  %vm1404_vm13 = vcmp.gt.s32.totalorder %v1185_v53, 0  ;;  %v1187_v55 = vpop.f32.mrb[13].mxu1  ;;  %v5921_v56 = vsel %vm1678_vm12, %v5902_v45, %v5906_v49 }
 0x2ed   : > { %9223 = vst [vmem:[#allocation22_spill] sm:$0xff] %v5913_v52  ;;  %v1405_v58 = vsel %vm1404_vm13, %v1185_v53, 0  ;;  %vm1406_vm14 = vcmp.gt.s32.totalorder %v1187_v55, 0  ;;  %1668 = vmax.xlane.f32.xlu1 %v5915_v54  ;;  %v1189_v59 = vpop.f32.mrb[14].mxu1  ;;  %v1681_v60 = vshra.s32 %v5921_v56, 16  ;;  %vm1694_vm15 = vcmp.gt.s32.totalorder %v5910_v51, %v5913_v52 }
 0x2ee   : > { %v1524_v61 = vand.u32 4294901760, %v1405_v58  ;;  %v1407_v62 = vsel %vm1406_vm14, %v1187_v55, 0  ;;  %vm1408_vm1 = vcmp.gt.s32.totalorder %v1189_v59, 0  ;;  %v1191_v63 = vpop.f32.mrb[15].mxu1  ;;  %v5929_v0 = vsel %vm1694_vm15, %v5910_v51, %v5913_v52 }
 0x2ef   : > { %v1525_v1 = vand.u32 4294901760, %v1407_v62  ;;  %v1409_v2 = vsel %vm1408_vm1, %v1189_v59, 0  ;;  %vm1410_vm2 = vcmp.gt.s32.totalorder %v1191_v63, 0  ;;  %v5931_v4 = vcvt.s32.f32 %v1681_v60 }
 0x2f0   : > { %v5934_v5 = vor.u32 %v1524_v61, %v5870_v15  ;;  %v1526_v6 = vand.u32 4294901760, %v1409_v2  ;;  %v1411_v7 = vsel %vm1410_vm2, %v1191_v63, 0  ;;  %v1697_v8 = vshra.s32 %v5929_v0, 16 }
 0x2f1   : > { %v5938_v9 = vor.u32 %v1525_v1, %v5872_v18  ;;  %v1527_v10 = vand.u32 4294901760, %v1411_v7  ;;  %1684 = vmax.xlane.f32.xlu1 %v5931_v4 }
 0x2f2   : > { %9224 = vst [vmem:[#allocation23_spill] sm:$0xff] %v5934_v5  ;;  %v5942_v11 = vor.u32 %v1526_v6, %v5870_v15  ;;  %v5947_v14 = vcvt.s32.f32 %v1697_v8 }
 0x2f3   : > { %9225 = vst [vmem:[#allocation24_spill] sm:$0xff] %v5938_v9  ;;  %v5945_v12 = vor.u32 %v1527_v10, %v5872_v18  ;;  %v1195_v13 = vpop.f32.mrb[16].mxu1  ;;  %vm1710_vm3 = vcmp.gt.s32.totalorder %v5934_v5, %v5938_v9 }
 0x2f4   : > { %9226 = vst [vmem:[#allocation25_spill] sm:$0xff] %v5942_v11  ;;  %vm1412_vm4 = vcmp.gt.s32.totalorder %v1195_v13, 0  ;;  %v1197_v16 = vpop.f32.mrb[17].mxu1  ;;  %v5953_v17 = vsel %vm1710_vm3, %v5934_v5, %v5938_v9 }
 0x2f5   : > { %9227 = vst [vmem:[#allocation26_spill] sm:$0xff] %v5945_v12  ;;  %v1413_v19 = vsel %vm1412_vm4, %v1195_v13, 0  ;;  %vm1414_vm5 = vcmp.gt.s32.totalorder %v1197_v16, 0  ;;  %1700 = vmax.xlane.f32.xlu1 %v5947_v14  ;;  %v1199_v20 = vpop.f32.mrb[18].mxu1  ;;  %v1713_v21 = vshra.s32 %v5953_v17, 16  ;;  %vm1726_vm6 = vcmp.gt.s32.totalorder %v5942_v11, %v5945_v12 }
 0x2f6   : > { %v1528_v22 = vand.u32 4294901760, %v1413_v19  ;;  %v1415_v23 = vsel %vm1414_vm5, %v1197_v16, 0  ;;  %vm1416_vm7 = vcmp.gt.s32.totalorder %v1199_v20, 0  ;;  %v1201_v24 = vpop.f32.mrb[19].mxu1  ;;  %v5961_v26 = vsel %vm1726_vm6, %v5942_v11, %v5945_v12 }
 0x2f7   : > { %v1529_v27 = vand.u32 4294901760, %v1415_v23  ;;  %v1417_v29 = vsel %vm1416_vm7, %v1199_v20, 0  ;;  %vm1418_vm8 = vcmp.gt.s32.totalorder %v1201_v24, 0  ;;  %v5963_v32 = vcvt.s32.f32 %v1713_v21 }
 0x2f8   : > { %v5966_v33 = vor.u32 %v1528_v22, %v5870_v15  ;;  %v1530_v35 = vand.u32 4294901760, %v1417_v29  ;;  %v1419_v36 = vsel %vm1418_vm8, %v1201_v24, 0  ;;  %v1729_v37 = vshra.s32 %v5961_v26, 16 }
 0x2f9   : > { %v5970_v38 = vor.u32 %v1529_v27, %v5872_v18  ;;  %v1531_v39 = vand.u32 4294901760, %v1419_v36  ;;  %1716 = vmax.xlane.f32.xlu1 %v5963_v32 }
 0x2fa   : > { %9228 = vst [vmem:[#allocation27_spill] sm:$0xff] %v5966_v33  ;;  %v5974_v40 = vor.u32 %v1530_v35, %v5870_v15  ;;  %v5979_v46 = vcvt.s32.f32 %v1729_v37 }
 0x2fb   : > { %9229 = vst [vmem:[#allocation28_spill] sm:$0xff] %v5970_v38  ;;  %v5977_v42 = vor.u32 %v1531_v39, %v5872_v18  ;;  %v1205_v43 = vpop.f32.mrb[20].mxu1  ;;  %vm1742_vm9 = vcmp.gt.s32.totalorder %v5966_v33, %v5970_v38 }
 0x2fc   : > { %9230 = vst [vmem:[#allocation29_spill] sm:$0xff] %v5974_v40  ;;  %vm1420_vm10 = vcmp.gt.s32.totalorder %v1205_v43, 0  ;;  %v1207_v47 = vpop.f32.mrb[21].mxu1  ;;  %v5985_v48 = vsel %vm1742_vm9, %v5966_v33, %v5970_v38 }
 0x2fd   : > { %9231 = vst [vmem:[#allocation30_spill] sm:$0xff] %v5977_v42  ;;  %v1421_v50 = vsel %vm1420_vm10, %v1205_v43, 0  ;;  %vm1422_vm11 = vcmp.gt.s32.totalorder %v1207_v47, 0  ;;  %1732 = vmax.xlane.f32.xlu1 %v5979_v46  ;;  %v1209_v53 = vpop.f32.mrb[22].mxu1  ;;  %v1745_v55 = vshra.s32 %v5985_v48, 16  ;;  %vm1758_vm12 = vcmp.gt.s32.totalorder %v5974_v40, %v5977_v42 }
 0x2fe   : > { %v1532_v58 = vand.u32 4294901760, %v1421_v50  ;;  %v1423_v59 = vsel %vm1422_vm11, %v1207_v47, 0  ;;  %vm1424_vm13 = vcmp.gt.s32.totalorder %v1209_v53, 0  ;;  %v1211_v60 = vpop.f32.mrb[23].mxu1  ;;  %v5993_v61 = vsel %vm1758_vm12, %v5974_v40, %v5977_v42 }
 0x2ff   : > { %v1533_v62 = vand.u32 4294901760, %v1423_v59  ;;  %v1425_v63 = vsel %vm1424_vm13, %v1209_v53, 0  ;;  %vm1426_vm14 = vcmp.gt.s32.totalorder %v1211_v60, 0  ;;  %v5995_v1 = vcvt.s32.f32 %v1745_v55 }
 0x300   : > { %v5998_v2 = vor.u32 %v1532_v58, %v5870_v15  ;;  %v1534_v6 = vand.u32 4294901760, %v1425_v63  ;;  %v1427_v7 = vsel %vm1426_vm14, %v1211_v60, 0  ;;  %v1761_v8 = vshra.s32 %v5993_v61, 16 }
 0x301   : > { %v6002_v10 = vor.u32 %v1533_v62, %v5872_v18  ;;  %v1535_v13 = vand.u32 4294901760, %v1427_v7  ;;  %1748 = vmax.xlane.f32.xlu1 %v5995_v1 }
 0x302   : > { %9232 = vst [vmem:[#allocation31_spill] sm:$0xff] %v5998_v2  ;;  %v6006_v16 = vor.u32 %v1534_v6, %v5870_v15  ;;  %v6011_v21 = vcvt.s32.f32 %v1761_v8 }
 0x303   : > { %9233 = vst [vmem:[#allocation32_spill] sm:$0xff] %v6002_v10  ;;  %v6009_v19 = vor.u32 %v1535_v13, %v5872_v18  ;;  %v1215_v20 = vpop.f32.mrb[24].mxu1  ;;  %vm1774_vm15 = vcmp.gt.s32.totalorder %v5998_v2, %v6002_v10 }
 0x304   : > { %9234 = vst [vmem:[#allocation33_spill] sm:$0xff] %v6006_v16  ;;  %vm1428_vm1 = vcmp.gt.s32.totalorder %v1215_v20, 0  ;;  %v1217_v22 = vpop.f32.mrb[25].mxu1  ;;  %v6017_v23 = vsel %vm1774_vm15, %v5998_v2, %v6002_v10 }
 0x305   : > { %9235 = vst [vmem:[#allocation34_spill] sm:$0xff] %v6009_v19  ;;  %v1429_v24 = vsel %vm1428_vm1, %v1215_v20, 0  ;;  %vm1430_vm2 = vcmp.gt.s32.totalorder %v1217_v22, 0  ;;  %1764 = vmax.xlane.f32.xlu1 %v6011_v21  ;;  %v1219_v27 = vpop.f32.mrb[26].mxu1  ;;  %v1777_v29 = vshra.s32 %v6017_v23, 16  ;;  %vm1790_vm3 = vcmp.gt.s32.totalorder %v6006_v16, %v6009_v19 }
 0x306   : > { %v1536_v35 = vand.u32 4294901760, %v1429_v24  ;;  %v1431_v36 = vsel %vm1430_vm2, %v1217_v22, 0  ;;  %vm1432_vm4 = vcmp.gt.s32.totalorder %v1219_v27, 0  ;;  %v1221_v37 = vpop.f32.mrb[27].mxu1  ;;  %v6025_v39 = vsel %vm1790_vm3, %v6006_v16, %v6009_v19 }
 0x307   : > { %v1537_v43 = vand.u32 4294901760, %v1431_v36  ;;  %v1433_v47 = vsel %vm1432_vm4, %v1219_v27, 0  ;;  %vm1434_vm5 = vcmp.gt.s32.totalorder %v1221_v37, 0  ;;  %v6027_v50 = vcvt.s32.f32 %v1777_v29 }
 0x308   : > { %v6030_v53 = vor.u32 %v1536_v35, %v5870_v15  ;;  %v1538_v55 = vand.u32 4294901760, %v1433_v47  ;;  %v1435_v58 = vsel %vm1434_vm5, %v1221_v37, 0  ;;  %v1793_v59 = vshra.s32 %v6025_v39, 16 }
 0x309   : > { %v6034_v60 = vor.u32 %v1537_v43, %v5872_v18  ;;  %v1539_v62 = vand.u32 4294901760, %v1435_v58  ;;  %1780 = vmax.xlane.f32.xlu1 %v6027_v50 }
 0x30a   : > { %9236 = vst [vmem:[#allocation35_spill] sm:$0xff] %v6030_v53  ;;  %v6038_v63 = vor.u32 %v1538_v55, %v5870_v15  ;;  %v6040_v6 = vcvt.s32.f32 %v1793_v59 }
 0x30b   : > { %9237 = vst [vmem:[#allocation36_spill] sm:$0xff] %v6034_v60  ;;  %v6043_v7 = vor.u32 %v1539_v62, %v5872_v18  ;;  %v1225_v8 = vpop.f32.mrb[28].mxu1  ;;  %vm1806_vm6 = vcmp.gt.s32.totalorder %v6030_v53, %v6034_v60 }
 0x30c   : > { %9238 = vst [vmem:[#allocation37_spill] sm:$0xff] %v6038_v63  ;;  %vm1436_vm7 = vcmp.gt.s32.totalorder %v1225_v8, 0  ;;  %1796 = vmax.xlane.f32.xlu0 %v6040_v6  ;;  %v1227_v13 = vpop.f32.mrb[29].mxu1  ;;  %v6050_v20 = vsel %vm1806_vm6, %v6030_v53, %v6034_v60 }
 0x30d   : > { %9239 = vst [vmem:[#allocation38_spill] sm:$0xff] %v6043_v7  ;;  %v1437_v22 = vsel %vm1436_vm7, %v1225_v8, 0  ;;  %vm1438_vm8 = vcmp.gt.s32.totalorder %v1227_v13, 0  ;;  %v1229_v24 = vpop.f32.mrb[30].mxu1  ;;  %v1809_v27 = vshra.s32 %v6050_v20, 16  ;;  %vm1822_vm9 = vcmp.gt.s32.totalorder %v6038_v63, %v6043_v7 }
 0x30e   : > { %v1540_v29 = vand.u32 4294901760, %v1437_v22  ;;  %v1439_v35 = vsel %vm1438_vm8, %v1227_v13, 0  ;;  %vm1440_vm10 = vcmp.gt.s32.totalorder %v1229_v24, 0  ;;  %v1231_v36 = vpop.f32.mrb[31].mxu1  ;;  %v6057_v37 = vsel %vm1822_vm9, %v6038_v63, %v6043_v7 }
 0x30f   : > { %v1541_v43 = vand.u32 4294901760, %v1439_v35  ;;  %v1441_v47 = vsel %vm1440_vm10, %v1229_v24, 0  ;;  %vm1442_vm11 = vcmp.gt.s32.totalorder %v1231_v36, 0  ;;  %v6059_v55 = vcvt.s32.f32 %v1809_v27 }
 0x310   : > { %v6062_v58 = vor.u32 %v1540_v29, %v5870_v15  ;;  %v1542_v59 = vand.u32 4294901760, %v1441_v47  ;;  %v1443_v62 = vsel %vm1442_vm11, %v1231_v36, 0  ;;  %v1825_v8 = vshra.s32 %v6057_v37, 16 }
 0x311   : > { %v6066_v13 = vor.u32 %v1541_v43, %v5872_v18  ;;  %v1543_v22 = vand.u32 4294901760, %v1443_v62  ;;  %1812 = vmax.xlane.f32.xlu1 %v6059_v55 }
 0x312   : > { %9240 = vst [vmem:[#allocation39_spill] sm:$0xff] %v6062_v58  ;;  %v6070_v3 = vor.u32 %v1542_v59, %v5870_v15  ;;  %v6072_v24 = vcvt.s32.f32 %v1825_v8 }
 0x313   : > { %9241 = vst [vmem:[#allocation40_spill] sm:$0xff] %v6066_v13  ;;  %v6075_v27 = vor.u32 %v1543_v22, %v5872_v18  ;;  %v1235_v29 = vpop.f32.mrb[32].mxu1  ;;  %vm1838_vm12 = vcmp.gt.s32.totalorder %v6062_v58, %v6066_v13 }
 0x314   : > { %9242 = vst [vmem:[#allocation41_spill] sm:$0xff] %v6070_v3  ;;  %vm1444_vm13 = vcmp.gt.s32.totalorder %v1235_v29, 0  ;;  %v1237_v35 = vpop.f32.mrb[33].mxu1  ;;  %v6081_v36 = vsel %vm1838_vm12, %v6062_v58, %v6066_v13 }
 0x315   : > { %9243 = vst [vmem:[#allocation42_spill] sm:$0xff] %v6075_v27  ;;  %v1445_v43 = vsel %vm1444_vm13, %v1235_v29, 0  ;;  %vm1446_vm14 = vcmp.gt.s32.totalorder %v1237_v35, 0  ;;  %1828 = vmax.xlane.f32.xlu1 %v6072_v24  ;;  %v1239_v47 = vpop.f32.mrb[34].mxu1  ;;  %v1841_v59 = vshra.s32 %v6081_v36, 16  ;;  %vm1854_vm15 = vcmp.gt.s32.totalorder %v6070_v3, %v6075_v27 }
 0x316   : > { %v1544_v62 = vand.u32 4294901760, %v1445_v43  ;;  %v1447_v8 = vsel %vm1446_vm14, %v1237_v35, 0  ;;  %vm1448_vm1 = vcmp.gt.s32.totalorder %v1239_v47, 0  ;;  %v1241_v22 = vpop.f32.mrb[35].mxu1  ;;  %v6089_v57 = vsel %vm1854_vm15, %v6070_v3, %v6075_v27 }
 0x317   : > { %v1545_v13 = vand.u32 4294901760, %v1447_v8  ;;  %v1449_v58 = vsel %vm1448_vm1, %v1239_v47, 0  ;;  %vm1450_vm2 = vcmp.gt.s32.totalorder %v1241_v22, 0  ;;  %v6091_v29 = vcvt.s32.f32 %v1841_v59 }
 0x318   : > { %v6094_v7 = vor.u32 %v1544_v62, %v5870_v15  ;;  %v1546_v63 = vand.u32 4294901760, %v1449_v58  ;;  %v1451_v60 = vsel %vm1450_vm2, %v1241_v22, 0  ;;  %v1857_v53 = vshra.s32 %v6089_v57, 16 }
 0x319   : > { %9244 = vst [vmem:[#allocation43_spill] sm:$0xff] %v6091_v29  ;;  %v6098_v35 = vor.u32 %v1545_v13, %v5872_v18  ;;  %v1547_v43 = vand.u32 4294901760, %v1451_v60  ;;  %1844 = vmax.xlane.f32.xlu1 %v6091_v29 }
 0x31a   : > { %9245 = vst [vmem:[#allocation44_spill] sm:$0xff] %v6094_v7  ;;  %v6102_v27 = vor.u32 %v1546_v63, %v5870_v15  ;;  %v6104_v47 = vcvt.s32.f32 %v1857_v53 }
 0x31b   : > { %9246 = vst [vmem:[#allocation45_spill] sm:$0xff] %v6098_v35  ;;  %v6107_v59 = vor.u32 %v1547_v43, %v5872_v18  ;;  %v1245_v62 = vpop.f32.mrb[36].mxu1  ;;  %vm1870_vm3 = vcmp.gt.s32.totalorder %v6094_v7, %v6098_v35 }
 0x31c   : > { %9247 = vst [vmem:[#allocation46_spill] sm:$0xff] %v6102_v27  ;;  %9248 = vst [vmem:[#allocation47_spill] sm:$0xff] %v6104_v47  ;;  %vm1452_vm4 = vcmp.gt.s32.totalorder %v1245_v62, 0  ;;  %v1247_v58 = vpop.f32.mrb[37].mxu1  ;;  %v6113_v13 = vsel %vm1870_vm3, %v6094_v7, %v6098_v35 }
 0x31d   : > { %9249 = vst [vmem:[#allocation48_spill] sm:$0xff] %v6107_v59  ;;  %9250 = vst [vmem:[#allocation49_spill] sm:$0xff] %v6113_v13  ;;  %v1453_v60 = vsel %vm1452_vm4, %v1245_v62, 0  ;;  %vm1454_vm5 = vcmp.gt.s32.totalorder %v1247_v58, 0  ;;  %1860 = vmax.xlane.f32.xlu1 %v6104_v47  ;;  %v1249_v63 = vpop.f32.mrb[38].mxu1  ;;  %v1873_v53 = vshra.s32 %v6113_v13, 16  ;;  %vm1886_vm6 = vcmp.gt.s32.totalorder %v6102_v27, %v6107_v59 }
 0x31e   : > { %v1548_v8 = vand.u32 4294901760, %v1453_v60  ;;  %v1455_v22 = vsel %vm1454_vm5, %v1247_v58, 0  ;;  %vm1456_vm7 = vcmp.gt.s32.totalorder %v1249_v63, 0  ;;  %v1251_v43 = vpop.f32.mrb[39].mxu1  ;;  %v6121_v3 = vsel %vm1886_vm6, %v6102_v27, %v6107_v59 }
 0x31f   : > { %9251 = vst [vmem:[#allocation50_spill] sm:$0xff] %v6121_v3  ;;  %v1549_v35 = vand.u32 4294901760, %v1455_v22  ;;  %v1457_v7 = vsel %vm1456_vm7, %v1249_v63, 0  ;;  %vm1458_vm8 = vcmp.gt.s32.totalorder %v1251_v43, 0  ;;  %v6123_v62 = vcvt.s32.f32 %v1873_v53 }
 0x320   : > { %v6126_v19 = vor.u32 %v1548_v8, %v5870_v15  ;;  %v1550_v16 = vand.u32 4294901760, %v1457_v7  ;;  %v1459_v10 = vsel %vm1458_vm8, %v1251_v43, 0  ;;  %v1889_v2 = vshra.s32 %v6121_v3, 16 }
 0x321   : > { %9252 = vst [vmem:[#allocation51_spill] sm:$0xff] %v6123_v62  ;;  %v6130_v58 = vor.u32 %v1549_v35, %v5872_v18  ;;  %v1551_v60 = vand.u32 4294901760, %v1459_v10  ;;  %1876 = vmax.xlane.f32.xlu1 %v6123_v62 }
 0x322   : > { %9253 = vst [vmem:[#allocation52_spill] sm:$0xff] %v6126_v19  ;;  %v6134_v59 = vor.u32 %v1550_v16, %v5870_v15  ;;  %v6136_v63 = vcvt.s32.f32 %v1889_v2 }
 0x323   : > { %9254 = vst [vmem:[#allocation53_spill] sm:$0xff] %v6130_v58  ;;  %v6139_v53 = vor.u32 %v1551_v60, %v5872_v18  ;;  %v1255_v8 = vpop.f32.mrb[40].mxu1  ;;  %vm1902_vm9 = vcmp.gt.s32.totalorder %v6126_v19, %v6130_v58 }
 0x324   : > { %9255 = vst [vmem:[#allocation54_spill] sm:$0xff] %v6134_v59  ;;  %9256 = vst [vmem:[#allocation55_spill] sm:$0xff] %v6136_v63  ;;  %vm1460_vm10 = vcmp.gt.s32.totalorder %v1255_v8, 0  ;;  %v1257_v7 = vpop.f32.mrb[41].mxu1  ;;  %v6145_v35 = vsel %vm1902_vm9, %v6126_v19, %v6130_v58 }
 0x325   : > { %9257 = vst [vmem:[#allocation56_spill] sm:$0xff] %v6139_v53  ;;  %9258 = vst [vmem:[#allocation57_spill] sm:$0xff] %v6145_v35  ;;  %v1461_v10 = vsel %vm1460_vm10, %v1255_v8, 0  ;;  %vm1462_vm11 = vcmp.gt.s32.totalorder %v1257_v7, 0  ;;  %1892 = vmax.xlane.f32.xlu1 %v6136_v63  ;;  %v1259_v16 = vpop.f32.mrb[42].mxu1  ;;  %v1905_v2 = vshra.s32 %v6145_v35, 16  ;;  %vm1918_vm12 = vcmp.gt.s32.totalorder %v6134_v59, %v6139_v53 }
 0x326   : > { %v1552_v22 = vand.u32 4294901760, %v1461_v10  ;;  %v1463_v43 = vsel %vm1462_vm11, %v1257_v7, 0  ;;  %vm1464_vm13 = vcmp.gt.s32.totalorder %v1259_v16, 0  ;;  %v1261_v60 = vpop.f32.mrb[43].mxu1  ;;  %v6153_v27 = vsel %vm1918_vm12, %v6134_v59, %v6139_v53 }
 0x327   : > { %9259 = vst [vmem:[#allocation58_spill] sm:$0xff] %v6153_v27  ;;  %v1553_v58 = vand.u32 4294901760, %v1463_v43  ;;  %v1465_v19 = vsel %vm1464_vm13, %v1259_v16, 0  ;;  %vm1466_vm14 = vcmp.gt.s32.totalorder %v1261_v60, 0  ;;  %v6155_v8 = vcvt.s32.f32 %v1905_v2 }
 0x328   : > { %v6158_v42 = vor.u32 %v1552_v22, %v5870_v15  ;;  %v1554_v40 = vand.u32 4294901760, %v1465_v19  ;;  %v1467_v38 = vsel %vm1466_vm14, %v1261_v60, 0  ;;  %v1921_v33 = vshra.s32 %v6153_v27, 16 }
 0x329   : > { %9260 = vst [vmem:[#allocation59_spill] sm:$0xff] %v6155_v8  ;;  %v6162_v7 = vor.u32 %v1553_v58, %v5872_v18  ;;  %v1555_v10 = vand.u32 4294901760, %v1467_v38  ;;  %1908 = vmax.xlane.f32.xlu1 %v6155_v8 }
 0x32a   : > { %9261 = vst [vmem:[#allocation60_spill] sm:$0xff] %v6158_v42  ;;  %v6166_v53 = vor.u32 %v1554_v40, %v5870_v15  ;;  %v6168_v16 = vcvt.s32.f32 %v1921_v33 }
 0x32b   : > { %9262 = vst [vmem:[#allocation61_spill] sm:$0xff] %v6162_v7  ;;  %v6171_v2 = vor.u32 %v1555_v10, %v5872_v18  ;;  %vm1934_vm15 = vcmp.gt.s32.totalorder %v6158_v42, %v6162_v7  ;;  %v1265_v19 = vpop.f32.mrb[44].mxu1 }
 0x32c   : > { %9263 = vst [vmem:[#allocation62_spill] sm:$0xff] %v6166_v53  ;;  %9264 = vst [vmem:[#allocation63_spill] sm:$0xff] %v6168_v16  ;;  %v6177_v22 = vsel %vm1934_vm15, %v6158_v42, %v6162_v7  ;;  %v1267_v58 = vpop.f32.mrb[45].mxu1  ;;  %vm1468_vm2 = vcmp.gt.s32.totalorder %v1265_v19, 0 }
 0x32d   : > { %9265 = vst [vmem:[#allocation64_spill] sm:$0xff] %v6171_v2  ;;  %9266 = vst [vmem:[#allocation65_spill] sm:$0xff] %v6177_v22  ;;  %1924 = vmax.xlane.f32.xlu1 %v6168_v16  ;;  %v1937_v38 = vshra.s32 %v6177_v22, 16  ;;  %vm1950_vm1 = vcmp.gt.s32.totalorder %v6166_v53, %v6171_v2  ;;  %v1269_v33 = vpop.f32.mrb[46].mxu1  ;;  %vm1470_vm3 = vcmp.gt.s32.totalorder %v1267_v58, 0 }
 0x32e   : > { %v6185_v40 = vsel %vm1950_vm1, %v6166_v53, %v6171_v2  ;;  %v1271_v43 = vpop.f32.mrb[47].mxu1  ;;  %v1471_v16 = vsel %vm1470_vm3, %v1267_v58, 0  ;;  %vm1472_vm4 = vcmp.gt.s32.totalorder %v1269_v33, 0 }
 0x32f   : > { %9267 = vst [vmem:[#allocation66_spill] sm:$0xff] %v6185_v40  ;;  %v6187_v60 = vcvt.s32.f32 %v1937_v38  ;;  %v1953_v10 = vshra.s32 %v6185_v40, 16  ;;  %v1469_v40 = vsel %vm1468_vm2, %v1265_v19, 0  ;;  %vm1474_vm5 = vcmp.gt.s32.totalorder %v1271_v43, 0 }
 0x330   : > { %v1556_v22 = vand.u32 4294901760, %v1469_v40  ;;  %v1557_v8 = vand.u32 4294901760, %v1471_v16  ;;  %v1473_v27 = vsel %vm1472_vm4, %v1269_v33, 0  ;;  %v1475_v63 = vsel %vm1474_vm5, %v1271_v43, 0 }
 0x331   : > { %9268 = vst [vmem:[#allocation67_spill] sm:$0xff] %v6187_v60  ;;  %1940 = vmax.xlane.f32.xlu1 %v6187_v60  ;;  %v6191_v7 = vcvt.s32.f32 %v1953_v10  ;;  %v1558_v13 = vand.u32 4294901760, %v1473_v27  ;;  %v1559_v29 = vand.u32 4294901760, %v1475_v63 }
 0x332   : > { %v6219_v3 = vor.u32 %v1556_v22, %v5870_v15  ;;  %v6222_v47 = vor.u32 %v1557_v8, %v5872_v18 }
 0x333   : > { %9269 = vst [vmem:[#allocation68_spill] sm:$0xff] %v6191_v7  ;;  %v1275_v42 = vpop.f32.mrb[48].mxu1 }
 0x334   : > { %v1277_v59 = vpop.f32.mrb[49].mxu1  ;;  %vm1476_vm6 = vcmp.gt.s32.totalorder %v1275_v42, 0  ;;  %vm1966_vm10 = vcmp.gt.s32.totalorder %v6219_v3, %v6222_v47 }
 0x335   : > { %1956 = vmax.xlane.f32.xlu1 %v6191_v7  ;;  %v1279_v12 = vpop.f32.mrb[50].mxu1  ;;  %vm1478_vm7 = vcmp.gt.s32.totalorder %v1277_v59, 0  ;;  %v1477_v35 = vsel %vm1476_vm6, %v1275_v42, 0  ;;  %v6227_v42 = vor.u32 %v1558_v13, %v5870_v15 }
 0x336   : > { %v1281_v11 = vpop.f32.mrb[51].mxu1  ;;  %v1479_v62 = vsel %vm1478_vm7, %v1277_v59, 0  ;;  %vm1480_vm8 = vcmp.gt.s32.totalorder %v1279_v12, 0  ;;  %v1560_v19 = vand.u32 4294901760, %v1477_v35  ;;  %v6230_v59 = vor.u32 %v1559_v29, %v5872_v18 }
 0x337   : > { %vm1482_vm9 = vcmp.gt.s32.totalorder %v1281_v11, 0  ;;  %v1561_v58 = vand.u32 4294901760, %v1479_v62  ;;  %v1481_v40 = vsel %vm1480_vm8, %v1279_v12, 0  ;;  %9270 = vst [vmem:[#allocation69_spill] sm:$0xff] %v6227_v42  ;;  %v1648_v12 = vand.u32 65535, %v5890_v34 }
 0x338   : > { %v1483_v16 = vsel %vm1482_vm9, %v1281_v11, 0  ;;  %9271 = vst [vmem:[#allocation70_spill] sm:$0xff] %v6230_v59  ;;  %v6233_v27 = vor.u32 %v1560_v19, %v5870_v15  ;;  %v1562_v11 = vand.u32 4294901760, %v1481_v40  ;;  %v6241_v35 = vsel %vm1966_vm10, %v6219_v3, %v6222_v47 }
 0x339   : > { %v6236_v63 = vor.u32 %v1561_v58, %v5872_v18  ;;  %v1563_v62 = vand.u32 4294901760, %v1483_v16  ;;  %v1664_v29 = vand.u32 65535, %v5897_v41  ;;  %vm1982_vm15 = vcmp.gt.s32.totalorder %v6227_v42, %v6230_v59 }
 0x33a   : > { %9272 = vst [vmem:[#allocation71_spill] sm:$0xff] %v6233_v27  ;;  %v1650_v22 = vcvt.s32.f32 %v1648_v12  ;;  %v1969_v33 = vshra.s32 %v6241_v35, 16  ;;  %v1680_v34 = vand.u32 65535, %v5921_v56  ;;  %v6253_v40 = vor.u32 %v1562_v11, %v5870_v15 }
 0x33b   : > { %v1285_v9 = vpop.f32.mrb[52].mxu1  ;;  %9273 = vst [vmem:[#allocation72_spill] sm:$0xff] %v6236_v63  ;;  %vm1998_vm1 = vcmp.gt.s32.totalorder %v6233_v27, %v6236_v63  ;;  %v6256_v41 = vor.u32 %v1563_v62, %v5872_v18  ;;  %v6262_v56 = vsel %vm1982_vm15, %v6227_v42, %v6230_v59  ;;  %v1696_v12 = vand.u32 65535, %v5929_v0 }
 0x33c   : > { %v1287_v5 = vpop.f32.mrb[53].mxu1  ;;  %vm1484_vm11 = vcmp.gt.s32.totalorder %v1285_v9, 0  ;;  %9274 = vst [vmem:[#allocation73_spill] sm:$0xff] %v6253_v40 }
 0x33d   : > { %v1289_v52 = vpop.f32.mrb[54].mxu1  ;;  %vm1486_vm12 = vcmp.gt.s32.totalorder %v1287_v5, 0  ;;  %v1485_v13 = vsel %vm1484_vm11, %v1285_v9, 0  ;;  %9275 = vst [vmem:[#allocation74_spill] sm:$0xff] %v6256_v41  ;;  %vm2014_vm6 = vcmp.gt.s32.totalorder %v6253_v40, %v6256_v41 }
 0x33e   : > { %v1291_v2 = vpop.f32.mrb[55].mxu1  ;;  %v1487_v8 = vsel %vm1486_vm12, %v1287_v5, 0  ;;  %vm1488_vm13 = vcmp.gt.s32.totalorder %v1289_v52, 0  ;;  %v1564_v19 = vand.u32 4294901760, %v1485_v13  ;;  %v1666_v13 = vcvt.s32.f32 %v1664_v29 }
 0x33f   : > { %vm1490_vm14 = vcmp.gt.s32.totalorder %v1291_v2, 0  ;;  %v1565_v9 = vand.u32 4294901760, %v1487_v8  ;;  %v1489_v5 = vsel %vm1488_vm13, %v1289_v52, 0  ;;  %v6267_v52 = vcvt.s32.f32 %v1969_v33 }
 0x340   : > { %v1491_v58 = vsel %vm1490_vm14, %v1291_v2, 0  ;;  %v1566_v2 = vand.u32 4294901760, %v1489_v5  ;;  %v6279_v0 = vor.u32 %v1564_v19, %v5870_v15  ;;  %v1682_v19 = vcvt.s32.f32 %v1680_v34 }
 0x341   : > { %v1567_v11 = vand.u32 4294901760, %v1491_v58  ;;  %v6282_v8 = vor.u32 %v1565_v9, %v5872_v18 }
 0x342   : > { %9276 = vst [vmem:[#allocation75_spill] sm:$0xff] %v6279_v0 }
 0x343   : > { %v6194_v53 = vpop.f32.mrb[56].mxu1  ;;  %9277 = vst [vmem:[#allocation76_spill] sm:$0xff] %v6282_v8  ;;  %vm2030_vm9 = vcmp.gt.s32.totalorder %v6279_v0, %v6282_v8 }
 0x344   : > { %v6196_v38 = vpop.f32.mrb[57].mxu1  ;;  %vm1492_vm3 = vcmp.gt.s32.totalorder %v6194_v53, 0 }
 0x345   : > { %v6198_v51 = vpop.f32.mrb[58].mxu1  ;;  %vm1494_vm4 = vcmp.gt.s32.totalorder %v6196_v38, 0  ;;  %v1493_v33 = vsel %vm1492_vm3, %v6194_v53, 0  ;;  %v6299_v53 = vor.u32 %v1567_v11, %v5872_v18 }
 0x346   : > { %v6200_v49 = vpop.f32.mrb[59].mxu1  ;;  %v1495_v5 = vsel %vm1494_vm4, %v6196_v38, 0  ;;  %vm1496_vm7 = vcmp.gt.s32.totalorder %v6198_v51, 0  ;;  %v1698_v38 = vcvt.s32.f32 %v1696_v12 }
 0x347   : > { %vm1498_vm8 = vcmp.gt.s32.totalorder %v6200_v49, 0  ;;  %9279 = vst [vmem:[#allocation78_spill] sm:$0xff] %v6299_v53 }
 0x348   : > { %v1499_v12 = vsel %vm1498_vm8, %v6200_v49, 0 }
 0x34b   : > { %v6202_v10 = vpop.f32.mrb[60].mxu1 }
 0x34c   : > { %v6204_v45 = vpop.f32.mrb[61].mxu1  ;;  %vm1500_vm11 = vcmp.gt.s32.totalorder %v6202_v10, 0 }
 0x34d   : > { %v6206_v31 = vpop.f32.mrb[62].mxu1  ;;  %vm1502_vm12 = vcmp.gt.s32.totalorder %v6204_v45, 0 }
 0x34e   : > { %v6208_v30 = vpop.f32.mrb[63].mxu1  ;;  %vm1504_vm15 = vcmp.gt.s32.totalorder %v6206_v31, 0 }
 0x353   : > { %v6210_v28 = vpop.f32.mrb[64].mxu1 }
 0x354   : > { %v6212_v25 = vpop.f32.mrb[65].mxu1  ;;  %vm1508_vm4 = vcmp.gt.s32.totalorder %v6210_v28, 0 }
 0x355   : > { %v6214_v7 = vpop.f32.mrb[66].mxu1 }
 0x356   : > { %v6216_v60 = vpop.f32.mrb[67].mxu1  ;;  %vm1512_vm8 = vcmp.gt.s32.totalorder %v6214_v7, 0 }
 0x376   : > { %v6250_v43 = vpop.xlane.xlu1 %1652 }
 0x377   : > { %vm1654_vm2 = vcmp.eq.f32.partialorder %v5899_v44, %v6250_v43  ;;  %v6274_v44 = vsel %vm1998_vm1, %v6233_v27, %v6236_v63  ;;  %v6305_v63 = vsel %vm2014_vm6, %v6253_v40, %v6256_v41  ;;  %vm1506_vm1 = vcmp.gt.s32.totalorder %v6208_v30, 0  ;;  %v9304_v41 = vld [vmem:[#allocation67_spill] sm:$0xff] }
 0x378   : > { %v1655_v16 = vsel %vm1654_vm2, %v1650_v22, -inf  ;;  %v1985_v22 = vshra.s32 %v6262_v56, 16  ;;  %v2001_v29 = vshra.s32 %v6274_v44, 16 }
 0x379   : > { %1656 = vmax.xlane.f32.xlu0 %v1655_v16  ;;  %v1568_v16 = vand.u32 4294901760, %v1493_v33  ;;  %v1712_v33 = vand.u32 65535, %v5953_v17 }
 0x37a   : > { %v6276_v62 = vpop.xlane.xlu1 %1668  ;;  %v6311_v34 = vcvt.s32.f32 %v1985_v22 }
 0x37b   : > { %vm1670_vm5 = vcmp.eq.f32.partialorder %v5915_v54, %v6276_v62  ;;  %v6296_v54 = vor.u32 %v1566_v2, %v5870_v15  ;;  %v1497_v2 = vsel %vm1496_vm7, %v6198_v51, 0  ;;  %v6331_v51 = vor.u32 %v1568_v16, %v5870_v15 }
 0x37c   : > { %v1671_v58 = vsel %vm1670_vm5, %v1666_v13, -inf  ;;  %v1569_v13 = vand.u32 4294901760, %v1495_v5  ;;  %v2017_v5 = vshra.s32 %v6305_v63, 16  ;;  %v1570_v22 = vand.u32 4294901760, %v1497_v2 }
 0x37d   : > { %1672 = vmax.xlane.f32.xlu1 %v1671_v58  ;;  %1972 = vmax.xlane.f32.xlu0 %v6267_v52  ;;  %9278 = vst [vmem:[#allocation77_spill] sm:$0xff] %v6296_v54  ;;  %v6315_v58 = vcvt.s32.f32 %v2001_v29  ;;  %vm2046_vm13 = vcmp.gt.s32.totalorder %v6296_v54, %v6299_v53  ;;  %9280 = vst [vmem:[#allocation79_spill] sm:$0xff] %v6331_v51  ;;  %v1571_v29 = vand.u32 4294901760, %v1499_v12  ;;  %v1714_v16 = vcvt.s32.f32 %v1712_v33 }
 0x37e   : > { %v6301_v9 = vpop.xlane.xlu1 %1684  ;;  %v6334_v17 = vor.u32 %v1569_v13, %v5872_v18  ;;  %v6344_v13 = vcvt.s32.f32 %v2017_v5  ;;  %v1505_v12 = vsel %vm1504_vm15, %v6206_v31, 0  ;;  %v1507_v33 = vsel %vm1506_vm1, %v6208_v30, 0 }
 0x37f   : > { %vm1686_vm10 = vcmp.eq.f32.partialorder %v5931_v4, %v6301_v9  ;;  %v6323_v4 = vsel %vm2030_vm9, %v6279_v0, %v6282_v8  ;;  %v1503_v0 = vsel %vm1502_vm12, %v6204_v45, 0  ;;  %vm1510_vm5 = vcmp.gt.s32.totalorder %v6212_v25, 0 }
 0x380   : > { %v1687_v11 = vsel %vm1686_vm10, %v1682_v19, -inf  ;;  %9281 = vst [vmem:[#allocation80_spill] sm:$0xff] %v6334_v17  ;;  %v1728_v19 = vand.u32 65535, %v5961_v26  ;;  %v2033_v2 = vshra.s32 %v6323_v4, 16  ;;  %v6357_v26 = vor.u32 %v1570_v22, %v5870_v15 }
 0x381   : > { %1688 = vmax.xlane.f32.xlu0 %v1687_v11  ;;  %1988 = vmax.xlane.f32.xlu1 %v6311_v34  ;;  %v1501_v11 = vsel %vm1500_vm11, %v6202_v10, 0  ;;  %v6360_v10 = vor.u32 %v1571_v29, %v5872_v18  ;;  %vm2062_vm2 = vcmp.gt.s32.totalorder %v6331_v51, %v6334_v17  ;;  %v1574_v31 = vand.u32 4294901760, %v1505_v12 }
 0x382   : > { %v6328_v49 = vpop.xlane.xlu1 %1700  ;;  %9282 = vst [vmem:[#allocation81_spill] sm:$0xff] %v6357_v26  ;;  %v1730_v22 = vcvt.s32.f32 %v1728_v19  ;;  %v6371_v29 = vcvt.s32.f32 %v2033_v2  ;;  %v6382_v30 = vsel %vm2062_vm2, %v6331_v51, %v6334_v17  ;;  %vm1514_vm9 = vcmp.gt.s32.totalorder %v6216_v60, 0  ;;  %v9300_v51 = vld [vmem:[#allocation59_spill] sm:$0xff] }
 0x383   : > { %vm1702_vm14 = vcmp.eq.f32.partialorder %v5947_v14, %v6328_v49  ;;  %v6352_v14 = vsel %vm2046_vm13, %v6296_v54, %v6299_v53  ;;  %9283 = vst [vmem:[#allocation82_spill] sm:$0xff] %v6360_v10  ;;  %v1744_v53 = vand.u32 65535, %v5985_v48  ;;  %vm2078_vm6 = vcmp.gt.s32.totalorder %v6357_v26, %v6360_v10  ;;  %v9302_v54 = vld [vmem:[#allocation63_spill] sm:$0xff] }
 0x384   : > { %v1703_v8 = vsel %vm1702_vm14, %v1698_v38, -inf  ;;  %v1573_v38 = vand.u32 4294901760, %v1503_v0  ;;  %v1575_v0 = vand.u32 4294901760, %v1507_v33  ;;  %v1760_v33 = vand.u32 65535, %v5993_v61 }
 0x385   : > { %1704 = vmax.xlane.f32.xlu1 %v1703_v8  ;;  %2004 = vmax.xlane.f32.xlu0 %v6315_v58  ;;  %v1572_v8 = vand.u32 4294901760, %v1501_v11  ;;  %v2049_v11 = vshra.s32 %v6352_v14, 16  ;;  %v1746_v12 = vcvt.s32.f32 %v1744_v53  ;;  %v6416_v53 = vsel %vm2078_vm6, %v6357_v26, %v6360_v10  ;;  %v9298_v26 = vld [vmem:[#allocation55_spill] sm:$0xff] }
 0x386   : > { %v6354_v45 = vpop.xlane.xlu1 %1716  ;;  %v6392_v19 = vor.u32 %v1573_v38, %v5872_v18  ;;  %v6409_v61 = vor.u32 %v1575_v0, %v5872_v18  ;;  %v1762_v0 = vcvt.s32.f32 %v1760_v33 }
 0x387   : > { %vm1718_vm3 = vcmp.eq.f32.partialorder %v5963_v32, %v6354_v45  ;;  %v6389_v48 = vor.u32 %v1572_v8, %v5870_v15  ;;  %v6398_v17 = vcvt.s32.f32 %v2049_v11  ;;  %v1513_v11 = vsel %vm1512_vm8, %v6214_v7, 0 }
 0x388   : > { %v1719_v5 = vsel %vm1718_vm3, %v1714_v16, -inf  ;;  %9285 = vst [vmem:[#allocation84_spill] sm:$0xff] %v6392_v19  ;;  %v1509_v16 = vsel %vm1508_vm4, %v6210_v28, 0  ;;  %v6406_v28 = vor.u32 %v1574_v31, %v5870_v15  ;;  %9287 = vst [vmem:[#allocation86_spill] sm:$0xff] %v6409_v61  ;;  %v1515_v31 = vsel %vm1514_vm9, %v6216_v60, 0 }
 0x389   : > { %1720 = vmax.xlane.f32.xlu0 %v1719_v5  ;;  %2020 = vmax.xlane.f32.xlu1 %v6344_v13  ;;  %9284 = vst [vmem:[#allocation83_spill] sm:$0xff] %v6389_v48  ;;  %v1511_v5 = vsel %vm1510_vm5, %v6212_v25, 0  ;;  %v1576_v25 = vand.u32 4294901760, %v1509_v16  ;;  %vm2094_vm11 = vcmp.gt.s32.totalorder %v6389_v48, %v6392_v19  ;;  %v1579_v33 = vand.u32 4294901760, %v1515_v31 }
 0x38a   : > { %v6375_v32 = vpop.xlane.xlu1 %1732  ;;  %9286 = vst [vmem:[#allocation85_spill] sm:$0xff] %v6406_v28  ;;  %v1577_v38 = vand.u32 4294901760, %v1511_v5  ;;  %v1776_v5 = vand.u32 65535, %v6017_v23  ;;  %v6436_v7 = vsel %vm2094_vm11, %v6389_v48, %v6392_v19  ;;  %vm2110_vm12 = vcmp.gt.s32.totalorder %v6406_v28, %v6409_v61 }
 0x38b   : > { %vm1734_vm7 = vcmp.eq.f32.partialorder %v5979_v46, %v6375_v32  ;;  %v2065_v46 = vshra.s32 %v6382_v30, 16  ;;  %v1792_v48 = vand.u32 65535, %v6025_v39 }
 0x38c   : > { %v1735_v2 = vsel %vm1734_vm7, %v1730_v22, -inf  ;;  %v6443_v60 = vor.u32 %v1577_v38, %v5872_v18  ;;  %v1778_v19 = vcvt.s32.f32 %v1776_v5  ;;  %v1808_v5 = vand.u32 65535, %v6050_v20 }
 0x38d   : > { %1736 = vmax.xlane.f32.xlu1 %v1735_v2  ;;  %2036 = vmax.xlane.f32.xlu0 %v6371_v29  ;;  %v6425_v16 = vcvt.s32.f32 %v2065_v46  ;;  %v2081_v2 = vshra.s32 %v6416_v53, 16  ;;  %v1824_v20 = vand.u32 65535, %v6057_v37  ;;  %v1840_v37 = vand.u32 65535, %v6081_v36 }
 0x38e   : > { %v6403_v8 = vpop.xlane.xlu1 %1748  ;;  %9289 = vst [vmem:[#allocation88_spill] sm:$0xff] %v6443_v60 }
 0x38f   : > { %vm1750_vm10 = vcmp.eq.f32.partialorder %v5995_v1, %v6403_v8  ;;  %v6431_v1 = vor.u32 %v1576_v25, %v5870_v15  ;;  %v6446_v23 = vcvt.s32.f32 %v2081_v2  ;;  %v2097_v25 = vshra.s32 %v6436_v7, 16 }
 0x390   : > { %v1751_v22 = vsel %vm1750_vm10, %v1746_v12, -inf  ;;  %v1578_v12 = vand.u32 4294901760, %v1513_v11  ;;  %v6462_v11 = vor.u32 %v1579_v33, %v5872_v18 }
 0x391   : > { %1752 = vmax.xlane.f32.xlu0 %v1751_v22  ;;  %2052 = vmax.xlane.f32.xlu1 %v6398_v17  ;;  %9288 = vst [vmem:[#allocation87_spill] sm:$0xff] %v6431_v1  ;;  %vm2126_vm15 = vcmp.gt.s32.totalorder %v6431_v1, %v6443_v60  ;;  %v6469_v39 = vcvt.s32.f32 %v2097_v25 }
 0x392   : > { %v6428_v10 = vpop.xlane.xlu1 %1764  ;;  %v6459_v38 = vor.u32 %v1578_v12, %v5870_v15  ;;  %9291 = vst [vmem:[#allocation90_spill] sm:$0xff] %v6462_v11  ;;  %v6477_v12 = vsel %vm2126_vm15, %v6431_v1, %v6443_v60  ;;  %v9292_v60 = vld [vmem:[#allocation43_spill] sm:$0xff]  ;;  %v9295_v1 = vld [vmem:[#allocation50_spill] sm:$0xff] }
 0x393   : > { %vm1766_vm13 = vcmp.eq.f32.partialorder %v6011_v21, %v6428_v10  ;;  %v6454_v21 = vsel %vm2110_vm12, %v6406_v28, %v6409_v61  ;;  %v1888_v61 = vand.u32 65535, %v9295_v1  ;;  %v9297_v28 = vld [vmem:[#allocation57_spill] sm:$0xff] }
 0x394   : > { %v1767_v46 = vsel %vm1766_vm13, %v1762_v0, -inf  ;;  %9290 = vst [vmem:[#allocation89_spill] sm:$0xff] %v6459_v38  ;;  %v2113_v2 = vshra.s32 %v6454_v21, 16  ;;  %vm2142_vm2 = vcmp.gt.s32.totalorder %v6459_v38, %v6462_v11 }
 0x395   : > { %1768 = vmax.xlane.f32.xlu1 %v1767_v46  ;;  %2068 = vmax.xlane.f32.xlu0 %v6425_v16  ;;  %v6490_v25 = vsel %vm2142_vm2, %v6459_v38, %v6462_v11 }
 0x396   : > { %v6449_v22 = vpop.xlane.xlu1 %1780  ;;  %v6482_v33 = vcvt.s32.f32 %v2113_v2 }
 0x397   : > { %vm1782_vm14 = vcmp.eq.f32.partialorder %v6027_v50, %v6449_v22  ;;  %v1794_v50 = vcvt.s32.f32 %v1792_v48  ;;  %v2129_v48 = vshra.s32 %v6477_v12, 16 }
 0x398   : > { %v1783_v31 = vsel %vm1782_vm14, %v1778_v19, -inf }
 0x399   : > { %v6466_v0 = vpop.xlane.xlu0 %1796  ;;  %1784 = vmax.xlane.f32.xlu0 %v1783_v31  ;;  %2084 = vmax.xlane.f32.xlu1 %v6446_v23  ;;  %v6495_v2 = vcvt.s32.f32 %v2129_v48  ;;  %v1842_v48 = vcvt.s32.f32 %v1840_v37 }
 0x39a   : > { %vm1798_vm1 = vcmp.eq.f32.partialorder %v6040_v6, %v6466_v0  ;;  %v1810_v6 = vcvt.s32.f32 %v1808_v5  ;;  %v1826_v5 = vcvt.s32.f32 %v1824_v20 }
 0x39b   : > { %v1799_v19 = vsel %vm1798_vm1, %v1794_v50, -inf  ;;  %v2145_v50 = vshra.s32 %v6490_v25, 16 }
 0x39d   : > { %2100 = vmax.xlane.f32.xlu0 %v6469_v39  ;;  %1800 = vmax.xlane.f32.xlu1 %v1799_v19 }
 0x39e   : > { %v6485_v46 = vpop.xlane.xlu1 %1812 }
 0x39f   : > { %vm1814_vm3 = vcmp.eq.f32.partialorder %v6059_v55, %v6485_v46  ;;  %v6504_v55 = vcvt.s32.f32 %v2145_v50 }
 0x3a0   : > { %v1815_v31 = vsel %vm1814_vm3, %v1810_v6, -inf }
 0x3a1   : > { %1816 = vmax.xlane.f32.xlu0 %v1815_v31  ;;  %2116 = vmax.xlane.f32.xlu1 %v6482_v33  ;;  %v1856_v31 = vand.u32 65535, %v6089_v57 }
 0x3a2   : > { %v6498_v19 = vpop.xlane.xlu1 %1828 }
 0x3a3   : > { %vm1830_vm4 = vcmp.eq.f32.partialorder %v6072_v24, %v6498_v19  ;;  %v1858_v24 = vcvt.s32.f32 %v1856_v31  ;;  %v1890_v31 = vcvt.s32.f32 %v1888_v61 }
 0x3a4   : > { %v1831_v11 = vsel %vm1830_vm4, %v1826_v5, -inf  ;;  %v9293_v5 = vld [vmem:[#allocation49_spill] sm:$0xff] }
 0x3a5   : > { %2132 = vmax.xlane.f32.xlu0 %v6495_v2  ;;  %1832 = vmax.xlane.f32.xlu1 %v1831_v11  ;;  %v1872_v38 = vand.u32 65535, %v9293_v5  ;;  %v9294_v11 = vld [vmem:[#allocation47_spill] sm:$0xff]  ;;  %v1904_v5 = vand.u32 65535, %v9297_v28 }
 0x3a6   : > { %v6506_v6 = vpop.xlane.xlu1 %1844 }
 0x3a7   : > { %vm1846_vm5 = vcmp.eq.f32.partialorder %v9292_v60, %v6506_v6  ;;  %v1874_v57 = vcvt.s32.f32 %v1872_v38  ;;  %v9296_v60 = vld [vmem:[#allocation51_spill] sm:$0xff]  ;;  %v1906_v38 = vcvt.s32.f32 %v1904_v5 }
 0x3a8   : > { %v1847_v20 = vsel %vm1846_vm5, %v1842_v48, -inf }
 0x3a9   : > { %1848 = vmax.xlane.f32.xlu0 %v1847_v20  ;;  %2148 = vmax.xlane.f32.xlu1 %v6504_v55 }
 0x3aa   : > { %v6512_v36 = vpop.xlane.xlu1 %1860 }
 0x3ab   : > { %vm1862_vm6 = vcmp.eq.f32.partialorder %v9294_v11, %v6512_v36 }
 0x3ac   : > { %v1863_v50 = vsel %vm1862_vm6, %v1858_v24, -inf }
 0x3ad   : > { %1864 = vmax.xlane.f32.xlu1 %v1863_v50  ;;  %v9299_v50 = vld [vmem:[#allocation58_spill] sm:$0xff] }
 0x3ae   : > { %v6517_v37 = vpop.xlane.xlu1 %1876  ;;  %v1920_v1 = vand.u32 65535, %v9299_v50 }
 0x3af   : > { %vm1878_vm7 = vcmp.eq.f32.partialorder %v9296_v60, %v6517_v37 }
 0x3b0   : > { %v1879_v48 = vsel %vm1878_vm7, %v1874_v57, -inf  ;;  %v1922_v61 = vcvt.s32.f32 %v1920_v1 }
 0x3b1   : > { %1880 = vmax.xlane.f32.xlu0 %v1879_v48  ;;  %v9301_v48 = vld [vmem:[#allocation65_spill] sm:$0xff] }
 0x3b2   : > { %v6522_v20 = vpop.xlane.xlu1 %1892  ;;  %v1936_v28 = vand.u32 65535, %v9301_v48 }
 0x3b3   : > { %vm1894_vm8 = vcmp.eq.f32.partialorder %v9298_v26, %v6522_v20 }
 0x3b4   : > { %v1895_v24 = vsel %vm1894_vm8, %v1890_v31, -inf  ;;  %v1938_v5 = vcvt.s32.f32 %v1936_v28  ;;  %v1968_v28 = vand.u32 65535, %v6241_v35 }
 0x3b5   : > { %1896 = vmax.xlane.f32.xlu1 %v1895_v24  ;;  %v9303_v24 = vld [vmem:[#allocation66_spill] sm:$0xff] }
 0x3b6   : > { %v6527_v11 = vpop.xlane.xlu1 %1908  ;;  %v1952_v50 = vand.u32 65535, %v9303_v24 }
 0x3b7   : > { %vm1910_vm9 = vcmp.eq.f32.partialorder %v9300_v51, %v6527_v11 }
 0x3b8   : > { %v1911_v57 = vsel %vm1910_vm9, %v1906_v38, -inf  ;;  %v1954_v1 = vcvt.s32.f32 %v1952_v50  ;;  %v2016_v50 = vand.u32 65535, %v6305_v63  ;;  %v2032_v63 = vand.u32 65535, %v6323_v4 }
 0x3b9   : > { %1912 = vmax.xlane.f32.xlu0 %v1911_v57  ;;  %v9305_v57 = vld [vmem:[#allocation68_spill] sm:$0xff] }
 0x3ba   : > { %v6532_v60 = vpop.xlane.xlu1 %1924 }
 0x3bb   : > { %vm1926_vm10 = vcmp.eq.f32.partialorder %v9302_v54, %v6532_v60  ;;  %v1659_v54 = vcvt.f32.s32 %v6250_v43  ;;  %v1970_v43 = vcvt.s32.f32 %v1968_v28 }
 0x3bc   : > { %v1927_v26 = vsel %vm1926_vm10, %v1922_v61, -inf }
 0x3bd   : > { %1928 = vmax.xlane.f32.xlu1 %v1927_v26  ;;  %v1984_v26 = vand.u32 65535, %v6262_v56  ;;  %v1660_v24 = vshll.u32 %v1659_v54, 16 }
 0x3be   : > { %v6537_v31 = vpop.xlane.xlu1 %1940 }
 0x3bf   : > { %vm1942_vm11 = vcmp.eq.f32.partialorder %v9304_v41, %v6537_v31  ;;  %v1675_v41 = vcvt.f32.s32 %v6276_v62  ;;  %v1986_v27 = vcvt.s32.f32 %v1984_v26 }
 0x3c0   : > { %v1943_v51 = vsel %vm1942_vm11, %v1938_v5, -inf }
 0x3c1   : > { %1944 = vmax.xlane.f32.xlu0 %v1943_v51  ;;  %v2000_v51 = vand.u32 65535, %v6274_v44  ;;  %v1676_v59 = vshll.u32 %v1675_v41, 16  ;;  %v6559_v44 = vcvt.s32.f32 %v2016_v50  ;;  %v9312_v41 = vld [vmem:[#allocation16_spill] sm:$0xff] }
 0x3c2   : > { %v6542_v38 = vpop.xlane.xlu1 %1956 }
 0x3c3   : > { %vm1958_vm12 = vcmp.eq.f32.partialorder %v9305_v57, %v6542_v38  ;;  %v1691_v57 = vcvt.f32.s32 %v6301_v9  ;;  %v6557_v62 = vcvt.s32.f32 %v2000_v51 }
 0x3c4   : > { %v1959_v48 = vsel %vm1958_vm12, %v1954_v1, -inf }
 0x3c5   : > { %1960 = vmax.xlane.f32.xlu1 %v1959_v48 }
 0x406   : > { %v1657_v61 = vpop.xlane.xlu0 %1656 }
 0x407   : > { %v1658_v5 = vcvt.f32.s32 %v1657_v61  ;;  %v1692_v61 = vshll.u32 %v1691_v57, 16  ;;  %v2080_v57 = vand.u32 65535, %v6416_v53  ;;  %v9316_v53 = vld [vmem:[#allocation17_spill] sm:$0xff] }
 0x409   : > { %v1661_v40 = vadd.s32 %v1660_v24, %v1658_v5  ;;  %v9310_v24 = vld [vmem:[#allocation15_spill] sm:$0xff]  ;;  %v1707_v5 = vcvt.f32.s32 %v6328_v49  ;;  %v1739_v49 = vcvt.f32.s32 %v6375_v32 }
 0x40a   : > { %v1673_v1 = vpop.xlane.xlu1 %1672  ;;  %v6553_v48 = vpop.xlane.xlu0 %1972 }
 0x40b   : > { %v2158_v35 = vand.u32 65535, %v1661_v40  ;;  %v1674_v42 = vcvt.f32.s32 %v1673_v1  ;;  %vm1974_vm13 = vcmp.eq.f32.partialorder %v6267_v52, %v6553_v48  ;;  %v2048_v52 = vand.u32 65535, %v6352_v14 }
 0x40c   : > { %v1975_v56 = vsel %vm1974_vm13, %v1970_v43, -inf  ;;  %v1723_v1 = vcvt.f32.s32 %v6354_v45  ;;  %v6621_v40 = vcvt.s32.f32 %v2032_v63 }
 0x40d   : > { %vm6563_vm14 = vcmp.eq.s32.totalorder %v5870_v15, %v2158_v35  ;;  %v1677_v54 = vadd.s32 %v1676_v59, %v1674_v42  ;;  %1976 = vmax.xlane.f32.xlu0 %v1975_v56  ;;  %vm6568_vm15 = vcmp.eq.s32.totalorder %v5872_v18, %v2158_v35  ;;  %v2064_v59 = vand.u32 65535, %v6382_v30  ;;  %v9318_v56 = vld [vmem:[#allocation18_spill] sm:$0xff] }
 0x40e   : > { %v6573_v28 = vpop.xlane.xlu1 %1988  ;;  %v1689_v26 = vpop.xlane.xlu0 %1688  ;;  %v6578_v4 = vsel %vm6563_vm14, 4294967295, %v9310_v24  ;;  %v6583_v42 = vsel %vm6568_vm15, 4294967295, %v9312_v41  ;;  %v9121_v24 = vmov 1.0|1.0   ;;  %v1724_v43 = vshll.u32 %v1723_v1, 16  ;;  %v9324_v1 = vld [vmem:[#allocation19_spill] sm:$0xff] }
 0x40f   : > { %9311 = vst [vmem:[#allocation43_spill] sm:$0xff] %v6578_v4  ;;  %9313 = vst [vmem:[#allocation49_spill] sm:$0xff] %v6583_v42  ;;  %v2159_v51 = vand.u32 65535, %v1677_v54  ;;  %v1690_v14 = vcvt.f32.s32 %v1689_v26  ;;  %vm1990_vm1 = vcmp.eq.f32.partialorder %v6311_v34, %v6573_v28  ;;  %vm2519_vm2 = vcmp.gt.s32.totalorder %v6578_v4, %v6583_v42 }
 0x410   : > { %v1991_v50 = vsel %vm1990_vm1, %v1986_v27, -inf  ;;  %v6606_v45 = vsel %vm2519_vm2, %v6578_v4, %v6583_v42 }
 0x411   : > { %vm6594_vm3 = vcmp.eq.s32.totalorder %v5870_v15, %v2159_v51  ;;  %v1693_v30 = vadd.s32 %v1692_v61, %v1690_v14  ;;  %1992 = vmax.xlane.f32.xlu1 %v1991_v50  ;;  %vm2193_vm4 = vcmp.eq.s32.totalorder %v5872_v18, %v2159_v51  ;;  %v1708_v61 = vshll.u32 %v1707_v5, 16 }
 0x412   : > { %v1705_v34 = vpop.xlane.xlu1 %1704  ;;  %v6600_v27 = vpop.xlane.xlu0 %2004  ;;  %vm4804_vm5 = vmpackc.low %vm2193_vm4, %vm6568_vm15  ;;  %v6611_v35 = vsel %vm6594_vm3, 4294967295, %v9316_v53  ;;  %v6614_v54 = vsel %vm2193_vm4, 4294967295, %v9318_v56  ;;  %v2522_v41 = vshra.s32 %v6606_v45, 16  ;;  %v6627_v5 = vcvt.s32.f32 %v2048_v52 }
 0x413   : > { %9317 = vst [vmem:[#allocation47_spill] sm:$0xff] %v6611_v35  ;;  %9319 = vst [vmem:[#allocation50_spill] sm:$0xff] %v6614_v54  ;;  %v2160_v32 = vand.u32 65535, %v1693_v30  ;;  %v1706_v26 = vcvt.f32.s32 %v1705_v34  ;;  %4805 = vmatprep.subr.msk.bf16.mxu1 %vm4804_vm5, %v9121_v24  ;;  %vm2535_vm7 = vcmp.gt.s32.totalorder %v6611_v35, %v6614_v54  ;;  %v6629_v51 = vcvt.s32.f32 %v2064_v59 }
 0x414   : > { %vm4806_vm6 = vmpackc.low %vm6594_vm3, %vm6563_vm14  ;;  %v6638_v63 = vsel %vm2535_vm7, %v6611_v35, %v6614_v54  ;;  %v6640_v50 = vcvt.s32.f32 %v2080_v57  ;;  %v1740_v30 = vshll.u32 %v1739_v49, 16  ;;  %v6642_v34 = vcvt.s32.f32 %v2522_v41 }
 0x415   : > { %4807 = vmatpush1.bf16.xpose.msk.msra.mxu1 %vm4806_vm6, %v9121_v24  ;;  %vm6632_vm8 = vcmp.eq.s32.totalorder %v5870_v15, %v2160_v32  ;;  %v1709_v9 = vadd.s32 %v1708_v61, %v1706_v26  ;;  %v2538_v53 = vshra.s32 %v6638_v63, 16  ;;  %v1755_v56 = vcvt.f32.s32 %v6403_v8  ;;  %v9326_v8 = vld [vmem:[#allocation20_spill] sm:$0xff] }
 0x416   : > { %v6644_v52 = vpop.xlane.xlu1 %2020  ;;  %v1721_v59 = vpop.xlane.xlu0 %1720  ;;  %vm6649_vm9 = vcmp.eq.s32.totalorder %v5872_v18, %v2160_v32  ;;  %2525 = vmax.xlane.f32.xlu0 %v6642_v34  ;;  %vm2006_vm10 = vcmp.eq.f32.partialorder %v6315_v58, %v6600_v27  ;;  %v6661_v49 = vsel %vm6632_vm8, 4294967295, %v9324_v1  ;;  %v1771_v32 = vcvt.f32.s32 %v6428_v10  ;;  %v9330_v10 = vld [vmem:[#allocation21_spill] sm:$0xff] }
 0x417   : > { %v2161_v24 = vand.u32 65535, %v1709_v9  ;;  %v1722_v42 = vcvt.f32.s32 %v1721_v59  ;;  %v6654_v57 = vcvt.s32.f32 %v2538_v53  ;;  %9325 = vst [vmem:[#allocation51_spill] sm:$0xff] %v6661_v49  ;;  %v6666_v26 = vsel %vm6649_vm9, 4294967295, %v9326_v8 }
 0x418   : > { %9327 = vst [vmem:[#allocation57_spill] sm:$0xff] %v6666_v26  ;;  %vm2022_vm14 = vcmp.eq.f32.partialorder %v6344_v13, %v6644_v52  ;;  %vm2551_vm15 = vcmp.gt.s32.totalorder %v6661_v49, %v6666_v26  ;;  %v2007_v61 = vsel %vm2006_vm10, %v6557_v62, -inf  ;;  %v9334_v54 = vmov 1.0|1.0  }
 0x419   : > { %vm6670_vm11 = vcmp.eq.s32.totalorder %v5870_v15, %v2161_v24  ;;  %v1725_v9 = vadd.s32 %v1724_v43, %v1722_v42  ;;  %vm2197_vm12 = vcmp.eq.s32.totalorder %v5872_v18, %v2161_v24  ;;  %2541 = vmax.xlane.f32.xlu1 %v6654_v57  ;;  %v9332_v24 = vld [vmem:[#allocation22_spill] sm:$0xff]  ;;  %v2096_v58 = vand.u32 65535, %v6436_v7 }
 0x41a   : > { %v1737_v59 = vpop.xlane.xlu1 %1736  ;;  %v6676_v53 = vpop.xlane.xlu0 %2036  ;;  %vm4808_vm13 = vmpackc.low %vm2197_vm12, %vm6649_vm9  ;;  %v6687_v42 = vsel %vm6670_vm11, 4294967295, %v9330_v10  ;;  %v6690_v43 = vsel %vm2197_vm12, 4294967295, %v9332_v24  ;;  %v6703_v10 = vsel %vm2551_vm15, %v6661_v49, %v6666_v26  ;;  %2008 = vmax.xlane.f32.xlu0 %v2007_v61  ;;  %v2112_v62 = vand.u32 65535, %v6454_v21 }
 0x41b   : > { %9331 = vst [vmem:[#allocation55_spill] sm:$0xff] %v6687_v42  ;;  %9333 = vst [vmem:[#allocation58_spill] sm:$0xff] %v6690_v43  ;;  %v2162_v1 = vand.u32 65535, %v1725_v9  ;;  %v1738_v8 = vcvt.f32.s32 %v1737_v59  ;;  %4809 = vmatprep.subr.msk.bf16.mxu1 %vm4808_vm13, %v9334_v54  ;;  %v2554_v9 = vshra.s32 %v6703_v10, 16  ;;  %vm2567_vm2 = vcmp.gt.s32.totalorder %v6687_v42, %v6690_v43 }
 0x41c   : > { %vm4810_vm1 = vmpackc.low %vm6670_vm11, %vm6632_vm8  ;;  %v2023_v59 = vsel %vm2022_vm14, %v6559_v44, -inf  ;;  %v6722_v24 = vsel %vm2567_vm2, %v6687_v42, %v6690_v43  ;;  %v1756_v61 = vshll.u32 %v1755_v56, 16  ;;  %v1772_v26 = vshll.u32 %v1771_v32, 16  ;;  %v9339_v56 = vld [vmem:[#allocation23_spill] sm:$0xff] }
 0x41d   : > { %4811 = vmatpush1.bf16.xpose.msk.msra.mxu1 %vm4810_vm1, %v9334_v54  ;;  %vm6712_vm3 = vcmp.eq.s32.totalorder %v5870_v15, %v2162_v1  ;;  %v1741_v41 = vadd.s32 %v1740_v30, %v1738_v8  ;;  %2024 = vmax.xlane.f32.xlu1 %v2023_v59  ;;  %v6724_v7 = vcvt.s32.f32 %v2554_v9  ;;  %v2570_v35 = vshra.s32 %v6722_v24, 16 }
 0x41e   : > { %v6726_v21 = vpop.xlane.xlu1 %2052  ;;  %v1753_v49 = vpop.xlane.xlu0 %1752  ;;  %v1787_v30 = vcvt.f32.s32 %v6449_v22  ;;  %vm6731_vm4 = vcmp.eq.s32.totalorder %v5872_v18, %v2162_v1  ;;  %vm2038_vm5 = vcmp.eq.f32.partialorder %v6371_v29, %v6676_v53  ;;  %v6743_v32 = vsel %vm6712_vm3, 4294967295, %v9339_v56  ;;  %v9341_v22 = vld [vmem:[#allocation24_spill] sm:$0xff] }
 0x41f   : > { %v2163_v8 = vand.u32 65535, %v1741_v41  ;;  %v1754_v4 = vcvt.f32.s32 %v1753_v49  ;;  %2557 = vmax.xlane.f32.xlu0 %v6724_v7  ;;  %v6736_v44 = vcvt.s32.f32 %v2570_v35  ;;  %9340 = vst [vmem:[#allocation59_spill] sm:$0xff] %v6743_v32  ;;  %v6748_v49 = vsel %vm6731_vm4, 4294967295, %v9341_v22 }
 0x420   : > { %9342 = vst [vmem:[#allocation65_spill] sm:$0xff] %v6748_v49  ;;  %v1803_v1 = vcvt.f32.s32 %v6466_v0  ;;  %vm2054_vm9 = vcmp.eq.f32.partialorder %v6398_v17, %v6726_v21  ;;  %vm2583_vm10 = vcmp.gt.s32.totalorder %v6743_v32, %v6748_v49  ;;  %v9345_v0 = vld [vmem:[#allocation25_spill] sm:$0xff]  ;;  %v2039_v13 = vsel %vm2038_vm5, %v6621_v40, -inf }
 0x421   : > { %vm6752_vm6 = vcmp.eq.s32.totalorder %v5870_v15, %v2163_v8  ;;  %v1757_v35 = vadd.s32 %v1756_v61, %v1754_v4  ;;  %vm2201_vm7 = vcmp.eq.s32.totalorder %v5872_v18, %v2163_v8  ;;  %2573 = vmax.xlane.f32.xlu1 %v6736_v44  ;;  %v9347_v61 = vld [vmem:[#allocation26_spill] sm:$0xff]  ;;  %v6791_v29 = vcvt.s32.f32 %v2096_v58 }
 0x422   : > { %v1769_v41 = vpop.xlane.xlu1 %1768  ;;  %v6758_v59 = vpop.xlane.xlu0 %2068  ;;  %vm4812_vm8 = vmpackc.low %vm2201_vm7, %vm6731_vm4  ;;  %v6769_v4 = vsel %vm6752_vm6, 4294967295, %v9345_v0  ;;  %v6772_v8 = vsel %vm2201_vm7, 4294967295, %v9347_v61  ;;  %v6785_v0 = vsel %vm2583_vm10, %v6743_v32, %v6748_v49  ;;  %v6793_v40 = vcvt.s32.f32 %v2112_v62 }
 0x423   : > { %9346 = vst [vmem:[#allocation63_spill] sm:$0xff] %v6769_v4  ;;  %9348 = vst [vmem:[#allocation66_spill] sm:$0xff] %v6772_v8  ;;  %v2164_v56 = vand.u32 65535, %v1757_v35  ;;  %v1770_v22 = vcvt.f32.s32 %v1769_v41  ;;  %4813 = vmatprep.subr.msk.bf16.mxu1 %vm4812_vm8, %v9334_v54  ;;  %2040 = vmax.xlane.f32.xlu0 %v2039_v13  ;;  %v2586_v35 = vshra.s32 %v6785_v0, 16  ;;  %vm2599_vm12 = vcmp.gt.s32.totalorder %v6769_v4, %v6772_v8 }
 0x424   : > { %vm4814_vm11 = vmpackc.low %vm6752_vm6, %vm6712_vm3  ;;  %v2055_v41 = vsel %vm2054_vm9, %v6627_v5, -inf  ;;  %v6806_v61 = vsel %vm2599_vm12, %v6769_v4, %v6772_v8  ;;  %v1788_v13 = vshll.u32 %v1787_v30, 16  ;;  %v1804_v58 = vshll.u32 %v1803_v1, 16  ;;  %v9353_v30 = vld [vmem:[#allocation27_spill] sm:$0xff] }
 0x425   : > { %4815 = vmatpush1.bf16.xpose.msk.msra.mxu1 %vm4814_vm11, %v9334_v54  ;;  %vm6796_vm13 = vcmp.eq.s32.totalorder %v5870_v15, %v2164_v56  ;;  %v1773_v9 = vadd.s32 %v1772_v26, %v1770_v22  ;;  %2056 = vmax.xlane.f32.xlu1 %v2055_v41  ;;  %v6808_v62 = vcvt.s32.f32 %v2586_v35  ;;  %v2602_v43 = vshra.s32 %v6806_v61, 16 }
 0x426   : > { %v6810_v49 = vpop.xlane.xlu1 %2084  ;;  %v1785_v32 = vpop.xlane.xlu0 %1784  ;;  %v1819_v26 = vcvt.f32.s32 %v6485_v46  ;;  %vm6815_vm14 = vcmp.eq.s32.totalorder %v5872_v18, %v2164_v56  ;;  %vm2070_vm15 = vcmp.eq.f32.partialorder %v6425_v16, %v6758_v59  ;;  %v6827_v1 = vsel %vm6796_vm13, 4294967295, %v9353_v30  ;;  %v9355_v46 = vld [vmem:[#allocation28_spill] sm:$0xff] }
 0x427   : > { %v2165_v22 = vand.u32 65535, %v1773_v9  ;;  %v1786_v42 = vcvt.f32.s32 %v1785_v32  ;;  %2589 = vmax.xlane.f32.xlu0 %v6808_v62  ;;  %v6820_v5 = vcvt.s32.f32 %v2602_v43  ;;  %9354 = vst [vmem:[#allocation67_spill] sm:$0xff] %v6827_v1  ;;  %v6832_v32 = vsel %vm6815_vm14, 4294967295, %v9355_v46 }
 0x428   : > { %9356 = vst [vmem:[#allocation68_spill] sm:$0xff] %v6832_v32  ;;  %v1835_v56 = vcvt.f32.s32 %v6498_v19  ;;  %vm2086_vm4 = vcmp.eq.f32.partialorder %v6446_v23, %v6810_v49  ;;  %vm2615_vm5 = vcmp.gt.s32.totalorder %v6827_v1, %v6832_v32  ;;  %v9359_v19 = vld [vmem:[#allocation29_spill] sm:$0xff]  ;;  %v2071_v17 = vsel %vm2070_vm15, %v6629_v51, -inf }
 0x429   : > { %vm6836_vm1 = vcmp.eq.s32.totalorder %v5870_v15, %v2165_v22  ;;  %v1789_v43 = vadd.s32 %v1788_v13, %v1786_v42  ;;  %vm2205_vm2 = vcmp.eq.s32.totalorder %v5872_v18, %v2165_v22  ;;  %2605 = vmax.xlane.f32.xlu1 %v6820_v5  ;;  %v9361_v13 = vld [vmem:[#allocation30_spill] sm:$0xff]  ;;  %v2128_v16 = vand.u32 65535, %v6477_v12 }
 0x42a   : > { %v1801_v9 = vpop.xlane.xlu1 %1800  ;;  %v6842_v41 = vpop.xlane.xlu0 %2100  ;;  %vm4816_vm3 = vmpackc.low %vm2205_vm2, %vm6815_vm14  ;;  %v6853_v42 = vsel %vm6836_vm1, 4294967295, %v9359_v19  ;;  %v6856_v22 = vsel %vm2205_vm2, 4294967295, %v9361_v13  ;;  %v6869_v19 = vsel %vm2615_vm5, %v6827_v1, %v6832_v32  ;;  %v2144_v51 = vand.u32 65535, %v6490_v25 }
 0x42b   : > { %9360 = vst [vmem:[#allocation15_spill] sm:$0xff] %v6853_v42  ;;  %9362 = vst [vmem:[#allocation16_spill] sm:$0xff] %v6856_v22  ;;  %v2166_v30 = vand.u32 65535, %v1789_v43  ;;  %v1802_v46 = vcvt.f32.s32 %v1801_v9  ;;  %4817 = vmatprep.subr.msk.bf16.mxu1 %vm4816_vm3, %v9334_v54  ;;  %2072 = vmax.xlane.f32.xlu0 %v2071_v17  ;;  %v2618_v43 = vshra.s32 %v6869_v19, 16  ;;  %vm2631_vm7 = vcmp.gt.s32.totalorder %v6853_v42, %v6856_v22 }
 0x42c   : > { %vm4818_vm6 = vmpackc.low %vm6836_vm1, %vm6796_vm13  ;;  %v2087_v9 = vsel %vm2086_vm4, %v6640_v50, -inf  ;;  %v6888_v13 = vsel %vm2631_vm7, %v6853_v42, %v6856_v22  ;;  %v1820_v17 = vshll.u32 %v1819_v26, 16  ;;  %v1836_v32 = vshll.u32 %v1835_v56, 16  ;;  %v9367_v26 = vld [vmem:[#allocation31_spill] sm:$0xff] }
 0x42d   : > { %4819 = vmatpush1.bf16.xpose.msk.msra.mxu1 %vm4818_vm6, %v9334_v54  ;;  %vm6878_vm8 = vcmp.eq.s32.totalorder %v5870_v15, %v2166_v30  ;;  %v1805_v35 = vadd.s32 %v1804_v58, %v1802_v46  ;;  %2088 = vmax.xlane.f32.xlu1 %v2087_v9  ;;  %v6890_v12 = vcvt.s32.f32 %v2618_v43  ;;  %v2634_v8 = vshra.s32 %v6888_v13, 16 }
 0x42e   : > { %v6892_v25 = vpop.xlane.xlu1 %2116  ;;  %v1817_v1 = vpop.xlane.xlu0 %1816  ;;  %v1851_v58 = vcvt.f32.s32 %v6506_v6  ;;  %vm6897_vm9 = vcmp.eq.s32.totalorder %v5872_v18, %v2166_v30  ;;  %vm2102_vm10 = vcmp.eq.f32.partialorder %v6469_v39, %v6842_v41  ;;  %v6909_v56 = vsel %vm6878_vm8, 4294967295, %v9367_v26  ;;  %v9369_v6 = vld [vmem:[#allocation32_spill] sm:$0xff] }
 0x42f   : > { %v2167_v46 = vand.u32 65535, %v1805_v35  ;;  %v1818_v4 = vcvt.f32.s32 %v1817_v1  ;;  %2621 = vmax.xlane.f32.xlu0 %v6890_v12  ;;  %v6902_v50 = vcvt.s32.f32 %v2634_v8  ;;  %9368 = vst [vmem:[#allocation17_spill] sm:$0xff] %v6909_v56  ;;  %v6914_v1 = vsel %vm6897_vm9, 4294967295, %v9369_v6 }
 0x430   : > { %9370 = vst [vmem:[#allocation18_spill] sm:$0xff] %v6914_v1  ;;  %v1867_v30 = vcvt.f32.s32 %v6512_v36  ;;  %vm2118_vm14 = vcmp.eq.f32.partialorder %v6482_v33, %v6892_v25  ;;  %vm2647_vm15 = vcmp.gt.s32.totalorder %v6909_v56, %v6914_v1  ;;  %v9373_v36 = vld [vmem:[#allocation33_spill] sm:$0xff]  ;;  %v2103_v23 = vsel %vm2102_vm10, %v6791_v29, -inf }
 0x431   : > { %vm6918_vm11 = vcmp.eq.s32.totalorder %v5870_v15, %v2167_v46  ;;  %v1821_v8 = vadd.s32 %v1820_v17, %v1818_v4  ;;  %vm2209_vm12 = vcmp.eq.s32.totalorder %v5872_v18, %v2167_v46  ;;  %2637 = vmax.xlane.f32.xlu1 %v6902_v50  ;;  %v9375_v17 = vld [vmem:[#allocation34_spill] sm:$0xff]  ;;  %v2130_v39 = vcvt.s32.f32 %v2128_v16 }
 0x432   : > { %v1833_v35 = vpop.xlane.xlu1 %1832  ;;  %v6924_v9 = vpop.xlane.xlu0 %2132  ;;  %vm4820_vm13 = vmpackc.low %vm2209_vm12, %vm6897_vm9  ;;  %v6935_v4 = vsel %vm6918_vm11, 4294967295, %v9373_v36  ;;  %v6938_v46 = vsel %vm2209_vm12, 4294967295, %v9375_v17  ;;  %v6951_v36 = vsel %vm2647_vm15, %v6909_v56, %v6914_v1  ;;  %v2146_v29 = vcvt.s32.f32 %v2144_v51 }
 0x433   : > { %9374 = vst [vmem:[#allocation19_spill] sm:$0xff] %v6935_v4  ;;  %9376 = vst [vmem:[#allocation20_spill] sm:$0xff] %v6938_v46  ;;  %v2168_v26 = vand.u32 65535, %v1821_v8  ;;  %v1834_v6 = vcvt.f32.s32 %v1833_v35  ;;  %4821 = vmatprep.subr.msk.bf16.mxu1 %vm4820_vm13, %v9334_v54  ;;  %2104 = vmax.xlane.f32.xlu0 %v2103_v23  ;;  %v2650_v8 = vshra.s32 %v6951_v36, 16  ;;  %vm2663_vm2 = vcmp.gt.s32.totalorder %v6935_v4, %v6938_v46 }
 0x434   : > { %vm4822_vm1 = vmpackc.low %vm6918_vm11, %vm6878_vm8  ;;  %v2119_v35 = vsel %vm2118_vm14, %v6793_v40, -inf  ;;  %v6968_v17 = vsel %vm2663_vm2, %v6935_v4, %v6938_v46  ;;  %v1852_v23 = vshll.u32 %v1851_v58, 16  ;;  %vm2134_vm4 = vcmp.eq.f32.partialorder %v6495_v2, %v6924_v9  ;;  %v9383_v2 = vld [vmem:[#allocation36_spill] sm:$0xff] }
 0x435   : > { %4823 = vmatpush1.bf16.xpose.msk.msra.mxu1 %vm4822_vm1, %v9334_v54  ;;  %vm6958_vm3 = vcmp.eq.s32.totalorder %v5870_v15, %v2168_v26  ;;  %v1837_v43 = vadd.s32 %v1836_v32, %v1834_v6  ;;  %2120 = vmax.xlane.f32.xlu1 %v2119_v35  ;;  %v6970_v1 = vcvt.s32.f32 %v2650_v8  ;;  %v2666_v56 = vshra.s32 %v6968_v17, 16  ;;  %v9381_v35 = vld [vmem:[#allocation35_spill] sm:$0xff] }
 0x436   : > { %v6972_v16 = vpop.xlane.xlu1 %2148  ;;  %v1849_v51 = vpop.xlane.xlu0 %1848  ;;  %v1868_v32 = vshll.u32 %v1867_v30, 16  ;;  %vm6978_vm5 = vcmp.eq.s32.totalorder %v5872_v18, %v2168_v26  ;;  %v1883_v58 = vcvt.f32.s32 %v6517_v37  ;;  %v6989_v46 = vsel %vm6958_vm3, 4294967295, %v9381_v35 }
 0x437   : > { %v2169_v6 = vand.u32 65535, %v1837_v43  ;;  %v1850_v33 = vcvt.f32.s32 %v1849_v51  ;;  %2653 = vmax.xlane.f32.xlu0 %v6970_v1  ;;  %v6984_v8 = vcvt.s32.f32 %v2666_v56  ;;  %9382 = vst [vmem:[#allocation21_spill] sm:$0xff] %v6989_v46  ;;  %v6994_v30 = vsel %vm6978_vm5, 4294967295, %v9383_v2  ;;  %v9387_v51 = vld [vmem:[#allocation37_spill] sm:$0xff] }
 0x438   : > { %9384 = vst [vmem:[#allocation22_spill] sm:$0xff] %v6994_v30  ;;  %v2135_v43 = vsel %vm2134_vm4, %v2130_v39, -inf  ;;  %vm2150_vm9 = vcmp.eq.f32.partialorder %v6504_v55, %v6972_v16  ;;  %vm2679_vm10 = vcmp.gt.s32.totalorder %v6989_v46, %v6994_v30  ;;  %v9389_v39 = vld [vmem:[#allocation38_spill] sm:$0xff]  ;;  %v1884_v2 = vshll.u32 %v1883_v58, 16 }
 0x439   : > { %vm6997_vm6 = vcmp.eq.s32.totalorder %v5870_v15, %v2169_v6  ;;  %v1853_v37 = vadd.s32 %v1852_v23, %v1850_v33  ;;  %vm2213_vm7 = vcmp.eq.s32.totalorder %v5872_v18, %v2169_v6  ;;  %2669 = vmax.xlane.f32.xlu1 %v6984_v8  ;;  %v7024_v40 = vsel %vm2679_vm10, %v6989_v46, %v6994_v30  ;;  %v9397_v46 = vld [vmem:[#allocation40_spill] sm:$0xff] }
 0x43a   : > { %v1865_v56 = vpop.xlane.xlu1 %1864  ;;  %vm4824_vm8 = vmpackc.low %vm2213_vm7, %vm6978_vm5  ;;  %v7012_v35 = vsel %vm6997_vm6, 4294967295, %v9387_v51  ;;  %v7015_v23 = vsel %vm2213_vm7, 4294967295, %v9389_v39  ;;  %v2151_v51 = vsel %vm2150_vm9, %v2146_v29, -inf }
 0x43b   : > { %9388 = vst [vmem:[#allocation23_spill] sm:$0xff] %v7012_v35  ;;  %9390 = vst [vmem:[#allocation24_spill] sm:$0xff] %v7015_v23  ;;  %v2170_v6 = vand.u32 65535, %v1853_v37  ;;  %v1866_v33 = vcvt.f32.s32 %v1865_v56  ;;  %4825 = vmatprep.subr.msk.bf16.mxu1 %vm4824_vm8, %v9334_v54  ;;  %vm2695_vm12 = vcmp.gt.s32.totalorder %v7012_v35, %v7015_v23  ;;  %2136 = vmax.xlane.f32.xlu0 %v2135_v43  ;;  %v2682_v37 = vshra.s32 %v7024_v40, 16 }
 0x43c   : > { %vm4826_vm11 = vmpackc.low %vm6997_vm6, %vm6958_vm3  ;;  %v7032_v56 = vsel %vm2695_vm12, %v7012_v35, %v7015_v23  ;;  %v1899_v43 = vcvt.f32.s32 %v6522_v20  ;;  %v9395_v35 = vld [vmem:[#allocation39_spill] sm:$0xff] }
 0x43d   : > { %4827 = vmatpush1.bf16.xpose.msk.msra.mxu1 %vm4826_vm11, %v9334_v54  ;;  %vm7035_vm13 = vcmp.eq.s32.totalorder %v5870_v15, %v2170_v6  ;;  %v1869_v26 = vadd.s32 %v1868_v32, %v1866_v33  ;;  %v2698_v58 = vshra.s32 %v7032_v56, 16  ;;  %2152 = vmax.xlane.f32.xlu1 %v2151_v51  ;;  %v7044_v39 = vcvt.s32.f32 %v2682_v37  ;;  %v9401_v51 = vld [vmem:[#allocation41_spill] sm:$0xff] }
 0x43e   : > { %v1881_v30 = vpop.xlane.xlu0 %1880  ;;  %vm7047_vm14 = vcmp.eq.s32.totalorder %v5872_v18, %v2170_v6  ;;  %v7054_v32 = vsel %vm7035_vm13, 4294967295, %v9395_v35 }
 0x43f   : > { %9396 = vst [vmem:[#allocation25_spill] sm:$0xff] %v7054_v32  ;;  %v2171_v55 = vand.u32 65535, %v1869_v26  ;;  %v1882_v29 = vcvt.f32.s32 %v1881_v30  ;;  %v7056_v33 = vcvt.s32.f32 %v2698_v58  ;;  %v7061_v20 = vsel %vm7047_vm14, 4294967295, %v9397_v46  ;;  %2685 = vmax.xlane.f32.xlu0 %v7044_v39  ;;  %v9403_v58 = vld [vmem:[#allocation42_spill] sm:$0xff] }
 0x440   : > { %9398 = vst [vmem:[#allocation26_spill] sm:$0xff] %v7061_v20  ;;  %vm2711_vm15 = vcmp.gt.s32.totalorder %v7054_v32, %v7061_v20  ;;  %v1915_v46 = vcvt.f32.s32 %v6527_v11 }
 0x441   : > { %vm7067_vm1 = vcmp.eq.s32.totalorder %v5870_v15, %v2171_v55  ;;  %v1885_v35 = vadd.s32 %v1884_v2, %v1882_v29  ;;  %vm2217_vm2 = vcmp.eq.s32.totalorder %v5872_v18, %v2171_v55  ;;  %v7074_v30 = vsel %vm2711_vm15, %v7054_v32, %v7061_v20  ;;  %2701 = vmax.xlane.f32.xlu1 %v7056_v33 }
 0x442   : > { %v1897_v37 = vpop.xlane.xlu1 %1896  ;;  %vm4828_vm3 = vmpackc.low %vm2217_vm2, %vm7047_vm14  ;;  %v2714_v26 = vshra.s32 %v7074_v30, 16  ;;  %v7084_v2 = vsel %vm7067_vm1, 4294967295, %v9401_v51  ;;  %v7087_v55 = vsel %vm2217_vm2, 4294967295, %v9403_v58  ;;  %v1900_v29 = vshll.u32 %v1899_v43, 16  ;;  %v9409_v58 = vld [vmem:[#allocation44_spill] sm:$0xff] }
 0x443   : > { %9402 = vst [vmem:[#allocation27_spill] sm:$0xff] %v7084_v2  ;;  %9404 = vst [vmem:[#allocation28_spill] sm:$0xff] %v7087_v55  ;;  %v2172_v20 = vand.u32 65535, %v1885_v35  ;;  %v1898_v32 = vcvt.f32.s32 %v1897_v37  ;;  %4829 = vmatprep.subr.msk.bf16.mxu1 %vm4828_vm3, %v9334_v54  ;;  %vm2727_vm5 = vcmp.gt.s32.totalorder %v7084_v2, %v7087_v55  ;;  %v1916_v35 = vshll.u32 %v1915_v46, 16  ;;  %v9411_v46 = vld [vmem:[#allocation45_spill] sm:$0xff] }
 0x444   : > { %vm4830_vm4 = vmpackc.low %vm7067_vm1, %vm7035_vm13  ;;  %v7097_v11 = vcvt.s32.f32 %v2714_v26  ;;  %v7101_v23 = vsel %vm2727_vm5, %v7084_v2, %v7087_v55  ;;  %v1931_v37 = vcvt.f32.s32 %v6532_v60 }
 0x445   : > { %4831 = vmatpush1.bf16.xpose.msk.msra.mxu1 %vm4830_vm4, %v9334_v54  ;;  %vm7104_vm6 = vcmp.eq.s32.totalorder %v5870_v15, %v2172_v20  ;;  %v1901_v14 = vadd.s32 %v1900_v29, %v1898_v32  ;;  %v2730_v6 = vshra.s32 %v7101_v23, 16  ;;  %vm7112_vm7 = vcmp.eq.s32.totalorder %v5872_v18, %v2172_v20 }
 0x446   : > { %2717 = vmax.xlane.f32.xlu0 %v7097_v11  ;;  %v1913_v51 = vpop.xlane.xlu0 %1912  ;;  %v7119_v55 = vsel %vm7104_vm6, 4294967295, %v9409_v58  ;;  %v7126_v60 = vsel %vm7112_vm7, 4294967295, %v9411_v46  ;;  %v9415_v46 = vld [vmem:[#allocation46_spill] sm:$0xff] }
 0x447   : > { %9410 = vst [vmem:[#allocation29_spill] sm:$0xff] %v7119_v55  ;;  %v2173_v2 = vand.u32 65535, %v1901_v14  ;;  %v1914_v32 = vcvt.f32.s32 %v1913_v51  ;;  %v7121_v29 = vcvt.s32.f32 %v2730_v6  ;;  %9412 = vst [vmem:[#allocation30_spill] sm:$0xff] %v7126_v60  ;;  %vm2743_vm8 = vcmp.gt.s32.totalorder %v7119_v55, %v7126_v60 }
 0x448   : > { %v7139_v14 = vsel %vm2743_vm8, %v7119_v55, %v7126_v60  ;;  %v1947_v6 = vcvt.f32.s32 %v6537_v31 }
 0x449   : > { %vm7131_vm9 = vcmp.eq.s32.totalorder %v5870_v15, %v2173_v2  ;;  %v1917_v4 = vadd.s32 %v1916_v35, %v1914_v32  ;;  %2733 = vmax.xlane.f32.xlu1 %v7121_v29  ;;  %vm2221_vm10 = vcmp.eq.s32.totalorder %v5872_v18, %v2173_v2  ;;  %v2746_v58 = vshra.s32 %v7139_v14, 16  ;;  %v9417_v32 = vld [vmem:[#allocation48_spill] sm:$0xff] }
 0x44a   : > { %v1929_v51 = vpop.xlane.xlu1 %1928  ;;  %vm4832_vm11 = vmpackc.low %vm2221_vm10, %vm7112_vm7  ;;  %v7148_v35 = vsel %vm7131_vm9, 4294967295, %v9415_v46  ;;  %v7151_v22 = vsel %vm2221_vm10, 4294967295, %v9417_v32  ;;  %v1932_v2 = vshll.u32 %v1931_v37, 16  ;;  %v1948_v20 = vshll.u32 %v1947_v6, 16  ;;  %v9424_v32 = vld [vmem:[#allocation52_spill] sm:$0xff]  ;;  %v9427_v6 = vld [vmem:[#allocation53_spill] sm:$0xff] }
 0x44b   : > { %9416 = vst [vmem:[#allocation31_spill] sm:$0xff] %v7148_v35  ;;  %9418 = vst [vmem:[#allocation32_spill] sm:$0xff] %v7151_v22  ;;  %v2174_v42 = vand.u32 65535, %v1917_v4  ;;  %v1930_v60 = vcvt.f32.s32 %v1929_v51  ;;  %4833 = vmatprep.subr.msk.bf16.mxu1 %vm4832_vm11, %v9334_v54  ;;  %vm2759_vm13 = vcmp.gt.s32.totalorder %v7148_v35, %v7151_v22  ;;  %v7161_v31 = vcvt.s32.f32 %v2746_v58 }
 0x44c   : > { %vm4834_vm12 = vmpackc.low %vm7131_vm9, %vm7104_vm6  ;;  %v7165_v26 = vsel %vm2759_vm13, %v7148_v35, %v7151_v22  ;;  %v1963_v51 = vcvt.f32.s32 %v6542_v38 }
 0x44d   : > { %4835 = vmatpush1.bf16.xpose.msk.msra.mxu1 %vm4834_vm12, %v9334_v54  ;;  %9419 = vst [vmem:[#allocation33_spill] sm:$0xff] %v7161_v31  ;;  %vm7168_vm14 = vcmp.eq.s32.totalorder %v5870_v15, %v2174_v42  ;;  %v1933_v43 = vadd.s32 %v1932_v2, %v1930_v60  ;;  %v2762_v37 = vshra.s32 %v7165_v26, 16  ;;  %2749 = vmax.xlane.f32.xlu0 %v7161_v31 }
 0x44e   : > { %v1945_v46 = vpop.xlane.xlu0 %1944  ;;  %vm7176_vm15 = vcmp.eq.s32.totalorder %v5872_v18, %v2174_v42  ;;  %v7183_v22 = vsel %vm7168_vm14, 4294967295, %v9424_v32 }
 0x44f   : > { %9425 = vst [vmem:[#allocation34_spill] sm:$0xff] %v7183_v22  ;;  %v2175_v35 = vand.u32 65535, %v1933_v43  ;;  %v1946_v60 = vcvt.f32.s32 %v1945_v46  ;;  %v7185_v2 = vcvt.s32.f32 %v2762_v37  ;;  %v7190_v38 = vsel %vm7176_vm15, 4294967295, %v9427_v6  ;;  %v9431_v37 = vld [vmem:[#allocation54_spill] sm:$0xff]  ;;  %v9433_v6 = vld [vmem:[#allocation56_spill] sm:$0xff] }
 0x450   : > { %9428 = vst [vmem:[#allocation36_spill] sm:$0xff] %v7190_v38  ;;  %vm2775_vm1 = vcmp.gt.s32.totalorder %v7183_v22, %v7190_v38 }
 0x451   : > { %9426 = vst [vmem:[#allocation35_spill] sm:$0xff] %v7185_v2  ;;  %vm7195_vm2 = vcmp.eq.s32.totalorder %v5870_v15, %v2175_v35  ;;  %v1949_v55 = vadd.s32 %v1948_v20, %v1946_v60  ;;  %2765 = vmax.xlane.f32.xlu1 %v7185_v2  ;;  %vm2225_vm3 = vcmp.eq.s32.totalorder %v5872_v18, %v2175_v35  ;;  %v1964_v60 = vshll.u32 %v1963_v51, 16 }
 0x452   : > { %v7203_v43 = vsel %vm2775_vm1, %v7183_v22, %v7190_v38  ;;  %v7208_v46 = vsel %vm7195_vm2, 4294967295, %v9431_v37  ;;  %v1961_v32 = vpop.xlane.xlu1 %1960  ;;  %vm4836_vm4 = vmpackc.low %vm2225_vm3, %vm7176_vm15  ;;  %v7213_v31 = vsel %vm2225_vm3, 4294967295, %v9433_v6  ;;  %v5343_v22 = vld [vmem:[#allocation7 + $0x70] ss:$24 sps:$4 sm:$0xff]  }
 0x453   : > { %9432 = vst [vmem:[#allocation37_spill] sm:$0xff] %v7208_v46  ;;  %9434 = vst [vmem:[#allocation38_spill] sm:$0xff] %v7213_v31  ;;  %v2778_v20 = vshra.s32 %v7203_v43, 16  ;;  %v2176_v35 = vand.u32 65535, %v1949_v55  ;;  %v1962_v2 = vcvt.f32.s32 %v1961_v32  ;;  %4837 = vmatprep.subr.msk.bf16.mxu1 %vm4836_vm4, %v9334_v54  ;;  %vm2791_vm6 = vcmp.gt.s32.totalorder %v7208_v46, %v7213_v31  ;;  %v9441_v32 = vld [vmem:[#allocation60_spill] sm:$0xff] }
 0x454   : > { %vm4838_vm5 = vmpackc.low %vm7195_vm2, %vm7168_vm14  ;;  %v7228_v37 = vsel %vm2791_vm6, %v7208_v46, %v7213_v31  ;;  %v5337_v55 = vld [vmem:[#allocation7 + $0x10] ss:$24 sps:$4 sm:$0xff]   ;;  %v5345_v46 = vld [vmem:[#allocation7 + $0x74] ss:$24 sps:$4 sm:$0xff]  }
 0x455   : > { %4839 = vmatpush1.bf16.xpose.msk.msra.mxu1 %vm4838_vm5, %v9334_v54  ;;  %v7224_v58 = vcvt.s32.f32 %v2778_v20  ;;  %9436 = vst [vmem:[#allocation40_spill] sm:$0xff] %v7228_v37  ;;  %vm7231_vm7 = vcmp.eq.s32.totalorder %v5870_v15, %v2176_v35  ;;  %v1965_v4 = vadd.s32 %v1964_v60, %v1962_v2  ;;  %v2794_v51 = vshra.s32 %v7228_v37, 16  ;;  %v9443_v20 = vld [vmem:[#allocation61_spill] sm:$0xff] }
 0x456   : > { %vm7237_vm8 = vcmp.eq.s32.totalorder %v5872_v18, %v2176_v35  ;;  %v7245_v6 = vsel %vm7231_vm7, 4294967295, %v9441_v32 }
 0x457   : > { %9435 = vst [vmem:[#allocation39_spill] sm:$0xff] %v7224_v58  ;;  %2781 = vmax.xlane.f32.xlu0 %v7224_v58  ;;  %9442 = vst [vmem:[#allocation41_spill] sm:$0xff] %v7245_v6  ;;  %v7250_v31 = vsel %vm7237_vm8, 4294967295, %v9443_v20  ;;  %v2177_v2 = vand.u32 65535, %v1965_v4  ;;  %v7252_v60 = vcvt.s32.f32 %v2794_v51  ;;  %v9447_v20 = vld [vmem:[#allocation62_spill] sm:$0xff]  ;;  %v9449_v4 = vld [vmem:[#allocation64_spill] sm:$0xff] }
 0x458   : > { %9444 = vst [vmem:[#allocation42_spill] sm:$0xff] %v7250_v31  ;;  %vm2807_vm9 = vcmp.gt.s32.totalorder %v7245_v6, %v7250_v31 }
 0x459   : > { %9445 = vst [vmem:[#allocation44_spill] sm:$0xff] %v7252_v60  ;;  %v7258_v35 = vsel %vm2807_vm9, %v7245_v6, %v7250_v31  ;;  %vm2228_vm10 = vcmp.eq.s32.totalorder %v5870_v15, %v2177_v2  ;;  %2797 = vmax.xlane.f32.xlu1 %v7252_v60  ;;  %vm2229_vm11 = vcmp.eq.s32.totalorder %v5872_v18, %v2177_v2  ;;  %v5340_v6 = vld [vmem:[#allocation7 + $0x40] ss:$24 sps:$4 sm:$0xff]  }
 0x45a   : > { %9446 = vst [vmem:[#allocation45_spill] sm:$0xff] %v7258_v35  ;;  %v2810_v32 = vshra.s32 %v7258_v35, 16  ;;  %v7265_v38 = vsel %vm2228_vm10, 4294967295, %v9447_v20  ;;  %vm4840_vm12 = vmpackc.low %vm2229_vm11, %vm7237_vm8  ;;  %v7270_v51 = vsel %vm2229_vm11, 4294967295, %v9449_v4  ;;  %v5342_v4 = vld [vmem:[#allocation7 + $0x44] ss:$24 sps:$4 sm:$0xff]  }
 0x45b   : > { %9448 = vst [vmem:[#allocation46_spill] sm:$0xff] %v7265_v38  ;;  %9450 = vst [vmem:[#allocation48_spill] sm:$0xff] %v7270_v51  ;;  %4841 = vmatprep.subr.msk.bf16.mxu1 %vm4840_vm12, %v9334_v54  ;;  %vm2823_vm14 = vcmp.gt.s32.totalorder %v7265_v38, %v7270_v51 }
 0x45c   : > { %vm4842_vm13 = vmpackc.low %vm2228_vm10, %vm7231_vm7  ;;  %v7275_v31 = vcvt.s32.f32 %v2810_v32  ;;  %v7282_v2 = vsel %vm2823_vm14, %v7265_v38, %v7270_v51  ;;  %v5339_v32 = vld [vmem:[#allocation7 + $0x14] ss:$24 sps:$4 sm:$0xff]   ;;  %v5348_v51 = vld [vmem:[#allocation7 + $0xa4] ss:$24 sps:$4 sm:$0xff]  }
 0x45d   : > { %4843 = vmatpush1.bf16.xpose.msk.msra.mxu1 %vm4842_vm13, %v9334_v54  ;;  %9452 = vst [vmem:[#allocation53_spill] sm:$0xff] %v7282_v2  ;;  %v2826_v42 = vshra.s32 %v7282_v2, 16  ;;  %937 = vmatprep.subr.bf16.mxu0 %v5339_v32  ;;  %v5346_v38 = vld [vmem:[#allocation7 + $0xa0] ss:$24 sps:$4 sm:$0xff]   ;;  %v5357_v32 = vld [vmem:[#allocation7 + $0x134] ss:$24 sps:$4 sm:$0xff]  }
 0x45e   : > { %9451 = vst [vmem:[#allocation52_spill] sm:$0xff] %v7275_v31  ;;  %2813 = vmax.xlane.f32.xlu0 %v7275_v31  ;;  %938 = vmatpush1.bf16.msra.mxu0 %v5337_v55  ;;  %v5351_v31 = vld [vmem:[#allocation7 + $0xd4] ss:$24 sps:$4 sm:$0xff]   ;;  %v5352_v2 = vld [vmem:[#allocation7 + $0x100] ss:$24 sps:$4 sm:$0xff]  }
 0x45f   : > { %v7286_v20 = vcvt.s32.f32 %v2826_v42  ;;  %939 = vmatprep.subr.bf16.mxu0 %v5342_v4  ;;  %v5349_v42 = vld [vmem:[#allocation7 + $0xd0] ss:$24 sps:$4 sm:$0xff]   ;;  %v5360_v4 = vld [vmem:[#allocation7 + $0x164] ss:$24 sps:$4 sm:$0xff]  }
 0x460   : > { %v5355_v55 = vld [vmem:[#allocation7 + $0x130] ss:$24 sps:$4 sm:$0xff]  }
 0x461   : > { %9453 = vst [vmem:[#allocation54_spill] sm:$0xff] %v7286_v20  ;;  %2829 = vmax.xlane.f32.xlu1 %v7286_v20  ;;  %v5354_v20 = vld [vmem:[#allocation7 + $0x104] ss:$24 sps:$4 sm:$0xff]  }
 0x462   : > { %940 = vmatpush1.bf16.msra.mxu0 %v5340_v6  ;;  %v5358_v6 = vld [vmem:[#allocation7 + $0x160] ss:$24 sps:$4 sm:$0xff]  }
 0x463   : > { %941 = vmatprep.subr.bf16.mxu0 %v5345_v46  ;;  %v5363_v46 = vld [vmem:[#allocation7 + $0x194] ss:$24 sps:$4 sm:$0xff]  }
 0x466   : > { %942 = vmatpush1.bf16.msra.mxu0 %v5343_v22  ;;  %v5361_v22 = vld [vmem:[#allocation7 + $0x190] ss:$24 sps:$4 sm:$0xff]  }
 0x467   : > { %943 = vmatprep.subr.bf16.mxu0 %v5348_v51  ;;  %v5366_v51 = vld [vmem:[#allocation7 + $0x1c4] ss:$24 sps:$4 sm:$0xff]  }
 0x46a   : > { %944 = vmatpush1.bf16.msra.mxu0 %v5346_v38  ;;  %v5364_v38 = vld [vmem:[#allocation7 + $0x1c0] ss:$24 sps:$4 sm:$0xff]  }
 0x46b   : > { %945 = vmatprep.subr.bf16.mxu0 %v5351_v31  ;;  %v5369_v31 = vld [vmem:[#allocation7 + $0x1f4] ss:$24 sps:$4 sm:$0xff]  }
 0x46e   : > { %946 = vmatpush1.bf16.msra.mxu0 %v5349_v42  ;;  %v1979_v42 = vcvt.f32.s32 %v6553_v48  ;;  %v5373_v48 = vld [vmem:[#allocation7 + $0x250] ss:$24 sps:$4 sm:$0xff]  }
 0x46f   : > { %947 = vmatprep.subr.bf16.mxu0 %v5354_v20  ;;  %v5367_v20 = vld [vmem:[#allocation7 + $0x1f0] ss:$24 sps:$4 sm:$0xff]  }
 0x470   : > { %v1980_v60 = vshll.u32 %v1979_v42, 16 }
 0x472   : > { %948 = vmatpush1.bf16.msra.mxu0 %v5352_v2  ;;  %v5372_v2 = vld [vmem:[#allocation7 + $0x224] ss:$24 sps:$4 sm:$0xff]  }
 0x473   : > { %949 = vmatprep.subr.bf16.mxu0 %v5357_v32 }
 0x476   : > { %950 = vmatpush1.bf16.msra.mxu0 %v5355_v55  ;;  %v1995_v55 = vcvt.f32.s32 %v6573_v28 }
 0x477   : > { %951 = vmatprep.subr.bf16.mxu0 %v5360_v4 }
 0x478   : > { %v1996_v58 = vshll.u32 %v1995_v55, 16  ;;  %v2011_v55 = vcvt.f32.s32 %v6600_v27 }
 0x47a   : > { %952 = vmatpush1.bf16.msra.mxu0 %v5358_v6  ;;  %v5370_v6 = vld [vmem:[#allocation7 + $0x220] ss:$24 sps:$4 sm:$0xff]  }
 0x47b   : > { %953 = vmatprep.subr.bf16.mxu0 %v5363_v46  ;;  %v5375_v46 = vld [vmem:[#allocation7 + $0x254] ss:$24 sps:$4 sm:$0xff]  }
 0x47e   : > { %954 = vmatpush1.bf16.msra.mxu0 %v5361_v22 }
 0x47f   : > { %955 = vmatprep.subr.bf16.mxu0 %v5366_v51 }
 0x482   : > { %956 = vmatpush1.bf16.msra.mxu0 %v5364_v38  ;;  %v2521_v38 = vand.u32 65535, %v6606_v45 }
 0x483   : > { %957 = vmatprep.subr.bf16.mxu0 %v5369_v31  ;;  %v2553_v31 = vand.u32 65535, %v6703_v10 }
 0x486   : > { %958 = vmatpush1.bf16.msra.mxu0 %v5367_v20  ;;  %v2537_v20 = vand.u32 65535, %v6638_v63 }
 0x487   : > { %959 = vmatprep.subr.bf16.mxu0 %v5372_v2 }
 0x488   : > { %v2539_v27 = vcvt.s32.f32 %v2537_v20 }
 0x48a   : > { %960 = vmatpush1.bf16.msra.mxu0 %v5370_v6 }
 0x48b   : > { %961 = vmatprep.subr.bf16.mxu0 %v5375_v46  ;;  %v9463_v46 = vld [vmem:[#allocation70_spill] sm:$0xff] }
 0x48e   : > { %962 = vmatpush1.bf16.msra.mxu0 %v5373_v48  ;;  %v2027_v48 = vcvt.f32.s32 %v6644_v52 }
 0x49a   : > { %v1977_v32 = vpop.xlane.xlu0 %1976 }
 0x49b   : > { %v1978_v4 = vcvt.f32.s32 %v1977_v32  ;;  %v5376_v32 = vld [vmem:[#allocation7 + $0x280] ss:$24 sps:$4 sm:$0xff]  }
 0x49d   : > { %v1981_v35 = vadd.s32 %v1980_v60, %v1978_v4  ;;  %v5378_v60 = vld [vmem:[#allocation7 + $0x284] ss:$24 sps:$4 sm:$0xff]  }
 0x49e   : > { %v1993_v22 = vpop.xlane.xlu1 %1992  ;;  %963 = vmatprep.subr.bf16.mxu0 %v5378_v60  ;;  %v9461_v4 = vld [vmem:[#allocation69_spill] sm:$0xff] }
 0x49f   : > { %v2178_v51 = vand.u32 65535, %v1981_v35  ;;  %v1994_v37 = vcvt.f32.s32 %v1993_v22  ;;  %964 = vmatpush1.bf16.msra.mxu0 %v5376_v32 }
 0x4a1   : > { %vm7293_vm15 = vcmp.eq.s32.totalorder %v5870_v15, %v2178_v51  ;;  %v1997_v28 = vadd.s32 %v1996_v58, %v1994_v37  ;;  %vm7298_vm1 = vcmp.eq.s32.totalorder %v5872_v18, %v2178_v51  ;;  %v5381_v51 = vld [vmem:[#allocation7 + $0x2b4] ss:$24 sps:$4 sm:$0xff]  }
 0x4a2   : > { %v7305_v35 = vsel %vm7293_vm15, 4294967295, %v6219_v3  ;;  %v7310_v45 = vsel %vm7298_vm1, 4294967295, %v6222_v47  ;;  %v2523_v47 = vcvt.s32.f32 %v2521_v38  ;;  %v2012_v3 = vshll.u32 %v2011_v55, 16  ;;  %965 = vmatprep.subr.bf16.mxu0 %v5381_v51 }
 0x4a3   : > { %9458 = vst [vmem:[#allocation56_spill] sm:$0xff] %v7310_v45  ;;  %v2179_v58 = vand.u32 65535, %v1997_v28  ;;  %vm2839_vm2 = vcmp.gt.s32.totalorder %v7305_v35, %v7310_v45  ;;  %v7324_v2 = vpop.xlane.xlu0 %2525  ;;  %v2555_v55 = vcvt.s32.f32 %v2553_v31 }
 0x4a4   : > { %v7317_v37 = vsel %vm2839_vm2, %v7305_v35, %v7310_v45  ;;  %vm2527_vm5 = vcmp.eq.f32.partialorder %v6642_v34, %v7324_v2 }
 0x4a5   : > { %vm7320_vm3 = vcmp.eq.s32.totalorder %v5870_v15, %v2179_v58  ;;  %vm2233_vm4 = vcmp.eq.s32.totalorder %v5872_v18, %v2179_v58  ;;  %v2842_v63 = vshra.s32 %v7317_v37, 16  ;;  %v2528_v38 = vsel %vm2527_vm5, %v2523_v47, -inf  ;;  %v5379_v58 = vld [vmem:[#allocation7 + $0x2b0] ss:$24 sps:$4 sm:$0xff]  }
 0x4a6   : > { %v7332_v6 = vsel %vm7320_vm3, 4294967295, %v9461_v4  ;;  %vm4844_vm6 = vmpackc.low %vm2233_vm4, %vm7298_vm1  ;;  %v7339_v22 = vsel %vm2233_vm4, 4294967295, %v9463_v46  ;;  %v7342_v28 = vpop.xlane.xlu1 %2541  ;;  %2529 = vmax.xlane.f32.xlu0 %v2528_v38  ;;  %v2028_v4 = vshll.u32 %v2027_v48, 16  ;;  %v2043_v46 = vcvt.f32.s32 %v6676_v53  ;;  %966 = vmatpush1.bf16.msra.mxu0 %v5379_v58 }
 0x4a7   : > { %9462 = vst [vmem:[#allocation60_spill] sm:$0xff] %v7332_v6  ;;  %9464 = vst [vmem:[#allocation61_spill] sm:$0xff] %v7339_v22  ;;  %4845 = vmatprep.subr.msk.bf16.mxu1 %vm4844_vm6, %v9334_v54  ;;  %vm2855_vm8 = vcmp.gt.s32.totalorder %v7332_v6, %v7339_v22  ;;  %vm2543_vm9 = vcmp.eq.f32.partialorder %v6654_v57, %v7342_v28  ;;  %v7354_v34 = vcvt.s32.f32 %v2842_v63  ;;  %v2009_v42 = vpop.xlane.xlu0 %2008  ;;  %v2569_v38 = vand.u32 65535, %v6722_v24 }
 0x4a8   : > { %vm4846_vm7 = vmpackc.low %vm7320_vm3, %vm7293_vm15  ;;  %v7358_v52 = vsel %vm2855_vm8, %v7332_v6, %v7339_v22  ;;  %v2544_v60 = vsel %vm2543_vm9, %v2539_v27, -inf  ;;  %v2010_v47 = vcvt.f32.s32 %v2009_v42  ;;  %v2059_v27 = vcvt.f32.s32 %v6726_v21 }
 0x4a9   : > { %4847 = vmatpush1.bf16.xpose.msk.msra.mxu1 %vm4846_vm7, %v9334_v54  ;;  %v2858_v20 = vshra.s32 %v7358_v52, 16  ;;  %2545 = vmax.xlane.f32.xlu1 %v2544_v60  ;;  %v2044_v24 = vshll.u32 %v2043_v46, 16  ;;  %v2571_v31 = vcvt.s32.f32 %v2569_v38  ;;  %v2091_v38 = vcvt.f32.s32 %v6810_v49 }
 0x4aa   : > { %v2025_v57 = vpop.xlane.xlu1 %2024  ;;  %v2013_v22 = vadd.s32 %v2012_v3, %v2010_v47  ;;  %2845 = vmax.xlane.f32.xlu0 %v7354_v34  ;;  %v2075_v47 = vcvt.f32.s32 %v6758_v59 }
 0x4ab   : > { %v7362_v63 = vcvt.s32.f32 %v2858_v20  ;;  %v2026_v10 = vcvt.f32.s32 %v2025_v57  ;;  %v2060_v20 = vshll.u32 %v2059_v27, 16 }
 0x4ac   : > { %v7368_v32 = vpop.xlane.xlu0 %2557  ;;  %v2180_v42 = vand.u32 65535, %v2013_v22  ;;  %v9467_v22 = vld [vmem:[#allocation71_spill] sm:$0xff] }
 0x4ad   : > { %v2029_v51 = vadd.s32 %v2028_v4, %v2026_v10  ;;  %2861 = vmax.xlane.f32.xlu1 %v7362_v63  ;;  %vm2559_vm10 = vcmp.eq.f32.partialorder %v6724_v7, %v7368_v32  ;;  %v9473_v10 = vld [vmem:[#allocation73_spill] sm:$0xff]  ;;  %v2092_v4 = vshll.u32 %v2091_v38, 16  ;;  %v9481_v38 = vld [vmem:[#allocation75_spill] sm:$0xff] }
 0x4ae   : > { %v2560_v53 = vsel %vm2559_vm10, %v2555_v55, -inf  ;;  %v7373_v48 = vpop.xlane.xlu1 %2573  ;;  %vm7376_vm11 = vcmp.eq.s32.totalorder %v5870_v15, %v2180_v42  ;;  %vm7388_vm13 = vcmp.eq.s32.totalorder %v5872_v18, %v2180_v42  ;;  %v9475_v55 = vld [vmem:[#allocation72_spill] sm:$0xff] }
 0x4af   : > { %v2181_v21 = vand.u32 65535, %v2029_v51  ;;  %2561 = vmax.xlane.f32.xlu0 %v2560_v53  ;;  %v7383_v58 = vsel %vm7376_vm11, 4294967295, %v9467_v22  ;;  %vm2575_vm12 = vcmp.eq.f32.partialorder %v6736_v44, %v7373_v48  ;;  %v7408_v59 = vsel %vm7388_vm13, 4294967295, %v9475_v55  ;;  %v9477_v51 = vld [vmem:[#allocation74_spill] sm:$0xff] }
 0x4b0   : > { %9468 = vst [vmem:[#allocation62_spill] sm:$0xff] %v7383_v58  ;;  %v2041_v3 = vpop.xlane.xlu0 %2040  ;;  %v2576_v46 = vsel %vm2575_vm12, %v2571_v31, -inf  ;;  %9476 = vst [vmem:[#allocation69_spill] sm:$0xff] %v7408_v59  ;;  %vm2871_vm3 = vcmp.gt.s32.totalorder %v7383_v58, %v7408_v59 }
 0x4b1   : > { %vm7394_vm14 = vcmp.eq.s32.totalorder %v5870_v15, %v2181_v21  ;;  %v2042_v57 = vcvt.f32.s32 %v2041_v3  ;;  %2577 = vmax.xlane.f32.xlu1 %v2576_v46  ;;  %vm2237_vm15 = vcmp.eq.s32.totalorder %v5872_v18, %v2181_v21  ;;  %v2585_v21 = vand.u32 65535, %v6785_v0 }
 0x4b2   : > { %v7402_v44 = vsel %vm7394_vm14, 4294967295, %v9473_v10  ;;  %v2057_v27 = vpop.xlane.xlu1 %2056  ;;  %vm4850_vm1 = vmpackc.low %vm7394_vm14, %vm7376_vm11  ;;  %v7417_v53 = vsel %vm2237_vm15, 4294967295, %v9477_v51  ;;  %v7427_v60 = vsel %vm2871_vm3, %v7383_v58, %v7408_v59  ;;  %v2601_v0 = vand.u32 65535, %v6806_v61 }
 0x4b3   : > { %9474 = vst [vmem:[#allocation64_spill] sm:$0xff] %v7402_v44  ;;  %v2045_v49 = vadd.s32 %v2044_v24, %v2042_v57  ;;  %v2058_v42 = vcvt.f32.s32 %v2057_v27  ;;  %vm4848_vm2 = vmpackc.low %vm2237_vm15, %vm7388_vm13  ;;  %vm2887_vm4 = vcmp.gt.s32.totalorder %v7402_v44, %v7417_v53  ;;  %v2076_v24 = vshll.u32 %v2075_v47, 16 }
 0x4b4   : > { %9478 = vst [vmem:[#allocation70_spill] sm:$0xff] %v7417_v53  ;;  %v7422_v31 = vpop.xlane.xlu0 %2589  ;;  %4849 = vmatprep.subr.msk.bf16.mxu1 %vm4848_vm2, %v9334_v54  ;;  %v2874_v7 = vshra.s32 %v7427_v60, 16  ;;  %v2107_v57 = vcvt.f32.s32 %v6842_v41  ;;  %v7439_v10 = vsel %vm2887_vm4, %v7402_v44, %v7417_v53  ;;  %v2123_v61 = vcvt.f32.s32 %v6892_v25  ;;  %v9485_v25 = vld [vmem:[#allocation77_spill] sm:$0xff]  ;;  %v9487_v44 = vld [vmem:[#allocation76_spill] sm:$0xff] }
 0x4b5   : > { %v2182_v22 = vand.u32 65535, %v2045_v49  ;;  %v2061_v3 = vadd.s32 %v2060_v20, %v2058_v42  ;;  %4851 = vmatpush1.bf16.xpose.msk.msra.mxu1 %vm4850_vm1, %v9334_v54  ;;  %v2890_v42 = vshra.s32 %v7439_v10, 16  ;;  %vm2591_vm6 = vcmp.eq.f32.partialorder %v6808_v62, %v7422_v31 }
 0x4b6   : > { %v7435_v46 = vpop.xlane.xlu1 %2605  ;;  %v7447_v55 = vcvt.s32.f32 %v2874_v7  ;;  %v2587_v27 = vcvt.s32.f32 %v2585_v21  ;;  %v2108_v58 = vshll.u32 %v2107_v57, 16  ;;  %v2603_v62 = vcvt.s32.f32 %v2601_v0 }
 0x4b7   : > { %vm7443_vm5 = vcmp.eq.s32.totalorder %v5870_v15, %v2182_v22  ;;  %v2183_v47 = vand.u32 65535, %v2061_v3  ;;  %vm2239_vm8 = vcmp.eq.s32.totalorder %v5872_v18, %v2182_v22  ;;  %v9489_v22 = vld [vmem:[#allocation78_spill] sm:$0xff]  ;;  %vm2607_vm12 = vcmp.eq.f32.partialorder %v6820_v5, %v7435_v46 }
 0x4b8   : > { %v7453_v41 = vsel %vm7443_vm5, 4294967295, %v9481_v38  ;;  %v2073_v49 = vpop.xlane.xlu0 %2072  ;;  %2877 = vmax.xlane.f32.xlu0 %v7447_v55  ;;  %v7471_v38 = vcvt.s32.f32 %v2890_v42  ;;  %v7474_v59 = vsel %vm2239_vm8, 4294967295, %v9487_v44  ;;  %v2592_v44 = vsel %vm2591_vm6, %v2587_v27, -inf }
 0x4b9   : > { %9482 = vst [vmem:[#allocation71_spill] sm:$0xff] %v7453_v41  ;;  %vm7459_vm7 = vcmp.eq.s32.totalorder %v5870_v15, %v2183_v47  ;;  %v2074_v3 = vcvt.f32.s32 %v2073_v49  ;;  %vm2241_vm9 = vcmp.eq.s32.totalorder %v5872_v18, %v2183_v47  ;;  %9488 = vst [vmem:[#allocation72_spill] sm:$0xff] %v7474_v59  ;;  %vm2903_vm13 = vcmp.gt.s32.totalorder %v7453_v41, %v7474_v59 }
 0x4ba   : > { %v7469_v7 = vsel %vm7459_vm7, 4294967295, %v9485_v25  ;;  %v2089_v53 = vpop.xlane.xlu1 %2088  ;;  %vm4852_vm10 = vmpackc.low %vm2241_vm9, %vm2239_vm8  ;;  %v7478_v47 = vsel %vm2241_vm9, 4294967295, %v9489_v22  ;;  %2893 = vmax.xlane.f32.xlu1 %v7471_v38  ;;  %v7499_v27 = vsel %vm2903_vm13, %v7453_v41, %v7474_v59  ;;  %v2124_v42 = vshll.u32 %v2123_v61, 16 }
 0x4bb   : > { %9486 = vst [vmem:[#allocation73_spill] sm:$0xff] %v7469_v7  ;;  %v2077_v6 = vadd.s32 %v2076_v24, %v2074_v3  ;;  %v2090_v49 = vcvt.f32.s32 %v2089_v53  ;;  %4853 = vmatprep.subr.msk.bf16.mxu1 %vm4852_vm10, %v9334_v54  ;;  %9490 = vst [vmem:[#allocation74_spill] sm:$0xff] %v7478_v47  ;;  %vm2919_vm14 = vcmp.gt.s32.totalorder %v7469_v7, %v7478_v47  ;;  %v5382_v53 = vld [vmem:[#allocation7 + $0x2e0] ss:$24 sps:$4 sm:$0xff]   ;;  %v5384_v24 = vld [vmem:[#allocation7 + $0x2e4] ss:$24 sps:$4 sm:$0xff]   ;;  %v2155_v61 = vcvt.f32.s32 %v6972_v16 }
 0x4bc   : > { %vm4854_vm11 = vmpackc.low %vm7459_vm7, %vm7443_vm5  ;;  %v7488_v21 = vpop.xlane.xlu0 %2621  ;;  %2593 = vmax.xlane.f32.xlu0 %v2592_v44  ;;  %v2633_v51 = vand.u32 65535, %v6888_v13  ;;  %v2906_v3 = vshra.s32 %v7499_v27, 16  ;;  %v7507_v22 = vsel %vm2919_vm14, %v7469_v7, %v7478_v47  ;;  %967 = vmatprep.subr.bf16.mxu0 %v5384_v24  ;;  %v2608_v13 = vsel %vm2607_vm12, %v2603_v62, -inf  ;;  %v9498_v62 = vld [vmem:[#allocation81_spill] sm:$0xff]  ;;  %v9500_v47 = vld [vmem:[#allocation80_spill] sm:$0xff] }
 0x4bd   : > { %v2184_v57 = vand.u32 65535, %v2077_v6  ;;  %v2093_v20 = vadd.s32 %v2092_v4, %v2090_v49  ;;  %4855 = vmatpush1.bf16.xpose.msk.msra.mxu1 %vm4854_vm11, %v9334_v54  ;;  %v2139_v6 = vcvt.f32.s32 %v6924_v9  ;;  %968 = vmatpush1.bf16.msra.mxu0 %v5382_v53  ;;  %v2922_v24 = vshra.s32 %v7507_v22, 16  ;;  %v9493_v9 = vld [vmem:[#allocation79_spill] sm:$0xff] }
 0x4be   : > { %v7503_v25 = vpop.xlane.xlu1 %2637  ;;  %2609 = vmax.xlane.f32.xlu1 %v2608_v13  ;;  %v7519_v49 = vcvt.s32.f32 %v2906_v3  ;;  %vm2623_vm1 = vcmp.eq.f32.partialorder %v6890_v12, %v7488_v21  ;;  %v9503_v7 = vand.u32 65535, %v6869_v19  ;;  %v2635_v45 = vcvt.s32.f32 %v2633_v51 }
 0x4bf   : > { %vm7511_vm15 = vcmp.eq.s32.totalorder %v5870_v15, %v2184_v57  ;;  %v2185_v0 = vand.u32 65535, %v2093_v20  ;;  %vm7535_vm3 = vcmp.eq.s32.totalorder %v5872_v18, %v2184_v57  ;;  %v7545_v13 = vcvt.s32.f32 %v2922_v24  ;;  %v9502_v57 = vld [vmem:[#allocation14_spill] sm:$0xff] }
 0x4c0   : > { %v2105_v44 = vpop.xlane.xlu0 %2104  ;;  %v7527_v20 = vsel %vm7511_vm15, 4294967295, %v9493_v9  ;;  %2909 = vmax.xlane.f32.xlu0 %v7519_v49  ;;  %970 = vmatmul.mubr.bf16.vlgmr.msra.gmra.mrb[4].mxu0 %v9502_v57  ;;  %v2619_v24 = vcvt.s32.f32 %v9503_v7  ;;  %vm2639_vm7 = vcmp.eq.f32.partialorder %v6902_v50, %v7503_v25  ;;  %v2649_v53 = vand.u32 65535, %v6951_v36 }
 0x4c1   : > { %vm7530_vm2 = vcmp.eq.s32.totalorder %v5870_v15, %v2185_v0  ;;  %v2106_v16 = vcvt.f32.s32 %v2105_v44  ;;  %vm2245_vm4 = vcmp.eq.s32.totalorder %v5872_v18, %v2185_v0  ;;  %v7551_v44 = vsel %vm7535_vm3, 4294967295, %v9500_v47  ;;  %v9504_v0 = vld [vmem:[#allocation82_spill] sm:$0xff] }
 0x4c2   : > { %v7542_v3 = vsel %vm7530_vm2, 4294967295, %v9498_v62  ;;  %v2121_v9 = vpop.xlane.xlu1 %2120  ;;  %9501 = vst [vmem:[#allocation77_spill] sm:$0xff] %v7551_v44  ;;  %vm4858_vm5 = vmpackc.low %vm7530_vm2, %vm7511_vm15  ;;  %v7563_v41 = vsel %vm2245_vm4, 4294967295, %v9504_v0  ;;  %2925 = vmax.xlane.f32.xlu1 %v7545_v13  ;;  %vm2935_vm8 = vcmp.gt.s32.totalorder %v7527_v20, %v7551_v44  ;;  %v2640_v36 = vsel %vm2639_vm7, %v2635_v45, -inf  ;;  %v9512_v45 = vld [vmem:[#allocation85_spill] sm:$0xff] }
 0x4c3   : > { %9499 = vst [vmem:[#allocation75_spill] sm:$0xff] %v7542_v3  ;;  %v2109_v62 = vadd.s32 %v2108_v58, %v2106_v16  ;;  %v2122_v59 = vcvt.f32.s32 %v2121_v9  ;;  %vm4856_vm6 = vmpackc.low %vm2245_vm4, %vm7535_vm3  ;;  %vm2951_vm9 = vcmp.gt.s32.totalorder %v7542_v3, %v7563_v41  ;;  %v2624_v58 = vsel %vm2623_vm1, %v2619_v24, -inf }
 0x4c4   : > { %9505 = vst [vmem:[#allocation76_spill] sm:$0xff] %v7563_v41  ;;  %v7566_v47 = vpop.xlane.xlu0 %2653  ;;  %4857 = vmatprep.subr.msk.bf16.mxu1 %vm4856_vm6, %v9334_v54  ;;  %v7586_v51 = vsel %vm2935_vm8, %v7527_v20, %v7551_v44  ;;  %v2140_v16 = vshll.u32 %v2139_v6, 16  ;;  %2625 = vmax.xlane.f32.xlu0 %v2624_v58  ;;  %v2156_v6 = vshll.u32 %v2155_v61, 16 }
 0x4c5   : > { %v2186_v19 = vand.u32 65535, %v2109_v62  ;;  %v2125_v7 = vadd.s32 %v2124_v42, %v2122_v59  ;;  %4859 = vmatpush1.bf16.xpose.msk.msra.mxu1 %vm4858_vm5, %v9334_v54  ;;  %v2938_v9 = vshra.s32 %v7586_v51, 16  ;;  %v7594_v59 = vsel %vm2951_vm9, %v7542_v3, %v7563_v41 }
 0x4c6   : > { %v7590_v12 = vpop.xlane.xlu1 %2669  ;;  %v2665_v42 = vand.u32 65535, %v6968_v17  ;;  %2641 = vmax.xlane.f32.xlu1 %v2640_v36  ;;  %v2954_v24 = vshra.s32 %v7594_v59, 16  ;;  %vm2655_vm11 = vcmp.eq.f32.partialorder %v6970_v1, %v7566_v47  ;;  %v9508_v17 = vld [vmem:[#allocation83_spill] sm:$0xff]  ;;  %v9514_v36 = vld [vmem:[#allocation84_spill] sm:$0xff] }
 0x4c7   : > { %vm7598_vm10 = vcmp.eq.s32.totalorder %v5870_v15, %v2186_v19  ;;  %v2187_v5 = vand.u32 65535, %v2125_v7  ;;  %v7605_v57 = vcvt.s32.f32 %v2938_v9  ;;  %vm2247_vm13 = vcmp.eq.s32.totalorder %v5872_v18, %v2186_v19 }
 0x4c8   : > { %v2137_v62 = vpop.xlane.xlu0 %2136  ;;  %v7613_v0 = vsel %vm7598_vm10, 4294967295, %v9508_v17  ;;  %v7627_v7 = vcvt.s32.f32 %v2954_v24  ;;  %v7631_v17 = vsel %vm2247_vm13, 4294967295, %v9514_v36  ;;  %vm2671_vm2 = vcmp.eq.f32.partialorder %v6984_v8, %v7590_v12  ;;  %v9520_v36 = vld [vmem:[#allocation87_spill] sm:$0xff] }
 0x4c9   : > { %9509 = vst [vmem:[#allocation78_spill] sm:$0xff] %v7613_v0  ;;  %vm7616_vm12 = vcmp.eq.s32.totalorder %v5870_v15, %v2187_v5  ;;  %v2138_v50 = vcvt.f32.s32 %v2137_v62  ;;  %2941 = vmax.xlane.f32.xlu0 %v7605_v57  ;;  %vm2249_vm14 = vcmp.eq.s32.totalorder %v5872_v18, %v2187_v5  ;;  %9515 = vst [vmem:[#allocation81_spill] sm:$0xff] %v7631_v17  ;;  %v2651_v62 = vcvt.s32.f32 %v2649_v53 }
 0x4ca   : > { %v7624_v61 = vsel %vm7616_vm12, 4294967295, %v9512_v45  ;;  %v2153_v9 = vpop.xlane.xlu1 %2152  ;;  %vm4862_vm15 = vmpackc.low %vm7616_vm12, %vm7598_vm10  ;;  %v9516_v45 = vld [vmem:[#allocation86_spill] sm:$0xff]  ;;  %2957 = vmax.xlane.f32.xlu1 %v7627_v7  ;;  %v2667_v5 = vcvt.s32.f32 %v2665_v42  ;;  %vm2967_vm3 = vcmp.gt.s32.totalorder %v7613_v0, %v7631_v17 }
 0x4cb   : > { %9513 = vst [vmem:[#allocation79_spill] sm:$0xff] %v7624_v61  ;;  %v2141_v19 = vadd.s32 %v2140_v16, %v2138_v50  ;;  %v2154_v41 = vcvt.f32.s32 %v2153_v9  ;;  %vm4860_vm1 = vmpackc.low %vm2249_vm14, %vm2247_vm13  ;;  %v7638_v44 = vsel %vm2249_vm14, 4294967295, %v9516_v45  ;;  %v2656_v53 = vsel %vm2655_vm11, %v2651_v62, -inf }
 0x4cc   : > { %9517 = vst [vmem:[#allocation80_spill] sm:$0xff] %v7638_v44  ;;  %4861 = vmatprep.subr.msk.bf16.mxu1 %vm4860_vm1, %v9334_v54  ;;  %vm2983_vm4 = vcmp.gt.s32.totalorder %v7624_v61, %v7638_v44  ;;  %v7654_v42 = vsel %vm2967_vm3, %v7613_v0, %v7631_v17  ;;  %v7656_v8 = vpop.xlane.xlu0 %2685  ;;  %v2681_v50 = vand.u32 65535, %v7024_v40  ;;  %v2697_v9 = vand.u32 65535, %v7032_v56  ;;  %v9524_v56 = vld [vmem:[#allocation89_spill] sm:$0xff] }
 0x4cd   : > { %v2188_v16 = vand.u32 65535, %v2141_v19  ;;  %v2157_v4 = vadd.s32 %v2156_v6, %v2154_v41  ;;  %4863 = vmatpush1.bf16.xpose.msk.msra.mxu1 %vm4862_vm15, %v9334_v54  ;;  %2657 = vmax.xlane.f32.xlu0 %v2656_v53  ;;  %v2970_v24 = vshra.s32 %v7654_v42, 16  ;;  %v7661_v58 = vsel %vm2983_vm4, %v7624_v61, %v7638_v44 }
 0x4ce   : > { %v2672_v6 = vsel %vm2671_vm2, %v2667_v5, -inf  ;;  %v2986_v45 = vshra.s32 %v7661_v58, 16  ;;  %v7683_v53 = vpop.xlane.xlu1 %2701  ;;  %vm2687_vm7 = vcmp.eq.f32.partialorder %v7044_v39, %v7656_v8  ;;  %v2683_v17 = vcvt.s32.f32 %v2681_v50 }
 0x4cf   : > { %vm7665_vm5 = vcmp.eq.s32.totalorder %v5870_v15, %v2188_v16  ;;  %v2189_v41 = vand.u32 65535, %v2157_v4  ;;  %2673 = vmax.xlane.f32.xlu1 %v2672_v6  ;;  %v7675_v62 = vcvt.s32.f32 %v2970_v24  ;;  %vm2251_vm8 = vcmp.eq.s32.totalorder %v5872_v18, %v2188_v16  ;;  %v9526_v24 = vld [vmem:[#allocation88_spill] sm:$0xff] }
 0x4d0   : > { %v7673_v19 = vsel %vm7665_vm5, 4294967295, %v9520_v36  ;;  %v7695_v4 = vcvt.s32.f32 %v2986_v45  ;;  %v7698_v6 = vsel %vm2251_vm8, 4294967295, %v9526_v24  ;;  %v9528_v36 = vld [vmem:[#allocation90_spill] sm:$0xff]  ;;  %vm2703_vm14 = vcmp.eq.f32.partialorder %v7056_v33, %v7683_v53 }
 0x4d1   : > { %9521 = vst [vmem:[#allocation14_spill] sm:$0xff] %v7673_v19  ;;  %vm7679_vm6 = vcmp.eq.s32.totalorder %v5870_v15, %v2189_v41  ;;  %vm2253_vm9 = vcmp.eq.s32.totalorder %v5872_v18, %v2189_v41  ;;  %2973 = vmax.xlane.f32.xlu0 %v7675_v62  ;;  %9527 = vst [vmem:[#allocation83_spill] sm:$0xff] %v7698_v6  ;;  %vm2999_vm12 = vcmp.gt.s32.totalorder %v7673_v19, %v7698_v6 }
 0x4d2   : > { %v7692_v5 = vsel %vm7679_vm6, 4294967295, %v9524_v56  ;;  %vm4864_vm10 = vmpackc.low %vm2253_vm9, %vm2251_vm8  ;;  %v7701_v44 = vsel %vm2253_vm9, 4294967295, %v9528_v36  ;;  %v7717_v16 = vsel %vm2999_vm12, %v7673_v19, %v7698_v6  ;;  %v2688_v1 = vsel %vm2687_vm7, %v2683_v17, -inf  ;;  %v9531_v6 = vld [vmem:[#allocation35_spill] sm:$0xff] }
 0x4d3   : > { %9525 = vst [vmem:[#allocation82_spill] sm:$0xff] %v7692_v5  ;;  %9529 = vst [vmem:[#allocation85_spill] sm:$0xff] %v7701_v44  ;;  %4865 = vmatprep.subr.msk.bf16.mxu1 %vm4864_vm10, %v9334_v54  ;;  %vm3015_vm13 = vcmp.gt.s32.totalorder %v7692_v5, %v7701_v44  ;;  %2989 = vmax.xlane.f32.xlu1 %v7695_v4  ;;  %v2699_v41 = vcvt.s32.f32 %v2697_v9  ;;  %v3002_v45 = vshra.s32 %v7717_v16, 16  ;;  %v7729_v33 = vpop.xlane.xlu0 %2717  ;;  %v2713_v56 = vand.u32 65535, %v7074_v30 }
 0x4d4   : > { %vm4866_vm11 = vmpackc.low %vm7679_vm6, %vm7665_vm5  ;;  %v7721_v50 = vsel %vm3015_vm13, %v7692_v5, %v7701_v44  ;;  %v2729_v39 = vand.u32 65535, %v7101_v23  ;;  %v2745_v17 = vand.u32 65535, %v7139_v14  ;;  %vm2719_vm15 = vcmp.eq.f32.partialorder %v7097_v11, %v7729_v33  ;;  %v9530_v23 = vld [vmem:[#allocation33_spill] sm:$0xff] }
 0x4d5   : > { %4867 = vmatpush1.bf16.xpose.msk.msra.mxu1 %vm4866_vm11, %v9334_v54  ;;  %v3018_v40 = vshra.s32 %v7721_v50, 16  ;;  %2689 = vmax.xlane.f32.xlu0 %v2688_v1  ;;  %v2704_v24 = vsel %vm2703_vm14, %v2699_v41, -inf  ;;  %v7732_v36 = vcvt.s32.f32 %v3002_v45  ;;  %v2761_v30 = vand.u32 65535, %v7165_v26 }
 0x4d6   : > { %v7738_v9 = vpop.xlane.xlu1 %2733  ;;  %v2715_v41 = vcvt.s32.f32 %v2713_v56  ;;  %v2731_v45 = vcvt.s32.f32 %v2729_v39  ;;  %v2777_v11 = vand.u32 65535, %v7203_v43 }
 0x4d7   : > { %2705 = vmax.xlane.f32.xlu1 %v2704_v24  ;;  %v7734_v44 = vcvt.s32.f32 %v3018_v40  ;;  %vm2735_vm1 = vcmp.eq.f32.partialorder %v7121_v29, %v7738_v9  ;;  %v2747_v40 = vcvt.s32.f32 %v2745_v17  ;;  %v2763_v5 = vcvt.s32.f32 %v2761_v30  ;;  %v9532_v29 = vld [vmem:[#allocation40_spill] sm:$0xff]  ;;  %v9533_v17 = vld [vmem:[#allocation39_spill] sm:$0xff] }
 0x4d8   : > { %v2720_v14 = vsel %vm2719_vm15, %v2715_v41, -inf  ;;  %v2736_v26 = vsel %vm2735_vm1, %v2731_v45, -inf  ;;  %v2793_v61 = vand.u32 65535, %v9532_v29  ;;  %v2779_v39 = vcvt.s32.f32 %v2777_v11  ;;  %v9534_v41 = vld [vmem:[#allocation45_spill] sm:$0xff]  ;;  %v9535_v30 = vld [vmem:[#allocation44_spill] sm:$0xff] }
 0x4d9   : > { %3005 = vmax.xlane.f32.xlu0 %v7732_v36  ;;  %v9536_v11 = vld [vmem:[#allocation53_spill] sm:$0xff] }
 0x4da   : > { %v7743_v1 = vpop.xlane.xlu0 %2749 }
 0x4db   : > { %3021 = vmax.xlane.f32.xlu1 %v7734_v44  ;;  %vm2751_vm2 = vcmp.eq.f32.partialorder %v9530_v23, %v7743_v1 }
 0x4dc   : > { %v2752_v56 = vsel %vm2751_vm2, %v2747_v40, -inf }
 0x4dd   : > { %2721 = vmax.xlane.f32.xlu0 %v2720_v14  ;;  %v2809_v14 = vand.u32 65535, %v9534_v41  ;;  %v2548_v41 = vcvt.f32.s32 %v7342_v28 }
 0x4de   : > { %v7751_v24 = vpop.xlane.xlu1 %2765 }
 0x4df   : > { %vm2767_vm3 = vcmp.eq.f32.partialorder %v9531_v6, %v7751_v24  ;;  %2737 = vmax.xlane.f32.xlu1 %v2736_v26  ;;  %v2795_v6 = vcvt.s32.f32 %v2793_v61  ;;  %v2811_v40 = vcvt.s32.f32 %v2809_v14  ;;  %v2825_v26 = vand.u32 65535, %v9536_v11  ;;  %v9538_v61 = vld [vmem:[#allocation54_spill] sm:$0xff] }
 0x4e0   : > { %v2768_v19 = vsel %vm2767_vm3, %v2763_v5, -inf }
 0x4e1   : > { %2753 = vmax.xlane.f32.xlu0 %v2752_v56  ;;  %v9537_v56 = vld [vmem:[#allocation52_spill] sm:$0xff] }
 0x4e3   : > { %2769 = vmax.xlane.f32.xlu1 %v2768_v19 }
 0x4e4   : > { %v7757_v23 = vpop.xlane.xlu0 %2781 }
 0x4e5   : > { %vm2783_vm4 = vcmp.eq.f32.partialorder %v9533_v17, %v7757_v23 }
 0x4e6   : > { %v2784_v43 = vsel %vm2783_vm4, %v2779_v39, -inf  ;;  %v7762_v0 = vpop.xlane.xlu1 %2797  ;;  %v2827_v39 = vcvt.s32.f32 %v2825_v26  ;;  %v2857_v26 = vand.u32 65535, %v7358_v52 }
 0x4e7   : > { %2785 = vmax.xlane.f32.xlu0 %v2784_v43  ;;  %vm2799_vm5 = vcmp.eq.f32.partialorder %v9535_v30, %v7762_v0  ;;  %v2532_v43 = vcvt.f32.s32 %v7324_v2 }
 0x4e8   : > { %v2800_v5 = vsel %vm2799_vm5, %v2795_v6, -inf  ;;  %v2841_v6 = vand.u32 65535, %v7317_v37  ;;  %v2859_v52 = vcvt.s32.f32 %v2857_v26 }
 0x4e9   : > { %2801 = vmax.xlane.f32.xlu1 %v2800_v5  ;;  %v2533_v30 = vshll.u32 %v2532_v43, 16 }
 0x4eb   : > { %v7766_v45 = vpop.xlane.xlu0 %2813 }
 0x4ec   : > { %vm2815_vm6 = vcmp.eq.f32.partialorder %v9537_v56, %v7766_v45 }
 0x4ed   : > { %v2816_v19 = vsel %vm2815_vm6, %v2811_v40, -inf  ;;  %v2549_v40 = vshll.u32 %v2548_v41, 16 }
 0x4ee   : > { %2817 = vmax.xlane.f32.xlu0 %v2816_v19  ;;  %v7771_v29 = vpop.xlane.xlu1 %2829 }
 0x4ef   : > { %vm2831_vm7 = vcmp.eq.f32.partialorder %v9538_v61, %v7771_v29  ;;  %v2843_v61 = vcvt.s32.f32 %v2841_v6  ;;  %v9541_v6 = vld [vmem:[#allocation43_spill] sm:$0xff] }
 0x4f0   : > { %v2832_v17 = vsel %vm2831_vm7, %v2827_v39, -inf  ;;  %v2564_v39 = vcvt.f32.s32 %v7368_v32 }
 0x4f1   : > { %2833 = vmax.xlane.f32.xlu1 %v2832_v17 }
 0x533   : > { %v2530_v14 = vpop.xlane.xlu0 %2529 }
 0x534   : > { %v2531_v5 = vcvt.f32.s32 %v2530_v14  ;;  %v2580_v14 = vcvt.f32.s32 %v7373_v48 }
 0x536   : > { %v2546_v11 = vpop.xlane.xlu1 %2545  ;;  %v2534_v56 = vadd.s32 %v2533_v30, %v2531_v5  ;;  %v2565_v5 = vshll.u32 %v2564_v39, 16 }
 0x537   : > { %v2547_v19 = vcvt.f32.s32 %v2546_v11  ;;  %v7779_v3 = vpop.xlane.xlu0 %2845  ;;  %v2873_v11 = vand.u32 65535, %v7427_v60 }
 0x538   : > { %v3031_v17 = vand.u32 65535, %v2534_v56  ;;  %vm2847_vm8 = vcmp.eq.f32.partialorder %v7354_v34, %v7779_v3  ;;  %v9546_v56 = vld [vmem:[#allocation47_spill] sm:$0xff] }
 0x539   : > { %v2550_v2 = vadd.s32 %v2549_v40, %v2547_v19  ;;  %v2848_v28 = vsel %vm2847_vm8, %v2843_v61, -inf }
 0x53a   : > { %v7784_v37 = vpop.xlane.xlu1 %2861  ;;  %vm7787_vm9 = vcmp.eq.s32.totalorder %v5870_v15, %v3031_v17  ;;  %2849 = vmax.xlane.f32.xlu0 %v2848_v28  ;;  %vm7798_vm11 = vcmp.eq.s32.totalorder %v5872_v18, %v3031_v17  ;;  %v9548_v17 = vld [vmem:[#allocation50_spill] sm:$0xff]  ;;  %v2581_v28 = vshll.u32 %v2580_v14, 16  ;;  %v2596_v14 = vcvt.f32.s32 %v7422_v31  ;;  %v9554_v31 = vld [vmem:[#allocation57_spill] sm:$0xff] }
 0x53b   : > { %v3032_v41 = vand.u32 65535, %v2550_v2  ;;  %v3328_v32 = vsel %vm7787_vm9, 4294967295, %v9541_v6  ;;  %vm2863_vm10 = vcmp.eq.f32.partialorder %v7362_v63, %v7784_v37  ;;  %v9547_v63 = vld [vmem:[#allocation49_spill] sm:$0xff] }
 0x53c   : > { %v2562_v30 = vpop.xlane.xlu0 %2561  ;;  %v2864_v40 = vsel %vm2863_vm10, %v2859_v52, -inf  ;;  %v3329_v26 = vsel %vm7798_vm11, 4294967295, %v9547_v63 }
 0x53d   : > { %vm7803_vm12 = vcmp.eq.s32.totalorder %v5870_v15, %v3032_v41  ;;  %v2563_v48 = vcvt.f32.s32 %v2562_v30  ;;  %2865 = vmax.xlane.f32.xlu1 %v2864_v40  ;;  %vm3066_vm13 = vcmp.eq.s32.totalorder %v5872_v18, %v3032_v41  ;;  %vm3392_vm1 = vcmp.gt.s32.totalorder %v3328_v32, %v3329_v26 }
 0x53e   : > { %v3330_v19 = vsel %vm7803_vm12, 4294967295, %v9546_v56  ;;  %vm4934_vm14 = vmpackc.low %vm7803_vm12, %vm7787_vm9  ;;  %v2578_v39 = vpop.xlane.xlu1 %2577  ;;  %v3331_v2 = vsel %vm3066_vm13, 4294967295, %v9548_v17  ;;  %v7822_v41 = vsel %vm3392_vm1, %v3328_v32, %v3329_v26  ;;  %v9553_v56 = vld [vmem:[#allocation51_spill] sm:$0xff]  ;;  %v2644_v40 = vcvt.f32.s32 %v7503_v25 }
 0x53f   : > { %v2566_v61 = vadd.s32 %v2565_v5, %v2563_v48  ;;  %vm4932_vm15 = vmpackc.low %vm3066_vm13, %vm7798_vm11  ;;  %v2579_v52 = vcvt.f32.s32 %v2578_v39  ;;  %vm3408_vm2 = vcmp.gt.s32.totalorder %v3330_v19, %v3331_v2  ;;  %v3395_v43 = vshra.s32 %v7822_v41, 16 }
 0x540   : > { %4933 = vmatprep.subr.msk.bf16.mxu0 %vm4932_vm15, %v9334_v54  ;;  %v7826_v30 = vsel %vm3408_vm2, %v3330_v19, %v3331_v2  ;;  %v2875_v2 = vcvt.s32.f32 %v2873_v11  ;;  %v2676_v25 = vcvt.f32.s32 %v7590_v12 }
 0x541   : > { %v3033_v6 = vand.u32 65535, %v2566_v61  ;;  %4935 = vmatpush1.bf16.xpose.msk.msra.mxu0 %vm4934_vm14, %v9334_v54  ;;  %v2582_v5 = vadd.s32 %v2581_v28, %v2579_v52  ;;  %v3411_v34 = vshra.s32 %v7826_v30, 16  ;;  %v7836_v32 = vcvt.s32.f32 %v3395_v43 }
 0x542   : > { %v2889_v61 = vand.u32 65535, %v7439_v10  ;;  %v2597_v52 = vshll.u32 %v2596_v14, 16  ;;  %v9558_v10 = vld [vmem:[#allocation58_spill] sm:$0xff] }
 0x543   : > { %vm7832_vm3 = vcmp.eq.s32.totalorder %v5870_v15, %v3033_v6  ;;  %vm7839_vm4 = vcmp.eq.s32.totalorder %v5872_v18, %v3033_v6  ;;  %v3034_v63 = vand.u32 65535, %v2582_v5  ;;  %v7846_v60 = vcvt.s32.f32 %v3411_v34  ;;  %3398 = vmax.xlane.f32.xlu0 %v7836_v32  ;;  %v9557_v6 = vld [vmem:[#allocation55_spill] sm:$0xff] }
 0x544   : > { %v3332_v19 = vsel %vm7832_vm3, 4294967295, %v9553_v56  ;;  %v3333_v26 = vsel %vm7839_vm4, 4294967295, %v9554_v31  ;;  %v2612_v34 = vcvt.f32.s32 %v7435_v46  ;;  %v2891_v46 = vcvt.s32.f32 %v2889_v61 }
 0x545   : > { %vm3424_vm5 = vcmp.gt.s32.totalorder %v3332_v19, %v3333_v26  ;;  %vm7854_vm6 = vcmp.eq.s32.totalorder %v5870_v15, %v3034_v63  ;;  %v7858_v17 = vpop.xlane.xlu0 %2877  ;;  %3414 = vmax.xlane.f32.xlu1 %v7846_v60  ;;  %vm3070_vm7 = vcmp.eq.s32.totalorder %v5872_v18, %v3034_v63  ;;  %v2660_v63 = vcvt.f32.s32 %v7566_v47 }
 0x546   : > { %v7862_v28 = vsel %vm3424_vm5, %v3332_v19, %v3333_v26  ;;  %v3334_v43 = vsel %vm7854_vm6, 4294967295, %v9557_v6  ;;  %vm2879_vm8 = vcmp.eq.f32.partialorder %v7447_v55, %v7858_v17  ;;  %vm4936_vm9 = vmpackc.low %vm3070_vm7, %vm7839_vm4  ;;  %v3335_v5 = vsel %vm3070_vm7, 4294967295, %v9558_v10 }
 0x547   : > { %v2880_v11 = vsel %vm2879_vm8, %v2875_v2, -inf  ;;  %4937 = vmatprep.subr.msk.bf16.mxu0 %vm4936_vm9, %v9334_v54  ;;  %vm3440_vm10 = vcmp.gt.s32.totalorder %v3334_v43, %v3335_v5  ;;  %vm4938_vm11 = vmpackc.low %vm7854_vm6, %vm7832_vm3  ;;  %v3427_v14 = vshra.s32 %v7862_v28, 16  ;;  %v2628_v55 = vcvt.f32.s32 %v7488_v21  ;;  %v7881_v56 = vpop.xlane.xlu1 %2893 }
 0x548   : > { %2881 = vmax.xlane.f32.xlu0 %v2880_v11  ;;  %v7884_v19 = vsel %vm3440_vm10, %v3334_v43, %v3335_v5  ;;  %vm2895_vm12 = vcmp.eq.f32.partialorder %v7471_v38, %v7881_v56  ;;  %v2905_v2 = vand.u32 65535, %v7499_v27  ;;  %v2692_v61 = vcvt.f32.s32 %v7656_v8 }
 0x549   : > { %4939 = vmatpush1.bf16.xpose.msk.msra.mxu0 %vm4938_vm11, %v9334_v54  ;;  %v2594_v48 = vpop.xlane.xlu0 %2593  ;;  %v7889_v31 = vcvt.s32.f32 %v3427_v14  ;;  %v3443_v21 = vshra.s32 %v7884_v19, 16  ;;  %v2896_v39 = vsel %vm2895_vm12, %v2891_v46, -inf  ;;  %v2921_v38 = vand.u32 65535, %v7507_v22 }
 0x54a   : > { %v2595_v26 = vcvt.f32.s32 %v2594_v48  ;;  %2897 = vmax.xlane.f32.xlu1 %v2896_v39  ;;  %v2613_v10 = vshll.u32 %v2612_v34, 16  ;;  %v2629_v5 = vshll.u32 %v2628_v55, 16  ;;  %v2645_v11 = vshll.u32 %v2644_v40, 16 }
 0x54b   : > { %v7895_v6 = vcvt.s32.f32 %v3443_v21  ;;  %v2610_v43 = vpop.xlane.xlu1 %2609  ;;  %v7899_v12 = vshll.u32 %v2660_v63, 16  ;;  %v7901_v46 = vshll.u32 %v2676_v25, 16  ;;  %v2907_v8 = vcvt.s32.f32 %v2905_v2  ;;  %v9563_v25 = vld [vmem:[#allocation59_spill] sm:$0xff] }
 0x54c   : > { %v2598_v47 = vadd.s32 %v2597_v52, %v2595_v26  ;;  %3430 = vmax.xlane.f32.xlu0 %v7889_v31  ;;  %v2611_v14 = vcvt.f32.s32 %v2610_v43  ;;  %v7905_v21 = vshll.u32 %v2692_v61, 16  ;;  %v2708_v52 = vcvt.f32.s32 %v7683_v53  ;;  %v9564_v43 = vld [vmem:[#allocation65_spill] sm:$0xff] }
 0x54d   : > { %v7903_v48 = vpop.xlane.xlu0 %2909  ;;  %v2923_v40 = vcvt.s32.f32 %v2921_v38  ;;  %v2724_v53 = vcvt.f32.s32 %v7729_v33  ;;  %v2740_v2 = vcvt.f32.s32 %v7738_v9 }
 0x54e   : > { %v3035_v27 = vand.u32 65535, %v2598_v47  ;;  %v2614_v26 = vadd.s32 %v2613_v10, %v2611_v14  ;;  %3446 = vmax.xlane.f32.xlu1 %v7895_v6  ;;  %vm2911_vm13 = vcmp.eq.f32.partialorder %v7519_v49, %v7903_v48  ;;  %v2937_v10 = vand.u32 65535, %v7586_v51 }
 0x54f   : > { %v2912_v34 = vsel %vm2911_vm13, %v2907_v8, -inf  ;;  %v7916_v55 = vpop.xlane.xlu1 %2925  ;;  %v9568_v8 = vld [vmem:[#allocation66_spill] sm:$0xff]  ;;  %v7955_v63 = vshll.u32 %v2708_v52, 16 }
 0x550   : > { %vm7912_vm14 = vcmp.eq.s32.totalorder %v5870_v15, %v3035_v27  ;;  %vm7919_vm15 = vcmp.eq.s32.totalorder %v5872_v18, %v3035_v27  ;;  %v3036_v39 = vand.u32 65535, %v2614_v26  ;;  %2913 = vmax.xlane.f32.xlu0 %v2912_v34  ;;  %vm2927_vm1 = vcmp.eq.f32.partialorder %v7545_v13, %v7916_v55  ;;  %v9567_v13 = vld [vmem:[#allocation63_spill] sm:$0xff] }
 0x551   : > { %v3336_v49 = vsel %vm7912_vm14, 4294967295, %v9563_v25  ;;  %v2626_v61 = vpop.xlane.xlu0 %2625  ;;  %v2928_v47 = vsel %vm2927_vm1, %v2923_v40, -inf  ;;  %v3337_v38 = vsel %vm7919_vm15, 4294967295, %v9564_v43  ;;  %v2953_v34 = vand.u32 65535, %v7594_v59 }
 0x552   : > { %vm7935_vm2 = vcmp.eq.s32.totalorder %v5870_v15, %v3036_v39  ;;  %v2627_v14 = vcvt.f32.s32 %v2626_v61  ;;  %2929 = vmax.xlane.f32.xlu1 %v2928_v47  ;;  %vm3074_vm3 = vcmp.eq.s32.totalorder %v5872_v18, %v3036_v39  ;;  %vm3456_vm4 = vcmp.gt.s32.totalorder %v3336_v49, %v3337_v38 }
 0x553   : > { %v3338_v9 = vsel %vm7935_vm2, 4294967295, %v9567_v13  ;;  %v2642_v27 = vpop.xlane.xlu1 %2641  ;;  %vm4940_vm5 = vmpackc.low %vm3074_vm3, %vm7919_vm15  ;;  %v3339_v51 = vsel %vm3074_vm3, 4294967295, %v9568_v8  ;;  %v7946_v26 = vsel %vm3456_vm4, %v3336_v49, %v3337_v38  ;;  %v7957_v61 = vshll.u32 %v2724_v53, 16 }
 0x554   : > { %v2630_v40 = vadd.s32 %v2629_v5, %v2627_v14  ;;  %v2643_v25 = vcvt.f32.s32 %v2642_v27  ;;  %4941 = vmatprep.subr.msk.bf16.mxu0 %vm4940_vm5, %v9334_v54  ;;  %vm3472_vm6 = vcmp.gt.s32.totalorder %v3338_v9, %v3339_v51  ;;  %vm4942_vm7 = vmpackc.low %vm7935_vm2, %vm7912_vm14  ;;  %v3459_v39 = vshra.s32 %v7946_v26, 16 }
 0x555   : > { %v7959_v49 = vshll.u32 %v2740_v2, 16  ;;  %4943 = vmatpush1.bf16.xpose.msk.msra.mxu0 %vm4942_vm7, %v9334_v54  ;;  %v7964_v59 = vsel %vm3472_vm6, %v3338_v9, %v3339_v51  ;;  %v2939_v22 = vcvt.s32.f32 %v2937_v10  ;;  %v2969_v38 = vand.u32 65535, %v7654_v42  ;;  %v9571_v42 = vld [vmem:[#allocation67_spill] sm:$0xff] }
 0x556   : > { %v7961_v47 = vpop.xlane.xlu0 %2941  ;;  %v3037_v5 = vand.u32 65535, %v2630_v40  ;;  %v2646_v43 = vadd.s32 %v2645_v11, %v2643_v25  ;;  %v7967_v33 = vcvt.s32.f32 %v3459_v39  ;;  %v3475_v52 = vshra.s32 %v7964_v59, 16  ;;  %v9577_v25 = vld [vmem:[#allocation15_spill] sm:$0xff] }
 0x557   : > { %v7969_v14 = vpop.xlane.xlu1 %2957  ;;  %v2955_v53 = vcvt.s32.f32 %v2953_v34  ;;  %v2985_v2 = vand.u32 65535, %v7661_v58  ;;  %v3001_v11 = vand.u32 65535, %v7717_v16  ;;  %v3017_v10 = vand.u32 65535, %v7721_v50  ;;  %v9576_v34 = vld [vmem:[#allocation68_spill] sm:$0xff] }
 0x558   : > { %vm7974_vm8 = vcmp.eq.s32.totalorder %v5870_v15, %v3037_v5  ;;  %v3038_v9 = vand.u32 65535, %v2646_v43  ;;  %vm2943_vm9 = vcmp.eq.f32.partialorder %v7605_v57, %v7961_v47  ;;  %3462 = vmax.xlane.f32.xlu0 %v7967_v33  ;;  %v7986_v8 = vcvt.s32.f32 %v3475_v52  ;;  %v9578_v43 = vld [vmem:[#allocation16_spill] sm:$0xff] }
 0x559   : > { %v3340_v27 = vsel %vm7974_vm8, 4294967295, %v9571_v42  ;;  %vm7989_vm10 = vcmp.eq.s32.totalorder %v5872_v18, %v3037_v5  ;;  %vm2959_vm13 = vcmp.eq.f32.partialorder %v7627_v7, %v7969_v14  ;;  %v2944_v42 = vsel %vm2943_vm9, %v2939_v22, -inf }
 0x55a   : > { %v2658_v58 = vpop.xlane.xlu0 %2657  ;;  %vm7994_vm11 = vcmp.eq.s32.totalorder %v5870_v15, %v3038_v9  ;;  %vm3078_vm12 = vcmp.eq.s32.totalorder %v5872_v18, %v3038_v9  ;;  %v3341_v40 = vsel %vm7989_vm10, 4294967295, %v9576_v34  ;;  %3478 = vmax.xlane.f32.xlu1 %v7986_v8  ;;  %v2971_v57 = vcvt.s32.f32 %v2969_v38 }
 0x55b   : > { %v2659_v50 = vcvt.f32.s32 %v2658_v58  ;;  %v3342_v39 = vsel %vm7994_vm11, 4294967295, %v9577_v25  ;;  %vm4944_vm14 = vmpackc.low %vm3078_vm12, %vm7989_vm10  ;;  %v3343_v52 = vsel %vm3078_vm12, 4294967295, %v9578_v43  ;;  %vm3488_vm15 = vcmp.gt.s32.totalorder %v3340_v27, %v3341_v40 }
 0x55c   : > { %v2674_v5 = vpop.xlane.xlu1 %2673  ;;  %4945 = vmatprep.subr.msk.bf16.mxu0 %vm4944_vm14, %v9334_v54  ;;  %vm3504_vm1 = vcmp.gt.s32.totalorder %v3342_v39, %v3343_v52  ;;  %vm4946_vm2 = vmpackc.low %vm7994_vm11, %vm7974_vm8  ;;  %2945 = vmax.xlane.f32.xlu0 %v2944_v42  ;;  %v8023_v34 = vsel %vm3488_vm15, %v3340_v27, %v3341_v40  ;;  %v2987_v22 = vcvt.s32.f32 %v2985_v2  ;;  %v2960_v13 = vsel %vm2959_vm13, %v2955_v53, -inf  ;;  %v9581_v53 = vld [vmem:[#allocation17_spill] sm:$0xff] }
 0x55d   : > { %v2662_v9 = vadd.s32 %v7899_v12, %v2659_v50  ;;  %v2675_v58 = vcvt.f32.s32 %v2674_v5  ;;  %4947 = vmatpush1.bf16.xpose.msk.msra.mxu0 %vm4946_vm2, %v9334_v54  ;;  %v8025_v12 = vsel %vm3504_vm1, %v3342_v39, %v3343_v52  ;;  %v2756_v50 = vcvt.f32.s32 %v7743_v1 }
 0x55e   : > { %v8020_v51 = vpop.xlane.xlu0 %2973  ;;  %2961 = vmax.xlane.f32.xlu1 %v2960_v13  ;;  %v3491_v16 = vshra.s32 %v8023_v34, 16  ;;  %v3507_v27 = vshra.s32 %v8025_v12, 16  ;;  %v8036_v40 = vcvt.s32.f32 %v3001_v11  ;;  %v8038_v38 = vcvt.s32.f32 %v3017_v10 }
 0x55f   : > { %v3039_v25 = vand.u32 65535, %v2662_v9  ;;  %v2678_v5 = vadd.s32 %v7901_v46, %v2675_v58  ;;  %v2772_v1 = vcvt.f32.s32 %v7751_v24  ;;  %v2788_v2 = vcvt.f32.s32 %v7757_v23  ;;  %v9584_v9 = vld [vmem:[#allocation19_spill] sm:$0xff] }
 0x560   : > { %v8033_v43 = vpop.xlane.xlu1 %2989  ;;  %vm2975_vm4 = vcmp.eq.f32.partialorder %v7675_v62, %v8020_v51  ;;  %v8052_v11 = vcvt.s32.f32 %v3491_v16  ;;  %v8054_v52 = vcvt.s32.f32 %v3507_v27  ;;  %v9586_v16 = vld [vmem:[#allocation20_spill] sm:$0xff]  ;;  %v2820_v62 = vcvt.f32.s32 %v7766_v45 }
 0x561   : > { %vm8043_vm3 = vcmp.eq.s32.totalorder %v5870_v15, %v3039_v25  ;;  %v3040_v7 = vand.u32 65535, %v2678_v5  ;;  %vm3080_vm6 = vcmp.eq.s32.totalorder %v5872_v18, %v3039_v25  ;;  %vm2991_vm8 = vcmp.eq.f32.partialorder %v7695_v4, %v8033_v43  ;;  %v9585_v5 = vld [vmem:[#allocation18_spill] sm:$0xff] }
 0x562   : > { %v3344_v39 = vsel %vm8043_vm3, 4294967295, %v9581_v53  ;;  %v2690_v10 = vpop.xlane.xlu0 %2689  ;;  %3494 = vmax.xlane.f32.xlu0 %v8052_v11  ;;  %3510 = vmax.xlane.f32.xlu1 %v8054_v52  ;;  %v3345_v13 = vsel %vm3080_vm6, 4294967295, %v9585_v5  ;;  %v8078_v53 = vshll.u32 %v2756_v50, 16  ;;  %v2976_v46 = vsel %vm2975_vm4, %v2971_v57, -inf }
 0x563   : > { %vm8057_vm5 = vcmp.eq.s32.totalorder %v5870_v15, %v3040_v7  ;;  %v2691_v23 = vcvt.f32.s32 %v2690_v10  ;;  %vm3082_vm7 = vcmp.eq.s32.totalorder %v5872_v18, %v3040_v7  ;;  %vm3520_vm10 = vcmp.gt.s32.totalorder %v3344_v39, %v3345_v13 }
 0x564   : > { %v3346_v42 = vsel %vm8057_vm5, 4294967295, %v9584_v9  ;;  %v2706_v58 = vpop.xlane.xlu1 %2705  ;;  %vm4948_vm9 = vmpackc.low %vm3082_vm7, %vm3080_vm6  ;;  %v3347_v27 = vsel %vm3082_vm7, 4294967295, %v9586_v16  ;;  %v8080_v10 = vshll.u32 %v2772_v1, 16  ;;  %v8085_v5 = vsel %vm3520_vm10, %v3344_v39, %v3345_v13 }
 0x565   : > { %v2694_v25 = vadd.s32 %v7905_v21, %v2691_v23  ;;  %v2707_v7 = vcvt.f32.s32 %v2706_v58  ;;  %4949 = vmatprep.subr.msk.bf16.mxu0 %vm4948_vm9, %v9334_v54  ;;  %vm3536_vm11 = vcmp.gt.s32.totalorder %v3346_v42, %v3347_v27  ;;  %vm4950_vm12 = vmpackc.low %vm8057_vm5, %vm8043_vm3  ;;  %v2992_v50 = vsel %vm2991_vm8, %v2987_v22, -inf }
 0x566   : > { %v8082_v9 = vpop.xlane.xlu0 %3005  ;;  %4951 = vmatpush1.bf16.xpose.msk.msra.mxu0 %vm4950_vm12, %v9334_v54  ;;  %v8087_v21 = vsel %vm3536_vm11, %v3346_v42, %v3347_v27  ;;  %v8096_v1 = vshll.u32 %v2788_v2, 16  ;;  %v2804_v58 = vcvt.f32.s32 %v7762_v0  ;;  %2977 = vmax.xlane.f32.xlu0 %v2976_v46  ;;  %v3523_v39 = vshra.s32 %v8085_v5, 16  ;;  %v9589_v0 = vld [vmem:[#allocation21_spill] sm:$0xff] }
 0x567   : > { %v3041_v23 = vand.u32 65535, %v2694_v25  ;;  %v2710_v24 = vadd.s32 %v7955_v63, %v2707_v7  ;;  %2993 = vmax.xlane.f32.xlu1 %v2992_v50  ;;  %v3539_v13 = vshra.s32 %v8087_v21, 16  ;;  %vm3007_vm14 = vcmp.eq.f32.partialorder %v7732_v36, %v8082_v9  ;;  %v9593_v7 = vld [vmem:[#allocation23_spill] sm:$0xff]  ;;  %v9594_v50 = vld [vmem:[#allocation22_spill] sm:$0xff] }
 0x568   : > { %v8100_v42 = vpop.xlane.xlu1 %3021  ;;  %v8114_v22 = vcvt.s32.f32 %v3523_v39  ;;  %v2836_v25 = vcvt.f32.s32 %v7771_v29  ;;  %v3008_v29 = vsel %vm3007_vm14, %v8036_v40, -inf  ;;  %v2805_v36 = vshll.u32 %v2804_v58, 16  ;;  %v9598_v58 = vld [vmem:[#allocation25_spill] sm:$0xff] }
 0x569   : > { %vm8105_vm13 = vcmp.eq.s32.totalorder %v5870_v15, %v3041_v23  ;;  %v3042_v4 = vand.u32 65535, %v2710_v24  ;;  %vm3023_vm15 = vcmp.eq.f32.partialorder %v7734_v44, %v8100_v42  ;;  %v8118_v45 = vcvt.s32.f32 %v3539_v13  ;;  %v9595_v13 = vld [vmem:[#allocation24_spill] sm:$0xff] }
 0x56a   : > { %v3348_v57 = vsel %vm8105_vm13, 4294967295, %v9589_v0  ;;  %v2722_v2 = vpop.xlane.xlu0 %2721  ;;  %vm3084_vm2 = vcmp.eq.s32.totalorder %v5872_v18, %v3041_v23  ;;  %3526 = vmax.xlane.f32.xlu0 %v8114_v22  ;;  %v8156_v40 = vshll.u32 %v2820_v62, 16 }
 0x56b   : > { %9590 = vst [vmem:[#allocation84_spill] sm:$0xff] %v8118_v45  ;;  %vm8121_vm1 = vcmp.eq.s32.totalorder %v5870_v15, %v3042_v4  ;;  %v2723_v27 = vcvt.f32.s32 %v2722_v2  ;;  %vm3086_vm3 = vcmp.eq.s32.totalorder %v5872_v18, %v3042_v4  ;;  %3542 = vmax.xlane.f32.xlu1 %v8118_v45  ;;  %v3349_v39 = vsel %vm3084_vm2, 4294967295, %v9594_v50 }
 0x56c   : > { %v3350_v46 = vsel %vm8121_vm1, 4294967295, %v9593_v7  ;;  %v2738_v24 = vpop.xlane.xlu1 %2737  ;;  %vm4952_vm4 = vmpackc.low %vm3086_vm3, %vm3084_vm2  ;;  %v3351_v0 = vsel %vm3086_vm3, 4294967295, %v9595_v13  ;;  %vm3552_vm5 = vcmp.gt.s32.totalorder %v3348_v57, %v3349_v39  ;;  %v8158_v13 = vshll.u32 %v2836_v25, 16 }
 0x56d   : > { %v2726_v23 = vadd.s32 %v7957_v61, %v2723_v27  ;;  %v2739_v2 = vcvt.f32.s32 %v2738_v24  ;;  %4953 = vmatprep.subr.msk.bf16.mxu0 %vm4952_vm4, %v9334_v54  ;;  %vm3568_vm6 = vcmp.gt.s32.totalorder %v3350_v46, %v3351_v0  ;;  %vm4954_vm7 = vmpackc.low %vm8121_vm1, %vm8105_vm13  ;;  %v3024_v61 = vsel %vm3023_vm15, %v8038_v38, -inf  ;;  %v9626_v38 = vld [vmem:[#allocation38_spill] sm:$0xff] }
 0x56e   : > { %v2754_v4 = vpop.xlane.xlu0 %2753  ;;  %4955 = vmatpush1.bf16.xpose.msk.msra.mxu0 %vm4954_vm7, %v9334_v54  ;;  %v8150_v27 = vsel %vm3552_vm5, %v3348_v57, %v3349_v39  ;;  %v8152_v7 = vsel %vm3568_vm6, %v3350_v46, %v3351_v0  ;;  %3009 = vmax.xlane.f32.xlu0 %v3008_v29 }
 0x56f   : > { %v3043_v63 = vand.u32 65535, %v2726_v23  ;;  %v2742_v16 = vadd.s32 %v7959_v49, %v2739_v2  ;;  %v2755_v24 = vcvt.f32.s32 %v2754_v4  ;;  %v3555_v50 = vshra.s32 %v8150_v27, 16  ;;  %3025 = vmax.xlane.f32.xlu1 %v3024_v61  ;;  %v9603_v4 = vld [vmem:[#allocation27_spill] sm:$0xff] }
 0x570   : > { %v2770_v45 = vpop.xlane.xlu1 %2769  ;;  %v3571_v44 = vshra.s32 %v8152_v7, 16 }
 0x571   : > { %vm8162_vm8 = vcmp.eq.s32.totalorder %v5870_v15, %v3043_v63  ;;  %v3044_v57 = vand.u32 65535, %v2742_v16  ;;  %v2758_v49 = vadd.s32 %v8078_v53, %v2755_v24  ;;  %v8167_v46 = vcvt.s32.f32 %v3555_v50  ;;  %v9605_v24 = vld [vmem:[#allocation28_spill] sm:$0xff] }
 0x572   : > { %v3352_v62 = vsel %vm8162_vm8, 4294967295, %v9598_v58  ;;  %v2771_v25 = vcvt.f32.s32 %v2770_v45  ;;  %v8172_v39 = vcvt.s32.f32 %v3571_v44  ;;  %vm8175_vm9 = vcmp.eq.s32.totalorder %v5872_v18, %v3043_v63  ;;  %v9604_v63 = vld [vmem:[#allocation26_spill] sm:$0xff] }
 0x573   : > { %vm8180_vm10 = vcmp.eq.s32.totalorder %v5870_v15, %v3044_v57  ;;  %v3045_v53 = vand.u32 65535, %v2758_v49  ;;  %vm3090_vm11 = vcmp.eq.s32.totalorder %v5872_v18, %v3044_v57  ;;  %3558 = vmax.xlane.f32.xlu0 %v8167_v46  ;;  %v3353_v16 = vsel %vm8175_vm9, 4294967295, %v9604_v63 }
 0x574   : > { %v2786_v0 = vpop.xlane.xlu0 %2785  ;;  %v3354_v45 = vsel %vm8180_vm10, 4294967295, %v9603_v4  ;;  %v2774_v61 = vadd.s32 %v8080_v10, %v2771_v25  ;;  %3574 = vmax.xlane.f32.xlu1 %v8172_v39  ;;  %vm4956_vm12 = vmpackc.low %vm3090_vm11, %vm8175_vm9  ;;  %v3355_v50 = vsel %vm3090_vm11, 4294967295, %v9605_v24  ;;  %vm3584_vm14 = vcmp.gt.s32.totalorder %v3352_v62, %v3353_v16  ;;  %v9608_v10 = vld [vmem:[#allocation29_spill] sm:$0xff] }
 0x575   : > { %v2787_v29 = vcvt.f32.s32 %v2786_v0  ;;  %vm8198_vm13 = vcmp.eq.s32.totalorder %v5870_v15, %v3045_v53  ;;  %4957 = vmatprep.subr.msk.bf16.mxu0 %vm4956_vm12, %v9334_v54  ;;  %vm3600_vm15 = vcmp.gt.s32.totalorder %v3354_v45, %v3355_v50  ;;  %vm4958_vm1 = vmpackc.low %vm8180_vm10, %vm8162_vm8  ;;  %v8212_v0 = vsel %vm3584_vm14, %v3352_v62, %v3353_v16  ;;  %v9612_v16 = vld [vmem:[#allocation31_spill] sm:$0xff] }
 0x576   : > { %v2802_v44 = vpop.xlane.xlu1 %2801  ;;  %v3356_v58 = vsel %vm8198_vm13, 4294967295, %v9608_v10  ;;  %v3046_v25 = vand.u32 65535, %v2774_v61  ;;  %4959 = vmatpush1.bf16.xpose.msk.msra.mxu0 %vm4958_vm1, %v9334_v54  ;;  %vm3092_vm2 = vcmp.eq.s32.totalorder %v5872_v18, %v3045_v53  ;;  %v8216_v4 = vsel %vm3600_vm15, %v3354_v45, %v3355_v50  ;;  %v9611_v61 = vld [vmem:[#allocation30_spill] sm:$0xff]  ;;  %v9616_v50 = vld [vmem:[#allocation32_spill] sm:$0xff] }
 0x577   : > { %v2790_v49 = vadd.s32 %v8096_v1, %v2787_v29  ;;  %v2803_v23 = vcvt.f32.s32 %v2802_v44  ;;  %v3587_v29 = vshra.s32 %v8212_v0, 16  ;;  %v3357_v63 = vsel %vm3092_vm2, 4294967295, %v9611_v61 }
 0x578   : > { %vm8219_vm3 = vcmp.eq.s32.totalorder %v5870_v15, %v3046_v25  ;;  %vm3094_vm4 = vcmp.eq.s32.totalorder %v5872_v18, %v3046_v25  ;;  %vm3616_vm7 = vcmp.gt.s32.totalorder %v3356_v58, %v3357_v63  ;;  %v3603_v25 = vshra.s32 %v8216_v4, 16 }
 0x579   : > { %v3047_v1 = vand.u32 65535, %v2790_v49  ;;  %v2806_v2 = vadd.s32 %v2805_v36, %v2803_v23  ;;  %v3358_v24 = vsel %vm8219_vm3, 4294967295, %v9612_v16  ;;  %v8233_v45 = vcvt.s32.f32 %v3587_v29  ;;  %vm4960_vm6 = vmpackc.low %vm3094_vm4, %vm3092_vm2  ;;  %v9617_v36 = vld [vmem:[#allocation34_spill] sm:$0xff] }
 0x57a   : > { %v3359_v44 = vsel %vm3094_vm4, 4294967295, %v9616_v50  ;;  %4961 = vmatprep.subr.msk.bf16.mxu0 %vm4960_vm6, %v9334_v54  ;;  %v8242_v23 = vsel %vm3616_vm7, %v3356_v58, %v3357_v63  ;;  %v9624_v58 = vld [vmem:[#allocation37_spill] sm:$0xff]  ;;  %vm4962_vm11 = vmpackc.low %vm8219_vm3, %vm8198_vm13  ;;  %v2852_v16 = vcvt.f32.s32 %v7779_v3  ;;  %v2900_v3 = vcvt.f32.s32 %v7881_v56 }
 0x57b   : > { %v2818_v62 = vpop.xlane.xlu0 %2817  ;;  %vm8229_vm5 = vcmp.eq.s32.totalorder %v5870_v15, %v3047_v1  ;;  %9615 = vst [vmem:[#allocation86_spill] sm:$0xff] %v8233_v45  ;;  %v3048_v10 = vand.u32 65535, %v2806_v2  ;;  %vm3632_vm8 = vcmp.gt.s32.totalorder %v3358_v24, %v3359_v44  ;;  %3590 = vmax.xlane.f32.xlu0 %v8233_v45  ;;  %9618 = vst [vmem:[#allocation87_spill] sm:$0xff] %v8242_v23  ;;  %v3619_v2 = vshra.s32 %v8242_v23, 16  ;;  %v9625_v23 = vld [vmem:[#allocation36_spill] sm:$0xff] }
 0x57c   : > { %v3360_v49 = vsel %vm8229_vm5, 4294967295, %v9617_v36  ;;  %v2819_v29 = vcvt.f32.s32 %v2818_v62  ;;  %v8244_v61 = vsel %vm3632_vm8, %v3358_v24, %v3359_v44  ;;  %vm8254_vm10 = vcmp.eq.s32.totalorder %v5872_v18, %v3047_v1 }
 0x57d   : > { %9619 = vst [vmem:[#allocation89_spill] sm:$0xff] %v8244_v61  ;;  %vm8247_vm9 = vcmp.eq.s32.totalorder %v5870_v15, %v3048_v10  ;;  %v3635_v50 = vshra.s32 %v8244_v61, 16  ;;  %v8261_v62 = vcvt.s32.f32 %v3603_v25  ;;  %v8268_v61 = vcvt.s32.f32 %v3619_v2 }
 0x57e   : > { %v2834_v36 = vpop.xlane.xlu1 %2833  ;;  %v3362_v63 = vsel %vm8247_vm9, 4294967295, %v9624_v58  ;;  %v2822_v24 = vadd.s32 %v8156_v40, %v2819_v29  ;;  %4963 = vmatpush1.bf16.xpose.msk.msra.mxu0 %vm4962_vm11, %v9334_v54  ;;  %vm3098_vm12 = vcmp.eq.s32.totalorder %v5872_v18, %v3048_v10  ;;  %v3361_v25 = vsel %vm8254_vm10, 4294967295, %v9625_v23  ;;  %vm4966_vm8 = vmpackc.low %vm8247_vm9, %vm8229_vm5 }
 0x57f   : > { %v2835_v44 = vcvt.f32.s32 %v2834_v36  ;;  %v8271_v1 = vcvt.s32.f32 %v3635_v50  ;;  %3606 = vmax.xlane.f32.xlu1 %v8261_v62  ;;  %vm4964_vm13 = vmpackc.low %vm3098_vm12, %vm8254_vm10  ;;  %v3363_v29 = vsel %vm3098_vm12, 4294967295, %v9626_v38  ;;  %vm3648_vm14 = vcmp.gt.s32.totalorder %v3360_v49, %v3361_v25  ;;  %3622 = vmax.xlane.f32.xlu0 %v8268_v61  ;;  %v9629_v50 = vld [vmem:[#allocation41_spill] sm:$0xff] }
 0x580   : > { %v3049_v40 = vand.u32 65535, %v2822_v24  ;;  %4965 = vmatprep.subr.msk.bf16.mxu0 %vm4964_vm13, %v9334_v54  ;;  %vm3664_vm15 = vcmp.gt.s32.totalorder %v3362_v63, %v3363_v29  ;;  %v8284_v10 = vsel %vm3648_vm14, %v3360_v49, %v3361_v25  ;;  %v9636_v25 = vld [vmem:[#allocation42_spill] sm:$0xff]  ;;  %v3410_v24 = vand.u32 65535, %v7826_v30 }
 0x581   : > { %v2838_v57 = vadd.s32 %v8158_v13, %v2835_v44  ;;  %v3651_v13 = vshra.s32 %v8284_v10, 16  ;;  %v8292_v45 = vsel %vm3664_vm15, %v3362_v63, %v3363_v29 }
 0x582   : > { %vm8287_vm1 = vcmp.eq.s32.totalorder %v5870_v15, %v3049_v40  ;;  %v3667_v58 = vshra.s32 %v8292_v45, 16  ;;  %vm8299_vm2 = vcmp.eq.s32.totalorder %v5872_v18, %v3049_v40 }
 0x583   : > { %v3050_v2 = vand.u32 65535, %v2838_v57  ;;  %v3364_v36 = vsel %vm8287_vm1, 4294967295, %v9629_v50  ;;  %3638 = vmax.xlane.f32.xlu1 %v8271_v1  ;;  %v8309_v63 = vcvt.s32.f32 %v3651_v13  ;;  %v3365_v40 = vsel %vm8299_vm2, 4294967295, %v9636_v25  ;;  %v9637_v57 = vld [vmem:[#allocation46_spill] sm:$0xff]  ;;  %v9638_v13 = vld [vmem:[#allocation48_spill] sm:$0xff] }
 0x584   : > { %v8322_v29 = vcvt.s32.f32 %v3667_v58  ;;  %vm3680_vm7 = vcmp.gt.s32.totalorder %v3364_v36, %v3365_v40 }
 0x585   : > { %vm8305_vm3 = vcmp.eq.s32.totalorder %v5870_v15, %v3050_v2  ;;  %vm8312_vm4 = vcmp.eq.s32.totalorder %v5872_v18, %v3050_v2  ;;  %3654 = vmax.xlane.f32.xlu0 %v8309_v63  ;;  %v8336_v50 = vsel %vm3680_vm7, %v3364_v36, %v3365_v40  ;;  %v2868_v36 = vcvt.f32.s32 %v7784_v37 }
 0x586   : > { %v3366_v38 = vsel %vm8305_vm3, 4294967295, %v9637_v57  ;;  %vm4968_vm6 = vmpackc.low %vm8312_vm4, %vm8299_vm2  ;;  %v3367_v2 = vsel %vm8312_vm4, 4294967295, %v9638_v13  ;;  %4967 = vmatpush1.bf16.xpose.msk.msra.mxu0 %vm4966_vm8, %v9334_v54  ;;  %v3683_v58 = vshra.s32 %v8336_v50, 16  ;;  %v2853_v57 = vshll.u32 %v2852_v16, 16 }
 0x587   : > { %vm3696_vm10 = vcmp.gt.s32.totalorder %v3366_v38, %v3367_v2  ;;  %3670 = vmax.xlane.f32.xlu1 %v8322_v29  ;;  %4969 = vmatprep.subr.msk.bf16.mxu0 %vm4968_vm6, %v9334_v54  ;;  %vm4970_vm5 = vmpackc.low %vm8305_vm3, %vm8287_vm1 }
 0x588   : > { %v8340_v49 = vsel %vm3696_vm10, %v3366_v38, %v3367_v2  ;;  %v8345_v25 = vcvt.s32.f32 %v3683_v58  ;;  %v2869_v58 = vshll.u32 %v2868_v36, 16  ;;  %v9646_v36 = vld [vmem:[#allocation56_spill] sm:$0xff] }
 0x589   : > { %9639 = vst [vmem:[#allocation88_spill] sm:$0xff] %v8340_v49  ;;  %v3699_v44 = vshra.s32 %v8340_v49, 16 }
 0x58a   : > { %9640 = vst [vmem:[#allocation90_spill] sm:$0xff] %v8345_v25  ;;  %3686 = vmax.xlane.f32.xlu0 %v8345_v25 }
 0x58b   : > { %v8347_v53 = vcvt.s32.f32 %v3699_v44 }
 0x58d   : > { %9641 = vst [vmem:[#allocation33_spill] sm:$0xff] %v8347_v53  ;;  %3702 = vmax.xlane.f32.xlu1 %v8347_v53  ;;  %v3394_v53 = vand.u32 65535, %v7822_v41 }
 0x58e   : > { %4971 = vmatpush1.bf16.xpose.msk.msra.mxu0 %vm4970_vm5, %v9334_v54 }
 0x58f   : > { %v3396_v30 = vcvt.s32.f32 %v3394_v53 }
 0x5c7   : > { %v2850_v40 = vpop.xlane.xlu0 %2849 }
 0x5c8   : > { %v2851_v38 = vcvt.f32.s32 %v2850_v40 }
 0x5ca   : > { %v2854_v13 = vadd.s32 %v2853_v57, %v2851_v38  ;;  %v2866_v2 = vpop.xlane.xlu1 %2865  ;;  %v3412_v57 = vcvt.s32.f32 %v3410_v24 }
 0x5cb   : > { %v2867_v44 = vcvt.f32.s32 %v2866_v2 }
 0x5cc   : > { %v3051_v25 = vand.u32 65535, %v2854_v13  ;;  %v9649_v13 = vld [vmem:[#allocation60_spill] sm:$0xff] }
 0x5cd   : > { %v2870_v23 = vadd.s32 %v2869_v58, %v2867_v44  ;;  %v9650_v58 = vld [vmem:[#allocation61_spill] sm:$0xff] }
 0x5ce   : > { %vm8361_vm9 = vcmp.eq.s32.totalorder %v5870_v15, %v3051_v25  ;;  %vm8366_vm11 = vcmp.eq.s32.totalorder %v5872_v18, %v3051_v25 }
 0x5cf   : > { %v3368_v37 = vsel %vm8361_vm9, 4294967295, %v7305_v35  ;;  %v3052_v16 = vand.u32 65535, %v2870_v23  ;;  %v3369_v41 = vsel %vm8366_vm11, 4294967295, %v9646_v36  ;;  %v2884_v35 = vcvt.f32.s32 %v7858_v17 }
 0x5d0   : > { %vm3712_vm12 = vcmp.gt.s32.totalorder %v3368_v37, %v3369_v41  ;;  %v8381_v25 = vpop.xlane.xlu0 %3398 }
 0x5d1   : > { %vm8377_vm13 = vcmp.eq.s32.totalorder %v5870_v15, %v3052_v16  ;;  %vm3106_vm14 = vcmp.eq.s32.totalorder %v5872_v18, %v3052_v16  ;;  %v8384_v38 = vsel %vm3712_vm12, %v3368_v37, %v3369_v41  ;;  %vm3400_vm15 = vcmp.eq.f32.partialorder %v7836_v32, %v8381_v25 }
 0x5d2   : > { %v3370_v2 = vsel %vm8377_vm13, 4294967295, %v9649_v13  ;;  %v8392_v53 = vpop.xlane.xlu1 %3414  ;;  %vm4972_vm1 = vmpackc.low %vm3106_vm14, %vm8366_vm11  ;;  %v3371_v44 = vsel %vm3106_vm14, 4294967295, %v9650_v58  ;;  %v3401_v23 = vsel %vm3400_vm15, %v3396_v30, -inf  ;;  %v3715_v17 = vshra.s32 %v8384_v38, 16 }
 0x5d3   : > { %vm3416_vm2 = vcmp.eq.f32.partialorder %v7846_v60, %v8392_v53  ;;  %4973 = vmatprep.subr.msk.bf16.mxu0 %vm4972_vm1, %v9334_v54  ;;  %vm3728_vm3 = vcmp.gt.s32.totalorder %v3370_v2, %v3371_v44  ;;  %vm4974_vm4 = vmpackc.low %vm8377_vm13, %vm8361_vm9  ;;  %3402 = vmax.xlane.f32.xlu0 %v3401_v23  ;;  %v3426_v16 = vand.u32 65535, %v7862_v28  ;;  %v2885_v49 = vshll.u32 %v2884_v35, 16 }
 0x5d4   : > { %4975 = vmatpush1.bf16.xpose.msk.msra.mxu0 %vm4974_vm4, %v9334_v54  ;;  %v3417_v32 = vsel %vm3416_vm2, %v3412_v57, -inf  ;;  %v8406_v24 = vsel %vm3728_vm3, %v3370_v2, %v3371_v44  ;;  %v8411_v41 = vcvt.s32.f32 %v3715_v17  ;;  %v3442_v13 = vand.u32 65535, %v7884_v19 }
 0x5d5   : > { %v2882_v37 = vpop.xlane.xlu0 %2881  ;;  %3418 = vmax.xlane.f32.xlu1 %v3417_v32  ;;  %v3731_v60 = vshra.s32 %v8406_v24, 16  ;;  %v2901_v2 = vshll.u32 %v2900_v3, 16  ;;  %v3428_v44 = vcvt.s32.f32 %v3426_v16  ;;  %v2916_v35 = vcvt.f32.s32 %v7903_v48 }
 0x5d6   : > { %v2883_v36 = vcvt.f32.s32 %v2882_v37  ;;  %v2932_v17 = vcvt.f32.s32 %v7916_v55  ;;  %v3444_v37 = vcvt.s32.f32 %v3442_v13  ;;  %v3474_v19 = vand.u32 65535, %v7964_v59  ;;  %v9666_v59 = vld [vmem:[#allocation72_spill] sm:$0xff] }
 0x5d7   : > { %v8413_v30 = vcvt.s32.f32 %v3731_v60  ;;  %3718 = vmax.xlane.f32.xlu0 %v8411_v41  ;;  %v2898_v57 = vpop.xlane.xlu1 %2897 }
 0x5d8   : > { %v2886_v40 = vadd.s32 %v2885_v49, %v2883_v36  ;;  %v2899_v56 = vcvt.f32.s32 %v2898_v57  ;;  %v9656_v36 = vld [vmem:[#allocation69_spill] sm:$0xff]  ;;  %v2917_v57 = vshll.u32 %v2916_v35, 16 }
 0x5d9   : > { %v8417_v58 = vpop.xlane.xlu0 %3430  ;;  %3734 = vmax.xlane.f32.xlu1 %v8413_v30 }
 0x5da   : > { %v3053_v28 = vand.u32 65535, %v2886_v40  ;;  %vm3432_vm6 = vcmp.eq.f32.partialorder %v7889_v31, %v8417_v58  ;;  %v2902_v23 = vadd.s32 %v2901_v2, %v2899_v56  ;;  %v9655_v31 = vld [vmem:[#allocation62_spill] sm:$0xff]  ;;  %v2933_v56 = vshll.u32 %v2932_v17, 16 }
 0x5db   : > { %v3433_v32 = vsel %vm3432_vm6, %v3428_v44, -inf  ;;  %v8429_v3 = vpop.xlane.xlu1 %3446  ;;  %v9659_v44 = vld [vmem:[#allocation64_spill] sm:$0xff] }
 0x5dc   : > { %vm8425_vm7 = vcmp.eq.s32.totalorder %v5870_v15, %v3053_v28  ;;  %3434 = vmax.xlane.f32.xlu0 %v3433_v32  ;;  %vm8432_vm8 = vcmp.eq.s32.totalorder %v5872_v18, %v3053_v28  ;;  %v3054_v16 = vand.u32 65535, %v2902_v23  ;;  %vm3448_vm10 = vcmp.eq.f32.partialorder %v7895_v6, %v8429_v3  ;;  %v9660_v23 = vld [vmem:[#allocation70_spill] sm:$0xff] }
 0x5dd   : > { %v3372_v48 = vsel %vm8425_vm7, 4294967295, %v9655_v31  ;;  %v2914_v55 = vpop.xlane.xlu0 %2913  ;;  %v3449_v49 = vsel %vm3448_vm10, %v3444_v37, -inf  ;;  %v3373_v40 = vsel %vm8432_vm8, 4294967295, %v9656_v36  ;;  %v3458_v36 = vand.u32 65535, %v7946_v26  ;;  %v9665_v26 = vld [vmem:[#allocation71_spill] sm:$0xff] }
 0x5de   : > { %vm8445_vm5 = vcmp.eq.s32.totalorder %v5870_v15, %v3054_v16  ;;  %v2915_v2 = vcvt.f32.s32 %v2914_v55  ;;  %3450 = vmax.xlane.f32.xlu1 %v3449_v49  ;;  %vm3110_vm9 = vcmp.eq.s32.totalorder %v5872_v18, %v3054_v16  ;;  %vm3744_vm12 = vcmp.gt.s32.totalorder %v3372_v48, %v3373_v40 }
 0x5df   : > { %v3374_v6 = vsel %vm8445_vm5, 4294967295, %v9659_v44  ;;  %v2930_v28 = vpop.xlane.xlu1 %2929  ;;  %vm4976_vm11 = vmpackc.low %vm3110_vm9, %vm8432_vm8  ;;  %v3375_v35 = vsel %vm3110_vm9, 4294967295, %v9660_v23  ;;  %v8461_v17 = vsel %vm3744_vm12, %v3372_v48, %v3373_v40 }
 0x5e0   : > { %v2918_v32 = vadd.s32 %v2917_v57, %v2915_v2  ;;  %v2931_v37 = vcvt.f32.s32 %v2930_v28  ;;  %4977 = vmatprep.subr.msk.bf16.mxu0 %vm4976_vm11, %v9334_v54  ;;  %vm3760_vm13 = vcmp.gt.s32.totalorder %v3374_v6, %v3375_v35  ;;  %vm4978_vm14 = vmpackc.low %vm8445_vm5, %vm8425_vm7  ;;  %v3747_v60 = vshra.s32 %v8461_v17, 16 }
 0x5e1   : > { %4979 = vmatpush1.bf16.xpose.msk.msra.mxu0 %vm4978_vm14, %v9334_v54  ;;  %v8465_v31 = vsel %vm3760_vm13, %v3374_v6, %v3375_v35  ;;  %v2964_v35 = vcvt.f32.s32 %v7969_v14  ;;  %v3476_v14 = vcvt.s32.f32 %v3474_v19 }
 0x5e2   : > { %v3055_v16 = vand.u32 65535, %v2918_v32  ;;  %v2934_v55 = vadd.s32 %v2933_v56, %v2931_v37  ;;  %v3763_v49 = vshra.s32 %v8465_v31, 16  ;;  %v8469_v57 = vcvt.s32.f32 %v3747_v60  ;;  %v9669_v32 = vld [vmem:[#allocation73_spill] sm:$0xff]  ;;  %v9670_v60 = vld [vmem:[#allocation74_spill] sm:$0xff] }
 0x5e3   : > { %v2948_v56 = vcvt.f32.s32 %v7961_v47  ;;  %v3460_v47 = vcvt.s32.f32 %v3458_v36 }
 0x5e4   : > { %vm8473_vm15 = vcmp.eq.s32.totalorder %v5870_v15, %v3055_v16  ;;  %v3056_v40 = vand.u32 65535, %v2934_v55  ;;  %v8477_v13 = vcvt.s32.f32 %v3763_v49  ;;  %vm8480_vm1 = vcmp.eq.s32.totalorder %v5872_v18, %v3055_v16  ;;  %3750 = vmax.xlane.f32.xlu0 %v8469_v57 }
 0x5e5   : > { %v3376_v44 = vsel %vm8473_vm15, 4294967295, %v9665_v26  ;;  %v3377_v6 = vsel %vm8480_vm1, 4294967295, %v9666_v59  ;;  %v8497_v23 = vpop.xlane.xlu0 %3462  ;;  %v2949_v59 = vshll.u32 %v2948_v56, 16  ;;  %v3506_v56 = vand.u32 65535, %v8025_v12 }
 0x5e6   : > { %vm8493_vm2 = vcmp.eq.s32.totalorder %v5870_v15, %v3056_v40  ;;  %3766 = vmax.xlane.f32.xlu1 %v8477_v13  ;;  %vm3114_vm3 = vcmp.eq.s32.totalorder %v5872_v18, %v3056_v40  ;;  %vm3776_vm4 = vcmp.gt.s32.totalorder %v3376_v44, %v3377_v6  ;;  %vm3464_vm6 = vcmp.eq.f32.partialorder %v7967_v33, %v8497_v23 }
 0x5e7   : > { %v3378_v37 = vsel %vm8493_vm2, 4294967295, %v9669_v32  ;;  %vm4980_vm7 = vmpackc.low %vm3114_vm3, %vm8480_vm1  ;;  %v3379_v16 = vsel %vm3114_vm3, 4294967295, %v9670_v60  ;;  %v3465_v55 = vsel %vm3464_vm6, %v3460_v47, -inf  ;;  %v8510_v49 = vpop.xlane.xlu1 %3478  ;;  %v8517_v36 = vsel %vm3776_vm4, %v3376_v44, %v3377_v6 }
 0x5e8   : > { %4981 = vmatprep.subr.msk.bf16.mxu0 %vm4980_vm7, %v9334_v54  ;;  %vm3792_vm8 = vcmp.gt.s32.totalorder %v3378_v37, %v3379_v16  ;;  %vm4982_vm10 = vmpackc.low %vm8493_vm2, %vm8473_vm15  ;;  %3466 = vmax.xlane.f32.xlu0 %v3465_v55  ;;  %vm3480_vm5 = vcmp.eq.f32.partialorder %v7986_v8, %v8510_v49  ;;  %v3779_v33 = vshra.s32 %v8517_v36, 16  ;;  %v2965_v44 = vshll.u32 %v2964_v35, 16  ;;  %v971_v35 = vpop.f32.mrb[4].mxu0 }
 0x5e9   : > { %4983 = vmatpush1.bf16.xpose.msk.msra.mxu0 %vm4982_vm10, %v9334_v54  ;;  %v2946_v40 = vpop.xlane.xlu0 %2945  ;;  %v3481_v2 = vsel %vm3480_vm5, %v3476_v14, -inf  ;;  %v8523_v26 = vsel %vm3792_vm8, %v3378_v37, %v3379_v16  ;;  %v2980_v6 = vcvt.f32.s32 %v8020_v51  ;;  %v2996_v8 = vcvt.f32.s32 %v8033_v43 }
 0x5ea   : > { %v2947_v48 = vcvt.f32.s32 %v2946_v40  ;;  %3482 = vmax.xlane.f32.xlu1 %v3481_v2  ;;  %v8525_v28 = vcvt.s32.f32 %v3779_v33  ;;  %v3795_v19 = vshra.s32 %v8523_v26, 16  ;;  %v3490_v32 = vand.u32 65535, %v8023_v34 }
 0x5eb   : > { %v2962_v47 = vpop.xlane.xlu1 %2961  ;;  %v2981_v33 = vshll.u32 %v2980_v6, 16  ;;  %v2997_v51 = vshll.u32 %v2996_v8, 16  ;;  %v3508_v12 = vcvt.s32.f32 %v3506_v56  ;;  %v9678_v56 = vld [vmem:[#allocation77_spill] sm:$0xff]  ;;  %v3522_v34 = vand.u32 65535, %v8085_v5 }
 0x5ec   : > { %v2950_v60 = vadd.s32 %v2949_v59, %v2947_v48  ;;  %3782 = vmax.xlane.f32.xlu0 %v8525_v28  ;;  %v2963_v37 = vcvt.f32.s32 %v2962_v47  ;;  %v8532_v16 = vcvt.s32.f32 %v3795_v19  ;;  %v3492_v43 = vcvt.s32.f32 %v3490_v32  ;;  %v973_v48 = vpop.f32.mrb[5].mxu0 }
 0x5ed   : > { %v3012_v19 = vcvt.f32.s32 %v8082_v9  ;;  %v975_v8 = vpop.f32.mrb[6].mxu0  ;;  %v3028_v47 = vcvt.f32.s32 %v8100_v42 }
 0x5ee   : > { %v3057_v55 = vand.u32 65535, %v2950_v60  ;;  %v2966_v14 = vadd.s32 %v2965_v44, %v2963_v37  ;;  %3798 = vmax.xlane.f32.xlu1 %v8532_v16  ;;  %v9677_v60 = vld [vmem:[#allocation75_spill] sm:$0xff] }
 0x5ef   : > { %v8536_v40 = vpop.xlane.xlu0 %3494  ;;  %v8538_v2 = vpop.xlane.xlu1 %3510 }
 0x5f0   : > { %vm8541_vm9 = vcmp.eq.s32.totalorder %v5870_v15, %v3057_v55  ;;  %v3058_v59 = vand.u32 65535, %v2966_v14  ;;  %vm3496_vm11 = vcmp.eq.f32.partialorder %v8052_v11, %v8536_v40  ;;  %vm3512_vm12 = vcmp.eq.f32.partialorder %v8054_v52, %v8538_v2 }
 0x5f1   : > { %v3380_v44 = vsel %vm8541_vm9, 4294967295, %v7527_v20  ;;  %v3497_v6 = vsel %vm3496_vm11, %v3492_v43, -inf  ;;  %v3513_v11 = vsel %vm3512_vm12, %v3508_v12, -inf  ;;  %vm8560_vm14 = vcmp.eq.s32.totalorder %v5872_v18, %v3057_v55  ;;  %v976_v20 = vpop.f32.mrb[7].mxu0 }
 0x5f2   : > { %vm8555_vm13 = vcmp.eq.s32.totalorder %v5870_v15, %v3058_v59  ;;  %3498 = vmax.xlane.f32.xlu0 %v3497_v6  ;;  %3514 = vmax.xlane.f32.xlu1 %v3513_v11  ;;  %vm3118_vm15 = vcmp.eq.s32.totalorder %v5872_v18, %v3058_v59  ;;  %v3381_v14 = vsel %vm8560_vm14, 4294967295, %v9678_v56  ;;  %v8575_v55 = vpack.c.bf16 %v971_v35, %v971_v35  ;;  %v9679_v6 = vld [vmem:[#allocation76_spill] sm:$0xff] }
 0x5f3   : > { %v3382_v52 = vsel %vm8555_vm13, 4294967295, %v9677_v60  ;;  %v2978_v37 = vpop.xlane.xlu0 %2977  ;;  %vm4986_vm1 = vmpackc.low %vm8555_vm13, %vm8541_vm9  ;;  %v3383_v8 = vsel %vm3118_vm15, 4294967295, %v9679_v6  ;;  %vm3808_vm3 = vcmp.gt.s32.totalorder %v3380_v44, %v3381_v14  ;;  %v1645_v11 = vpack.c.bf16 %v973_v48, %v973_v48 }
 0x5f4   : > { %v2994_v42 = vpop.xlane.xlu1 %2993  ;;  %v2979_v43 = vcvt.f32.s32 %v2978_v37  ;;  %vm4984_vm2 = vmpackc.low %vm3118_vm15, %vm8560_vm14  ;;  %vm3824_vm4 = vcmp.gt.s32.totalorder %v3382_v52, %v3383_v8  ;;  %v8581_v59 = vsel %vm3808_vm3, %v3380_v44, %v3381_v14  ;;  %v3013_v44 = vshll.u32 %v3012_v19, 16 }
 0x5f5   : > { %v2995_v12 = vcvt.f32.s32 %v2994_v42  ;;  %4985 = vmatprep.subr.msk.bf16.mxu0 %vm4984_vm2, %v9334_v54  ;;  %v3811_v35 = vshra.s32 %v8581_v59, 16  ;;  %v8586_v60 = vsel %vm3824_vm4, %v3382_v52, %v3383_v8  ;;  %2446 = vmatprep.mubr.bf16.mxu1 %v1645_v11  ;;  %v3538_v52 = vand.u32 65535, %v8087_v21  ;;  %v9688_v21 = vld [vmem:[#allocation79_spill] sm:$0xff]  ;;  %v9689_v8 = vld [vmem:[#allocation84_spill] sm:$0xff] }
 0x5f6   : > { %v2982_v32 = vadd.s32 %v2981_v33, %v2979_v43  ;;  %4987 = vmatpush1.bf16.xpose.msk.msra.mxu0 %vm4986_vm1, %v9334_v54  ;;  %v3827_v42 = vshra.s32 %v8586_v60, 16  ;;  %3319 = vmatprep.mubr.bf16.mxu0 %v1645_v11  ;;  %v3029_v33 = vshll.u32 %v3028_v47, 16  ;;  %v3524_v47 = vcvt.s32.f32 %v3522_v34  ;;  %v9687_v43 = vld [vmem:[#allocation78_spill] sm:$0xff] }
 0x5f7   : > { %v2998_v20 = vadd.s32 %v2997_v51, %v2995_v12  ;;  %v8588_v9 = vpop.xlane.xlu0 %3526  ;;  %2447 = vmatmul.mubr.bf16.vlgmr.msra.gmra.mrb[68].mxu1 %v8575_v55  ;;  %v8594_v51 = vcvt.s32.f32 %v3811_v35 }
 0x5f8   : > { %9680 = vst [vmem:[#allocation35_spill] sm:$0xff] %v8588_v9  ;;  %v8590_v37 = vpop.xlane.xlu1 %3542  ;;  %v3059_v56 = vand.u32 65535, %v2982_v32  ;;  %v8596_v48 = vcvt.s32.f32 %v3827_v42  ;;  %4192 = vmatprep.mubr.bf16.mxu1 %v1645_v11  ;;  %vm3528_vm8 = vcmp.eq.f32.partialorder %v8114_v22, %v8588_v9 }
 0x5f9   : > { %v3060_v5 = vand.u32 65535, %v2998_v20  ;;  %9681 = vst [vmem:[#allocation40_spill] sm:$0xff] %v8594_v51  ;;  %3814 = vmax.xlane.f32.xlu0 %v8594_v51  ;;  %vm3544_vm10 = vcmp.eq.f32.partialorder %v9689_v8, %v8590_v37  ;;  %v9690_v20 = vld [vmem:[#allocation81_spill] sm:$0xff]  ;;  %v3529_v42 = vsel %vm3528_vm8, %v3524_v47, -inf  ;;  %v9697_v8 = vld [vmem:[#allocation82_spill] sm:$0xff] }
 0x5fa   : > { %9682 = vst [vmem:[#allocation39_spill] sm:$0xff] %v8596_v48  ;;  %vm8600_vm6 = vcmp.eq.s32.totalorder %v5870_v15, %v3059_v56  ;;  %3830 = vmax.xlane.f32.xlu1 %v8596_v48  ;;  %vm3120_vm5 = vcmp.eq.s32.totalorder %v5872_v18, %v3059_v56  ;;  %v3540_v48 = vcvt.s32.f32 %v3538_v52 }
 0x5fb   : > { %vm8605_vm7 = vcmp.eq.s32.totalorder %v5870_v15, %v3060_v5  ;;  %v3384_v12 = vsel %vm8600_vm6, 4294967295, %v9687_v43  ;;  %v3010_v11 = vpop.xlane.xlu0 %3009  ;;  %vm3122_vm11 = vcmp.eq.s32.totalorder %v5872_v18, %v3060_v5  ;;  %v3385_v35 = vsel %vm3120_vm5, 4294967295, %v9690_v20  ;;  %v9691_v43 = vld [vmem:[#allocation80_spill] sm:$0xff] }
 0x5fc   : > { %v3386_v6 = vsel %vm8605_vm7, 4294967295, %v9688_v21  ;;  %v3026_v32 = vpop.xlane.xlu1 %3025  ;;  %vm4990_vm9 = vmpackc.low %vm8605_vm7, %vm8600_vm6  ;;  %v3011_v22 = vcvt.f32.s32 %v3010_v11  ;;  %v3387_v21 = vsel %vm3122_vm11, 4294967295, %v9691_v43  ;;  %vm3840_vm13 = vcmp.gt.s32.totalorder %v3384_v12, %v3385_v35 }
 0x5fd   : > { %v3027_v34 = vcvt.f32.s32 %v3026_v32  ;;  %vm4988_vm12 = vmpackc.low %vm3122_vm11, %vm3120_vm5  ;;  %vm3856_vm14 = vcmp.gt.s32.totalorder %v3386_v6, %v3387_v21  ;;  %v8630_v56 = vsel %vm3840_vm13, %v3384_v12, %v3385_v35  ;;  %3530 = vmax.xlane.f32.xlu0 %v3529_v42  ;;  %v3545_v5 = vsel %vm3544_vm10, %v3540_v48, -inf  ;;  %v9699_v35 = vld [vmem:[#allocation85_spill] sm:$0xff] }
 0x5fe   : > { %v3014_v51 = vadd.s32 %v3013_v44, %v3011_v22  ;;  %4989 = vmatprep.subr.msk.bf16.mxu0 %vm4988_vm12, %v9334_v54  ;;  %v3843_v44 = vshra.s32 %v8630_v56, 16  ;;  %3546 = vmax.xlane.f32.xlu1 %v3545_v5  ;;  %v3554_v11 = vand.u32 65535, %v8150_v27  ;;  %v3602_v32 = vand.u32 65535, %v8216_v4 }
 0x5ff   : > { %v3030_v9 = vadd.s32 %v3029_v33, %v3027_v34  ;;  %4991 = vmatpush1.bf16.xpose.msk.msra.mxu0 %vm4990_vm9, %v9334_v54  ;;  %v8642_v33 = vsel %vm3856_vm14, %v3386_v6, %v3387_v21  ;;  %v9696_v6 = vld [vmem:[#allocation14_spill] sm:$0xff] }
 0x600   : > { %v3061_v52 = vand.u32 65535, %v3014_v51  ;;  %v8644_v12 = vpop.xlane.xlu0 %3558  ;;  %v8647_v19 = vcvt.s32.f32 %v3843_v44  ;;  %v3859_v14 = vshra.s32 %v8642_v33, 16  ;;  %v3570_v51 = vand.u32 65535, %v8152_v7 }
 0x601   : > { %v3062_v47 = vand.u32 65535, %v3030_v9  ;;  %v8660_v9 = vpop.xlane.xlu1 %3574  ;;  %vm3560_vm2 = vcmp.eq.f32.partialorder %v8167_v46, %v8644_v12  ;;  %v3556_v7 = vcvt.s32.f32 %v3554_v11  ;;  %v9698_v46 = vld [vmem:[#allocation83_spill] sm:$0xff] }
 0x602   : > { %vm8651_vm15 = vcmp.eq.s32.totalorder %v5870_v15, %v3061_v52  ;;  %3846 = vmax.xlane.f32.xlu0 %v8647_v19  ;;  %v8672_v34 = vcvt.s32.f32 %v3859_v14  ;;  %vm3124_vm4 = vcmp.eq.s32.totalorder %v5872_v18, %v3061_v52  ;;  %vm3576_vm7 = vcmp.eq.f32.partialorder %v8172_v39, %v8660_v9 }
 0x603   : > { %vm8656_vm1 = vcmp.eq.s32.totalorder %v5870_v15, %v3062_v47  ;;  %v3388_v27 = vsel %vm8651_vm15, 4294967295, %v9696_v6  ;;  %vm3126_vm6 = vcmp.eq.s32.totalorder %v5872_v18, %v3062_v47  ;;  %v3389_v20 = vsel %vm3124_vm4, 4294967295, %v9698_v46 }
 0x604   : > { %v3390_v22 = vsel %vm8656_vm1, 4294967295, %v9697_v8  ;;  %vm4994_vm3 = vmpackc.low %vm8656_vm1, %vm8651_vm15  ;;  %3862 = vmax.xlane.f32.xlu1 %v8672_v34  ;;  %v3391_v42 = vsel %vm3126_vm6, 4294967295, %v9699_v35  ;;  %v3561_v43 = vsel %vm3560_vm2, %v3556_v7, -inf  ;;  %vm3872_vm10 = vcmp.gt.s32.totalorder %v3388_v27, %v3389_v20  ;;  %v9702_v35 = vld [vmem:[#allocation89_spill] sm:$0xff] }
 0x605   : > { %vm4992_vm8 = vmpackc.low %vm3126_vm6, %vm3124_vm4  ;;  %vm3888_vm5 = vcmp.gt.s32.totalorder %v3390_v22, %v3391_v42  ;;  %v3572_v5 = vcvt.s32.f32 %v3570_v51  ;;  %v8694_v39 = vsel %vm3872_vm10, %v3388_v27, %v3389_v20  ;;  %v3586_v14 = vand.u32 65535, %v8212_v0  ;;  %v9700_v27 = vld [vmem:[#allocation86_spill] sm:$0xff] }
 0x606   : > { %4993 = vmatprep.subr.msk.bf16.mxu0 %vm4992_vm8, %v9334_v54  ;;  %3562 = vmax.xlane.f32.xlu0 %v3561_v43  ;;  %v8696_v44 = vsel %vm3888_vm5, %v3390_v22, %v3391_v42  ;;  %v3875_v47 = vshra.s32 %v8694_v39, 16  ;;  %v9701_v22 = vld [vmem:[#allocation87_spill] sm:$0xff]  ;;  %v3604_v20 = vcvt.s32.f32 %v3602_v32  ;;  %v3634_v4 = vand.u32 65535, %v9702_v35  ;;  %v9705_v35 = vld [vmem:[#allocation90_spill] sm:$0xff] }
 0x607   : > { %4995 = vmatpush1.bf16.xpose.msk.msra.mxu0 %vm4994_vm3, %v9334_v54  ;;  %v3577_v52 = vsel %vm3576_vm7, %v3572_v5, -inf  ;;  %v3891_v11 = vshra.s32 %v8696_v44, 16  ;;  %v3588_v0 = vcvt.s32.f32 %v3586_v14  ;;  %v3618_v7 = vand.u32 65535, %v9701_v22  ;;  %v9704_v22 = vld [vmem:[#allocation88_spill] sm:$0xff] }
 0x608   : > { %v8685_v21 = vpop.xlane.xlu0 %3590  ;;  %3578 = vmax.xlane.f32.xlu1 %v3577_v52  ;;  %v8701_v51 = vcvt.s32.f32 %v3875_v47  ;;  %v3650_v43 = vand.u32 65535, %v8284_v10  ;;  %v9703_v5 = vmov 0   ;;  %v3666_v47 = vand.u32 65535, %v8292_v45 }
 0x609   : > { %v8705_v48 = vcvt.s32.f32 %v3891_v11  ;;  %vm3592_vm9 = vcmp.eq.f32.partialorder %v9700_v27, %v8685_v21  ;;  %v3620_v11 = vcvt.s32.f32 %v3618_v7  ;;  %v3636_v10 = vcvt.s32.f32 %v3634_v4 }
 0x60a   : > { %3878 = vmax.xlane.f32.xlu0 %v8701_v51  ;;  %v3593_v42 = vsel %vm3592_vm9, %v3588_v0, -inf  ;;  %v3652_v27 = vcvt.s32.f32 %v3650_v43  ;;  %v3668_v0 = vcvt.s32.f32 %v3666_v47  ;;  %v3421_v47 = vcvt.f32.s32 %v8392_v53 }
 0x60c   : > { %v8703_v6 = vpop.xlane.xlu1 %3606  ;;  %v8711_v8 = vpop.xlane.xlu0 %3622  ;;  %3894 = vmax.xlane.f32.xlu1 %v8705_v48 }
 0x60d   : > { %vm3608_vm11 = vcmp.eq.f32.partialorder %v8261_v62, %v8703_v6  ;;  %vm3624_vm12 = vcmp.eq.f32.partialorder %v8268_v61, %v8711_v8  ;;  %v3682_v61 = vand.u32 65535, %v8336_v50 }
 0x60e   : > { %3320 = vmatmul.mubr.bf16.vlgmr.msra.gmra.mrb[8].mxu0 %v8575_v55  ;;  %3594 = vmax.xlane.f32.xlu0 %v3593_v42  ;;  %v3609_v62 = vsel %vm3608_vm11, %v3604_v20, -inf  ;;  %v3625_v32 = vsel %vm3624_vm12, %v3620_v11, -inf }
 0x60f   : > { %4247 = vmatprep.mubr.bf16.mxu0 %v9703_v5  ;;  %v3684_v42 = vcvt.s32.f32 %v3682_v61 }
 0x610   : > { %v8717_v46 = vpop.xlane.xlu1 %3638  ;;  %3610 = vmax.xlane.f32.xlu1 %v3609_v62  ;;  %v3405_v62 = vcvt.f32.s32 %v8381_v25 }
 0x611   : > { %vm3640_vm13 = vcmp.eq.f32.partialorder %v8271_v1, %v8717_v46  ;;  %v3698_v1 = vand.u32 65535, %v9704_v22 }
 0x612   : > { %v8725_v52 = vpop.xlane.xlu0 %3654  ;;  %3626 = vmax.xlane.f32.xlu0 %v3625_v32  ;;  %v3641_v45 = vsel %vm3640_vm13, %v3636_v10, -inf  ;;  %v3714_v10 = vand.u32 65535, %v8384_v38  ;;  %v3406_v32 = vshll.u32 %v3405_v62, 16 }
 0x613   : > { %vm3656_vm14 = vcmp.eq.f32.partialorder %v8309_v63, %v8725_v52  ;;  %v3700_v50 = vcvt.s32.f32 %v3698_v1 }
 0x614   : > { %v8732_v14 = vpop.xlane.xlu1 %3670  ;;  %3642 = vmax.xlane.f32.xlu1 %v3641_v45  ;;  %v3657_v7 = vsel %vm3656_vm14, %v3652_v27, -inf  ;;  %v3730_v45 = vand.u32 65535, %v8406_v24 }
 0x615   : > { %vm3672_vm15 = vcmp.eq.f32.partialorder %v8322_v29, %v8732_v14  ;;  %v9706_v29 = vld [vmem:[#allocation33_spill] sm:$0xff] }
 0x616   : > { %v3673_v63 = vsel %vm3672_vm15, %v3668_v0, -inf  ;;  %3658 = vmax.xlane.f32.xlu0 %v3657_v7  ;;  %v3422_v0 = vshll.u32 %v3421_v47, 16  ;;  %v3732_v38 = vcvt.s32.f32 %v3730_v45 }
 0x617   : > { %v8738_v20 = vpop.xlane.xlu0 %3686 }
 0x618   : > { %vm3688_vm1 = vcmp.eq.f32.partialorder %v9705_v35, %v8738_v20  ;;  %3674 = vmax.xlane.f32.xlu1 %v3673_v63  ;;  %v3716_v35 = vcvt.s32.f32 %v3714_v10 }
 0x619   : > { %v3689_v43 = vsel %vm3688_vm1, %v3684_v42, -inf  ;;  %v3437_v42 = vcvt.f32.s32 %v8417_v58 }
 0x61a   : > { %v8742_v4 = vpop.xlane.xlu1 %3702  ;;  %3690 = vmax.xlane.f32.xlu0 %v3689_v43  ;;  %v3453_v43 = vcvt.f32.s32 %v8429_v3 }
 0x61b   : > { %vm3704_vm2 = vcmp.eq.f32.partialorder %v9706_v29, %v8742_v4 }
 0x61c   : > { %v3705_v5 = vsel %vm3704_vm2, %v3700_v50, -inf  ;;  %v3454_v3 = vshll.u32 %v3453_v43, 16 }
 0x61d   : > { %3706 = vmax.xlane.f32.xlu1 %v3705_v5 }
 0x660   : > { %v3403_v11 = vpop.xlane.xlu0 %3402 }
 0x661   : > { %v3404_v27 = vcvt.f32.s32 %v3403_v11 }
 0x662   : > { %v3419_v61 = vpop.xlane.xlu1 %3418 }
 0x663   : > { %v3420_v22 = vcvt.f32.s32 %v3419_v61  ;;  %v3407_v1 = vadd.s32 %v3406_v32, %v3404_v27  ;;  %v3746_v32 = vand.u32 65535, %v8461_v17  ;;  %v3762_v27 = vand.u32 65535, %v8465_v31 }
 0x664   : > { %v8750_v63 = vpop.xlane.xlu0 %3718 }
 0x665   : > { %v3423_v7 = vadd.s32 %v3422_v0, %v3420_v22  ;;  %v3904_v25 = vand.u32 65535, %v3407_v1  ;;  %vm3720_vm3 = vcmp.eq.f32.partialorder %v8411_v41, %v8750_v63  ;;  %v3438_v41 = vshll.u32 %v3437_v42, 16 }
 0x666   : > { %v8755_v53 = vpop.xlane.xlu1 %3734  ;;  %v3721_v50 = vsel %vm3720_vm3, %v3716_v35, -inf  ;;  %v3748_v22 = vcvt.s32.f32 %v3746_v32  ;;  %v3469_v1 = vcvt.f32.s32 %v8497_v23  ;;  %v3764_v31 = vcvt.s32.f32 %v3762_v27 }
 0x667   : > { %v3905_v29 = vand.u32 65535, %v3423_v7  ;;  %vm3736_vm4 = vcmp.eq.f32.partialorder %v8413_v30, %v8755_v53  ;;  %3722 = vmax.xlane.f32.xlu0 %v3721_v50  ;;  %vm3937_vm7 = vcmp.eq.s32.totalorder %v5872_v18, %v3904_v25  ;;  %vm3936_vm10 = vcmp.eq.s32.totalorder %v5870_v15, %v3904_v25 }
 0x668   : > { %v3737_v24 = vsel %vm3736_vm4, %v3732_v38, -inf  ;;  %v3485_v23 = vcvt.f32.s32 %v8510_v49  ;;  %v3778_v42 = vand.u32 65535, %v8517_v36  ;;  %v3470_v25 = vshll.u32 %v3469_v1, 16 }
 0x669   : > { %vm3938_vm6 = vcmp.eq.s32.totalorder %v5870_v15, %v3905_v29  ;;  %v3435_v5 = vpop.xlane.xlu0 %3434  ;;  %3738 = vmax.xlane.f32.xlu1 %v3737_v24  ;;  %vm3939_vm8 = vcmp.eq.s32.totalorder %v5872_v18, %v3905_v29  ;;  %v3826_v1 = vand.u32 65535, %v8586_v60  ;;  %v9711_v60 = vld [vmem:[#allocation35_spill] sm:$0xff] }
 0x66a   : > { %v3436_v58 = vcvt.f32.s32 %v3435_v5  ;;  %vm5060_vm5 = vmpackc.low %vm3939_vm8, %vm3937_vm7  ;;  %v3486_v50 = vshll.u32 %v3485_v23, 16 }
 0x66b   : > { %5061 = vmatprep.subr.msk.bf16.mxu1 %vm5060_vm5, %v9334_v54  ;;  %vm5062_vm9 = vmpackc.low %vm3938_vm6, %vm3936_vm10  ;;  %v3451_v62 = vpop.xlane.xlu1 %3450 }
 0x66c   : > { %v3439_v30 = vadd.s32 %v3438_v41, %v3436_v58  ;;  %5063 = vmatpush1.bf16.xpose.msk.msra.mxu1 %vm5062_vm9, %v9334_v54  ;;  %v3452_v47 = vcvt.f32.s32 %v3451_v62  ;;  %v3780_v41 = vcvt.s32.f32 %v3778_v42  ;;  %v3533_v42 = vcvt.f32.s32 %v9711_v60 }
 0x66e   : > { %v3906_v11 = vand.u32 65535, %v3439_v30  ;;  %v3455_v10 = vadd.s32 %v3454_v3, %v3452_v47  ;;  %v3501_v3 = vcvt.f32.s32 %v8536_v40 }
 0x670   : > { %v3907_v61 = vand.u32 65535, %v3455_v10  ;;  %vm3941_vm12 = vcmp.eq.s32.totalorder %v5872_v18, %v3906_v11  ;;  %vm3940_vm14 = vcmp.eq.s32.totalorder %v5870_v15, %v3906_v11  ;;  %v3502_v40 = vshll.u32 %v3501_v3, 16 }
 0x671   : > { %v8773_v0 = vpop.xlane.xlu0 %3750  ;;  %v3858_v3 = vand.u32 65535, %v8642_v33 }
 0x672   : > { %vm8769_vm11 = vcmp.eq.s32.totalorder %v5870_v15, %v3907_v61  ;;  %vm3943_vm13 = vcmp.eq.s32.totalorder %v5872_v18, %v3907_v61  ;;  %vm3752_vm15 = vcmp.eq.f32.partialorder %v8469_v57, %v8773_v0 }
 0x673   : > { %v8781_v17 = vpop.xlane.xlu1 %3766  ;;  %vm5064_vm1 = vmpackc.low %vm3943_vm13, %vm3941_vm12  ;;  %v3753_v7 = vsel %vm3752_vm15, %v3748_v22, -inf  ;;  %v3810_v22 = vand.u32 65535, %v8581_v59  ;;  %v3828_v59 = vcvt.s32.f32 %v3826_v1 }
 0x674   : > { %vm3768_vm2 = vcmp.eq.f32.partialorder %v8477_v13, %v8781_v17  ;;  %5065 = vmatprep.subr.msk.bf16.mxu1 %vm5064_vm1, %v9334_v54  ;;  %vm5066_vm3 = vmpackc.low %vm8769_vm11, %vm3940_vm14  ;;  %3754 = vmax.xlane.f32.xlu0 %v3753_v7  ;;  %v3794_v13 = vand.u32 65535, %v8523_v26  ;;  %v3517_v26 = vcvt.f32.s32 %v8538_v2 }
 0x675   : > { %5067 = vmatpush1.bf16.xpose.msk.msra.mxu1 %vm5066_vm3, %v9334_v54  ;;  %v3769_v35 = vsel %vm3768_vm2, %v3764_v31, -inf  ;;  %v3467_v57 = vpop.xlane.xlu0 %3466 }
 0x676   : > { %3770 = vmax.xlane.f32.xlu1 %v3769_v35  ;;  %v3468_v38 = vcvt.f32.s32 %v3467_v57  ;;  %v3796_v36 = vcvt.s32.f32 %v3794_v13  ;;  %v3812_v35 = vcvt.s32.f32 %v3810_v22 }
 0x677   : > { %v3483_v29 = vpop.xlane.xlu1 %3482 }
 0x678   : > { %v3471_v24 = vadd.s32 %v3470_v25, %v3468_v38  ;;  %v3484_v43 = vcvt.f32.s32 %v3483_v29  ;;  %v9712_v25 = vld [vmem:[#allocation40_spill] sm:$0xff]  ;;  %v9713_v38 = vld [vmem:[#allocation39_spill] sm:$0xff]  ;;  %v3549_v29 = vcvt.f32.s32 %v8590_v37 }
 0x679   : > { %v8792_v5 = vpop.xlane.xlu0 %3782 }
 0x67a   : > { %v3908_v49 = vand.u32 65535, %v3471_v24  ;;  %v3487_v58 = vadd.s32 %v3486_v50, %v3484_v43  ;;  %vm3784_vm4 = vcmp.eq.f32.partialorder %v8525_v28, %v8792_v5  ;;  %v3842_v43 = vand.u32 65535, %v8630_v56 }
 0x67b   : > { %v3785_v30 = vsel %vm3784_vm4, %v3780_v41, -inf  ;;  %v8796_v62 = vpop.xlane.xlu1 %3798  ;;  %v3534_v41 = vshll.u32 %v3533_v42, 16 }
 0x67c   : > { %v3909_v47 = vand.u32 65535, %v3487_v58  ;;  %3786 = vmax.xlane.f32.xlu0 %v3785_v30  ;;  %vm3800_vm6 = vcmp.eq.f32.partialorder %v8532_v16, %v8796_v62  ;;  %vm3945_vm8 = vcmp.eq.s32.totalorder %v5872_v18, %v3908_v49  ;;  %vm3944_vm5 = vcmp.eq.s32.totalorder %v5870_v15, %v3908_v49 }
 0x67d   : > { %v3801_v11 = vsel %vm3800_vm6, %v3796_v36, -inf  ;;  %v3518_v16 = vshll.u32 %v3517_v26, 16  ;;  %v3550_v30 = vshll.u32 %v3549_v29, 16  ;;  %v3844_v37 = vcvt.s32.f32 %v3842_v43 }
 0x67e   : > { %vm3946_vm7 = vcmp.eq.s32.totalorder %v5870_v15, %v3909_v47  ;;  %3802 = vmax.xlane.f32.xlu1 %v3801_v11  ;;  %vm3947_vm10 = vcmp.eq.s32.totalorder %v5872_v18, %v3909_v47 }
 0x67f   : > { %v3499_v28 = vpop.xlane.xlu0 %3498  ;;  %vm5068_vm9 = vmpackc.low %vm3947_vm10, %vm3945_vm8  ;;  %v3515_v32 = vpop.xlane.xlu1 %3514 }
 0x680   : > { %v3500_v10 = vcvt.f32.s32 %v3499_v28  ;;  %5069 = vmatprep.subr.msk.bf16.mxu1 %vm5068_vm9, %v9334_v54  ;;  %vm5070_vm11 = vmpackc.low %vm3946_vm7, %vm3944_vm5  ;;  %v3516_v2 = vcvt.f32.s32 %v3515_v32  ;;  %v3565_v28 = vcvt.f32.s32 %v8644_v12 }
 0x681   : > { %5071 = vmatpush1.bf16.xpose.msk.msra.mxu1 %vm5070_vm11, %v9334_v54 }
 0x682   : > { %v3503_v27 = vadd.s32 %v3502_v40, %v3500_v10  ;;  %v3519_v61 = vadd.s32 %v3518_v16, %v3516_v2  ;;  %v3860_v16 = vcvt.s32.f32 %v3858_v3  ;;  %v3581_v2 = vcvt.f32.s32 %v8660_v9 }
 0x683   : > { %v3874_v9 = vand.u32 65535, %v8694_v39  ;;  %v3597_v39 = vcvt.f32.s32 %v8685_v21  ;;  %v3661_v3 = vcvt.f32.s32 %v8725_v52 }
 0x684   : > { %v3910_v45 = vand.u32 65535, %v3503_v27  ;;  %v3911_v31 = vand.u32 65535, %v3519_v61  ;;  %v3582_v22 = vshll.u32 %v3581_v2, 16 }
 0x685   : > { %v3876_v60 = vcvt.s32.f32 %v3874_v9  ;;  %v3662_v52 = vshll.u32 %v3661_v3, 16  ;;  %v3741_v3 = vcvt.f32.s32 %v8755_v53  ;;  %v3773_v53 = vcvt.f32.s32 %v8781_v17 }
 0x686   : > { %vm8811_vm12 = vcmp.eq.s32.totalorder %v5870_v15, %v3911_v31  ;;  %vm3949_vm13 = vcmp.eq.s32.totalorder %v5872_v18, %v3910_v45  ;;  %vm3951_vm14 = vcmp.eq.s32.totalorder %v5872_v18, %v3911_v31  ;;  %vm3948_vm15 = vcmp.eq.s32.totalorder %v5870_v15, %v3910_v45  ;;  %v8818_v23 = vpop.xlane.xlu0 %3814 }
 0x687   : > { %v8820_v57 = vpop.xlane.xlu1 %3830  ;;  %vm5072_vm1 = vmpackc.low %vm3951_vm14, %vm3949_vm13  ;;  %vm3816_vm2 = vcmp.eq.f32.partialorder %v9712_v25, %v8818_v23  ;;  %v3890_v45 = vand.u32 65535, %v8696_v44  ;;  %v3613_v44 = vcvt.f32.s32 %v8703_v6  ;;  %v3629_v6 = vcvt.f32.s32 %v8711_v8 }
 0x688   : > { %vm3832_vm3 = vcmp.eq.f32.partialorder %v9713_v38, %v8820_v57  ;;  %5073 = vmatprep.subr.msk.bf16.mxu1 %vm5072_vm1, %v9334_v54  ;;  %vm5074_vm4 = vmpackc.low %vm8811_vm12, %vm3948_vm15  ;;  %v3817_v13 = vsel %vm3816_vm2, %v3812_v35, -inf }
 0x689   : > { %5075 = vmatpush1.bf16.xpose.msk.msra.mxu1 %vm5074_vm4, %v9334_v54  ;;  %v3833_v50 = vsel %vm3832_vm3, %v3828_v59, -inf  ;;  %3818 = vmax.xlane.f32.xlu0 %v3817_v13  ;;  %v3892_v25 = vcvt.s32.f32 %v3890_v45  ;;  %v3614_v43 = vshll.u32 %v3613_v44, 16  ;;  %v3630_v8 = vshll.u32 %v3629_v6, 16 }
 0x68a   : > { %3834 = vmax.xlane.f32.xlu1 %v3833_v50  ;;  %v3531_v24 = vpop.xlane.xlu0 %3530  ;;  %v3693_v45 = vcvt.f32.s32 %v8738_v20 }
 0x68b   : > { %v3532_v49 = vcvt.f32.s32 %v3531_v24  ;;  %v3547_v58 = vpop.xlane.xlu1 %3546 }
 0x68c   : > { %v3548_v36 = vcvt.f32.s32 %v3547_v58 }
 0x68d   : > { %v3535_v47 = vadd.s32 %v3534_v41, %v3532_v49  ;;  %v3645_v41 = vcvt.f32.s32 %v8717_v46  ;;  %v3677_v46 = vcvt.f32.s32 %v8732_v14 }
 0x68e   : > { %v3551_v26 = vadd.s32 %v3550_v30, %v3548_v36 }
 0x68f   : > { %v8834_v11 = vpop.xlane.xlu0 %3846  ;;  %v3912_v40 = vand.u32 65535, %v3535_v47 }
 0x690   : > { %vm3848_vm6 = vcmp.eq.f32.partialorder %v8647_v19, %v8834_v11  ;;  %v3913_v10 = vand.u32 65535, %v3551_v26  ;;  %v3566_v19 = vshll.u32 %v3565_v28, 16  ;;  %v3646_v28 = vshll.u32 %v3645_v41, 16 }
 0x691   : > { %v3849_v56 = vsel %vm3848_vm6, %v3844_v37, -inf  ;;  %v8839_v32 = vpop.xlane.xlu1 %3862  ;;  %vm3953_vm10 = vcmp.eq.s32.totalorder %v5872_v18, %v3912_v40  ;;  %vm3952_vm9 = vcmp.eq.s32.totalorder %v5870_v15, %v3912_v40 }
 0x692   : > { %3850 = vmax.xlane.f32.xlu0 %v3849_v56  ;;  %vm3864_vm7 = vcmp.eq.f32.partialorder %v8672_v34, %v8839_v32  ;;  %vm8845_vm8 = vcmp.eq.s32.totalorder %v5870_v15, %v3913_v10  ;;  %vm3955_vm5 = vcmp.eq.s32.totalorder %v5872_v18, %v3913_v10 }
 0x693   : > { %v3563_v12 = vpop.xlane.xlu0 %3562  ;;  %v3865_v27 = vsel %vm3864_vm7, %v3860_v16, -inf  ;;  %vm5076_vm11 = vmpackc.low %vm3955_vm5, %vm3953_vm10 }
 0x694   : > { %v3564_v61 = vcvt.f32.s32 %v3563_v12  ;;  %3866 = vmax.xlane.f32.xlu1 %v3865_v27  ;;  %5077 = vmatprep.subr.msk.bf16.mxu1 %vm5076_vm11, %v9334_v54  ;;  %vm5078_vm12 = vmpackc.low %vm8845_vm8, %vm3952_vm9 }
 0x695   : > { %v3579_v34 = vpop.xlane.xlu1 %3578  ;;  %5079 = vmatpush1.bf16.xpose.msk.msra.mxu1 %vm5078_vm12, %v9334_v54 }
 0x696   : > { %v3567_v1 = vadd.s32 %v3566_v19, %v3564_v61  ;;  %v3580_v31 = vcvt.f32.s32 %v3579_v34  ;;  %v3678_v19 = vshll.u32 %v3677_v46, 16  ;;  %v3709_v61 = vcvt.f32.s32 %v8742_v4 }
 0x697   : > { %v8858_v59 = vpop.xlane.xlu0 %3878  ;;  %v3742_v46 = vshll.u32 %v3741_v3, 16 }
 0x698   : > { %v3914_v7 = vand.u32 65535, %v3567_v1  ;;  %v3583_v35 = vadd.s32 %v3582_v22, %v3580_v31  ;;  %vm3880_vm13 = vcmp.eq.f32.partialorder %v8701_v51, %v8858_v59  ;;  %v3598_v51 = vshll.u32 %v3597_v39, 16 }
 0x699   : > { %v8863_v42 = vpop.xlane.xlu1 %3894  ;;  %v3881_v29 = vsel %vm3880_vm13, %v3876_v60, -inf  ;;  %v3710_v60 = vshll.u32 %v3709_v61, 16  ;;  %v3805_v1 = vcvt.f32.s32 %v8796_v62  ;;  %v3885_v3 = vcvt.f32.s32 %v8858_v59 }
 0x69a   : > { %v3915_v38 = vand.u32 65535, %v3583_v35  ;;  %vm3896_vm14 = vcmp.eq.f32.partialorder %v8705_v48, %v8863_v42  ;;  %3882 = vmax.xlane.f32.xlu0 %v3881_v29  ;;  %vm3957_vm1 = vcmp.eq.s32.totalorder %v5872_v18, %v3914_v7  ;;  %vm3956_vm3 = vcmp.eq.s32.totalorder %v5870_v15, %v3914_v7 }
 0x69b   : > { %v3897_v13 = vsel %vm3896_vm14, %v3892_v25, -inf  ;;  %v3595_v21 = vpop.xlane.xlu0 %3594 }
 0x69c   : > { %vm8869_vm15 = vcmp.eq.s32.totalorder %v5870_v15, %v3915_v38  ;;  %3898 = vmax.xlane.f32.xlu1 %v3897_v13  ;;  %vm3959_vm2 = vcmp.eq.s32.totalorder %v5872_v18, %v3915_v38  ;;  %v3596_v24 = vcvt.f32.s32 %v3595_v21  ;;  %v3694_v38 = vshll.u32 %v3693_v45, 16 }
 0x69d   : > { %v3611_v48 = vpop.xlane.xlu1 %3610  ;;  %vm5080_vm4 = vmpackc.low %vm3959_vm2, %vm3957_vm1 }
 0x69e   : > { %v3612_v49 = vcvt.f32.s32 %v3611_v48  ;;  %5081 = vmatprep.subr.msk.bf16.mxu1 %vm5080_vm4, %v9334_v54  ;;  %vm5082_vm6 = vmpackc.low %vm8869_vm15, %vm3956_vm3  ;;  %v3599_v58 = vadd.s32 %v3598_v51, %v3596_v24 }
 0x69f   : > { %5083 = vmatpush1.bf16.xpose.msk.msra.mxu1 %vm5082_vm6, %v9334_v54  ;;  %v3627_v36 = vpop.xlane.xlu0 %3626 }
 0x6a0   : > { %v3615_v30 = vadd.s32 %v3614_v43, %v3612_v49  ;;  %v3916_v47 = vand.u32 65535, %v3599_v58  ;;  %v3628_v26 = vcvt.f32.s32 %v3627_v36 }
 0x6a1   : > { %v3643_v37 = vpop.xlane.xlu1 %3642 }
 0x6a2   : > { %v3917_v40 = vand.u32 65535, %v3615_v30  ;;  %v3644_v10 = vcvt.f32.s32 %v3643_v37  ;;  %v3631_v56 = vadd.s32 %v3630_v8, %v3628_v26  ;;  %vm3961_vm8 = vcmp.eq.s32.totalorder %v5872_v18, %v3916_v47 }
 0x6a3   : > { %v3659_v33 = vpop.xlane.xlu0 %3658  ;;  %vm3960_vm5 = vcmp.eq.s32.totalorder %v5870_v15, %v3916_v47  ;;  %v3725_v8 = vcvt.f32.s32 %v8750_v63  ;;  %v3757_v63 = vcvt.f32.s32 %v8773_v0 }
 0x6a4   : > { %vm8885_vm7 = vcmp.eq.s32.totalorder %v5870_v15, %v3917_v40  ;;  %v3647_v2 = vadd.s32 %v3646_v28, %v3644_v10  ;;  %vm3963_vm10 = vcmp.eq.s32.totalorder %v5872_v18, %v3917_v40  ;;  %v3918_v12 = vand.u32 65535, %v3631_v56 }
 0x6a5   : > { %v3660_v27 = vcvt.f32.s32 %v3659_v33  ;;  %v3675_v14 = vpop.xlane.xlu1 %3674  ;;  %vm5084_vm9 = vmpackc.low %vm3963_vm10, %vm3961_vm8  ;;  %v3726_v26 = vshll.u32 %v3725_v8, 16 }
 0x6a6   : > { %v3919_v9 = vand.u32 65535, %v3647_v2  ;;  %v3676_v34 = vcvt.f32.s32 %v3675_v14  ;;  %5085 = vmatprep.subr.msk.bf16.mxu1 %vm5084_vm9, %v9334_v54  ;;  %vm5086_vm11 = vmpackc.low %vm8885_vm7, %vm3960_vm5  ;;  %vm3965_vm13 = vcmp.eq.s32.totalorder %v5872_v18, %v3918_v12  ;;  %vm8906_vm15 = vcmp.eq.s32.totalorder %v5870_v15, %v3918_v12 }
 0x6a7   : > { %v3663_v22 = vadd.s32 %v3662_v52, %v3660_v27  ;;  %5087 = vmatpush1.bf16.xpose.msk.msra.mxu1 %vm5086_vm11, %v9334_v54  ;;  %v3691_v7 = vpop.xlane.xlu0 %3690  ;;  %v3758_v52 = vshll.u32 %v3757_v63, 16  ;;  %v3774_v14 = vshll.u32 %v3773_v53, 16  ;;  %v4263_v63 = vld [vmem:[%s9037_s3] sm:$0xff] }
 0x6a8   : > { %vm8899_vm12 = vcmp.eq.s32.totalorder %v5870_v15, %v3919_v9  ;;  %v3679_v31 = vadd.s32 %v3678_v19, %v3676_v34  ;;  %vm3967_vm14 = vcmp.eq.s32.totalorder %v5872_v18, %v3919_v9  ;;  %v3692_v25 = vcvt.f32.s32 %v3691_v7 }
 0x6a9   : > { %v3920_v20 = vand.u32 65535, %v3663_v22  ;;  %vm5088_vm1 = vmpackc.low %vm3967_vm14, %vm3965_vm13  ;;  %v3789_v34 = vcvt.f32.s32 %v8792_v5  ;;  %v3806_v5 = vshll.u32 %v3805_v1, 16  ;;  %v5399_v1 = vld [vmem:[#allocation9 + $0x44] ss:$8 sps:$4 sm:$0xff]  }
 0x6aa   : > { %v3707_v35 = vpop.xlane.xlu1 %3706  ;;  %v3921_v39 = vand.u32 65535, %v3679_v31  ;;  %5089 = vmatprep.subr.msk.bf16.mxu1 %vm5088_vm1, %v9334_v54  ;;  %vm5090_vm2 = vmpackc.low %vm8899_vm12, %vm8906_vm15  ;;  %v3695_v13 = vadd.s32 %v3694_v38, %v3692_v25  ;;  %v3837_v25 = vcvt.f32.s32 %v8820_v57 }
 0x6ab   : > { %v3708_v44 = vcvt.f32.s32 %v3707_v35  ;;  %vm3969_vm4 = vcmp.eq.s32.totalorder %v5872_v18, %v3920_v20  ;;  %vm3968_vm7 = vcmp.eq.s32.totalorder %v5870_v15, %v3920_v20  ;;  %v3790_v17 = vshll.u32 %v3789_v34, 16  ;;  %v5391_v34 = vld [vmem:[#allocation9 + $0x20] ss:$8 sps:$4 sm:$0xff]  }
 0x6ac   : > { %vm3970_vm3 = vcmp.eq.s32.totalorder %v5870_v15, %v3921_v39  ;;  %vm3971_vm6 = vcmp.eq.s32.totalorder %v5872_v18, %v3921_v39  ;;  %v3922_v21 = vand.u32 65535, %v3695_v13  ;;  %v3821_v39 = vcvt.f32.s32 %v8818_v23 }
 0x6ad   : > { %v3711_v29 = vadd.s32 %v3710_v60, %v3708_v44  ;;  %vm5092_vm8 = vmpackc.low %vm3971_vm6, %vm3969_vm4  ;;  %v3838_v13 = vshll.u32 %v3837_v25, 16  ;;  %v5417_v25 = vld [vmem:[#allocation9 + $0xa4] ss:$8 sps:$4 sm:$0xff]  }
 0x6ae   : > { %vm5094_vm10 = vmpackc.low %vm3970_vm3, %vm3968_vm7  ;;  %vm3973_vm9 = vcmp.eq.s32.totalorder %v5872_v18, %v3922_v21  ;;  %vm3972_vm13 = vcmp.eq.s32.totalorder %v5870_v15, %v3922_v21 }
 0x6af   : > { %5091 = vmatpush1.bf16.xpose.msk.msra.mxu1 %vm5090_vm2, %v9334_v54  ;;  %v3923_v50 = vand.u32 65535, %v3711_v29  ;;  %v3822_v29 = vshll.u32 %v3821_v39, 16  ;;  %v5412_v39 = vld [vmem:[#allocation9 + $0x90] ss:$8 sps:$4 sm:$0xff]  }
 0x6b0   : > { %5093 = vmatprep.subr.msk.bf16.mxu1 %vm5092_vm8, %v9334_v54  ;;  %4266 = vperm.xlu0 %5238, %v4263_v63  }
 0x6b1   : > { %vm3975_vm5 = vcmp.eq.s32.totalorder %v5872_v18, %v3923_v50  ;;  %vm3974_vm12 = vcmp.eq.s32.totalorder %v5870_v15, %v3923_v50 }
 0x6b2   : > { %vm5096_vm11 = vmpackc.low %vm3975_vm5, %vm3973_vm9 }
 0x6b3   : > { %vm5098_vm14 = vmpackc.low %vm3974_vm12, %vm3972_vm13 }
 0x6b7   : > { %5095 = vmatpush1.bf16.xpose.msk.msra.mxu1 %vm5094_vm10, %v9334_v54 }
 0x6b8   : > { %5097 = vmatprep.subr.msk.bf16.mxu1 %vm5096_vm11, %v9334_v54 }
 0x6bf   : > { %5099 = vmatpush1.bf16.xpose.msk.msra.mxu1 %vm5098_vm14, %v9334_v54 }
 0x6ca   : > { %v2448_v51 = vpop.f32.mrb[68].mxu1 }
 0x6cb   : > { %v2450_v6 = vpop.f32.mrb[69].mxu1 }
 0x6cc   : > { %v2452_v24 = vpop.f32.mrb[70].mxu1 }
 0x6cd   : > { %v2453_v48 = vpop.f32.mrb[71].mxu1  ;;  %v3853_v24 = vcvt.f32.s32 %v8834_v11 }
 0x6cf   : > { %v3854_v57 = vshll.u32 %v3853_v24, 16  ;;  %v5427_v24 = vld [vmem:[#allocation9 + $0xe0] ss:$8 sps:$4 sm:$0xff]  }
 0x6e1   : > { %v3321_v43 = vpop.f32.mrb[8].mxu0 }
 0x6e2   : > { %v4201_v41 = vpack.c.bf16 %v3321_v43, %v2448_v51  ;;  %v3323_v49 = vpop.f32.mrb[9].mxu0 }
 0x6e3   : > { %v4202_v58 = vpack.c.bf16 %v3323_v49, %v2450_v6  ;;  %v3325_v30 = vpop.f32.mrb[10].mxu0 }
 0x6e4   : > { %v3326_v36 = vpop.f32.mrb[11].mxu0 }
 0x6e5   : > { %4215 = vmatprep.subr.bf16.mxu0 %v4202_v58 }
 0x6e6   : > { %4216 = vmatpush1.bf16.msra.mxu0 %v4201_v41  ;;  %v3869_v41 = vcvt.f32.s32 %v8839_v32 }
 0x6e8   : > { %v3870_v58 = vshll.u32 %v3869_v41, 16 }
 0x6f4   : > { %v3723_v47 = vpop.xlane.xlu0 %3722 }
 0x6f5   : > { %v3724_v37 = vcvt.f32.s32 %v3723_v47  ;;  %v3901_v47 = vcvt.f32.s32 %v8863_v42 }
 0x6f6   : > { %v3739_v28 = vpop.xlane.xlu1 %3738 }
 0x6f7   : > { %v3740_v40 = vcvt.f32.s32 %v3739_v28  ;;  %v3727_v10 = vadd.s32 %v3726_v26, %v3724_v37  ;;  %v3886_v28 = vshll.u32 %v3885_v3, 16 }
 0x6f9   : > { %v3743_v56 = vadd.s32 %v3742_v46, %v3740_v40  ;;  %v3924_v16 = vand.u32 65535, %v3727_v10  ;;  %v3902_v10 = vshll.u32 %v3901_v47, 16 }
 0x6fb   : > { %v3925_v2 = vand.u32 65535, %v3743_v56  ;;  %vm3977_vm1 = vcmp.eq.s32.totalorder %v5872_v18, %v3924_v16  ;;  %vm3976_vm3 = vcmp.eq.s32.totalorder %v5870_v15, %v3924_v16 }
 0x6fd   : > { %vm3978_vm15 = vcmp.eq.s32.totalorder %v5870_v15, %v3925_v2  ;;  %vm3979_vm2 = vcmp.eq.s32.totalorder %v5872_v18, %v3925_v2 }
 0x6fe   : > { %vm5100_vm4 = vmpackc.low %vm3979_vm2, %vm3977_vm1 }
 0x6ff   : > { %5101 = vmatprep.subr.msk.bf16.mxu1 %vm5100_vm4, %v9334_v54  ;;  %vm5102_vm6 = vmpackc.low %vm3978_vm15, %vm3976_vm3 }
 0x700   : > { %5103 = vmatpush1.bf16.xpose.msk.msra.mxu1 %vm5102_vm6, %v9334_v54 }
 0x701   : > { %v3755_v33 = vpop.xlane.xlu0 %3754 }
 0x702   : > { %v3756_v12 = vcvt.f32.s32 %v3755_v33 }
 0x703   : > { %v3771_v27 = vpop.xlane.xlu1 %3770 }
 0x704   : > { %v3772_v19 = vcvt.f32.s32 %v3771_v27  ;;  %v3759_v61 = vadd.s32 %v3758_v52, %v3756_v12  ;;  %v5387_v27 = vld [vmem:[#allocation9 + $0x4] ss:$8 sps:$4 sm:$0xff]  }
 0x706   : > { %v3775_v9 = vadd.s32 %v3774_v14, %v3772_v19  ;;  %v3926_v45 = vand.u32 65535, %v3759_v61  ;;  %v5390_v19 = vld [vmem:[#allocation9 + $0x14] ss:$8 sps:$4 sm:$0xff]   ;;  %v5388_v61 = vld [vmem:[#allocation9 + $0x10] ss:$8 sps:$4 sm:$0xff]  }
 0x708   : > { %v3927_v22 = vand.u32 65535, %v3775_v9  ;;  %vm3981_vm8 = vcmp.eq.s32.totalorder %v5872_v18, %v3926_v45  ;;  %vm3980_vm5 = vcmp.eq.s32.totalorder %v5870_v15, %v3926_v45  ;;  %v5393_v9 = vld [vmem:[#allocation9 + $0x24] ss:$8 sps:$4 sm:$0xff]   ;;  %v5396_v45 = vld [vmem:[#allocation9 + $0x34] ss:$8 sps:$4 sm:$0xff]  }
 0x709   : > { %v3787_v0 = vpop.xlane.xlu0 %3786 }
 0x70a   : > { %vm3982_vm7 = vcmp.eq.s32.totalorder %v5870_v15, %v3927_v22  ;;  %vm3983_vm10 = vcmp.eq.s32.totalorder %v5872_v18, %v3927_v22  ;;  %v3788_v31 = vcvt.f32.s32 %v3787_v0  ;;  %v5394_v22 = vld [vmem:[#allocation9 + $0x30] ss:$8 sps:$4 sm:$0xff]   ;;  %v5397_v0 = vld [vmem:[#allocation9 + $0x40] ss:$8 sps:$4 sm:$0xff]  }
 0x70b   : > { %vm5104_vm9 = vmpackc.low %vm3983_vm10, %vm3981_vm8  ;;  %v3803_v7 = vpop.xlane.xlu1 %3802 }
 0x70c   : > { %5105 = vmatprep.subr.msk.bf16.mxu1 %vm5104_vm9, %v9334_v54  ;;  %vm5106_vm11 = vmpackc.low %vm3982_vm7, %vm3980_vm5  ;;  %v3791_v4 = vadd.s32 %v3790_v17, %v3788_v31  ;;  %v3804_v20 = vcvt.f32.s32 %v3803_v7  ;;  %v5402_v17 = vld [vmem:[#allocation9 + $0x54] ss:$8 sps:$4 sm:$0xff]   ;;  %v5400_v31 = vld [vmem:[#allocation9 + $0x50] ss:$8 sps:$4 sm:$0xff]  }
 0x70d   : > { %5107 = vmatpush1.bf16.xpose.msk.msra.mxu1 %vm5106_vm11, %v9334_v54  ;;  %v5405_v7 = vld [vmem:[#allocation9 + $0x64] ss:$8 sps:$4 sm:$0xff]  }
 0x70e   : > { %v3928_v62 = vand.u32 65535, %v3791_v4  ;;  %v3807_v35 = vadd.s32 %v3806_v5, %v3804_v20  ;;  %v5403_v5 = vld [vmem:[#allocation9 + $0x60] ss:$8 sps:$4 sm:$0xff]   ;;  %v5408_v4 = vld [vmem:[#allocation9 + $0x74] ss:$8 sps:$4 sm:$0xff]  }
 0x70f   : > { %v5406_v20 = vld [vmem:[#allocation9 + $0x70] ss:$8 sps:$4 sm:$0xff]  }
 0x710   : > { %v3929_v60 = vand.u32 65535, %v3807_v35  ;;  %vm3985_vm13 = vcmp.eq.s32.totalorder %v5872_v18, %v3928_v62  ;;  %vm3984_vm15 = vcmp.eq.s32.totalorder %v5870_v15, %v3928_v62  ;;  %v5411_v62 = vld [vmem:[#allocation9 + $0x84] ss:$8 sps:$4 sm:$0xff]   ;;  %v5409_v35 = vld [vmem:[#allocation9 + $0x80] ss:$8 sps:$4 sm:$0xff]  }
 0x712   : > { %vm3986_vm12 = vcmp.eq.s32.totalorder %v5870_v15, %v3929_v60  ;;  %vm3987_vm14 = vcmp.eq.s32.totalorder %v5872_v18, %v3929_v60  ;;  %v5414_v60 = vld [vmem:[#allocation9 + $0x94] ss:$8 sps:$4 sm:$0xff]  }
 0x713   : > { %vm5108_vm1 = vmpackc.low %vm3987_vm14, %vm3985_vm13 }
 0x714   : > { %5109 = vmatprep.subr.msk.bf16.mxu1 %vm5108_vm1, %v9334_v54  ;;  %vm5110_vm2 = vmpackc.low %vm3986_vm12, %vm3984_vm15 }
 0x715   : > { %5111 = vmatpush1.bf16.xpose.msk.msra.mxu1 %vm5110_vm2, %v9334_v54 }
 0x716   : > { %v3819_v44 = vpop.xlane.xlu0 %3818 }
 0x717   : > { %v3835_v38 = vpop.xlane.xlu1 %3834  ;;  %v3820_v50 = vcvt.f32.s32 %v3819_v44  ;;  %v5415_v44 = vld [vmem:[#allocation9 + $0xa0] ss:$8 sps:$4 sm:$0xff]  }
 0x718   : > { %v3836_v21 = vcvt.f32.s32 %v3835_v38  ;;  %v5420_v38 = vld [vmem:[#allocation9 + $0xb4] ss:$8 sps:$4 sm:$0xff]  }
 0x719   : > { %v3823_v51 = vadd.s32 %v3822_v29, %v3820_v50  ;;  %v5418_v29 = vld [vmem:[#allocation9 + $0xb0] ss:$8 sps:$4 sm:$0xff]   ;;  %v5421_v50 = vld [vmem:[#allocation9 + $0xc0] ss:$8 sps:$4 sm:$0xff]  }
 0x71a   : > { %v3839_v6 = vadd.s32 %v3838_v13, %v3836_v21  ;;  %v5423_v13 = vld [vmem:[#allocation9 + $0xc4] ss:$8 sps:$4 sm:$0xff]   ;;  %v5426_v21 = vld [vmem:[#allocation9 + $0xd4] ss:$8 sps:$4 sm:$0xff]  }
 0x71b   : > { %v3930_v48 = vand.u32 65535, %v3823_v51  ;;  %v5424_v51 = vld [vmem:[#allocation9 + $0xd0] ss:$8 sps:$4 sm:$0xff]  }
 0x71c   : > { %v3931_v43 = vand.u32 65535, %v3839_v6  ;;  %v5429_v6 = vld [vmem:[#allocation9 + $0xe4] ss:$8 sps:$4 sm:$0xff]  }
 0x71d   : > { %vm3989_vm4 = vcmp.eq.s32.totalorder %v5872_v18, %v3930_v48  ;;  %vm3988_vm7 = vcmp.eq.s32.totalorder %v5870_v15, %v3930_v48  ;;  %v5430_v48 = vld [vmem:[#allocation9 + $0xf0] ss:$8 sps:$4 sm:$0xff]  }
 0x71e   : > { %vm3990_vm3 = vcmp.eq.s32.totalorder %v5870_v15, %v3931_v43  ;;  %vm3991_vm6 = vcmp.eq.s32.totalorder %v5872_v18, %v3931_v43  ;;  %v5432_v43 = vld [vmem:[#allocation9 + $0xf4] ss:$8 sps:$4 sm:$0xff]  }
 0x71f   : > { %v3851_v23 = vpop.xlane.xlu0 %3850  ;;  %vm5112_vm8 = vmpackc.low %vm3991_vm6, %vm3989_vm4 }
 0x720   : > { %v3852_v49 = vcvt.f32.s32 %v3851_v23  ;;  %5113 = vmatprep.subr.msk.bf16.mxu1 %vm5112_vm8, %v9334_v54  ;;  %vm5114_vm10 = vmpackc.low %vm3990_vm3, %vm3988_vm7  ;;  %vm4205_vm7 = vcmask 195584  }
 0x721   : > { %v3867_v11 = vpop.xlane.xlu1 %3866  ;;  %5115 = vmatpush1.bf16.xpose.msk.msra.mxu1 %vm5114_vm10, %v9334_v54 }
 0x722   : > { %v3855_v32 = vadd.s32 %v3854_v57, %v3852_v49  ;;  %v3868_v30 = vcvt.f32.s32 %v3867_v11 }
 0x724   : > { %v3932_v36 = vand.u32 65535, %v3855_v32  ;;  %v3871_v8 = vadd.s32 %v3870_v58, %v3868_v30 }
 0x726   : > { %v3933_v26 = vand.u32 65535, %v3871_v8  ;;  %vm3993_vm9 = vcmp.eq.s32.totalorder %v5872_v18, %v3932_v36  ;;  %vm3992_vm12 = vcmp.eq.s32.totalorder %v5870_v15, %v3932_v36 }
 0x727   : > { %v3883_v37 = vpop.xlane.xlu0 %3882 }
 0x728   : > { %vm3994_vm5 = vcmp.eq.s32.totalorder %v5870_v15, %v3933_v26  ;;  %vm3995_vm11 = vcmp.eq.s32.totalorder %v5872_v18, %v3933_v26  ;;  %v3884_v46 = vcvt.f32.s32 %v3883_v37 }
 0x729   : > { %v3899_v40 = vpop.xlane.xlu1 %3898  ;;  %vm5116_vm13 = vmpackc.low %vm3995_vm11, %vm3993_vm9 }
 0x72a   : > { %v3900_v56 = vcvt.f32.s32 %v3899_v40  ;;  %5117 = vmatprep.subr.msk.bf16.mxu1 %vm5116_vm13, %v9334_v54  ;;  %vm5118_vm14 = vmpackc.low %vm3994_vm5, %vm3992_vm12  ;;  %v3887_v59 = vadd.s32 %v3886_v28, %v3884_v46 }
 0x72b   : > { %5119 = vmatpush1.bf16.xpose.msk.msra.mxu1 %vm5118_vm14, %v9334_v54 }
 0x72c   : > { %v3903_v42 = vadd.s32 %v3902_v10, %v3900_v56  ;;  %v3934_v16 = vand.u32 65535, %v3887_v59 }
 0x72e   : > { %v3935_v2 = vand.u32 65535, %v3903_v42  ;;  %vm3996_vm15 = vcmp.eq.s32.totalorder %v5870_v15, %v3934_v16  ;;  %vm3997_vm4 = vcmp.eq.s32.totalorder %v5872_v18, %v3934_v16 }
 0x72f   : > { %v4267_v41 = vpop.permute.xlu0 %4266 }
 0x730   : > { %vm3998_vm1 = vcmp.eq.s32.totalorder %v5870_v15, %v3935_v2  ;;  %vm3999_vm2 = vcmp.eq.s32.totalorder %v5872_v18, %v3935_v2 }
 0x731   : > { %vm5122_vm3 = vmpackc.low %vm3998_vm1, %vm3996_vm15 }
 0x732   : > { %vm5120_vm6 = vmpackc.low %vm3999_vm2, %vm3997_vm4 }
 0x733   : > { %5121 = vmatprep.subr.msk.bf16.mxu1 %vm5120_vm6, %v9334_v54 }
 0x734   : > { %5123 = vmatpush1.bf16.xpose.msk.msra.mxu1 %vm5122_vm3, %v9334_v54  ;;  %v989_v54 = vld [vmem:[%s9036_s2] sm:$0xf] }
 0x73b   : > { %4193 = vmatmul.mubr.bf16.vlgmr.msra.gmra.mrb[72].mxu1 %v8575_v55  ;;  %v5385_v55 = vld [vmem:[#allocation9] ss:$8 sps:$4 sm:$0xff]  }
 0x80e   : > { %v4194_v53 = vpop.f32.mrb[72].mxu1 }
 0x80f   : > { %v4203_v33 = vpack.c.bf16 %v4194_v53, %v4194_v53  ;;  %v4196_v15 = vpop.f32.mrb[73].mxu1 }
 0x810   : > { %v4204_v52 = vpack.c.bf16 %v4196_v15, %v4196_v15  ;;  %v4198_v12 = vpop.f32.mrb[74].mxu1 }
 0x811   : > { %v4210_v18 = vsel %vm1124_vm0, %v4203_v33, 0  ;;  %v4199_v14 = vpop.f32.mrb[75].mxu1 }
 0x812   : > { %5124 = vmatprep.subr.msk.bf16.mxu0 %vm1124_vm0, %v4204_v52 }
 0x813   : > { %4218 = vmatpush1.bf16.msra.mxu0 %v4210_v18 }
 0x814   : > { %4465 = vmatprep.subr.bf16.mxu0 %v5387_v27 }
 0x816   : > { %5125 = vmatmul.mubr.msk.bf16.vlgmr.msra.gmra.mrb[12].mxu0 %vm4205_vm7, %v989_v54 }
 0x817   : > { %4466 = vmatpush1.bf16.msra.mxu0 %v5385_v55 }
 0x818   : > { %4467 = vmatprep.subr.bf16.mxu0 %v5390_v19 }
 0x81b   : > { %4468 = vmatpush1.bf16.msra.mxu0 %v5388_v61 }
 0x81c   : > { %4469 = vmatprep.subr.bf16.mxu0 %v5393_v9 }
 0x81f   : > { %4470 = vmatpush1.bf16.msra.mxu0 %v5391_v34 }
 0x820   : > { %4471 = vmatprep.subr.bf16.mxu0 %v5396_v45 }
 0x823   : > { %4472 = vmatpush1.bf16.msra.mxu0 %v5394_v22 }
 0x824   : > { %4473 = vmatprep.subr.bf16.mxu0 %v5399_v1 }
 0x827   : > { %4474 = vmatpush1.bf16.msra.mxu0 %v5397_v0 }
 0x828   : > { %4475 = vmatprep.subr.bf16.mxu0 %v5402_v17 }
 0x82b   : > { %4476 = vmatpush1.bf16.msra.mxu0 %v5400_v31 }
 0x82c   : > { %4477 = vmatprep.subr.bf16.mxu0 %v5405_v7 }
 0x82f   : > { %4478 = vmatpush1.bf16.msra.mxu0 %v5403_v5 }
 0x830   : > { %4479 = vmatprep.subr.bf16.mxu0 %v5408_v4 }
 0x833   : > { %4480 = vmatpush1.bf16.msra.mxu0 %v5406_v20 }
 0x834   : > { %4481 = vmatprep.subr.bf16.mxu0 %v5411_v62 }
 0x837   : > { %4482 = vmatpush1.bf16.msra.mxu0 %v5409_v35 }
 0x838   : > { %4483 = vmatprep.subr.bf16.mxu0 %v5414_v60 }
 0x83b   : > { %4484 = vmatpush1.bf16.msra.mxu0 %v5412_v39 }
 0x83c   : > { %4485 = vmatprep.subr.bf16.mxu0 %v5417_v25 }
 0x83f   : > { %4486 = vmatpush1.bf16.msra.mxu0 %v5415_v44 }
 0x840   : > { %4487 = vmatprep.subr.bf16.mxu0 %v5420_v38 }
 0x843   : > { %4488 = vmatpush1.bf16.msra.mxu0 %v5418_v29 }
 0x844   : > { %4489 = vmatprep.subr.bf16.mxu0 %v5423_v13 }
 0x847   : > { %4490 = vmatpush1.bf16.msra.mxu0 %v5421_v50 }
 0x848   : > { %4491 = vmatprep.subr.bf16.mxu0 %v5426_v21 }
 0x84b   : > { %4492 = vmatpush1.bf16.msra.mxu0 %v5424_v51 }
 0x84c   : > { %4493 = vmatprep.subr.bf16.mxu0 %v5429_v6 }
 0x84f   : > { %4494 = vmatpush1.bf16.msra.mxu0 %v5427_v24 }
 0x850   : > { %4495 = vmatprep.subr.bf16.mxu0 %v5432_v43 }
 0x853   : > { %4496 = vmatpush1.bf16.msra.mxu0 %v5430_v48 }
 0x8e9   : > { %v4249_v23 = vpop.f32.mrb[12].mxu0 }
 0x8ea   : > { %v4269_v57 = vadd.f32 %v4267_v41, %v4249_v23  ;;  %v4251_v49 = vpop.f32.mrb[13].mxu0 }
 0x8eb   : > { %v4270_v11 = vadd.f32 %v4267_v41, %v4251_v49  ;;  %v4253_v58 = vpop.f32.mrb[14].mxu0 }
 0x8ec   : > { %v4254_v32 = vpop.f32.mrb[15].mxu0  ;;  %v4271_v36 = vpack.c.bf16 %v4269_v57, %v4269_v57 }
 0x8ed   : > { %v4272_v30 = vpack.c.bf16 %v4270_v11, %v4270_v11 }
 0x8ef   : > { %4497 = vmatprep.mubr.bf16.mxu0 %v4272_v30 }
 0x8f0   : > { %4498 = vmatmul.mubr.bf16.vlgmr.msra.gmra.mrb[16].mxu0 %v4271_v36 }
 0x9c3   : > { %v4499_v8 = vpop.f32.mrb[16].mxu0 }
 0x9c4   : > { %4506 = vst [vmem:[%s269_s13] sm:$0xff] %v4499_v8  ;;  %v4501_v3 = vpop.f32.mrb[17].mxu0 }
 0x9c5   : > { %4507 = vst [vmem:[%s269_s13 + $0x8] sm:$0xff] %v4501_v3  ;;  %v4503_v47 = vpop.f32.mrb[18].mxu0 }
 0x9c6   : > { %v4504_v26 = vpop.f32.mrb[19].mxu0 }
 0x9c7   : > { %5540 = shalt.err (!%p5537_p2)
}
 0x9c8   : > { %s5541_s14 = scalar_lea.hbm %s8992_s9, 256  ;;  %s5545_s10 = scalar_lea.hbm %s9039_s5, 512 }
 0x9c9   : > { %p5542_p13 = scmp.ne.s32.totalorder %s8992_s9, %s5541_s14  ;;  %p5546_p4 = scmp.lt.u32.totalorder %s8992_s9, %s9039_s5 }
 0x9ca   : > { %p5547_p7 = scmp.lt.u32.totalorder %s5545_s10, %s5541_s14  ;;  %p5549_p8 = scmp.lt.u32.totalorder %s5541_s14, %s8992_s9 }
 0x9cb   : > { %p5543_p6 = pnand %p5542_p13, %p9724_p0 }
 0x9cc   : > { %p5548_p11 = por %p5547_p7, %p5546_p4 }
 0x9cd   : > { %p5544_p10 = pneg %p5543_p6 }
 0x9ce   : > { %p5550_p1 = por %p5549_p8, %p5548_p11 }
 0x9d0   : > { %p5551_p3 = pnand %p5550_p1, %p5544_p10 }
 0x9d2   : > { %5554 = shalt.err (!%p5551_p3)
}
 0x9d3   : > { %5175 = dma.vmem_to_hbm [thread:$0]  (%p9724_p0), %s8987_s7, 256, %s8992_s9, %s4509_s11  }
 0x9d4 PF: > { %s4535_s13 = sand.u32 1, %s5585_s18   ;;  %p9725_p5 = scmp.ne.s32.totalorder %s9206_s25, 0 }
 0x9d5   : > { %p9726_p9 = scmp.ge.s32.totalorder %s5597_s21, 2  ;;  %s4536_s6 = scalar_lea.sflag [#allocation6], %s4535_s13 }
 0x9d7   : > { %p5189_p12 = pnand %p9726_p9, %p9725_p5 }
 0x9d9   : > { %5580 = dma.done.wait (!%p5189_p12), %s4536_s6, 256  }
 0x9da   : > { %5582 = vsyncadd (!%p5189_p12), %s4536_s6, 4294967040  ;;  %p19_p2 = scmp.ge.s32.totalorder %s5749_s16, 4   ;;  %s9727_s18 = smov %s5589_s19 }
 0x9db   : > { %s9728_s19 = smov %s5593_s20  ;;  %s9729_s20 = smov %s5758_s27 }
 0x9dc   : > { %s9730_s21 = smov %s5749_s16  ;;  %21 = sbr.rel (!%p19_p2) target bundleno = 6 (0x6), region = 95 }
 0x9e3   :  { %4541 = vsyncpa [#allocation5], 1 }
 0x9e4   :  { %4543 = vsyncpa [#allocation5 + $0x1], 1 }
 0x9e5   :  { %4544 = vsyncpa [#allocation8], 1 }
 0x9e6   :  { %4545 = vsyncpa [#allocation6], 1 }
 0x9e7   :  { %4547 = vsyncpa [#allocation6 + $0x1], 1 }

</bundles_post_ra>
